<compile_context>
chip_gen: v6e
topology: v6e:2x2x1
jax: 0.10.0
libtpu: 0.0.40
codegen_flags: <defaults>
</compile_context>

<pallas_src>
import functools

import jax
import jax.numpy as jnp
from jax.experimental import pallas as pl
from jax.experimental.pallas import tpu as pltpu

_EPS = 1e-5  # PyTorch InstanceNorm2d default eps, affine=False


# ------------------------------ kernel helpers ----------------------------- #

def _reflect_border(pad_ref, h, w):
    """Fix up the 1-pixel reflection border of pad_ref (H+2, W+2, C) assuming
    the interior [1:h+1, 1:w+1] has already been written (PyTorch
    ReflectionPad2d(1) semantics; rows first, columns handle the corners)."""
    pad_ref[0:1, 1:w + 1, :] = pad_ref[2:3, 1:w + 1, :]          # top    <- row 1
    pad_ref[h + 1:h + 2, 1:w + 1, :] = pad_ref[h - 1:h, 1:w + 1, :]  # bottom <- row H-2
    pad_ref[:, 0:1, :] = pad_ref[:, 2:3, :]                      # left   <- col 1
    pad_ref[:, w + 1:w + 2, :] = pad_ref[:, w - 1:w, :]          # right  <- col W-2


def _conv3x3(pad_ref, w_ref, h, w, c, use_k9):
    """3x3 'VALID' conv over the padded scratch via im2col matmul(s).

    pad_ref: (H+2, W+2, C) scratch, MXU compute dtype (bf16 by default).
    w_ref:   (9*C, C) weights, rows ordered (dy, dx, cin), MXU compute dtype.
    Returns the raw (H*W, C) f32 conv output (no bias -- it cancels under the
    affine-free InstanceNorm that follows).
    """
    if use_k9:
        # Small shapes: one K=9C matmul -> accumulator written exactly once,
        # and the contraction dim stays reasonably dense even for tiny C.
        im = jnp.concatenate(
            [pad_ref[dy:dy + h, dx:dx + w, :]
             for dy in range(3) for dx in range(3)],
            axis=-1).reshape(h * w, 9 * c)
        return jnp.dot(im, w_ref[...], preferred_element_type=jnp.float32)

    # Larger shapes: K=3C per row offset (3 accumulator updates instead of 9)
    # keeps the im2col working set ~3x smaller (VMEM diet, matters on v7x).
    acc = None
    for dy in range(3):  # static unrolled
        row = pad_ref[dy:dy + h, :, :]                      # (H, W+2, C)
        im = jnp.concatenate([row[:, dx:dx + w, :] for dx in range(3)],
                             axis=-1).reshape(h * w, 3 * c)
        part = jnp.dot(im, w_ref[3 * c * dy:3 * c * (dy + 1), :],
                       preferred_element_type=jnp.float32)
        acc = part if acc is None else acc + part           # init from first dot
    return acc


def _instnorm_stats(acc):
    """Per-channel mean and 1/std of acc (M, C), single pass, f32.

    The column reductions run as (1, M) @ (M, C) MXU matmuls (sum and
    sum-of-squares) so they stay off the vld/vst-saturated vector path; f32
    operands keep them accurate.  Variance is clamped at 0 before rsqrt.
    """
    m = acc.shape[0]
    inv_m = 1.0 / m
    ones = jnp.ones((1, m), jnp.float32)
    s1 = jnp.dot(ones, acc, preferred_element_type=jnp.float32)          # (1, C)
    s2 = jnp.dot(ones, acc * acc, preferred_element_type=jnp.float32)    # (1, C)
    mean = s1 * inv_m
    var = jnp.maximum(s2 * inv_m - mean * mean, 0.0)
    return mean, jax.lax.rsqrt(var + _EPS)


# --------------------------------- kernel ---------------------------------- #

def resblock_kernel(x_ref, w1_ref, w2_ref, o_ref, pad_ref, *, use_k9):
    """Fused ResidualBlock for one batch element.

    x_ref:   (1, H, W, C) f32 input block
    w1_ref:  (9*C, C)     stage-1 conv weights (MXU compute dtype)
    w2_ref:  (9*C, C)     stage-2 conv weights (MXU compute dtype)
    o_ref:   (1, H, W, C) f32 output block
    pad_ref: (H+2, W+2, C) VMEM scratch in the MXU compute dtype, reused by
             both stages.
    """
    _, h, w, c = x_ref.shape
    cdt = pad_ref.dtype

    # Stage 1: ReflPad -> Conv3x3 -> InstanceNorm -> ReLU (all in VMEM).
    pad_ref[1:h + 1, 1:w + 1, :] = x_ref[0].astype(cdt)   # single cast of x
    _reflect_border(pad_ref, h, w)
    acc = _conv3x3(pad_ref, w1_ref, h, w, c, use_k9)      # (H*W, C) f32
    mean, inv_std = _instnorm_stats(acc)
    # Fused epilogue: normalize + ReLU + cast stored straight into the padded
    # scratch interior (no separate y1 materialization / second full copy).
    pad_ref[1:h + 1, 1:w + 1, :] = (
        jnp.maximum((acc - mean) * inv_std, 0.0).reshape(h, w, c).astype(cdt))
    _reflect_border(pad_ref, h, w)

    # Stage 2: ReflPad (already in scratch) -> Conv3x3 -> InstanceNorm.
    acc = _conv3x3(pad_ref, w2_ref, h, w, c, use_k9)      # (H*W, C) f32
    mean, inv_std = _instnorm_stats(acc)
    y2 = ((acc - mean) * inv_std).reshape(h, w, c)

    # Residual add: identity path re-read from the input ref, exact f32.
    o_ref[0] = (x_ref[0] + y2).astype(o_ref.dtype)


# --------------------------------- wrapper --------------------------------- #

def _vmem_limit_bytes(h, w, c, cbytes, use_k9):
    """Size the scoped-VMEM limit from the actual working set, with headroom,
    clamped to [32 MiB, 64 MiB] (64 MiB = v7x physical)."""
    io_block = h * w * c * 4                     # f32 in / out block
    weights = 2 * 9 * c * c * cbytes             # w1 + w2
    pad = (h + 2) * (w + 2) * c * cbytes
    k = 9 * c if use_k9 else 3 * c
    im2col = h * w * k * cbytes
    acc = h * w * c * 4
    est = 2 * 2 * io_block + 2 * weights + pad + im2col + 2 * acc + (2 << 20)
    return int(min(max(int(est * 1.25), 32 << 20), 64 << 20))


@functools.partial(jax.jit,
                   static_argnames=("compute_dtype", "single_buffer_weights"))
def _residual_block_impl(x_nchw, w1, w2, *, compute_dtype, single_buffer_weights):
    n, c, h, w = x_nchw.shape
    x = jnp.transpose(x_nchw, (0, 2, 3, 1)).astype(jnp.float32)   # NHWC
    # HWIO (3,3,Cin,Cout) -> (9*Cin, Cout); row order (dy, dx, cin) matches the
    # in-kernel im2col concatenation order.
    w1f = w1.reshape(9 * c, c).astype(compute_dtype)
    w2f = w2.reshape(9 * c, c).astype(compute_dtype)

    cbytes = jnp.dtype(compute_dtype).itemsize
    # Single K=9C matmul when the im2col buffer is small; per-dy K=3C otherwise.
    use_k9 = (h * w * 9 * c * cbytes) <= (8 << 20)

    # Weights are grid-invariant: single-buffer them when supported.
    wspec_kwargs = {}
    if single_buffer_weights:
        wspec_kwargs["pipeline_mode"] = pl.Buffered(1)
    w_spec = pl.BlockSpec((9 * c, c), lambda i: (0, 0), **wspec_kwargs)

    out = pl.pallas_call(
        functools.partial(resblock_kernel, use_k9=use_k9),
        out_shape=jax.ShapeDtypeStruct((n, h, w, c), jnp.float32),
        grid=(n,),
        in_specs=[
            pl.BlockSpec((1, h, w, c), lambda i: (i, 0, 0, 0)),
            w_spec,
            w_spec,
        ],
        out_specs=pl.BlockSpec((1, h, w, c), lambda i: (i, 0, 0, 0)),
        scratch_shapes=[pltpu.VMEM((h + 2, w + 2, c), compute_dtype)],
        compiler_params=pltpu.CompilerParams(
            dimension_semantics=("parallel",),
            vmem_limit_bytes=_vmem_limit_bytes(h, w, c, cbytes, use_k9)),
    )(x, w1f, w2f)
    return jnp.transpose(out, (0, 3, 1, 2))   # back to NCHW


def residual_block(x_nchw, w1, b1, w2, b2, *, compute_dtype=jnp.bfloat16):
    """Forward pass of ResidualBlock. Input/output are NCHW float32.

    w1, w2: (3, 3, Cin, Cout) HWIO conv weights.  b1, b2 are accepted for API
    parity with nn.Conv2d(bias=True) but are intentionally unused: a
    per-channel bias cancels exactly inside the affine-free InstanceNorm that
    follows each conv (validated against a reference that keeps the bias).
    """
    del b1, b2  # mathematically a no-op before InstanceNorm(affine=False)
    try:
        return _residual_block_impl(x_nchw, w1, w2, compute_dtype=compute_dtype,
                                    single_buffer_weights=True)
    except Exception:
        # Fallback for JAX builds where pipeline_mode=pl.Buffered(1) is not
        # accepted; identical math, weights just stay double-buffered.
        return _residual_block_impl(x_nchw, w1, w2, compute_dtype=compute_dtype,
                                    single_buffer_weights=False)


# ----------------------------- pure-JAX reference --------------------------- #

def ref_forward(x_nchw, w1, b1, w2, b2):
    """PyTorch-faithful f32 reference (keeps the conv bias)."""
    def conv(x, wgt, bias):
        xp = jnp.pad(x, ((0, 0), (0, 0), (1, 1), (1, 1)), mode="reflect")
        y = jax.lax.conv_general_dilated(
            xp, wgt, window_strides=(1, 1), padding="VALID",
            dimension_numbers=("NCHW", "HWIO", "NCHW"))
        return y + bias[None, :, None, None]

    def inorm(y):
        m = jnp.mean(y, axis=(2, 3), keepdims=True)
        v = jnp.mean(jnp.square(y - m), axis=(2, 3), keepdims=True)
        return (y - m) * jax.lax.rsqrt(v + _EPS)

    hmid = jnp.maximum(inorm(conv(x_nchw, w1, b1)), 0.0)
    return x_nchw + inorm(conv(hmid, w2, b2))


# ----------------------------------- main ----------------------------------- #

if __name__ == "__main__":
    key = jax.random.PRNGKey(0)
    kx, k1, k2, k3, k4 = jax.random.split(key, 5)

    N, C, H, W = 2, 4, 16, 16
    x = jax.random.normal(kx, (N, C, H, W), jnp.float32)
    # Deterministic synthetic parameters (Conv2d(in=C, out=C, kernel=3) x2).
    w1 = jax.random.normal(k1, (3, 3, C, C), jnp.float32) * 0.1
    b1 = jax.random.normal(k2, (C,), jnp.float32) * 0.1
    w2 = jax.random.normal(k3, (3, 3, C, C), jnp.float32) * 0.1
    b2 = jax.random.normal(k4, (C,), jnp.float32) * 0.1

    ref = jax.block_until_ready(ref_forward(x, w1, b1, w2, b2))

    # f32-MXU path: tight check vs. the PyTorch-faithful reference (also
    # validates that dropping the conv bias is exact under InstanceNorm).
    out_f32 = jax.block_until_ready(
        residual_block(x, w1, b1, w2, b2, compute_dtype=jnp.float32))
    assert out_f32.shape == x.shape and out_f32.dtype == jnp.float32
    if not jnp.allclose(out_f32, ref, atol=1e-3, rtol=1e-3):
        raise AssertionError("f32 Pallas kernel mismatch vs JAX reference")

    # Default bf16-MXU path (perf configuration): the only error source is
    # bf16 rounding of the conv operands; the residual/identity path is exact.
    out = jax.block_until_ready(residual_block(x, w1, b1, w2, b2))
    assert out.shape == x.shape and out.dtype == jnp.float32
    if not jnp.allclose(out, ref, atol=5e-2, rtol=5e-2):
        raise AssertionError("bf16 Pallas kernel mismatch vs JAX reference")

    print("KERNEL_OK")
</pallas_src>

<mosaic_0001>
module attributes {stable_mosaic.version = 11 : i64} {
  func.func @resblock_kernel(%arg0: i32, %arg1: memref<1x16x16x4xf32, #tpu.memory_space<vmem>>, %arg2: memref<36x4xf32, #tpu.memory_space<vmem>>, %arg3: memref<36x4xf32, #tpu.memory_space<vmem>>, %arg4: memref<1x16x16x4xf32, #tpu.memory_space<vmem>>, %arg5: memref<18x18x4xf32, #tpu.memory_space<vmem>>) attributes {dimension_semantics = [#tpu.dimension_semantics<parallel>], iteration_bounds = array<i64: 2>, scalar_prefetch = 0 : i64, scratch_operands = 1 : i64, tpu.core_type = #tpu.core_type<tc>, window_params = [{transform_indices = @transform_0, window_bounds = array<i64: 1, 16, 16, 4>}, {pipeline_mode = #tpu.pipeline_mode<synchronous>, transform_indices = @transform_1, window_bounds = array<i64: 36, 4>}, {pipeline_mode = #tpu.pipeline_mode<synchronous>, transform_indices = @transform_2, window_bounds = array<i64: 36, 4>}, {transform_indices = @transform_3, window_bounds = array<i64: 1, 16, 16, 4>}]} {
    %c0 = arith.constant 0 : index
    %c0_0 = arith.constant 0 : index
    %c0_1 = arith.constant 0 : index
    %c0_2 = arith.constant 0 : index
    %0 = vector.load %arg1[%c0, %c0_0, %c0_1, %c0_2] : memref<1x16x16x4xf32, #tpu.memory_space<vmem>>, vector<1x16x16x4xf32>
    %1 = vector.shape_cast %0 : vector<1x16x16x4xf32> to vector<16x16x4xf32>
    %c1 = arith.constant 1 : index
    %c1_3 = arith.constant 1 : index
    %c0_4 = arith.constant 0 : index
    %2 = vector.load %arg5[%c1, %c1_3, %c0_4] : memref<18x18x4xf32, #tpu.memory_space<vmem>>, vector<16x16x4xf32>
    tpu.vector_store %arg5[%c1, %c1_3, %c0_4], %1 {strides = array<i32>} : memref<18x18x4xf32, #tpu.memory_space<vmem>>, vector<16x16x4xf32>,
    %c2 = arith.constant 2 : index
    %c1_5 = arith.constant 1 : index
    %c0_6 = arith.constant 0 : index
    %3 = vector.load %arg5[%c2, %c1_5, %c0_6] : memref<18x18x4xf32, #tpu.memory_space<vmem>>, vector<1x16x4xf32>
    %c0_7 = arith.constant 0 : index
    %c1_8 = arith.constant 1 : index
    %c0_9 = arith.constant 0 : index
    %4 = vector.load %arg5[%c0_7, %c1_8, %c0_9] : memref<18x18x4xf32, #tpu.memory_space<vmem>>, vector<1x16x4xf32>
    tpu.vector_store %arg5[%c0_7, %c1_8, %c0_9], %3 {strides = array<i32>} : memref<18x18x4xf32, #tpu.memory_space<vmem>>, vector<1x16x4xf32>,
    %c15 = arith.constant 15 : index
    %c1_10 = arith.constant 1 : index
    %c0_11 = arith.constant 0 : index
    %5 = vector.load %arg5[%c15, %c1_10, %c0_11] : memref<18x18x4xf32, #tpu.memory_space<vmem>>, vector<1x16x4xf32>
    %c17 = arith.constant 17 : index
    %c1_12 = arith.constant 1 : index
    %c0_13 = arith.constant 0 : index
    %6 = vector.load %arg5[%c17, %c1_12, %c0_13] : memref<18x18x4xf32, #tpu.memory_space<vmem>>, vector<1x16x4xf32>
    tpu.vector_store %arg5[%c17, %c1_12, %c0_13], %5 {strides = array<i32>} : memref<18x18x4xf32, #tpu.memory_space<vmem>>, vector<1x16x4xf32>,
    %c0_14 = arith.constant 0 : index
    %c2_15 = arith.constant 2 : index
    %c0_16 = arith.constant 0 : index
    %7 = vector.load %arg5[%c0_14, %c2_15, %c0_16] : memref<18x18x4xf32, #tpu.memory_space<vmem>>, vector<18x1x4xf32>
    %c0_17 = arith.constant 0 : index
    %c0_18 = arith.constant 0 : index
    %c0_19 = arith.constant 0 : index
    %8 = vector.load %arg5[%c0_17, %c0_18, %c0_19] : memref<18x18x4xf32, #tpu.memory_space<vmem>>, vector<18x1x4xf32>
    tpu.vector_store %arg5[%c0_17, %c0_18, %c0_19], %7 {strides = array<i32>} : memref<18x18x4xf32, #tpu.memory_space<vmem>>, vector<18x1x4xf32>,
    %c0_20 = arith.constant 0 : index
    %c15_21 = arith.constant 15 : index
    %c0_22 = arith.constant 0 : index
    %9 = vector.load %arg5[%c0_20, %c15_21, %c0_22] : memref<18x18x4xf32, #tpu.memory_space<vmem>>, vector<18x1x4xf32>
    %c0_23 = arith.constant 0 : index
    %c17_24 = arith.constant 17 : index
    %c0_25 = arith.constant 0 : index
    %10 = vector.load %arg5[%c0_23, %c17_24, %c0_25] : memref<18x18x4xf32, #tpu.memory_space<vmem>>, vector<18x1x4xf32>
    tpu.vector_store %arg5[%c0_23, %c17_24, %c0_25], %9 {strides = array<i32>} : memref<18x18x4xf32, #tpu.memory_space<vmem>>, vector<18x1x4xf32>,
    %c0_26 = arith.constant 0 : index
    %c0_27 = arith.constant 0 : index
    %c0_28 = arith.constant 0 : index
    %11 = vector.load %arg5[%c0_26, %c0_27, %c0_28] : memref<18x18x4xf32, #tpu.memory_space<vmem>>, vector<16x16x4xf32>
    %c0_29 = arith.constant 0 : index
    %c1_30 = arith.constant 1 : index
    %c0_31 = arith.constant 0 : index
    %12 = vector.load %arg5[%c0_29, %c1_30, %c0_31] : memref<18x18x4xf32, #tpu.memory_space<vmem>>, vector<16x16x4xf32>
    %c0_32 = arith.constant 0 : index
    %c2_33 = arith.constant 2 : index
    %c0_34 = arith.constant 0 : index
    %13 = vector.load %arg5[%c0_32, %c2_33, %c0_34] : memref<18x18x4xf32, #tpu.memory_space<vmem>>, vector<16x16x4xf32>
    %c1_35 = arith.constant 1 : index
    %c0_36 = arith.constant 0 : index
    %c0_37 = arith.constant 0 : index
    %14 = vector.load %arg5[%c1_35, %c0_36, %c0_37] : memref<18x18x4xf32, #tpu.memory_space<vmem>>, vector<16x16x4xf32>
    %c1_38 = arith.constant 1 : index
    %c1_39 = arith.constant 1 : index
    %c0_40 = arith.constant 0 : index
    %15 = vector.load %arg5[%c1_38, %c1_39, %c0_40] : memref<18x18x4xf32, #tpu.memory_space<vmem>>, vector<16x16x4xf32>
    %c1_41 = arith.constant 1 : index
    %c2_42 = arith.constant 2 : index
    %c0_43 = arith.constant 0 : index
    %16 = vector.load %arg5[%c1_41, %c2_42, %c0_43] : memref<18x18x4xf32, #tpu.memory_space<vmem>>, vector<16x16x4xf32>
    %c2_44 = arith.constant 2 : index
    %c0_45 = arith.constant 0 : index
    %c0_46 = arith.constant 0 : index
    %17 = vector.load %arg5[%c2_44, %c0_45, %c0_46] : memref<18x18x4xf32, #tpu.memory_space<vmem>>, vector<16x16x4xf32>
    %c2_47 = arith.constant 2 : index
    %c1_48 = arith.constant 1 : index
    %c0_49 = arith.constant 0 : index
    %18 = vector.load %arg5[%c2_47, %c1_48, %c0_49] : memref<18x18x4xf32, #tpu.memory_space<vmem>>, vector<16x16x4xf32>
    %c2_50 = arith.constant 2 : index
    %c2_51 = arith.constant 2 : index
    %c0_52 = arith.constant 0 : index
    %19 = vector.load %arg5[%c2_50, %c2_51, %c0_52] : memref<18x18x4xf32, #tpu.memory_space<vmem>>, vector<16x16x4xf32>
    %20 = tpu.concatenate %11, %12, %13, %14, %15, %16, %17, %18, %19 in 2 : vector<16x16x4xf32>, vector<16x16x4xf32>, vector<16x16x4xf32>, vector<16x16x4xf32>, vector<16x16x4xf32>, vector<16x16x4xf32>, vector<16x16x4xf32>, vector<16x16x4xf32>, vector<16x16x4xf32> -> vector<16x16x36xf32>
    %21 = vector.shape_cast %20 : vector<16x16x36xf32> to vector<256x36xf32>
    %c0_53 = arith.constant 0 : index
    %c0_54 = arith.constant 0 : index
    %22 = vector.load %arg2[%c0_53, %c0_54] : memref<36x4xf32, #tpu.memory_space<vmem>>, vector<36x4xf32>
    %cst = arith.constant dense<0.000000e+00> : vector<256x4xf32>
    %23 = tpu.matmul %21, %22, %cst {dimension_numbers = #tpu.dot_dimension_numbers<[1], [0], [0], [1], [0, 0, 1, 1], [], []>} : vector<256x36xf32>, vector<36x4xf32>, vector<256x4xf32> -> vector<256x4xf32>
    %cst_55 = arith.constant 1.000000e+00 : f32
    %24 = vector.broadcast %cst_55 : f32 to vector<1x256xf32>
    %cst_56 = arith.constant dense<0.000000e+00> : vector<1x4xf32>
    %25 = tpu.matmul %24, %23, %cst_56 {dimension_numbers = #tpu.dot_dimension_numbers<[1], [0], [0], [1], [0, 0, 1, 1], [], []>} : vector<1x256xf32>, vector<256x4xf32>, vector<1x4xf32> -> vector<1x4xf32>
    %26 = arith.mulf %23, %23 : vector<256x4xf32>
    %cst_57 = arith.constant dense<0.000000e+00> : vector<1x4xf32>
    %27 = tpu.matmul %24, %26, %cst_57 {dimension_numbers = #tpu.dot_dimension_numbers<[1], [0], [0], [1], [0, 0, 1, 1], [], []>} : vector<1x256xf32>, vector<256x4xf32>, vector<1x4xf32> -> vector<1x4xf32>
    %cst_58 = arith.constant 3.906250e-03 : f32
    %28 = vector.broadcast %cst_58 : f32 to vector<1x4xf32>
    %29 = arith.mulf %25, %28 : vector<1x4xf32>
    %cst_59 = arith.constant 3.906250e-03 : f32
    %30 = vector.broadcast %cst_59 : f32 to vector<1x4xf32>
    %31 = arith.mulf %27, %30 : vector<1x4xf32>
    %32 = arith.mulf %29, %29 : vector<1x4xf32>
    %33 = arith.subf %31, %32 : vector<1x4xf32>
    %cst_60 = arith.constant 0.000000e+00 : f32
    %34 = vector.broadcast %cst_60 : f32 to vector<1x4xf32>
    %35 = arith.maximumf %33, %34 : vector<1x4xf32>
    %cst_61 = arith.constant 9.99999974E-6 : f32
    %36 = vector.broadcast %cst_61 : f32 to vector<1x4xf32>
    %37 = arith.addf %35, %36 : vector<1x4xf32>
    %38 = math.rsqrt %37 : vector<1x4xf32>
    %39 = vector.broadcast %29 : vector<1x4xf32> to vector<256x4xf32>
    %40 = arith.subf %23, %39 : vector<256x4xf32>
    %41 = vector.broadcast %38 : vector<1x4xf32> to vector<256x4xf32>
    %42 = arith.mulf %40, %41 : vector<256x4xf32>
    %cst_62 = arith.constant 0.000000e+00 : f32
    %43 = vector.broadcast %cst_62 : f32 to vector<256x4xf32>
    %44 = arith.maximumf %42, %43 : vector<256x4xf32>
    %45 = vector.shape_cast %44 : vector<256x4xf32> to vector<16x16x4xf32>
    %c1_63 = arith.constant 1 : index
    %c1_64 = arith.constant 1 : index
    %c0_65 = arith.constant 0 : index
    %46 = vector.load %arg5[%c1_63, %c1_64, %c0_65] : memref<18x18x4xf32, #tpu.memory_space<vmem>>, vector<16x16x4xf32>
    tpu.vector_store %arg5[%c1_63, %c1_64, %c0_65], %45 {strides = array<i32>} : memref<18x18x4xf32, #tpu.memory_space<vmem>>, vector<16x16x4xf32>,
    %c2_66 = arith.constant 2 : index
    %c1_67 = arith.constant 1 : index
    %c0_68 = arith.constant 0 : index
    %47 = vector.load %arg5[%c2_66, %c1_67, %c0_68] : memref<18x18x4xf32, #tpu.memory_space<vmem>>, vector<1x16x4xf32>
    %c0_69 = arith.constant 0 : index
    %c1_70 = arith.constant 1 : index
    %c0_71 = arith.constant 0 : index
    %48 = vector.load %arg5[%c0_69, %c1_70, %c0_71] : memref<18x18x4xf32, #tpu.memory_space<vmem>>, vector<1x16x4xf32>
    tpu.vector_store %arg5[%c0_69, %c1_70, %c0_71], %47 {strides = array<i32>} : memref<18x18x4xf32, #tpu.memory_space<vmem>>, vector<1x16x4xf32>,
    %c15_72 = arith.constant 15 : index
    %c1_73 = arith.constant 1 : index
    %c0_74 = arith.constant 0 : index
    %49 = vector.load %arg5[%c15_72, %c1_73, %c0_74] : memref<18x18x4xf32, #tpu.memory_space<vmem>>, vector<1x16x4xf32>
    %c17_75 = arith.constant 17 : index
    %c1_76 = arith.constant 1 : index
    %c0_77 = arith.constant 0 : index
    %50 = vector.load %arg5[%c17_75, %c1_76, %c0_77] : memref<18x18x4xf32, #tpu.memory_space<vmem>>, vector<1x16x4xf32>
    tpu.vector_store %arg5[%c17_75, %c1_76, %c0_77], %49 {strides = array<i32>} : memref<18x18x4xf32, #tpu.memory_space<vmem>>, vector<1x16x4xf32>,
    %c0_78 = arith.constant 0 : index
    %c2_79 = arith.constant 2 : index
    %c0_80 = arith.constant 0 : index
    %51 = vector.load %arg5[%c0_78, %c2_79, %c0_80] : memref<18x18x4xf32, #tpu.memory_space<vmem>>, vector<18x1x4xf32>
    %c0_81 = arith.constant 0 : index
    %c0_82 = arith.constant 0 : index
    %c0_83 = arith.constant 0 : index
    %52 = vector.load %arg5[%c0_81, %c0_82, %c0_83] : memref<18x18x4xf32, #tpu.memory_space<vmem>>, vector<18x1x4xf32>
    tpu.vector_store %arg5[%c0_81, %c0_82, %c0_83], %51 {strides = array<i32>} : memref<18x18x4xf32, #tpu.memory_space<vmem>>, vector<18x1x4xf32>,
    %c0_84 = arith.constant 0 : index
    %c15_85 = arith.constant 15 : index
    %c0_86 = arith.constant 0 : index
    %53 = vector.load %arg5[%c0_84, %c15_85, %c0_86] : memref<18x18x4xf32, #tpu.memory_space<vmem>>, vector<18x1x4xf32>
    %c0_87 = arith.constant 0 : index
    %c17_88 = arith.constant 17 : index
    %c0_89 = arith.constant 0 : index
    %54 = vector.load %arg5[%c0_87, %c17_88, %c0_89] : memref<18x18x4xf32, #tpu.memory_space<vmem>>, vector<18x1x4xf32>
    tpu.vector_store %arg5[%c0_87, %c17_88, %c0_89], %53 {strides = array<i32>} : memref<18x18x4xf32, #tpu.memory_space<vmem>>, vector<18x1x4xf32>,
    %c0_90 = arith.constant 0 : index
    %c0_91 = arith.constant 0 : index
    %c0_92 = arith.constant 0 : index
    %55 = vector.load %arg5[%c0_90, %c0_91, %c0_92] : memref<18x18x4xf32, #tpu.memory_space<vmem>>, vector<16x16x4xf32>
    %c0_93 = arith.constant 0 : index
    %c1_94 = arith.constant 1 : index
    %c0_95 = arith.constant 0 : index
    %56 = vector.load %arg5[%c0_93, %c1_94, %c0_95] : memref<18x18x4xf32, #tpu.memory_space<vmem>>, vector<16x16x4xf32>
    %c0_96 = arith.constant 0 : index
    %c2_97 = arith.constant 2 : index
    %c0_98 = arith.constant 0 : index
    %57 = vector.load %arg5[%c0_96, %c2_97, %c0_98] : memref<18x18x4xf32, #tpu.memory_space<vmem>>, vector<16x16x4xf32>
    %c1_99 = arith.constant 1 : index
    %c0_100 = arith.constant 0 : index
    %c0_101 = arith.constant 0 : index
    %58 = vector.load %arg5[%c1_99, %c0_100, %c0_101] : memref<18x18x4xf32, #tpu.memory_space<vmem>>, vector<16x16x4xf32>
    %c1_102 = arith.constant 1 : index
    %c1_103 = arith.constant 1 : index
    %c0_104 = arith.constant 0 : index
    %59 = vector.load %arg5[%c1_102, %c1_103, %c0_104] : memref<18x18x4xf32, #tpu.memory_space<vmem>>, vector<16x16x4xf32>
    %c1_105 = arith.constant 1 : index
    %c2_106 = arith.constant 2 : index
    %c0_107 = arith.constant 0 : index
    %60 = vector.load %arg5[%c1_105, %c2_106, %c0_107] : memref<18x18x4xf32, #tpu.memory_space<vmem>>, vector<16x16x4xf32>
    %c2_108 = arith.constant 2 : index
    %c0_109 = arith.constant 0 : index
    %c0_110 = arith.constant 0 : index
    %61 = vector.load %arg5[%c2_108, %c0_109, %c0_110] : memref<18x18x4xf32, #tpu.memory_space<vmem>>, vector<16x16x4xf32>
    %c2_111 = arith.constant 2 : index
    %c1_112 = arith.constant 1 : index
    %c0_113 = arith.constant 0 : index
    %62 = vector.load %arg5[%c2_111, %c1_112, %c0_113] : memref<18x18x4xf32, #tpu.memory_space<vmem>>, vector<16x16x4xf32>
    %c2_114 = arith.constant 2 : index
    %c2_115 = arith.constant 2 : index
    %c0_116 = arith.constant 0 : index
    %63 = vector.load %arg5[%c2_114, %c2_115, %c0_116] : memref<18x18x4xf32, #tpu.memory_space<vmem>>, vector<16x16x4xf32>
    %64 = tpu.concatenate %55, %56, %57, %58, %59, %60, %61, %62, %63 in 2 : vector<16x16x4xf32>, vector<16x16x4xf32>, vector<16x16x4xf32>, vector<16x16x4xf32>, vector<16x16x4xf32>, vector<16x16x4xf32>, vector<16x16x4xf32>, vector<16x16x4xf32>, vector<16x16x4xf32> -> vector<16x16x36xf32>
    %65 = vector.shape_cast %64 : vector<16x16x36xf32> to vector<256x36xf32>
    %c0_117 = arith.constant 0 : index
    %c0_118 = arith.constant 0 : index
    %66 = vector.load %arg3[%c0_117, %c0_118] : memref<36x4xf32, #tpu.memory_space<vmem>>, vector<36x4xf32>
    %cst_119 = arith.constant dense<0.000000e+00> : vector<256x4xf32>
    %67 = tpu.matmul %65, %66, %cst_119 {dimension_numbers = #tpu.dot_dimension_numbers<[1], [0], [0], [1], [0, 0, 1, 1], [], []>} : vector<256x36xf32>, vector<36x4xf32>, vector<256x4xf32> -> vector<256x4xf32>
    %cst_120 = arith.constant 1.000000e+00 : f32
    %68 = vector.broadcast %cst_120 : f32 to vector<1x256xf32>
    %cst_121 = arith.constant dense<0.000000e+00> : vector<1x4xf32>
    %69 = tpu.matmul %68, %67, %cst_121 {dimension_numbers = #tpu.dot_dimension_numbers<[1], [0], [0], [1], [0, 0, 1, 1], [], []>} : vector<1x256xf32>, vector<256x4xf32>, vector<1x4xf32> -> vector<1x4xf32>
    %70 = arith.mulf %67, %67 : vector<256x4xf32>
    %cst_122 = arith.constant dense<0.000000e+00> : vector<1x4xf32>
    %71 = tpu.matmul %68, %70, %cst_122 {dimension_numbers = #tpu.dot_dimension_numbers<[1], [0], [0], [1], [0, 0, 1, 1], [], []>} : vector<1x256xf32>, vector<256x4xf32>, vector<1x4xf32> -> vector<1x4xf32>
    %cst_123 = arith.constant 3.906250e-03 : f32
    %72 = vector.broadcast %cst_123 : f32 to vector<1x4xf32>
    %73 = arith.mulf %69, %72 : vector<1x4xf32>
    %cst_124 = arith.constant 3.906250e-03 : f32
    %74 = vector.broadcast %cst_124 : f32 to vector<1x4xf32>
    %75 = arith.mulf %71, %74 : vector<1x4xf32>
    %76 = arith.mulf %73, %73 : vector<1x4xf32>
    %77 = arith.subf %75, %76 : vector<1x4xf32>
    %cst_125 = arith.constant 0.000000e+00 : f32
    %78 = vector.broadcast %cst_125 : f32 to vector<1x4xf32>
    %79 = arith.maximumf %77, %78 : vector<1x4xf32>
    %cst_126 = arith.constant 9.99999974E-6 : f32
    %80 = vector.broadcast %cst_126 : f32 to vector<1x4xf32>
    %81 = arith.addf %79, %80 : vector<1x4xf32>
    %82 = math.rsqrt %81 : vector<1x4xf32>
    %83 = vector.broadcast %73 : vector<1x4xf32> to vector<256x4xf32>
    %84 = arith.subf %67, %83 : vector<256x4xf32>
    %85 = vector.broadcast %82 : vector<1x4xf32> to vector<256x4xf32>
    %86 = arith.mulf %84, %85 : vector<256x4xf32>
    %87 = vector.shape_cast %86 : vector<256x4xf32> to vector<16x16x4xf32>
    %c0_127 = arith.constant 0 : index
    %c0_128 = arith.constant 0 : index
    %c0_129 = arith.constant 0 : index
    %c0_130 = arith.constant 0 : index
    %88 = vector.load %arg1[%c0_127, %c0_128, %c0_129, %c0_130] : memref<1x16x16x4xf32, #tpu.memory_space<vmem>>, vector<1x16x16x4xf32>
    %89 = vector.shape_cast %88 : vector<1x16x16x4xf32> to vector<16x16x4xf32>
    %90 = arith.addf %89, %87 : vector<16x16x4xf32>
    %c0_131 = arith.constant 0 : index
    %c0_132 = arith.constant 0 : index
    %c0_133 = arith.constant 0 : index
    %c0_134 = arith.constant 0 : index
    %91 = vector.load %arg4[%c0_131, %c0_132, %c0_133, %c0_134] : memref<1x16x16x4xf32, #tpu.memory_space<vmem>>, vector<1x16x16x4xf32>
    %92 = vector.shape_cast %91 : vector<1x16x16x4xf32> to vector<16x16x4xf32>
    %93 = vector.shape_cast %90 : vector<16x16x4xf32> to vector<1x16x16x4xf32>
    tpu.vector_store %arg4[%c0_131, %c0_132, %c0_133, %c0_134], %93 {strides = array<i32>} : memref<1x16x16x4xf32, #tpu.memory_space<vmem>>, vector<1x16x16x4xf32>,
    return
  }
  func.func @transform_0(%arg0: i32) -> (i32, i32, i32, i32) {
    %c0_i32 = arith.constant 0 : i32
    %c0_i32_0 = arith.constant 0 : i32
    %c0_i32_1 = arith.constant 0 : i32
    %c0_i32_2 = arith.constant 0 : i32
    return %arg0, %c0_i32, %c0_i32_0, %c0_i32_1 : i32, i32, i32, i32
  }
  func.func @transform_1(%arg0: i32) -> (i32, i32) {
    %c0_i32 = arith.constant 0 : i32
    %c0_i32_0 = arith.constant 0 : i32
    %c0_i32_1 = arith.constant 0 : i32
    return %c0_i32, %c0_i32_0 : i32, i32
  }
  func.func @transform_2(%arg0: i32) -> (i32, i32) {
    %c0_i32 = arith.constant 0 : i32
    %c0_i32_0 = arith.constant 0 : i32
    %c0_i32_1 = arith.constant 0 : i32
    return %c0_i32, %c0_i32_0 : i32, i32
  }
  func.func @transform_3(%arg0: i32) -> (i32, i32, i32, i32) {
    %c0_i32 = arith.constant 0 : i32
    %c0_i32_0 = arith.constant 0 : i32
    %c0_i32_1 = arith.constant 0 : i32
    %c0_i32_2 = arith.constant 0 : i32
    return %arg0, %c0_i32, %c0_i32_0, %c0_i32_1 : i32, i32, i32, i32
  }
}

module attributes {stable_mosaic.version = 11 : i64} {
  func.func @resblock_kernel(%arg0: i32, %arg1: memref<1x16x16x4xf32, #tpu.memory_space<vmem>>, %arg2: memref<36x4xf32, #tpu.memory_space<vmem>>, %arg3: memref<36x4xf32, #tpu.memory_space<vmem>>, %arg4: memref<1x16x16x4xf32, #tpu.memory_space<vmem>>, %arg5: memref<18x18x4xf32, #tpu.memory_space<vmem>>) attributes {dimension_semantics = [#tpu.dimension_semantics<parallel>], iteration_bounds = array<i64: 2>, scalar_prefetch = 0 : i64, scratch_operands = 1 : i64, tpu.core_type = #tpu.core_type<tc>, window_params = [{transform_indices = @transform_0, window_bounds = array<i64: 1, 16, 16, 4>}, {pipeline_mode = #tpu.pipeline_mode<synchronous>, transform_indices = @transform_1, window_bounds = array<i64: 36, 4>}, {pipeline_mode = #tpu.pipeline_mode<synchronous>, transform_indices = @transform_2, window_bounds = array<i64: 36, 4>}, {transform_indices = @transform_3, window_bounds = array<i64: 1, 16, 16, 4>}]} {
    %c0 = arith.constant 0 : index
    %c0_0 = arith.constant 0 : index
    %c0_1 = arith.constant 0 : index
    %c0_2 = arith.constant 0 : index
    %0 = vector.load %arg1[%c0, %c0_0, %c0_1, %c0_2] : memref<1x16x16x4xf32, #tpu.memory_space<vmem>>, vector<1x16x16x4xf32>
    %1 = vector.shape_cast %0 : vector<1x16x16x4xf32> to vector<16x16x4xf32>
    %c1 = arith.constant 1 : index
    %c1_3 = arith.constant 1 : index
    %c0_4 = arith.constant 0 : index
    %2 = vector.load %arg5[%c1, %c1_3, %c0_4] : memref<18x18x4xf32, #tpu.memory_space<vmem>>, vector<16x16x4xf32>
    tpu.vector_store %arg5[%c1, %c1_3, %c0_4], %1 {strides = array<i32>} : memref<18x18x4xf32, #tpu.memory_space<vmem>>, vector<16x16x4xf32>,
    %c2 = arith.constant 2 : index
    %c1_5 = arith.constant 1 : index
    %c0_6 = arith.constant 0 : index
    %3 = vector.load %arg5[%c2, %c1_5, %c0_6] : memref<18x18x4xf32, #tpu.memory_space<vmem>>, vector<1x16x4xf32>
    %c0_7 = arith.constant 0 : index
    %c1_8 = arith.constant 1 : index
    %c0_9 = arith.constant 0 : index
    %4 = vector.load %arg5[%c0_7, %c1_8, %c0_9] : memref<18x18x4xf32, #tpu.memory_space<vmem>>, vector<1x16x4xf32>
    tpu.vector_store %arg5[%c0_7, %c1_8, %c0_9], %3 {strides = array<i32>} : memref<18x18x4xf32, #tpu.memory_space<vmem>>, vector<1x16x4xf32>,
    %c15 = arith.constant 15 : index
    %c1_10 = arith.constant 1 : index
    %c0_11 = arith.constant 0 : index
    %5 = vector.load %arg5[%c15, %c1_10, %c0_11] : memref<18x18x4xf32, #tpu.memory_space<vmem>>, vector<1x16x4xf32>
    %c17 = arith.constant 17 : index
    %c1_12 = arith.constant 1 : index
    %c0_13 = arith.constant 0 : index
    %6 = vector.load %arg5[%c17, %c1_12, %c0_13] : memref<18x18x4xf32, #tpu.memory_space<vmem>>, vector<1x16x4xf32>
    tpu.vector_store %arg5[%c17, %c1_12, %c0_13], %5 {strides = array<i32>} : memref<18x18x4xf32, #tpu.memory_space<vmem>>, vector<1x16x4xf32>,
    %c0_14 = arith.constant 0 : index
    %c2_15 = arith.constant 2 : index
    %c0_16 = arith.constant 0 : index
    %7 = vector.load %arg5[%c0_14, %c2_15, %c0_16] : memref<18x18x4xf32, #tpu.memory_space<vmem>>, vector<18x1x4xf32>
    %c0_17 = arith.constant 0 : index
    %c0_18 = arith.constant 0 : index
    %c0_19 = arith.constant 0 : index
    %8 = vector.load %arg5[%c0_17, %c0_18, %c0_19] : memref<18x18x4xf32, #tpu.memory_space<vmem>>, vector<18x1x4xf32>
    tpu.vector_store %arg5[%c0_17, %c0_18, %c0_19], %7 {strides = array<i32>} : memref<18x18x4xf32, #tpu.memory_space<vmem>>, vector<18x1x4xf32>,
    %c0_20 = arith.constant 0 : index
    %c15_21 = arith.constant 15 : index
    %c0_22 = arith.constant 0 : index
    %9 = vector.load %arg5[%c0_20, %c15_21, %c0_22] : memref<18x18x4xf32, #tpu.memory_space<vmem>>, vector<18x1x4xf32>
    %c0_23 = arith.constant 0 : index
    %c17_24 = arith.constant 17 : index
    %c0_25 = arith.constant 0 : index
    %10 = vector.load %arg5[%c0_23, %c17_24, %c0_25] : memref<18x18x4xf32, #tpu.memory_space<vmem>>, vector<18x1x4xf32>
    tpu.vector_store %arg5[%c0_23, %c17_24, %c0_25], %9 {strides = array<i32>} : memref<18x18x4xf32, #tpu.memory_space<vmem>>, vector<18x1x4xf32>,
    %c0_26 = arith.constant 0 : index
    %c0_27 = arith.constant 0 : index
    %c0_28 = arith.constant 0 : index
    %11 = vector.load %arg5[%c0_26, %c0_27, %c0_28] : memref<18x18x4xf32, #tpu.memory_space<vmem>>, vector<16x16x4xf32>
    %c0_29 = arith.constant 0 : index
    %c1_30 = arith.constant 1 : index
    %c0_31 = arith.constant 0 : index
    %12 = vector.load %arg5[%c0_29, %c1_30, %c0_31] : memref<18x18x4xf32, #tpu.memory_space<vmem>>, vector<16x16x4xf32>
    %c0_32 = arith.constant 0 : index
    %c2_33 = arith.constant 2 : index
    %c0_34 = arith.constant 0 : index
    %13 = vector.load %arg5[%c0_32, %c2_33, %c0_34] : memref<18x18x4xf32, #tpu.memory_space<vmem>>, vector<16x16x4xf32>
    %c1_35 = arith.constant 1 : index
    %c0_36 = arith.constant 0 : index
    %c0_37 = arith.constant 0 : index
    %14 = vector.load %arg5[%c1_35, %c0_36, %c0_37] : memref<18x18x4xf32, #tpu.memory_space<vmem>>, vector<16x16x4xf32>
    %c1_38 = arith.constant 1 : index
    %c1_39 = arith.constant 1 : index
    %c0_40 = arith.constant 0 : index
    %15 = vector.load %arg5[%c1_38, %c1_39, %c0_40] : memref<18x18x4xf32, #tpu.memory_space<vmem>>, vector<16x16x4xf32>
    %c1_41 = arith.constant 1 : index
    %c2_42 = arith.constant 2 : index
    %c0_43 = arith.constant 0 : index
    %16 = vector.load %arg5[%c1_41, %c2_42, %c0_43] : memref<18x18x4xf32, #tpu.memory_space<vmem>>, vector<16x16x4xf32>
    %c2_44 = arith.constant 2 : index
    %c0_45 = arith.constant 0 : index
    %c0_46 = arith.constant 0 : index
    %17 = vector.load %arg5[%c2_44, %c0_45, %c0_46] : memref<18x18x4xf32, #tpu.memory_space<vmem>>, vector<16x16x4xf32>
    %c2_47 = arith.constant 2 : index
    %c1_48 = arith.constant 1 : index
    %c0_49 = arith.constant 0 : index
    %18 = vector.load %arg5[%c2_47, %c1_48, %c0_49] : memref<18x18x4xf32, #tpu.memory_space<vmem>>, vector<16x16x4xf32>
    %c2_50 = arith.constant 2 : index
    %c2_51 = arith.constant 2 : index
    %c0_52 = arith.constant 0 : index
    %19 = vector.load %arg5[%c2_50, %c2_51, %c0_52] : memref<18x18x4xf32, #tpu.memory_space<vmem>>, vector<16x16x4xf32>
    %20 = tpu.concatenate %11, %12, %13, %14, %15, %16, %17, %18, %19 in 2 : vector<16x16x4xf32>, vector<16x16x4xf32>, vector<16x16x4xf32>, vector<16x16x4xf32>, vector<16x16x4xf32>, vector<16x16x4xf32>, vector<16x16x4xf32>, vector<16x16x4xf32>, vector<16x16x4xf32> -> vector<16x16x36xf32>
    %21 = vector.shape_cast %20 : vector<16x16x36xf32> to vector<256x36xf32>
    %c0_53 = arith.constant 0 : index
    %c0_54 = arith.constant 0 : index
    %22 = vector.load %arg2[%c0_53, %c0_54] : memref<36x4xf32, #tpu.memory_space<vmem>>, vector<36x4xf32>
    %cst = arith.constant dense<0.000000e+00> : vector<256x4xf32>
    %23 = tpu.matmul %21, %22, %cst {dimension_numbers = #tpu.dot_dimension_numbers<[1], [0], [0], [1], [0, 0, 1, 1], [], []>} : vector<256x36xf32>, vector<36x4xf32>, vector<256x4xf32> -> vector<256x4xf32>
    %cst_55 = arith.constant 1.000000e+00 : f32
    %24 = vector.broadcast %cst_55 : f32 to vector<1x256xf32>
    %cst_56 = arith.constant dense<0.000000e+00> : vector<1x4xf32>
    %25 = tpu.matmul %24, %23, %cst_56 {dimension_numbers = #tpu.dot_dimension_numbers<[1], [0], [0], [1], [0, 0, 1, 1], [], []>} : vector<1x256xf32>, vector<256x4xf32>, vector<1x4xf32> -> vector<1x4xf32>
    %26 = arith.mulf %23, %23 : vector<256x4xf32>
    %cst_57 = arith.constant dense<0.000000e+00> : vector<1x4xf32>
    %27 = tpu.matmul %24, %26, %cst_57 {dimension_numbers = #tpu.dot_dimension_numbers<[1], [0], [0], [1], [0, 0, 1, 1], [], []>} : vector<1x256xf32>, vector<256x4xf32>, vector<1x4xf32> -> vector<1x4xf32>
    %cst_58 = arith.constant 3.906250e-03 : f32
    %28 = vector.broadcast %cst_58 : f32 to vector<1x4xf32>
    %29 = arith.mulf %25, %28 : vector<1x4xf32>
    %cst_59 = arith.constant 3.906250e-03 : f32
    %30 = vector.broadcast %cst_59 : f32 to vector<1x4xf32>
    %31 = arith.mulf %27, %30 : vector<1x4xf32>
    %32 = arith.mulf %29, %29 : vector<1x4xf32>
    %33 = arith.subf %31, %32 : vector<1x4xf32>
    %cst_60 = arith.constant 0.000000e+00 : f32
    %34 = vector.broadcast %cst_60 : f32 to vector<1x4xf32>
    %35 = arith.maximumf %33, %34 : vector<1x4xf32>
    %cst_61 = arith.constant 9.99999974E-6 : f32
    %36 = vector.broadcast %cst_61 : f32 to vector<1x4xf32>
    %37 = arith.addf %35, %36 : vector<1x4xf32>
    %38 = math.rsqrt %37 : vector<1x4xf32>
    %39 = vector.broadcast %29 : vector<1x4xf32> to vector<256x4xf32>
    %40 = arith.subf %23, %39 : vector<256x4xf32>
    %41 = vector.broadcast %38 : vector<1x4xf32> to vector<256x4xf32>
    %42 = arith.mulf %40, %41 : vector<256x4xf32>
    %cst_62 = arith.constant 0.000000e+00 : f32
    %43 = vector.broadcast %cst_62 : f32 to vector<256x4xf32>
    %44 = arith.maximumf %42, %43 : vector<256x4xf32>
    %45 = vector.shape_cast %44 : vector<256x4xf32> to vector<16x16x4xf32>
    %c1_63 = arith.constant 1 : index
    %c1_64 = arith.constant 1 : index
    %c0_65 = arith.constant 0 : index
    %46 = vector.load %arg5[%c1_63, %c1_64, %c0_65] : memref<18x18x4xf32, #tpu.memory_space<vmem>>, vector<16x16x4xf32>
    tpu.vector_store %arg5[%c1_63, %c1_64, %c0_65], %45 {strides = array<i32>} : memref<18x18x4xf32, #tpu.memory_space<vmem>>, vector<16x16x4xf32>,
    %c2_66 = arith.constant 2 : index
    %c1_67 = arith.constant 1 : index
    %c0_68 = arith.constant 0 : index
    %47 = vector.load %arg5[%c2_66, %c1_67, %c0_68] : memref<18x18x4xf32, #tpu.memory_space<vmem>>, vector<1x16x4xf32>
    %c0_69 = arith.constant 0 : index
    %c1_70 = arith.constant 1 : index
    %c0_71 = arith.constant 0 : index
    %48 = vector.load %arg5[%c0_69, %c1_70, %c0_71] : memref<18x18x4xf32, #tpu.memory_space<vmem>>, vector<1x16x4xf32>
    tpu.vector_store %arg5[%c0_69, %c1_70, %c0_71], %47 {strides = array<i32>} : memref<18x18x4xf32, #tpu.memory_space<vmem>>, vector<1x16x4xf32>,
    %c15_72 = arith.constant 15 : index
    %c1_73 = arith.constant 1 : index
    %c0_74 = arith.constant 0 : index
    %49 = vector.load %arg5[%c15_72, %c1_73, %c0_74] : memref<18x18x4xf32, #tpu.memory_space<vmem>>, vector<1x16x4xf32>
    %c17_75 = arith.constant 17 : index
    %c1_76 = arith.constant 1 : index
    %c0_77 = arith.constant 0 : index
    %50 = vector.load %arg5[%c17_75, %c1_76, %c0_77] : memref<18x18x4xf32, #tpu.memory_space<vmem>>, vector<1x16x4xf32>
    tpu.vector_store %arg5[%c17_75, %c1_76, %c0_77], %49 {strides = array<i32>} : memref<18x18x4xf32, #tpu.memory_space<vmem>>, vector<1x16x4xf32>,
    %c0_78 = arith.constant 0 : index
    %c2_79 = arith.constant 2 : index
    %c0_80 = arith.constant 0 : index
    %51 = vector.load %arg5[%c0_78, %c2_79, %c0_80] : memref<18x18x4xf32, #tpu.memory_space<vmem>>, vector<18x1x4xf32>
    %c0_81 = arith.constant 0 : index
    %c0_82 = arith.constant 0 : index
    %c0_83 = arith.constant 0 : index
    %52 = vector.load %arg5[%c0_81, %c0_82, %c0_83] : memref<18x18x4xf32, #tpu.memory_space<vmem>>, vector<18x1x4xf32>
    tpu.vector_store %arg5[%c0_81, %c0_82, %c0_83], %51 {strides = array<i32>} : memref<18x18x4xf32, #tpu.memory_space<vmem>>, vector<18x1x4xf32>,
    %c0_84 = arith.constant 0 : index
    %c15_85 = arith.constant 15 : index
    %c0_86 = arith.constant 0 : index
    %53 = vector.load %arg5[%c0_84, %c15_85, %c0_86] : memref<18x18x4xf32, #tpu.memory_space<vmem>>, vector<18x1x4xf32>
    %c0_87 = arith.constant 0 : index
    %c17_88 = arith.constant 17 : index
    %c0_89 = arith.constant 0 : index
    %54 = vector.load %arg5[%c0_87, %c17_88, %c0_89] : memref<18x18x4xf32, #tpu.memory_space<vmem>>, vector<18x1x4xf32>
    tpu.vector_store %arg5[%c0_87, %c17_88, %c0_89], %53 {strides = array<i32>} : memref<18x18x4xf32, #tpu.memory_space<vmem>>, vector<18x1x4xf32>,
    %c0_90 = arith.constant 0 : index
    %c0_91 = arith.constant 0 : index
    %c0_92 = arith.constant 0 : index
    %55 = vector.load %arg5[%c0_90, %c0_91, %c0_92] : memref<18x18x4xf32, #tpu.memory_space<vmem>>, vector<16x16x4xf32>
    %c0_93 = arith.constant 0 : index
    %c1_94 = arith.constant 1 : index
    %c0_95 = arith.constant 0 : index
    %56 = vector.load %arg5[%c0_93, %c1_94, %c0_95] : memref<18x18x4xf32, #tpu.memory_space<vmem>>, vector<16x16x4xf32>
    %c0_96 = arith.constant 0 : index
    %c2_97 = arith.constant 2 : index
    %c0_98 = arith.constant 0 : index
    %57 = vector.load %arg5[%c0_96, %c2_97, %c0_98] : memref<18x18x4xf32, #tpu.memory_space<vmem>>, vector<16x16x4xf32>
    %c1_99 = arith.constant 1 : index
    %c0_100 = arith.constant 0 : index
    %c0_101 = arith.constant 0 : index
    %58 = vector.load %arg5[%c1_99, %c0_100, %c0_101] : memref<18x18x4xf32, #tpu.memory_space<vmem>>, vector<16x16x4xf32>
    %c1_102 = arith.constant 1 : index
    %c1_103 = arith.constant 1 : index
    %c0_104 = arith.constant 0 : index
    %59 = vector.load %arg5[%c1_102, %c1_103, %c0_104] : memref<18x18x4xf32, #tpu.memory_space<vmem>>, vector<16x16x4xf32>
    %c1_105 = arith.constant 1 : index
    %c2_106 = arith.constant 2 : index
    %c0_107 = arith.constant 0 : index
    %60 = vector.load %arg5[%c1_105, %c2_106, %c0_107] : memref<18x18x4xf32, #tpu.memory_space<vmem>>, vector<16x16x4xf32>
    %c2_108 = arith.constant 2 : index
    %c0_109 = arith.constant 0 : index
    %c0_110 = arith.constant 0 : index
    %61 = vector.load %arg5[%c2_108, %c0_109, %c0_110] : memref<18x18x4xf32, #tpu.memory_space<vmem>>, vector<16x16x4xf32>
    %c2_111 = arith.constant 2 : index
    %c1_112 = arith.constant 1 : index
    %c0_113 = arith.constant 0 : index
    %62 = vector.load %arg5[%c2_111, %c1_112, %c0_113] : memref<18x18x4xf32, #tpu.memory_space<vmem>>, vector<16x16x4xf32>
    %c2_114 = arith.constant 2 : index
    %c2_115 = arith.constant 2 : index
    %c0_116 = arith.constant 0 : index
    %63 = vector.load %arg5[%c2_114, %c2_115, %c0_116] : memref<18x18x4xf32, #tpu.memory_space<vmem>>, vector<16x16x4xf32>
    %64 = tpu.concatenate %55, %56, %57, %58, %59, %60, %61, %62, %63 in 2 : vector<16x16x4xf32>, vector<16x16x4xf32>, vector<16x16x4xf32>, vector<16x16x4xf32>, vector<16x16x4xf32>, vector<16x16x4xf32>, vector<16x16x4xf32>, vector<16x16x4xf32>, vector<16x16x4xf32> -> vector<16x16x36xf32>
    %65 = vector.shape_cast %64 : vector<16x16x36xf32> to vector<256x36xf32>
    %c0_117 = arith.constant 0 : index
    %c0_118 = arith.constant 0 : index
    %66 = vector.load %arg3[%c0_117, %c0_118] : memref<36x4xf32, #tpu.memory_space<vmem>>, vector<36x4xf32>
    %cst_119 = arith.constant dense<0.000000e+00> : vector<256x4xf32>
    %67 = tpu.matmul %65, %66, %cst_119 {dimension_numbers = #tpu.dot_dimension_numbers<[1], [0], [0], [1], [0, 0, 1, 1], [], []>} : vector<256x36xf32>, vector<36x4xf32>, vector<256x4xf32> -> vector<256x4xf32>
    %cst_120 = arith.constant 1.000000e+00 : f32
    %68 = vector.broadcast %cst_120 : f32 to vector<1x256xf32>
    %cst_121 = arith.constant dense<0.000000e+00> : vector<1x4xf32>
    %69 = tpu.matmul %68, %67, %cst_121 {dimension_numbers = #tpu.dot_dimension_numbers<[1], [0], [0], [1], [0, 0, 1, 1], [], []>} : vector<1x256xf32>, vector<256x4xf32>, vector<1x4xf32> -> vector<1x4xf32>
    %70 = arith.mulf %67, %67 : vector<256x4xf32>
    %cst_122 = arith.constant dense<0.000000e+00> : vector<1x4xf32>
    %71 = tpu.matmul %68, %70, %cst_122 {dimension_numbers = #tpu.dot_dimension_numbers<[1], [0], [0], [1], [0, 0, 1, 1], [], []>} : vector<1x256xf32>, vector<256x4xf32>, vector<1x4xf32> -> vector<1x4xf32>
    %cst_123 = arith.constant 3.906250e-03 : f32
    %72 = vector.broadcast %cst_123 : f32 to vector<1x4xf32>
    %73 = arith.mulf %69, %72 : vector<1x4xf32>
    %cst_124 = arith.constant 3.906250e-03 : f32
    %74 = vector.broadcast %cst_124 : f32 to vector<1x4xf32>
    %75 = arith.mulf %71, %74 : vector<1x4xf32>
    %76 = arith.mulf %73, %73 : vector<1x4xf32>
    %77 = arith.subf %75, %76 : vector<1x4xf32>
    %cst_125 = arith.constant 0.000000e+00 : f32
    %78 = vector.broadcast %cst_125 : f32 to vector<1x4xf32>
    %79 = arith.maximumf %77, %78 : vector<1x4xf32>
    %cst_126 = arith.constant 9.99999974E-6 : f32
    %80 = vector.broadcast %cst_126 : f32 to vector<1x4xf32>
    %81 = arith.addf %79, %80 : vector<1x4xf32>
    %82 = math.rsqrt %81 : vector<1x4xf32>
    %83 = vector.broadcast %73 : vector<1x4xf32> to vector<256x4xf32>
    %84 = arith.subf %67, %83 : vector<256x4xf32>
    %85 = vector.broadcast %82 : vector<1x4xf32> to vector<256x4xf32>
    %86 = arith.mulf %84, %85 : vector<256x4xf32>
    %87 = vector.shape_cast %86 : vector<256x4xf32> to vector<16x16x4xf32>
    %c0_127 = arith.constant 0 : index
    %c0_128 = arith.constant 0 : index
    %c0_129 = arith.constant 0 : index
    %c0_130 = arith.constant 0 : index
    %88 = vector.load %arg1[%c0_127, %c0_128, %c0_129, %c0_130] : memref<1x16x16x4xf32, #tpu.memory_space<vmem>>, vector<1x16x16x4xf32>
    %89 = vector.shape_cast %88 : vector<1x16x16x4xf32> to vector<16x16x4xf32>
    %90 = arith.addf %89, %87 : vector<16x16x4xf32>
    %c0_131 = arith.constant 0 : index
    %c0_132 = arith.constant 0 : index
    %c0_133 = arith.constant 0 : index
    %c0_134 = arith.constant 0 : index
    %91 = vector.load %arg4[%c0_131, %c0_132, %c0_133, %c0_134] : memref<1x16x16x4xf32, #tpu.memory_space<vmem>>, vector<1x16x16x4xf32>
    %92 = vector.shape_cast %91 : vector<1x16x16x4xf32> to vector<16x16x4xf32>
    %93 = vector.shape_cast %90 : vector<16x16x4xf32> to vector<1x16x16x4xf32>
    tpu.vector_store %arg4[%c0_131, %c0_132, %c0_133, %c0_134], %93 {strides = array<i32>} : memref<1x16x16x4xf32, #tpu.memory_space<vmem>>, vector<1x16x16x4xf32>,
    return
  }
  func.func @transform_0(%arg0: i32) -> (i32, i32, i32, i32) {
    %c0_i32 = arith.constant 0 : i32
    %c0_i32_0 = arith.constant 0 : i32
    %c0_i32_1 = arith.constant 0 : i32
    %c0_i32_2 = arith.constant 0 : i32
    return %arg0, %c0_i32, %c0_i32_0, %c0_i32_1 : i32, i32, i32, i32
  }
  func.func @transform_1(%arg0: i32) -> (i32, i32) {
    %c0_i32 = arith.constant 0 : i32
    %c0_i32_0 = arith.constant 0 : i32
    %c0_i32_1 = arith.constant 0 : i32
    return %c0_i32, %c0_i32_0 : i32, i32
  }
  func.func @transform_2(%arg0: i32) -> (i32, i32) {
    %c0_i32 = arith.constant 0 : i32
    %c0_i32_0 = arith.constant 0 : i32
    %c0_i32_1 = arith.constant 0 : i32
    return %c0_i32, %c0_i32_0 : i32, i32
  }
  func.func @transform_3(%arg0: i32) -> (i32, i32, i32, i32) {
    %c0_i32 = arith.constant 0 : i32
    %c0_i32_0 = arith.constant 0 : i32
    %c0_i32_1 = arith.constant 0 : i32
    %c0_i32_2 = arith.constant 0 : i32
    return %arg0, %c0_i32, %c0_i32_0, %c0_i32_1 : i32, i32, i32, i32
  }
}

</mosaic_0001>

<bundles_post_ra>
// kernel: _residual_block_impl.1
= control target key start
LH: loop header
LB: loop body
LE: loop exit
PB: predicated region body
PF: predicated region fallthrough
CT: control target
= control target key end

     0   :  { %s5388_s12 = smov 0   ;;  %s8383_s0 = inlined_call_operand.vmem [shape: f32[2,16,16,4], index: 0, kind: input, shape index: {}]   ;;  %s8384_s1 = inlined_call_operand.vmem [shape: f32[36,4], index: 1, kind: input, shape index: {}]   ;;  %s8385_s2 = inlined_call_operand.vmem [shape: f32[36,4], index: 2, kind: input, shape index: {}]   ;;  %s8386_s3 = inlined_call_operand.vmem [shape: f32[2,16,16,4], index: 3, kind: output, shape index: {}]  }
   0x1 LB: > { %s4921_s13 = sadd.s32 4294967295, %s5357_s12   ;;  %p4925_p0 = scmp.ge.s32.totalorder %s5357_s12, 1  ;;  %s5357_s12 = sphi %s5388_s12, %s13_s12  }
   0x2   : > { %p137_p1 = scmp.lt.s32.totalorder %s5357_s12, 3 }
   0x4   : > { %p138_p2 = pnand %p4925_p0, %p137_p1 }
   0x6   : > { %141 = sbr.rel (%p138_p2) target bundleno = 2276 (0x8e4), region = 32 }
   0xb   : > { %p161_p3 = scmp.lt.s32.totalorder %s4921_s13, 1  ;;  %vm204_vm0 = vcmask 31744   ;;  %vm266_vm1 = vcmask 24576   ;;  %s5359_s18 = smov 16   ;;  %v1900_v36 = vld [vmem:[%s8384_s1 + $0x20] sm:$0xf] }
   0xc   : > { %s5360_s19 = smov 12   ;;  %s5361_s20 = smov 4   ;;  %vm1998_vm2 = vcmask 1043456   ;;  %v1899_v39 = vld [vmem:[%s8384_s1 + $0x18] sm:$0xff]  ;;  %v1898_v41 = vld [vmem:[%s8384_s1 + $0x10] sm:$0xff]  ;;  %v1897_v42 = vld [vmem:[%s8384_s1 + $0x8] sm:$0xff] }
   0xd   : > { %s8526_s13 = smov (!%p161_p3, %s4921_s13), 1  ;;  %s5362_s21 = smov 20   ;;  %5214 = vmatprep.subr.msk.mxu0 %vm1998_vm2, %v1900_v36  ;;  %v1896_v43 = vld [vmem:[%s8384_s1] sm:$0xff]  ;;  %vm1698_vm3 = vcmask 97280   ;;  %vm1665_vm4 = vcmask 64512   ;;  %vm1731_vm5 = vcmask 130048  }
   0xe   : > { %s4998_s14 = sshll.u32 %s8526_s13, 8  ;;  %s5363_s22 = smov 8   ;;  %5215 = vmatpush3.msk.msra.mxu0 %vm1998_vm2, %v1900_v36  ;;  %vm1764_vm6 = vcmask 162816   ;;  %vm1797_vm7 = vcmask 195584   ;;  %vm1830_vm8 = vcmask 228352   ;;  %vm1863_vm9 = vcmask 261120  }
   0xf   : > { %s5404_s17 = scalar_lea.vmem %s8383_s0, %s4998_s14  ;;  %s5364_s23 = smov 24   ;;  %5216 = vmatprep.subr.mxu0 %v1899_v39  ;;  %vm1901_vm10 = vcmask 293888  }
  0x10   : > { %v171_v0 = vld [vmem:[%s5404_s17] sm:$0xff]  ;;  %v172_v1 = vld [vmem:[%s5404_s17 + $0x8] sm:$0xff]  ;;  %v173_v2 = vld [vmem:[%s5404_s17 + $0x10] sm:$0xff]  ;;  %5217 = vmatpush3.msra.mxu0 %v1899_v39  ;;  %s5365_s5 = smov 28   ;;  %s5366_s8 = smov 32  }
  0x11   : > { %205 = vst.msk [vmem:[#allocation2 + $0x19] sm:$0xff] %vm204_vm0, %v171_v0  ;;  %206 = vst.msk [vmem:[#allocation2 + $0x21] sm:$0xff] %vm204_vm0, %v172_v1  ;;  %v174_v3 = vld [vmem:[%s5404_s17 + $0x18] sm:$0xff]  ;;  %v175_v4 = vld [vmem:[%s5404_s17 + $0x20] sm:$0xff]  ;;  %5218 = vmatprep.subr.mxu0 %v1898_v41 }
  0x12   : > { %207 = vst.msk [vmem:[#allocation2 + $0x31] sm:$0xff] %vm204_vm0, %v173_v2  ;;  %v176_v5 = vld [vmem:[%s5404_s17 + $0x28] sm:$0xff]  ;;  %208 = vst.msk [vmem:[#allocation2 + $0x39] sm:$0xff] %vm204_vm0, %v174_v3  ;;  %v177_v6 = vld [vmem:[%s5404_s17 + $0x30] sm:$0xff]  ;;  %5219 = vmatpush3.msra.mxu0 %v1898_v41 }
  0x13   : > { %209 = vst.msk [vmem:[#allocation2 + $0x49] sm:$0xff] %vm204_vm0, %v175_v4  ;;  %210 = vst.msk [vmem:[#allocation2 + $0x51] sm:$0xff] %vm204_vm0, %v176_v5  ;;  %v178_v7 = vld [vmem:[%s5404_s17 + $0x38] sm:$0xff]  ;;  %v179_v8 = vld [vmem:[%s5404_s17 + $0x40] sm:$0xff]  ;;  %5220 = vmatprep.subr.mxu0 %v1897_v42 }
  0x14   : > { %211 = vst.msk [vmem:[#allocation2 + $0x61] sm:$0xff] %vm204_vm0, %v177_v6  ;;  %212 = vst.msk [vmem:[#allocation2 + $0x69] sm:$0xff] %vm204_vm0, %v178_v7  ;;  %v180_v9 = vld [vmem:[%s5404_s17 + $0x48] sm:$0xff]  ;;  %v181_v31 = vld [vmem:[%s5404_s17 + $0x50] sm:$0xff]  ;;  %5221 = vmatpush3.msra.mxu0 %v1897_v42 }
  0x15   : > { %213 = vst.msk [vmem:[#allocation2 + $0x79] sm:$0xff] %vm204_vm0, %v179_v8  ;;  %214 = vst.msk [vmem:[#allocation2 + $0x81] sm:$0xff] %vm204_vm0, %v180_v9  ;;  %v182_v37 = vld [vmem:[%s5404_s17 + $0x58] sm:$0xff]  ;;  %5222 = vmatprep.subr.mxu0 %v1896_v43  ;;  %v183_v46 = vld [vmem:[%s5404_s17 + $0x60] sm:$0xff] }
  0x16   : > { %215 = vst.msk [vmem:[#allocation2 + $0x91] sm:$0xff] %vm204_vm0, %v181_v31  ;;  %216 = vst.msk [vmem:[#allocation2 + $0x99] sm:$0xff] %vm204_vm0, %v182_v37  ;;  %5223 = vmatpush3.msra.mxu0 %v1896_v43  ;;  %v184_v50 = vld [vmem:[%s5404_s17 + $0x68] sm:$0xff]  ;;  %v185_v56 = vld [vmem:[%s5404_s17 + $0x70] sm:$0xff] }
  0x17   : > { %217 = vst.msk [vmem:[#allocation2 + $0xa9] sm:$0xff] %vm204_vm0, %v183_v46  ;;  %218 = vst.msk [vmem:[#allocation2 + $0xb1] sm:$0xff] %vm204_vm0, %v184_v50  ;;  %v186_v60 = vld [vmem:[%s5404_s17 + $0x78] sm:$0xff]  ;;  %v187_v2 = vld [vmem:[%s5404_s17 + $0x80] sm:$0xff] }
  0x18   : > { %v449_v10 = vld [vmem:[#allocation2 + $0x19] sm:$0xff]  ;;  %v450_v12 = vld [vmem:[#allocation2 + $0x21] sm:$0xff]  ;;  %219 = vst.msk [vmem:[#allocation2 + $0xc1] sm:$0xff] %vm204_vm0, %v185_v56  ;;  %220 = vst.msk [vmem:[#allocation2 + $0xc9] sm:$0xff] %vm204_vm0, %v186_v60 }
  0x19   : > { %v5426_v11 = vld [vmem:[#allocation2 + $0x20] sm:$0xff]  ;;  %1025 = vrot.lane.b32.xlu0 %v449_v10, %s5359_s18  ;;  %v5431_v13 = vld [vmem:[#allocation2 + $0x31] sm:$0xff]  ;;  %v249_v16 = vld [vmem:[#allocation2 + $0x1a] sm:$0x1]  ;;  %221 = vst.msk [vmem:[#allocation2 + $0xd9] sm:$0xff] %vm204_vm0, %v187_v2 }
  0x1a   : > { %899 = vrot.lane.b32.xlu1 %v5426_v11, %s5360_s19  ;;  %v5433_v14 = vld [vmem:[#allocation2 + $0x39] sm:$0xff]  ;;  %240 = vst.msk [vmem:[#allocation2 + $0x1] sm:$0xff] %vm204_vm0, %v5431_v13  ;;  %v250_v15 = vld [vmem:[#allocation2 + $0x32] sm:$0x1]  ;;  %v286_v17 = vld [vmem:[#allocation2 + $0x27] sm:$0x1] }
  0x1b   : > { %241 = vst.msk [vmem:[#allocation2 + $0x9] sm:$0xff] %vm204_vm0, %v5433_v14  ;;  %v287_v18 = vld [vmem:[#allocation2 + $0x3f] sm:$0x1]  ;;  %v251_v19 = vld [vmem:[#allocation2 + $0x4a] sm:$0x1]  ;;  %v577_v44 = vld [vmem:[#allocation2 + $0x32] sm:$0xff] }
  0x1c   : > { %269 = vst.msk [vmem:[#allocation2 + $0x30] sm:$0x1] %vm266_vm1, %v250_v15  ;;  %268 = vst.msk [vmem:[#allocation2 + $0x18] sm:$0x1] %vm266_vm1, %v249_v16  ;;  %v288_v20 = vld [vmem:[#allocation2 + $0x57] sm:$0x1] }
  0x1d   : > { %304 = vst.msk [vmem:[#allocation2 + $0x29] sm:$0x1] %vm266_vm1, %v286_v17  ;;  %305 = vst.msk [vmem:[#allocation2 + $0x41] sm:$0x1] %vm266_vm1, %v287_v18  ;;  %1027 = vrot.lane.b32.xlu0 %v450_v12, %s5359_s18  ;;  %v481_v21 = vld [vmem:[#allocation2 + $0x1a] sm:$0xff]  ;;  %v547_v51 = vld [vmem:[#allocation2 + $0x49] sm:$0xff] }
  0x1e   : > { %645 = vrot.lane.b32.xlu1 %v449_v10, %s5361_s20  ;;  %270 = vst.msk [vmem:[#allocation2 + $0x48] sm:$0x1] %vm266_vm1, %v251_v19  ;;  %306 = vst.msk [vmem:[#allocation2 + $0x59] sm:$0x1] %vm266_vm1, %v288_v20  ;;  %v252_v22 = vld [vmem:[#allocation2 + $0x62] sm:$0x1] }
  0x1f   : > { %271 = vst.msk [vmem:[#allocation2 + $0x60] sm:$0x1] %vm266_vm1, %v252_v22  ;;  %v289_v23 = vld [vmem:[#allocation2 + $0x6f] sm:$0x1]  ;;  %v253_v24 = vld [vmem:[#allocation2 + $0x7a] sm:$0x1] }
  0x20   : > { %307 = vst.msk [vmem:[#allocation2 + $0x71] sm:$0x1] %vm266_vm1, %v289_v23  ;;  %272 = vst.msk [vmem:[#allocation2 + $0x78] sm:$0x1] %vm266_vm1, %v253_v24  ;;  %v290_v28 = vld [vmem:[#allocation2 + $0x87] sm:$0x1] }
  0x21   : > { %647 = vrot.lane.b32.xlu0 %v450_v12, %s5361_s20  ;;  %v353_v25 = vld [vmem:[#allocation2 + $0x1] sm:$0xff]  ;;  %308 = vst.msk [vmem:[#allocation2 + $0x89] sm:$0x1] %vm266_vm1, %v290_v28  ;;  %v254_v35 = vld [vmem:[#allocation2 + $0x92] sm:$0x1]  ;;  %v5485_v40 = vld [vmem:[#allocation2 + $0x38] sm:$0xff] }
  0x22   : > { %1153 = vrot.lane.b32.xlu1 %v481_v21, %s5362_s21  ;;  %v285_v26 = vld [vmem:[#allocation2 + $0xf] sm:$0x1]  ;;  %v248_v27 = vld [vmem:[#allocation2 + $0x2] sm:$0x1]  ;;  %273 = vst.msk [vmem:[#allocation2 + $0x90] sm:$0x1] %vm266_vm1, %v254_v35 }
  0x23   : > { %303 = vst.msk [vmem:[#allocation2 + $0x11] sm:$0x1] %vm266_vm1, %v285_v26  ;;  %267 = vst.msk [vmem:[#allocation2] sm:$0x1] %vm266_vm1, %v248_v27  ;;  %v354_v29 = vld [vmem:[#allocation2 + $0x9] sm:$0xff]  ;;  %v5463_v33 = vld [vmem:[#allocation2 + $0x18] sm:$0xff] }
  0x24   : > { %v385_v30 = vld [vmem:[#allocation2 + $0x2] sm:$0xff]  ;;  %v5461_v32 = vld [vmem:[#allocation2 + $0x30] sm:$0xff]  ;;  %v291_v45 = vld [vmem:[#allocation2 + $0x9f] sm:$0x1] }
  0x25   : > { %641 = vrot.lane.b32.xlu0 %v353_v25, %s5361_s20  ;;  %v482_v34 = vld [vmem:[#allocation2 + $0x22] sm:$0xff]  ;;  %309 = vst.msk [vmem:[#allocation2 + $0xa1] sm:$0x1] %vm266_vm1, %v291_v45  ;;  %v578_v47 = vld [vmem:[#allocation2 + $0x3a] sm:$0xff]  ;;  %v255_v48 = vld [vmem:[#allocation2 + $0xaa] sm:$0x1] }
  0x26   : > { %773 = vrot.lane.b32.xlu1 %v481_v21, %s5363_s22  ;;  %274 = vst.msk [vmem:[#allocation2 + $0xa8] sm:$0x1] %vm266_vm1, %v255_v48  ;;  %v5520_v49 = vld [vmem:[#allocation2 + $0x48] sm:$0xff]  ;;  %v5530_v52 = vld [vmem:[#allocation2 + $0x50] sm:$0xff]  ;;  %v256_v58 = vld [vmem:[#allocation2 + $0xc2] sm:$0x1] }
  0x27   : > { %v579_v53 = vld [vmem:[#allocation2 + $0x4a] sm:$0xff]  ;;  %v292_v55 = vld [vmem:[#allocation2 + $0xb7] sm:$0x1]  ;;  %275 = vst.msk [vmem:[#allocation2 + $0xc0] sm:$0x1] %vm266_vm1, %v256_v58  ;;  %v5550_v59 = vld [vmem:[#allocation2 + $0x60] sm:$0xff] }
  0x28   : > { %v548_v54 = vld [vmem:[#allocation2 + $0x51] sm:$0xff]  ;;  %310 = vst.msk [vmem:[#allocation2 + $0xb9] sm:$0x1] %vm266_vm1, %v292_v55  ;;  %v549_v61 = vld [vmem:[#allocation2 + $0x61] sm:$0xff]  ;;  %v550_v0 = vld [vmem:[#allocation2 + $0x69] sm:$0xff] }
  0x29   : > { %643 = vrot.lane.b32.xlu0 %v354_v29, %s5361_s20  ;;  %v580_v57 = vld [vmem:[#allocation2 + $0x52] sm:$0xff]  ;;  %v5560_v62 = vld [vmem:[#allocation2 + $0x68] sm:$0xff]  ;;  %v257_v4 = vld [vmem:[#allocation2 + $0xda] sm:$0x1] }
  0x2a   : > { %769 = vrot.lane.b32.xlu1 %v385_v30, %s5363_s22  ;;  %v386_v38 = vld [vmem:[#allocation2 + $0xa] sm:$0xff]  ;;  %v581_v63 = vld [vmem:[#allocation2 + $0x62] sm:$0xff]  ;;  %276 = vst.msk [vmem:[#allocation2 + $0xd8] sm:$0x1] %vm266_vm1, %v257_v4  ;;  %v5582_v7 = vld [vmem:[#allocation2 + $0x78] sm:$0xff] }
  0x2b   : > { %v293_v1 = vld [vmem:[#allocation2 + $0xcf] sm:$0x1]  ;;  %v5598_v15 = vld [vmem:[#allocation2 + $0x80] sm:$0xff]  ;;  %v189_v25 = vld [vmem:[%s5404_s17 + $0x90] sm:$0xff] }
  0x2c   : > { %311 = vst.msk [vmem:[#allocation2 + $0xd1] sm:$0x1] %vm266_vm1, %v293_v1  ;;  %v582_v3 = vld [vmem:[#allocation2 + $0x6a] sm:$0xff]  ;;  %v583_v20 = vld [vmem:[#allocation2 + $0x7a] sm:$0xff]  ;;  %v584_v29 = vld [vmem:[#allocation2 + $0x82] sm:$0xff] }
  0x2d   : > { %897 = vrot.lane.b32.xlu0 %v5463_v33, %s5360_s19  ;;  %v188_v10 = vld [vmem:[%s5404_s17 + $0x88] sm:$0xff]  ;;  %223 = vst.msk [vmem:[#allocation2 + $0xf1] sm:$0xff] %vm204_vm0, %v189_v25  ;;  %v321_v28 = vld [vmem:[#allocation2] sm:$0xff]  ;;  %v5630_v45 = vld [vmem:[#allocation2 + $0x90] sm:$0xff] }
  0x2e   : > { %1281 = vrot.lane.b32.xlu1 %v5461_v32, %s5364_s23  ;;  %222 = vst.msk [vmem:[#allocation2 + $0xe1] sm:$0xff] %vm204_vm0, %v188_v10  ;;  %v552_v21 = vld [vmem:[#allocation2 + $0x81] sm:$0xff]  ;;  %v553_v60 = vld [vmem:[#allocation2 + $0x91] sm:$0xff]  ;;  %v554_v10 = vld [vmem:[#allocation2 + $0x99] sm:$0xff] }
  0x31   : > { %1155 = vrot.lane.b32.xlu0 %v482_v34, %s5362_s21 }
  0x32   : > { %901 = vrot.lane.b32.xlu1 %v5461_v32, %s5360_s19 }
  0x34   : > { %v258_v37 = vld [vmem:[#allocation2 + $0xf2] sm:$0x1] }
  0x35   : > { %775 = vrot.lane.b32.xlu0 %v482_v34, %s5363_s22  ;;  %v294_v24 = vld [vmem:[#allocation2 + $0xe7] sm:$0x1]  ;;  %277 = vst.msk [vmem:[#allocation2 + $0xf0] sm:$0x1] %vm266_vm1, %v258_v37 }
  0x36   : > { %771 = vrot.lane.b32.xlu1 %v386_v38, %s5363_s22  ;;  %312 = vst.msk [vmem:[#allocation2 + $0xe9] sm:$0x1] %vm266_vm1, %v294_v24  ;;  %v322_v38 = vld [vmem:[#allocation2 + $0x8] sm:$0xff] }
  0x39   : > { %1283 = vrot.lane.b32.xlu0 %v5485_v40, %s5364_s23 }
  0x3a   : > { %1409 = vrot.lane.b32.xlu1 %v5431_v13, %s5365_s5 }
  0x3d   : > { %903 = vrot.lane.b32.xlu0 %v5485_v40, %s5360_s19 }
  0x3e   : > { %1029 = vrot.lane.b32.xlu1 %v5431_v13, %s5359_s18 }
  0x41   : > { %1411 = vrot.lane.b32.xlu0 %v5433_v14, %s5365_s5 }
  0x42   : > { %1537 = vrot.lane.b32.xlu1 %v577_v44, %s5366_s8 }
  0x45   : > { %649 = vrot.lane.b32.xlu0 %v5431_v13, %s5361_s20 }
  0x46   : > { %1031 = vrot.lane.b32.xlu1 %v5433_v14, %s5359_s18 }
  0x49   : > { %1157 = vrot.lane.b32.xlu0 %v577_v44, %s5362_s21 }
  0x4a   : > { %1539 = vrot.lane.b32.xlu1 %v578_v47, %s5366_s8 }
  0x4d   : > { %651 = vrot.lane.b32.xlu0 %v5433_v14, %s5361_s20  ;;  %v551_v14 = vld [vmem:[#allocation2 + $0x79] sm:$0xff] }
  0x4e   : > { %777 = vrot.lane.b32.xlu1 %v577_v44, %s5363_s22 }
  0x51   : > { %1159 = vrot.lane.b32.xlu0 %v578_v47, %s5362_s21 }
  0x52   : > { %1285 = vrot.lane.b32.xlu1 %v5520_v49, %s5364_s23 }
  0x55   : > { %779 = vrot.lane.b32.xlu0 %v578_v47, %s5363_s22 }
  0x56   : > { %905 = vrot.lane.b32.xlu1 %v5520_v49, %s5360_s19 }
  0x59   : > { %1287 = vrot.lane.b32.xlu0 %v5530_v52, %s5364_s23 }
  0x5a   : > { %1413 = vrot.lane.b32.xlu1 %v547_v51, %s5365_s5 }
  0x5d   : > { %907 = vrot.lane.b32.xlu0 %v5530_v52, %s5360_s19 }
  0x5e   : > { %1033 = vrot.lane.b32.xlu1 %v547_v51, %s5359_s18 }
  0x61   : > { %1415 = vrot.lane.b32.xlu0 %v548_v54, %s5365_s5 }
  0x62   : > { %1541 = vrot.lane.b32.xlu1 %v579_v53, %s5366_s8 }
  0x65   : > { %653 = vrot.lane.b32.xlu0 %v547_v51, %s5361_s20  ;;  %v190_v51 = vld [vmem:[%s5404_s17 + $0x98] sm:$0xff] }
  0x66   : > { %1035 = vrot.lane.b32.xlu1 %v548_v54, %s5359_s18  ;;  %224 = vst.msk [vmem:[#allocation2 + $0xf9] sm:$0xff] %vm204_vm0, %v190_v51 }
  0x69   : > { %1161 = vrot.lane.b32.xlu0 %v579_v53, %s5362_s21 }
  0x6a   : > { %1543 = vrot.lane.b32.xlu1 %v580_v57, %s5366_s8 }
  0x6d   : > { %655 = vrot.lane.b32.xlu0 %v548_v54, %s5361_s20 }
  0x6e   : > { %781 = vrot.lane.b32.xlu1 %v579_v53, %s5363_s22 }
  0x71   : > { %1163 = vrot.lane.b32.xlu0 %v580_v57, %s5362_s21 }
  0x72   : > { %1289 = vrot.lane.b32.xlu1 %v5550_v59, %s5364_s23 }
  0x75   : > { %783 = vrot.lane.b32.xlu0 %v580_v57, %s5363_s22 }
  0x76   : > { %909 = vrot.lane.b32.xlu1 %v5550_v59, %s5360_s19 }
  0x79   : > { %1291 = vrot.lane.b32.xlu0 %v5560_v62, %s5364_s23 }
  0x7a   : > { %1417 = vrot.lane.b32.xlu1 %v549_v61, %s5365_s5 }
  0x7d   : > { %911 = vrot.lane.b32.xlu0 %v5560_v62, %s5360_s19 }
  0x7e   : > { %1037 = vrot.lane.b32.xlu1 %v549_v61, %s5359_s18 }
  0x81   : > { %1419 = vrot.lane.b32.xlu0 %v550_v0, %s5365_s5 }
  0x82   : > { %1545 = vrot.lane.b32.xlu1 %v581_v63, %s5366_s8 }
  0x85   : > { %657 = vrot.lane.b32.xlu0 %v549_v61, %s5361_s20  ;;  %v5653_v61 = vld [vmem:[#allocation2 + $0x98] sm:$0xff] }
  0x86   : > { %1039 = vrot.lane.b32.xlu1 %v550_v0, %s5359_s18 }
  0x89   : > { %1165 = vrot.lane.b32.xlu0 %v581_v63, %s5362_s21 }
  0x8a   : > { %1547 = vrot.lane.b32.xlu1 %v582_v3, %s5366_s8 }
  0x8b   : > { %v1026_v5 = vpop.permute.xlu0 %1025 }
  0x8c   : > { %v5578_v6 = vpop.permute.xlu1 %899 }
  0x8d   : > { %659 = vrot.lane.b32.xlu0 %v550_v0, %s5361_s20 }
  0x8e   : > { %785 = vrot.lane.b32.xlu1 %v581_v63, %s5363_s22 }
  0x8f   : > { %v5584_v8 = vpop.permute.xlu0 %1027 }
  0x90   : > { %v5586_v9 = vpop.permute.xlu1 %645 }
  0x91   : > { %1167 = vrot.lane.b32.xlu0 %v582_v3, %s5362_s21 }
  0x92   : > { %1293 = vrot.lane.b32.xlu1 %v5582_v7, %s5364_s23 }
  0x93   : > { %v5593_v12 = vpop.permute.xlu0 %647 }
  0x94   : > { %v1154_v13 = vpop.permute.xlu1 %1153 }
  0x95   : > { %787 = vrot.lane.b32.xlu0 %v582_v3, %s5363_s22 }
  0x96   : > { %913 = vrot.lane.b32.xlu1 %v5582_v7, %s5360_s19 }
  0x97   : > { %v642_v16 = vpop.permute.xlu0 %641 }
  0x98   : > { %v5600_v17 = vpop.permute.xlu1 %773  ;;  %v1633_v30 = vsel %vm204_vm0, %v321_v28, %v642_v16  ;;  %v295_v16 = vld [vmem:[#allocation2 + $0xff] sm:$0x1]  ;;  %v1635_v28 = vsel %vm204_vm0, %v5463_v33, %v5586_v9  ;;  %v192_v9 = vld [vmem:[%s5404_s17 + $0xa8] sm:$0xff] }
  0x99   : > { %1295 = vrot.lane.b32.xlu0 %v5598_v15, %s5364_s23  ;;  %313 = vst.msk [vmem:[#allocation2 + $0x101] sm:$0x1] %vm266_vm1, %v295_v16 }
  0x9a   : > { %1421 = vrot.lane.b32.xlu1 %v551_v14, %s5365_s5  ;;  %226 = vst.msk [vmem:[#allocation2 + $0x111] sm:$0xff] %vm204_vm0, %v192_v9  ;;  %v5797_v9 = vld [vmem:[#allocation2 + $0xc8] sm:$0xff] }
  0x9b   : > { %v644_v18 = vpop.permute.xlu0 %643 }
  0x9c   : > { %v770_v19 = vpop.permute.xlu1 %769  ;;  %v1634_v43 = vsel %vm204_vm0, %v322_v38, %v644_v18  ;;  %v191_v18 = vld [vmem:[%s5404_s17 + $0xa0] sm:$0xff] }
  0x9d   : > { %915 = vrot.lane.b32.xlu0 %v5598_v15, %s5360_s19  ;;  %v1666_v35 = vsel %vm1665_vm4, %v1633_v30, %v770_v19  ;;  %225 = vst.msk [vmem:[#allocation2 + $0x109] sm:$0xff] %vm204_vm0, %v191_v18  ;;  %v5695_v30 = vld [vmem:[#allocation2 + $0xa8] sm:$0xff] }
  0x9e   : > { %1041 = vrot.lane.b32.xlu1 %v551_v14, %s5359_s18 }
  0x9f   : > { %v898_v23 = vpop.permute.xlu0 %897 }
  0xa0   : > { %v1282_v22 = vpop.permute.xlu1 %1281  ;;  %v1699_v36 = vsel %vm1698_vm3, %v1666_v35, %v898_v23 }
  0xa1   : > { %1423 = vrot.lane.b32.xlu0 %v552_v21, %s5365_s5  ;;  %v1732_v42 = vsel %vm1731_vm5, %v1699_v36, %v1026_v5 }
  0xa2   : > { %1549 = vrot.lane.b32.xlu1 %v583_v20, %s5366_s8  ;;  %v1765_v46 = vsel %vm1764_vm6, %v1732_v42, %v1154_v13  ;;  %v1636_v42 = vsel %vm204_vm0, %v5426_v11, %v5593_v12 }
  0xa3   : > { %v1156_v27 = vpop.permute.xlu0 %1155  ;;  %v1798_v53 = vsel %vm1797_vm7, %v1765_v46, %v1282_v22  ;;  %v5723_v46 = vld [vmem:[#allocation2 + $0xb0] sm:$0xff] }
  0xa4   : > { %v5613_v26 = vpop.permute.xlu1 %901  ;;  %v259_v24 = vld [vmem:[#allocation2 + $0x10a] sm:$0x1] }
  0xa5   : > { %661 = vrot.lane.b32.xlu0 %v551_v14, %s5361_s20  ;;  %278 = vst.msk [vmem:[#allocation2 + $0x108] sm:$0x1] %vm266_vm1, %v259_v24 }
  0xa6   : > { %1043 = vrot.lane.b32.xlu1 %v552_v21, %s5359_s18 }
  0xa7   : > { %v5618_v34 = vpop.permute.xlu0 %775 }
  0xa8   : > { %v772_v31 = vpop.permute.xlu1 %771 }
  0xa9   : > { %1169 = vrot.lane.b32.xlu0 %v583_v20, %s5362_s21  ;;  %v1667_v44 = vsel %vm1665_vm4, %v1634_v43, %v772_v31  ;;  %v1669_v43 = vsel %vm1665_vm4, %v1636_v42, %v5618_v34 }
  0xaa   : > { %1551 = vrot.lane.b32.xlu1 %v584_v29, %s5366_s8  ;;  %v1700_v50 = vsel %vm1698_vm3, %v1667_v44, %v5578_v6  ;;  %v555_v44 = vld [vmem:[#allocation2 + $0xa9] sm:$0xff] }
  0xab   : > { %v1284_v41 = vpop.permute.xlu0 %1283  ;;  %v1733_v57 = vsel %vm1731_vm5, %v1700_v50, %v5584_v8  ;;  %v585_v8 = vld [vmem:[#allocation2 + $0x92] sm:$0xff] }
  0xac   : > { %v1410_v39 = vpop.permute.xlu1 %1409  ;;  %v1766_v63 = vsel %vm1764_vm6, %v1733_v57, %v1156_v27  ;;  %v556_v57 = vld [vmem:[#allocation2 + $0xb1] sm:$0xff] }
  0xad   : > { %663 = vrot.lane.b32.xlu0 %v552_v21, %s5361_s20  ;;  %v1831_v54 = vsel %vm1830_vm8, %v1798_v53, %v1410_v39  ;;  %v1799_v2 = vsel %vm1797_vm7, %v1766_v63, %v1284_v41  ;;  %v586_v21 = vld [vmem:[#allocation2 + $0x9a] sm:$0xff]  ;;  %v296_v63 = vld [vmem:[#allocation2 + $0x117] sm:$0x1] }
  0xae   : > { %789 = vrot.lane.b32.xlu1 %v583_v20, %s5363_s22  ;;  %314 = vst.msk [vmem:[#allocation2 + $0x119] sm:$0x1] %vm266_vm1, %v296_v63 }
  0xaf   : > { %v5635_v48 = vpop.permute.xlu0 %903 }
  0xb0   : > { %v5633_v47 = vpop.permute.xlu1 %1029 }
  0xb1   : > { %1171 = vrot.lane.b32.xlu0 %v584_v29, %s5362_s21 }
  0xb2   : > { %1297 = vrot.lane.b32.xlu1 %v5630_v45, %s5364_s23 }
  0xb3   : > { %v1412_v56 = vpop.permute.xlu0 %1411 }
  0xb4   : > { %v1538_v55 = vpop.permute.xlu1 %1537  ;;  %v1832_v3 = vsel %vm1830_vm8, %v1799_v2, %v1412_v56  ;;  %v587_v56 = vld [vmem:[#allocation2 + $0xaa] sm:$0xff] }
  0xb5   : > { %v1864_v58 = vsel %vm1863_vm9, %v1831_v54, %v1538_v55  ;;  %791 = vrot.lane.b32.xlu0 %v584_v29, %s5363_s22  ;;  %v1668_v29 = vsel %vm1665_vm4, %v1635_v28, %v5600_v17 }
  0xb6   : > { %917 = vrot.lane.b32.xlu1 %v5630_v45, %s5360_s19  ;;  %5224 = vmatprep.mubr.msk.f32.mxu0 %vm1901_vm10, %v1864_v58  ;;  %v1701_v31 = vsel %vm1698_vm3, %v1668_v29, %v5613_v26 }
  0xb7   : > { %v5658_v1 = vpop.permute.xlu0 %649  ;;  %v1734_v37 = vsel %vm1731_vm5, %v1701_v31, %v5633_v47  ;;  %v1702_v47 = vsel %vm1698_vm3, %v1669_v43, %v5635_v48  ;;  %v589_v43 = vld [vmem:[#allocation2 + $0xc2] sm:$0xff] }
  0xb8   : > { %v5656_v0 = vpop.permute.xlu1 %1031  ;;  %v1637_v18 = vsel %vm204_vm0, %v5461_v32, %v5658_v1  ;;  %v194_v1 = vld [vmem:[%s5404_s17 + $0xb8] sm:$0xff] }
  0xb9   : > { %1299 = vrot.lane.b32.xlu0 %v5653_v61, %s5364_s23  ;;  %v1735_v11 = vsel %vm1731_vm5, %v1702_v47, %v5656_v0  ;;  %v193_v0 = vld [vmem:[%s5404_s17 + $0xb0] sm:$0xff]  ;;  %228 = vst.msk [vmem:[#allocation2 + $0x129] sm:$0xff] %vm204_vm0, %v194_v1  ;;  %v5871_v1 = vld [vmem:[#allocation2 + $0xe0] sm:$0xff] }
  0xba   : > { %1425 = vrot.lane.b32.xlu1 %v553_v60, %s5365_s5  ;;  %227 = vst.msk [vmem:[#allocation2 + $0x121] sm:$0xff] %vm204_vm0, %v193_v0 }
  0xbb   : > { %v1158_v5 = vpop.permute.xlu0 %1157 }
  0xbc   : > { %v1540_v4 = vpop.permute.xlu1 %1539  ;;  %v1767_v33 = vsel %vm1764_vm6, %v1734_v37, %v1158_v5 }
  0xbd   : > { %v1865_v6 = vsel %vm1863_vm9, %v1832_v3, %v1540_v4  ;;  %919 = vrot.lane.b32.xlu0 %v5653_v61, %s5360_s19  ;;  %v588_v4 = vld [vmem:[#allocation2 + $0xb2] sm:$0xff] }
  0xbe   : > { %1045 = vrot.lane.b32.xlu1 %v553_v60, %s5359_s18  ;;  %5225 = vmatmul.mubr.msk.f32.vlgmr.msra.gmra.mxu0 %vm1901_vm10, %v1865_v6 }
  0xbf   : > { %v5672_v14 = vpop.permute.xlu0 %651 }
  0xc0   : > { %v5670_v13 = vpop.permute.xlu1 %777 }
  0xc1   : > { %1427 = vrot.lane.b32.xlu0 %v554_v10, %s5365_s5 }
  0xc2   : > { %1553 = vrot.lane.b32.xlu1 %v585_v8, %s5366_s8 }
  0xc3   : > { %v1160_v20 = vpop.permute.xlu0 %1159 }
  0xc4   : > { %v1286_v19 = vpop.permute.xlu1 %1285  ;;  %v1768_v12 = vsel %vm1764_vm6, %v1735_v11, %v1160_v20  ;;  %v5769_v20 = vld [vmem:[#allocation2 + $0xc0] sm:$0xff]  ;;  %v297_v11 = vld [vmem:[#allocation2 + $0x12f] sm:$0x1] }
  0xc5   : > { %665 = vrot.lane.b32.xlu0 %v553_v60, %s5361_s20  ;;  %v1800_v17 = vsel %vm1797_vm7, %v1767_v33, %v1286_v19  ;;  %v1670_v19 = vsel %vm1665_vm4, %v1637_v18, %v5670_v13  ;;  %v557_v33 = vld [vmem:[#allocation2 + $0xc1] sm:$0xff]  ;;  %315 = vst.msk [vmem:[#allocation2 + $0x131] sm:$0x1] %vm266_vm1, %v297_v11 }
  0xc6   : > { %1047 = vrot.lane.b32.xlu1 %v554_v10, %s5359_s18 }
  0xc7   : > { %v5683_v23 = vpop.permute.xlu0 %779 }
  0xc8   : > { %v5681_v22 = vpop.permute.xlu1 %905 }
  0xc9   : > { %1173 = vrot.lane.b32.xlu0 %v585_v8, %s5362_s21 }
  0xca   : > { %1555 = vrot.lane.b32.xlu1 %v586_v21, %s5366_s8 }
  0xcb   : > { %v1288_v27 = vpop.permute.xlu0 %1287 }
  0xcc   : > { %v1414_v25 = vpop.permute.xlu1 %1413  ;;  %v1801_v34 = vsel %vm1797_vm7, %v1768_v12, %v1288_v27  ;;  %v195_v12 = vld [vmem:[%s5404_s17 + $0xc0] sm:$0xff] }
  0xcd   : > { %667 = vrot.lane.b32.xlu0 %v554_v10, %s5361_s20  ;;  %v1833_v26 = vsel %vm1830_vm8, %v1800_v17, %v1414_v25  ;;  %229 = vst.msk [vmem:[#allocation2 + $0x139] sm:$0xff] %vm204_vm0, %v195_v12 }
  0xce   : > { %793 = vrot.lane.b32.xlu1 %v585_v8, %s5363_s22  ;;  %v260_v8 = vld [vmem:[#allocation2 + $0x122] sm:$0x1] }
  0xcf   : > { %v5701_v36 = vpop.permute.xlu0 %907  ;;  %279 = vst.msk [vmem:[#allocation2 + $0x120] sm:$0x1] %vm266_vm1, %v260_v8 }
  0xd0   : > { %v5699_v35 = vpop.permute.xlu1 %1033 }
  0xd1   : > { %1175 = vrot.lane.b32.xlu0 %v586_v21, %s5362_s21 }
  0xd2   : > { %1301 = vrot.lane.b32.xlu1 %v5695_v30, %s5364_s23 }
  0xd3   : > { %v1416_v39 = vpop.permute.xlu0 %1415 }
  0xd4   : > { %v1542_v38 = vpop.permute.xlu1 %1541  ;;  %v1834_v53 = vsel %vm1830_vm8, %v1801_v34, %v1416_v39 }
  0xd5   : > { %v1866_v41 = vsel %vm1863_vm9, %v1833_v26, %v1542_v38  ;;  %795 = vrot.lane.b32.xlu0 %v586_v21, %s5363_s22  ;;  %v1703_v21 = vsel %vm1698_vm3, %v1670_v19, %v5681_v22 }
  0xd6   : > { %921 = vrot.lane.b32.xlu1 %v5695_v30, %s5360_s19  ;;  %5227 = vmatprep.mubr.msk.f32.mxu0 %vm1901_vm10, %v1866_v41  ;;  %v1736_v27 = vsel %vm1731_vm5, %v1703_v21, %v5699_v35  ;;  %v1638_v35 = vsel %vm204_vm0, %v5485_v40, %v5672_v14 }
  0xd7   : > { %v5729_v51 = vpop.permute.xlu0 %653  ;;  %v1671_v37 = vsel %vm1665_vm4, %v1638_v35, %v5683_v23 }
  0xd8   : > { %v5727_v50 = vpop.permute.xlu1 %1035  ;;  %v1704_v17 = vsel %vm1698_vm3, %v1671_v37, %v5701_v36  ;;  %v1639_v0 = vsel %vm204_vm0, %v5520_v49, %v5729_v51  ;;  %v196_v51 = vld [vmem:[%s5404_s17 + $0xc8] sm:$0xff]  ;;  %v591_v37 = vld [vmem:[#allocation2 + $0xda] sm:$0xff] }
  0xd9   : > { %1303 = vrot.lane.b32.xlu0 %v5723_v46, %s5364_s23  ;;  %v1737_v40 = vsel %vm1731_vm5, %v1704_v17, %v5727_v50  ;;  %230 = vst.msk [vmem:[#allocation2 + $0x141] sm:$0xff] %vm204_vm0, %v196_v51  ;;  %v5945_v51 = vld [vmem:[#allocation2 + $0xf8] sm:$0xff] }
  0xda   : > { %1429 = vrot.lane.b32.xlu1 %v555_v44, %s5365_s5 }
  0xdb   : > { %v1162_v54 = vpop.permute.xlu0 %1161 }
  0xdc   : > { %v1544_v48 = vpop.permute.xlu1 %1543  ;;  %v1769_v32 = vsel %vm1764_vm6, %v1736_v27, %v1162_v54 }
  0xdd   : > { %v1867_v55 = vsel %vm1863_vm9, %v1834_v53, %v1544_v48  ;;  %923 = vrot.lane.b32.xlu0 %v5723_v46, %s5360_s19  ;;  %v590_v48 = vld [vmem:[#allocation2 + $0xca] sm:$0xff] }
  0xde   : > { %1049 = vrot.lane.b32.xlu1 %v555_v44, %s5359_s18  ;;  %5228 = vmatmul.mubr.msk.f32.gmra.mxu0 %vm1901_vm10, %v1867_v55 }
  0xdf   : > { %v5746_v60 = vpop.permute.xlu0 %655 }
  0xe0   : > { %v5744_v58 = vpop.permute.xlu1 %781 }
  0xe1   : > { %1431 = vrot.lane.b32.xlu0 %v556_v57, %s5365_s5 }
  0xe2   : > { %1557 = vrot.lane.b32.xlu1 %v587_v56, %s5366_s8 }
  0xe3   : > { %v1164_v3 = vpop.permute.xlu0 %1163 }
  0xe4   : > { %v1290_v2 = vpop.permute.xlu1 %1289  ;;  %v1770_v14 = vsel %vm1764_vm6, %v1737_v40, %v1164_v3  ;;  %v5843_v3 = vld [vmem:[#allocation2 + $0xd8] sm:$0xff]  ;;  %v298_v40 = vld [vmem:[#allocation2 + $0x147] sm:$0x1] }
  0xe5   : > { %669 = vrot.lane.b32.xlu0 %v555_v44, %s5361_s20  ;;  %v1802_v13 = vsel %vm1797_vm7, %v1769_v32, %v1290_v2  ;;  %v558_v44 = vld [vmem:[#allocation2 + $0xc9] sm:$0xff]  ;;  %v1672_v2 = vsel %vm1665_vm4, %v1639_v0, %v5744_v58  ;;  %v559_v32 = vld [vmem:[#allocation2 + $0xd9] sm:$0xff]  ;;  %316 = vst.msk [vmem:[#allocation2 + $0x149] sm:$0x1] %vm266_vm1, %v298_v40 }
  0xe6   : > { %1051 = vrot.lane.b32.xlu1 %v556_v57, %s5359_s18 }
  0xe7   : > { %v5757_v6 = vpop.permute.xlu0 %783 }
  0xe8   : > { %v5755_v5 = vpop.permute.xlu1 %909 }
  0xe9   : > { %1177 = vrot.lane.b32.xlu0 %v587_v56, %s5362_s21 }
  0xea   : > { %1559 = vrot.lane.b32.xlu1 %v588_v4, %s5366_s8 }
  0xeb   : > { %v1292_v16 = vpop.permute.xlu0 %1291 }
  0xec   : > { %v1418_v10 = vpop.permute.xlu1 %1417  ;;  %v1803_v23 = vsel %vm1797_vm7, %v1770_v14, %v1292_v16  ;;  %v197_v14 = vld [vmem:[%s5404_s17 + $0xd0] sm:$0xff] }
  0xed   : > { %671 = vrot.lane.b32.xlu0 %v556_v57, %s5361_s20  ;;  %v1835_v22 = vsel %vm1830_vm8, %v1802_v13, %v1418_v10  ;;  %231 = vst.msk [vmem:[#allocation2 + $0x151] sm:$0xff] %vm204_vm0, %v197_v14 }
  0xee   : > { %797 = vrot.lane.b32.xlu1 %v587_v56, %s5363_s22  ;;  %v261_v56 = vld [vmem:[#allocation2 + $0x13a] sm:$0x1] }
  0xef   : > { %v5775_v25 = vpop.permute.xlu0 %911  ;;  %280 = vst.msk [vmem:[#allocation2 + $0x138] sm:$0x1] %vm266_vm1, %v261_v56 }
  0xf0   : > { %v5773_v24 = vpop.permute.xlu1 %1037 }
  0xf1   : > { %1179 = vrot.lane.b32.xlu0 %v588_v4, %s5362_s21 }
  0xf2   : > { %1305 = vrot.lane.b32.xlu1 %v5769_v20, %s5364_s23 }
  0xf3   : > { %v1420_v29 = vpop.permute.xlu0 %1419 }
  0xf4   : > { %v1546_v28 = vpop.permute.xlu1 %1545  ;;  %v1836_v39 = vsel %vm1830_vm8, %v1803_v23, %v1420_v29 }
  0xf5   : > { %v1868_v31 = vsel %vm1863_vm9, %v1835_v22, %v1546_v28  ;;  %799 = vrot.lane.b32.xlu0 %v588_v4, %s5363_s22  ;;  %v1705_v4 = vsel %vm1698_vm3, %v1672_v2, %v5755_v5 }
  0xf6   : > { %925 = vrot.lane.b32.xlu1 %v5769_v20, %s5360_s19  ;;  %5230 = vmatprep.mubr.msk.f32.mxu0 %vm1901_vm10, %v1868_v31  ;;  %v1738_v16 = vsel %vm1731_vm5, %v1705_v4, %v5773_v24  ;;  %v1640_v24 = vsel %vm204_vm0, %v5530_v52, %v5746_v60 }
  0xf7   : > { %v5803_v38 = vpop.permute.xlu0 %657  ;;  %v1673_v27 = vsel %vm1665_vm4, %v1640_v24, %v5757_v6 }
  0xf8   : > { %v5801_v26 = vpop.permute.xlu1 %1039  ;;  %v1706_v13 = vsel %vm1698_vm3, %v1673_v27, %v5775_v25  ;;  %v1641_v12 = vsel %vm204_vm0, %v5550_v59, %v5803_v38  ;;  %v198_v38 = vld [vmem:[%s5404_s17 + $0xd8] sm:$0xff] }
  0xf9   : > { %1307 = vrot.lane.b32.xlu0 %v5797_v9, %s5364_s23  ;;  %v1739_v52 = vsel %vm1731_vm5, %v1706_v13, %v5801_v26  ;;  %232 = vst.msk [vmem:[#allocation2 + $0x159] sm:$0xff] %vm204_vm0, %v198_v38  ;;  %v593_v27 = vld [vmem:[#allocation2 + $0xf2] sm:$0xff] }
  0xfa   : > { %1433 = vrot.lane.b32.xlu1 %v557_v33, %s5365_s5  ;;  %v6019_v38 = vld [vmem:[#allocation2 + $0x110] sm:$0xff] }
  0xfb   : > { %v1166_v41 = vpop.permute.xlu0 %1165 }
  0xfc   : > { %v1548_v36 = vpop.permute.xlu1 %1547  ;;  %v1771_v49 = vsel %vm1764_vm6, %v1738_v16, %v1166_v41 }
  0xfd   : > { %v1869_v42 = vsel %vm1863_vm9, %v1836_v39, %v1548_v36  ;;  %927 = vrot.lane.b32.xlu0 %v5797_v9, %s5360_s19  ;;  %v592_v36 = vld [vmem:[#allocation2 + $0xe2] sm:$0xff] }
  0xfe   : > { %1053 = vrot.lane.b32.xlu1 %v557_v33, %s5359_s18  ;;  %5231 = vmatmul.mubr.msk.f32.gmra.mxu0 %vm1901_vm10, %v1869_v42 }
  0xff   : > { %v5820_v50 = vpop.permute.xlu0 %659 }
 0x100   : > { %v5818_v47 = vpop.permute.xlu1 %785 }
 0x101   : > { %1435 = vrot.lane.b32.xlu0 %v558_v44, %s5365_s5 }
 0x102   : > { %1561 = vrot.lane.b32.xlu1 %v589_v43, %s5366_s8 }
 0x103   : > { %v1168_v53 = vpop.permute.xlu0 %1167 }
 0x104   : > { %v1294_v34 = vpop.permute.xlu1 %1293  ;;  %v1772_v60 = vsel %vm1764_vm6, %v1739_v52, %v1168_v53  ;;  %v5917_v53 = vld [vmem:[#allocation2 + $0xf0] sm:$0xff]  ;;  %v299_v52 = vld [vmem:[#allocation2 + $0x15f] sm:$0x1] }
 0x105   : > { %673 = vrot.lane.b32.xlu0 %v557_v33, %s5361_s20  ;;  %v1804_v58 = vsel %vm1797_vm7, %v1771_v49, %v1294_v34  ;;  %v560_v33 = vld [vmem:[#allocation2 + $0xe1] sm:$0xff]  ;;  %v1674_v34 = vsel %vm1665_vm4, %v1641_v12, %v5818_v47  ;;  %v561_v49 = vld [vmem:[#allocation2 + $0xf1] sm:$0xff]  ;;  %317 = vst.msk [vmem:[#allocation2 + $0x161] sm:$0x1] %vm266_vm1, %v299_v52 }
 0x106   : > { %1055 = vrot.lane.b32.xlu1 %v558_v44, %s5359_s18 }
 0x107   : > { %v5831_v55 = vpop.permute.xlu0 %787 }
 0x108   : > { %v5829_v54 = vpop.permute.xlu1 %913 }
 0x109   : > { %1181 = vrot.lane.b32.xlu0 %v589_v43, %s5362_s21 }
 0x10a   : > { %1563 = vrot.lane.b32.xlu1 %v590_v48, %s5366_s8 }
 0x10b   : > { %v1296_v63 = vpop.permute.xlu0 %1295 }
 0x10c   : > { %v1422_v57 = vpop.permute.xlu1 %1421  ;;  %v1805_v6 = vsel %vm1797_vm7, %v1772_v60, %v1296_v63  ;;  %v199_v60 = vld [vmem:[%s5404_s17 + $0xe0] sm:$0xff] }
 0x10d   : > { %675 = vrot.lane.b32.xlu0 %v558_v44, %s5361_s20  ;;  %v1837_v5 = vsel %vm1830_vm8, %v1804_v58, %v1422_v57  ;;  %233 = vst.msk [vmem:[#allocation2 + $0x169] sm:$0xff] %vm204_vm0, %v199_v60 }
 0x10e   : > { %801 = vrot.lane.b32.xlu1 %v589_v43, %s5363_s22  ;;  %v262_v43 = vld [vmem:[#allocation2 + $0x152] sm:$0x1] }
 0x10f   : > { %v5849_v10 = vpop.permute.xlu0 %915  ;;  %281 = vst.msk [vmem:[#allocation2 + $0x150] sm:$0x1] %vm266_vm1, %v262_v43 }
 0x110   : > { %v5847_v8 = vpop.permute.xlu1 %1041 }
 0x111   : > { %1183 = vrot.lane.b32.xlu0 %v590_v48, %s5362_s21 }
 0x112   : > { %1309 = vrot.lane.b32.xlu1 %v5843_v3, %s5364_s23 }
 0x113   : > { %v1424_v19 = vpop.permute.xlu0 %1423 }
 0x114   : > { %v1550_v18 = vpop.permute.xlu1 %1549  ;;  %v1838_v29 = vsel %vm1830_vm8, %v1805_v6, %v1424_v19 }
 0x115   : > { %v1870_v21 = vsel %vm1863_vm9, %v1837_v5, %v1550_v18  ;;  %803 = vrot.lane.b32.xlu0 %v590_v48, %s5363_s22  ;;  %v1707_v48 = vsel %vm1698_vm3, %v1674_v34, %v5829_v54 }
 0x116   : > { %929 = vrot.lane.b32.xlu1 %v5843_v3, %s5360_s19  ;;  %5233 = vmatprep.mubr.msk.f32.mxu0 %vm1901_vm10, %v1870_v21  ;;  %v1740_v63 = vsel %vm1731_vm5, %v1707_v48, %v5847_v8  ;;  %v1642_v8 = vsel %vm204_vm0, %v5560_v62, %v5820_v50 }
 0x117   : > { %v5877_v28 = vpop.permute.xlu0 %661  ;;  %v1675_v16 = vsel %vm1665_vm4, %v1642_v8, %v5831_v55 }
 0x118   : > { %v5875_v22 = vpop.permute.xlu1 %1043  ;;  %v1708_v58 = vsel %vm1698_vm3, %v1675_v16, %v5849_v10  ;;  %v1643_v14 = vsel %vm204_vm0, %v5582_v7, %v5877_v28  ;;  %v200_v28 = vld [vmem:[%s5404_s17 + $0xe8] sm:$0xff] }
 0x119   : > { %1311 = vrot.lane.b32.xlu0 %v5871_v1, %s5364_s23  ;;  %v1741_v62 = vsel %vm1731_vm5, %v1708_v58, %v5875_v22  ;;  %234 = vst.msk [vmem:[#allocation2 + $0x171] sm:$0xff] %vm204_vm0, %v200_v28  ;;  %v564_v58 = vld [vmem:[#allocation2 + $0x111] sm:$0xff] }
 0x11a   : > { %1437 = vrot.lane.b32.xlu1 %v559_v32, %s5365_s5 }
 0x11b   : > { %v1170_v31 = vpop.permute.xlu0 %1169 }
 0x11c   : > { %v1552_v25 = vpop.permute.xlu1 %1551  ;;  %v1773_v59 = vsel %vm1764_vm6, %v1740_v63, %v1170_v31 }
 0x11d   : > { %v1871_v35 = vsel %vm1863_vm9, %v1838_v29, %v1552_v25  ;;  %931 = vrot.lane.b32.xlu0 %v5871_v1, %s5360_s19  ;;  %v594_v25 = vld [vmem:[#allocation2 + $0xfa] sm:$0xff] }
 0x11e   : > { %1057 = vrot.lane.b32.xlu1 %v559_v32, %s5359_s18  ;;  %5234 = vmatmul.mubr.msk.f32.gmra.mxu0 %vm1901_vm10, %v1871_v35 }
 0x11f   : > { %v5894_v26 = vpop.permute.xlu0 %663 }
 0x120   : > { %v5892_v17 = vpop.permute.xlu1 %789 }
 0x121   : > { %1439 = vrot.lane.b32.xlu0 %v560_v33, %s5365_s5 }
 0x122   : > { %1565 = vrot.lane.b32.xlu1 %v591_v37, %s5366_s8 }
 0x123   : > { %v1172_v39 = vpop.permute.xlu0 %1171 }
 0x124   : > { %v1298_v23 = vpop.permute.xlu1 %1297  ;;  %v1774_v50 = vsel %vm1764_vm6, %v1741_v62, %v1172_v39  ;;  %v5991_v39 = vld [vmem:[#allocation2 + $0x108] sm:$0xff] }
 0x125   : > { %677 = vrot.lane.b32.xlu0 %v559_v32, %s5361_s20  ;;  %v1806_v47 = vsel %vm1797_vm7, %v1773_v59, %v1298_v23  ;;  %v562_v32 = vld [vmem:[#allocation2 + $0xf9] sm:$0xff]  ;;  %v1676_v23 = vsel %vm1665_vm4, %v1643_v14, %v5892_v17  ;;  %v563_v59 = vld [vmem:[#allocation2 + $0x109] sm:$0xff] }
 0x126   : > { %1059 = vrot.lane.b32.xlu1 %v560_v33, %s5359_s18 }
 0x127   : > { %v5905_v42 = vpop.permute.xlu0 %791 }
 0x128   : > { %v5903_v41 = vpop.permute.xlu1 %917 }
 0x129   : > { %1185 = vrot.lane.b32.xlu0 %v591_v37, %s5362_s21 }
 0x12a   : > { %1567 = vrot.lane.b32.xlu1 %v592_v36, %s5366_s8 }
 0x12b   : > { %v1300_v11 = vpop.permute.xlu0 %1299 }
 0x12c   : > { %v1426_v44 = vpop.permute.xlu1 %1425  ;;  %v1807_v55 = vsel %vm1797_vm7, %v1774_v50, %v1300_v11  ;;  %v6050_v50 = vld [vmem:[#allocation2 + $0x171] sm:$0xff] }
 0x12d   : > { %679 = vrot.lane.b32.xlu0 %v560_v33, %s5361_s20  ;;  %v1839_v54 = vsel %vm1830_vm8, %v1806_v47, %v1426_v44  ;;  %247 = vst.msk [vmem:[#allocation2 + $0x1a1] sm:$0xff] %vm204_vm0, %v6050_v50 }
 0x12e   : > { %805 = vrot.lane.b32.xlu1 %v591_v37, %s5363_s22  ;;  %v263_v37 = vld [vmem:[#allocation2 + $0x16a] sm:$0x1] }
 0x12f   : > { %v5923_v57 = vpop.permute.xlu0 %919  ;;  %282 = vst.msk [vmem:[#allocation2 + $0x168] sm:$0x1] %vm266_vm1, %v263_v37  ;;  %v6073_v37 = vld [vmem:[#allocation2 + $0x120] sm:$0xff] }
 0x130   : > { %v5921_v56 = vpop.permute.xlu1 %1045 }
 0x131   : > { %1187 = vrot.lane.b32.xlu0 %v592_v36, %s5362_s21 }
 0x132   : > { %1313 = vrot.lane.b32.xlu1 %v5917_v53, %s5364_s23 }
 0x133   : > { %v1428_v2 = vpop.permute.xlu0 %1427 }
 0x134   : > { %v1554_v0 = vpop.permute.xlu1 %1553  ;;  %v1840_v19 = vsel %vm1830_vm8, %v1807_v55, %v1428_v2  ;;  %v300_v55 = vld [vmem:[#allocation2 + $0x177] sm:$0x1] }
 0x135   : > { %v1872_v4 = vsel %vm1863_vm9, %v1839_v54, %v1554_v0  ;;  %807 = vrot.lane.b32.xlu0 %v592_v36, %s5363_s22  ;;  %v1709_v36 = vsel %vm1698_vm3, %v1676_v23, %v5903_v41  ;;  %318 = vst.msk [vmem:[#allocation2 + $0x179] sm:$0x1] %vm266_vm1, %v300_v55 }
 0x136   : > { %933 = vrot.lane.b32.xlu1 %v5917_v53, %s5360_s19  ;;  %5236 = vmatprep.mubr.msk.f32.mxu0 %vm1901_vm10, %v1872_v4  ;;  %v1742_v11 = vsel %vm1731_vm5, %v1709_v36, %v5921_v56  ;;  %v1644_v56 = vsel %vm204_vm0, %v5598_v15, %v5894_v26  ;;  %v6029_v26 = vld [vmem:[#allocation2 + $0x169] sm:$0xff] }
 0x137   : > { %v5951_v18 = vpop.permute.xlu0 %665  ;;  %v1677_v63 = vsel %vm1665_vm4, %v1644_v56, %v5905_v42  ;;  %246 = vst.msk [vmem:[#allocation2 + $0x199] sm:$0xff] %vm204_vm0, %v6029_v26 }
 0x138   : > { %v5949_v5 = vpop.permute.xlu1 %1047  ;;  %v1710_v47 = vsel %vm1698_vm3, %v1677_v63, %v5923_v57 }
 0x139   : > { %1315 = vrot.lane.b32.xlu0 %v5945_v51, %s5364_s23  ;;  %v1743_v15 = vsel %vm1731_vm5, %v1710_v47, %v5949_v5  ;;  %v597_v47 = vld [vmem:[#allocation2 + $0x122] sm:$0xff] }
 0x13a   : > { %1441 = vrot.lane.b32.xlu1 %v561_v49, %s5365_s5 }
 0x13b   : > { %v1174_v21 = vpop.permute.xlu0 %1173 }
 0x13c   : > { %v1556_v10 = vpop.permute.xlu1 %1555  ;;  %v1775_v7 = vsel %vm1764_vm6, %v1742_v11, %v1174_v21 }
 0x13d   : > { %v1873_v24 = vsel %vm1863_vm9, %v1840_v19, %v1556_v10  ;;  %935 = vrot.lane.b32.xlu0 %v5945_v51, %s5360_s19  ;;  %v201_v19 = vld [vmem:[%s5404_s17 + $0xf0] sm:$0xff] }
 0x13e   : > { %1061 = vrot.lane.b32.xlu1 %v561_v49, %s5359_s18  ;;  %5237 = vmatmul.mubr.msk.f32.gmra.mxu0 %vm1901_vm10, %v1873_v24  ;;  %235 = vst.msk [vmem:[#allocation2 + $0x181] sm:$0xff] %vm204_vm0, %v201_v19  ;;  %v596_v24 = vld [vmem:[#allocation2 + $0x112] sm:$0xff] }
 0x13f   : > { %v5968_v22 = vpop.permute.xlu0 %667 }
 0x140   : > { %v5966_v13 = vpop.permute.xlu1 %793 }
 0x141   : > { %1443 = vrot.lane.b32.xlu0 %v562_v32, %s5365_s5 }
 0x142   : > { %1569 = vrot.lane.b32.xlu1 %v593_v27, %s5366_s8 }
 0x143   : > { %v1176_v29 = vpop.permute.xlu0 %1175 }
 0x144   : > { %v1302_v6 = vpop.permute.xlu1 %1301  ;;  %v1776_v2 = vsel %vm1764_vm6, %v1743_v15, %v1176_v29  ;;  %v1645_v29 = vsel %vm204_vm0, %v5630_v45, %v5951_v18  ;;  %v202_v18 = vld [vmem:[%s5404_s17 + $0xf8] sm:$0xff] }
 0x145   : > { %681 = vrot.lane.b32.xlu0 %v561_v49, %s5361_s20  ;;  %v1808_v17 = vsel %vm1797_vm7, %v1775_v7, %v1302_v6  ;;  %v595_v49 = vld [vmem:[#allocation2 + $0x10a] sm:$0xff]  ;;  %v264_v52 = vld [vmem:[#allocation2 + $0x182] sm:$0x1]  ;;  %236 = vst.msk [vmem:[#allocation2 + $0x189] sm:$0xff] %vm204_vm0, %v202_v18  ;;  %v567_v18 = vld [vmem:[#allocation2 + $0x139] sm:$0xff] }
 0x146   : > { %1063 = vrot.lane.b32.xlu1 %v562_v32, %s5359_s18  ;;  %283 = vst.msk [vmem:[#allocation2 + $0x180] sm:$0x1] %vm266_vm1, %v264_v52  ;;  %v6145_v52 = vld [vmem:[#allocation2 + $0x138] sm:$0xff] }
 0x147   : > { %v5979_v35 = vpop.permute.xlu0 %795 }
 0x148   : > { %v5977_v31 = vpop.permute.xlu1 %921 }
 0x149   : > { %1189 = vrot.lane.b32.xlu0 %v593_v27, %s5362_s21 }
 0x14a   : > { %1571 = vrot.lane.b32.xlu1 %v594_v25, %s5366_s8 }
 0x14b   : > { %v1304_v40 = vpop.permute.xlu0 %1303 }
 0x14c   : > { %v1430_v33 = vpop.permute.xlu1 %1429  ;;  %v1809_v42 = vsel %vm1797_vm7, %v1776_v2, %v1304_v40 }
 0x14d   : > { %683 = vrot.lane.b32.xlu0 %v562_v32, %s5361_s20  ;;  %v1841_v41 = vsel %vm1830_vm8, %v1808_v17, %v1430_v33  ;;  %v565_v17 = vld [vmem:[#allocation2 + $0x121] sm:$0xff] }
 0x14e   : > { %809 = vrot.lane.b32.xlu1 %v593_v27, %s5363_s22 }
 0x14f   : > { %v5997_v44 = vpop.permute.xlu0 %923 }
 0x150   : > { %v5995_v43 = vpop.permute.xlu1 %1049 }
 0x151   : > { %1191 = vrot.lane.b32.xlu0 %v594_v25, %s5362_s21 }
 0x152   : > { %1317 = vrot.lane.b32.xlu1 %v5991_v39, %s5364_s23 }
 0x153   : > { %v1432_v34 = vpop.permute.xlu0 %1431 }
 0x154   : > { %v1558_v12 = vpop.permute.xlu1 %1557  ;;  %v1842_v57 = vsel %vm1830_vm8, %v1809_v42, %v1432_v34  ;;  %v301_v42 = vld [vmem:[#allocation2 + $0x18f] sm:$0x1] }
 0x155   : > { %v1874_v48 = vsel %vm1863_vm9, %v1841_v41, %v1558_v12  ;;  %811 = vrot.lane.b32.xlu0 %v594_v25, %s5363_s22  ;;  %v1678_v25 = vsel %vm1665_vm4, %v1645_v29, %v5966_v13  ;;  %v6101_v41 = vld [vmem:[#allocation2 + $0x128] sm:$0xff]  ;;  %319 = vst.msk [vmem:[#allocation2 + $0x191] sm:$0x1] %vm266_vm1, %v301_v42 }
 0x156   : > { %937 = vrot.lane.b32.xlu1 %v5991_v39, %s5360_s19  ;;  %5239 = vmatprep.mubr.msk.f32.mxu0 %vm1901_vm10, %v1874_v48  ;;  %v1711_v33 = vsel %vm1698_vm3, %v1678_v25, %v5977_v31 }
 0x157   : > { %v6025_v0 = vpop.permute.xlu0 %669  ;;  %v1744_v23 = vsel %vm1731_vm5, %v1711_v33, %v5995_v43  ;;  %v1646_v43 = vsel %vm204_vm0, %v5653_v61, %v5968_v22 }
 0x158   : > { %v6023_v54 = vpop.permute.xlu1 %1051  ;;  %v1679_v28 = vsel %vm1665_vm4, %v1646_v43, %v5979_v35 }
 0x159   : > { %1319 = vrot.lane.b32.xlu0 %v6019_v38, %s5364_s23  ;;  %v1712_v12 = vsel %vm1698_vm3, %v1679_v28, %v5997_v44 }
 0x15a   : > { %1445 = vrot.lane.b32.xlu1 %v563_v59, %s5365_s5  ;;  %v1745_v61 = vsel %vm1731_vm5, %v1712_v12, %v6023_v54  ;;  %v566_v54 = vld [vmem:[#allocation2 + $0x129] sm:$0xff]  ;;  %v568_v12 = vld [vmem:[#allocation2 + $0x141] sm:$0xff] }
 0x15b   : > { %v1178_v8 = vpop.permute.xlu0 %1177 }
 0x15c   : > { %v1560_v4 = vpop.permute.xlu1 %1559  ;;  %v1777_v45 = vsel %vm1764_vm6, %v1744_v23, %v1178_v8  ;;  %v265_v8 = vld [vmem:[#allocation2 + $0x19a] sm:$0x1] }
 0x15d   : > { %v1875_v16 = vsel %vm1863_vm9, %v1842_v57, %v1560_v4  ;;  %939 = vrot.lane.b32.xlu0 %v6019_v38, %s5360_s19  ;;  %284 = vst.msk [vmem:[#allocation2 + $0x198] sm:$0x1] %vm266_vm1, %v265_v8 }
 0x15e   : > { %1065 = vrot.lane.b32.xlu1 %v563_v59, %s5359_s18  ;;  %5240 = vmatmul.mubr.msk.f32.gmra.mxu0 %vm1901_vm10, %v1875_v16  ;;  %v598_v16 = vld [vmem:[#allocation2 + $0x12a] sm:$0xff] }
 0x15f   : > { %v6046_v62 = vpop.permute.xlu0 %671 }
 0x160   : > { %v6044_v5 = vpop.permute.xlu1 %797 }
 0x161   : > { %1447 = vrot.lane.b32.xlu0 %v564_v58, %s5365_s5 }
 0x162   : > { %1573 = vrot.lane.b32.xlu1 %v595_v49, %s5366_s8 }
 0x163   : > { %v1180_v21 = vpop.permute.xlu0 %1179 }
 0x164   : > { %v1306_v10 = vpop.permute.xlu1 %1305  ;;  %v1778_v22 = vsel %vm1764_vm6, %v1745_v61, %v1180_v21  ;;  %v302_v21 = vld [vmem:[#allocation2 + $0x1a7] sm:$0x1] }
 0x165   : > { %685 = vrot.lane.b32.xlu0 %v563_v59, %s5361_s20  ;;  %v1810_v13 = vsel %vm1797_vm7, %v1777_v45, %v1306_v10  ;;  %v1647_v10 = vsel %vm204_vm0, %v5695_v30, %v6025_v0  ;;  %320 = vst.msk [vmem:[#allocation2 + $0x1a9] sm:$0x1] %vm266_vm1, %v302_v21  ;;  %v1648_v45 = vsel %vm204_vm0, %v5723_v46, %v6046_v62 }
 0x166   : > { %1067 = vrot.lane.b32.xlu1 %v564_v58, %s5359_s18 }
 0x167   : > { %v6061_v32 = vpop.permute.xlu0 %799 }
 0x168   : > { %v6059_v27 = vpop.permute.xlu1 %925 }
 0x169   : > { %1193 = vrot.lane.b32.xlu0 %v595_v49, %s5362_s21 }
 0x16a   : > { %1575 = vrot.lane.b32.xlu1 %v596_v24, %s5366_s8 }
 0x16b   : > { %v1308_v6 = vpop.permute.xlu0 %1307 }
 0x16c   : > { %v1434_v60 = vpop.permute.xlu1 %1433  ;;  %v1811_v35 = vsel %vm1797_vm7, %v1778_v22, %v1308_v6 }
 0x16d   : > { %687 = vrot.lane.b32.xlu0 %v564_v58, %s5361_s20  ;;  %v1843_v31 = vsel %vm1830_vm8, %v1810_v13, %v1434_v60  ;;  %v6170_v13 = vld [vmem:[#allocation2 + $0x140] sm:$0xff] }
 0x16e   : > { %813 = vrot.lane.b32.xlu1 %v595_v49, %s5363_s22 }
 0x16f   : > { %v6079_v14 = vpop.permute.xlu0 %927 }
 0x170   : > { %v6077_v40 = vpop.permute.xlu1 %1053 }
 0x171   : > { %1195 = vrot.lane.b32.xlu0 %v596_v24, %s5362_s21 }
 0x172   : > { %1321 = vrot.lane.b32.xlu1 %v6073_v37, %s5364_s23 }
 0x173   : > { %v1436_v11 = vpop.permute.xlu0 %1435 }
 0x174   : > { %v1562_v36 = vpop.permute.xlu1 %1561  ;;  %v1844_v56 = vsel %vm1830_vm8, %v1811_v35, %v1436_v11 }
 0x175   : > { %v1876_v7 = vsel %vm1863_vm9, %v1843_v31, %v1562_v36  ;;  %815 = vrot.lane.b32.xlu0 %v596_v24, %s5363_s22  ;;  %v1680_v24 = vsel %vm1665_vm4, %v1647_v10, %v6044_v5 }
 0x176   : > { %941 = vrot.lane.b32.xlu1 %v6073_v37, %s5360_s19  ;;  %5242 = vmatprep.mubr.msk.f32.mxu0 %vm1901_vm10, %v1876_v7  ;;  %v1713_v60 = vsel %vm1698_vm3, %v1680_v24, %v6059_v27 }
 0x177   : > { %v6107_v48 = vpop.permute.xlu0 %673  ;;  %v1746_v30 = vsel %vm1731_vm5, %v1713_v60, %v6077_v40  ;;  %v1681_v40 = vsel %vm1665_vm4, %v1648_v45, %v6061_v32  ;;  %v569_v60 = vld [vmem:[#allocation2 + $0x151] sm:$0xff]  ;;  %v570_v45 = vld [vmem:[#allocation2 + $0x159] sm:$0xff] }
 0x178   : > { %v6105_v34 = vpop.permute.xlu1 %1055  ;;  %v1714_v31 = vsel %vm1698_vm3, %v1681_v40, %v6079_v14 }
 0x179   : > { %1323 = vrot.lane.b32.xlu0 %v6101_v41, %s5364_s23  ;;  %v1747_v46 = vsel %vm1731_vm5, %v1714_v31, %v6105_v34 }
 0x17a   : > { %1449 = vrot.lane.b32.xlu1 %v565_v17, %s5365_s5 }
 0x17b   : > { %v1182_v44 = vpop.permute.xlu0 %1181 }
 0x17c   : > { %v1564_v63 = vpop.permute.xlu1 %1563  ;;  %v1779_v0 = vsel %vm1764_vm6, %v1746_v30, %v1182_v44 }
 0x17d   : > { %v1877_v59 = vsel %vm1863_vm9, %v1844_v56, %v1564_v63  ;;  %943 = vrot.lane.b32.xlu0 %v6101_v41, %s5360_s19  ;;  %v600_v56 = vld [vmem:[#allocation2 + $0x142] sm:$0xff] }
 0x17e   : > { %1069 = vrot.lane.b32.xlu1 %v565_v17, %s5359_s18  ;;  %5243 = vmatmul.mubr.msk.f32.gmra.mxu0 %vm1901_vm10, %v1877_v59 }
 0x17f   : > { %v6124_v2 = vpop.permute.xlu0 %675 }
 0x180   : > { %v6122_v15 = vpop.permute.xlu1 %801  ;;  %v1650_v21 = vsel %vm204_vm0, %v5797_v9, %v6124_v2 }
 0x181   : > { %1451 = vrot.lane.b32.xlu0 %v566_v54, %s5365_s5 }
 0x182   : > { %1577 = vrot.lane.b32.xlu1 %v597_v47, %s5366_s8 }
 0x183   : > { %v1184_v4 = vpop.permute.xlu0 %1183 }
 0x184   : > { %v1310_v57 = vpop.permute.xlu1 %1309  ;;  %v1780_v62 = vsel %vm1764_vm6, %v1747_v46, %v1184_v4  ;;  %v602_v46 = vld [vmem:[#allocation2 + $0x15a] sm:$0xff] }
 0x185   : > { %689 = vrot.lane.b32.xlu0 %v565_v17, %s5361_s20  ;;  %v1812_v5 = vsel %vm1797_vm7, %v1779_v0, %v1310_v57  ;;  %v599_v17 = vld [vmem:[#allocation2 + $0x13a] sm:$0xff]  ;;  %v6210_v57 = vld [vmem:[#allocation2 + $0x150] sm:$0xff] }
 0x186   : > { %1071 = vrot.lane.b32.xlu1 %v566_v54, %s5359_s18 }
 0x187   : > { %v6134_v58 = vpop.permute.xlu0 %803 }
 0x188   : > { %v6132_v49 = vpop.permute.xlu1 %929  ;;  %v1683_v24 = vsel %vm1665_vm4, %v1650_v21, %v6134_v58 }
 0x189   : > { %1197 = vrot.lane.b32.xlu0 %v597_v47, %s5362_s21 }
 0x18a   : > { %1579 = vrot.lane.b32.xlu1 %v598_v16, %s5366_s8 }
 0x18b   : > { %v1312_v19 = vpop.permute.xlu0 %1311 }
 0x18c   : > { %v1438_v55 = vpop.permute.xlu1 %1437  ;;  %v1813_v32 = vsel %vm1797_vm7, %v1780_v62, %v1312_v19 }
 0x18d   : > { %691 = vrot.lane.b32.xlu0 %v566_v54, %s5361_s20  ;;  %v1845_v25 = vsel %vm1830_vm8, %v1812_v5, %v1438_v55  ;;  %v1649_v54 = vsel %vm204_vm0, %v5769_v20, %v6107_v48 }
 0x18e   : > { %817 = vrot.lane.b32.xlu1 %v597_v47, %s5363_s22  ;;  %v1682_v42 = vsel %vm1665_vm4, %v1649_v54, %v6122_v15 }
 0x18f   : > { %v6150_v29 = vpop.permute.xlu0 %931  ;;  %v1715_v4 = vsel %vm1698_vm3, %v1682_v42, %v6132_v49 }
 0x190   : > { %v1058_v6 = vpop.permute.xlu1 %1057  ;;  %v1716_v30 = vsel %vm1698_vm3, %v1683_v24, %v6150_v29 }
 0x191   : > { %1199 = vrot.lane.b32.xlu0 %v598_v16, %s5362_s21  ;;  %v1748_v55 = vsel %vm1731_vm5, %v1715_v4, %v1058_v6  ;;  %v6233_v6 = vld [vmem:[#allocation2 + $0x158] sm:$0xff]  ;;  %v6295_v4 = vld [vmem:[#allocation2 + $0x170] sm:$0xff] }
 0x192   : > { %1325 = vrot.lane.b32.xlu1 %v6145_v52, %s5364_s23 }
 0x193   : > { %v1440_v23 = vpop.permute.xlu0 %1439 }
 0x194   : > { %v1566_v33 = vpop.permute.xlu1 %1565  ;;  %v1846_v7 = vsel %vm1830_vm8, %v1813_v32, %v1440_v23 }
 0x195   : > { %v1878_v27 = vsel %vm1863_vm9, %v1845_v25, %v1566_v33  ;;  %819 = vrot.lane.b32.xlu0 %v598_v16, %s5363_s22 }
 0x196   : > { %945 = vrot.lane.b32.xlu1 %v6145_v52, %s5360_s19  ;;  %5245 = vmatprep.mubr.msk.f32.mxu0 %vm1901_vm10, %v1878_v27  ;;  %v601_v27 = vld [vmem:[#allocation2 + $0x152] sm:$0xff] }
 0x197   : > { %v6174_v11 = vpop.permute.xlu0 %677 }
 0x198   : > { %v1060_v36 = vpop.permute.xlu1 %1059 }
 0x199   : > { %1327 = vrot.lane.b32.xlu0 %v6170_v13, %s5364_s23  ;;  %v1749_v9 = vsel %vm1731_vm5, %v1716_v30, %v1060_v36  ;;  %v604_v30 = vld [vmem:[#allocation2 + $0x172] sm:$0xff] }
 0x19a   : > { %1453 = vrot.lane.b32.xlu1 %v567_v18, %s5365_s5 }
 0x19b   : > { %v1186_v28 = vpop.permute.xlu0 %1185 }
 0x19c   : > { %v1568_v43 = vpop.permute.xlu1 %1567  ;;  %v1781_v19 = vsel %vm1764_vm6, %v1748_v55, %v1186_v28  ;;  %v1651_v28 = vsel %vm204_vm0, %v5843_v3, %v6174_v11 }
 0x19d   : > { %v1879_v14 = vsel %vm1863_vm9, %v1846_v7, %v1568_v43  ;;  %947 = vrot.lane.b32.xlu0 %v6170_v13, %s5360_s19 }
 0x19e   : > { %1073 = vrot.lane.b32.xlu1 %v567_v18, %s5359_s18  ;;  %5246 = vmatmul.mubr.msk.f32.gmra.mxu0 %vm1901_vm10, %v1879_v14 }
 0x19f   : > { %v6191_v61 = vpop.permute.xlu0 %679 }
 0x1a0   : > { %v6189_v34 = vpop.permute.xlu1 %805  ;;  %v1652_v54 = vsel %vm204_vm0, %v5871_v1, %v6191_v61 }
 0x1a1   : > { %1455 = vrot.lane.b32.xlu0 %v568_v12, %s5365_s5  ;;  %v1684_v14 = vsel %vm1665_vm4, %v1651_v28, %v6189_v34 }
 0x1a2   : > { %1581 = vrot.lane.b32.xlu1 %v599_v17, %s5366_s8 }
 0x1a3   : > { %v1188_v35 = vpop.permute.xlu0 %1187 }
 0x1a4   : > { %v1314_v22 = vpop.permute.xlu1 %1313  ;;  %v1782_v2 = vsel %vm1764_vm6, %v1749_v9, %v1188_v35 }
 0x1a5   : > { %693 = vrot.lane.b32.xlu0 %v567_v18, %s5361_s20  ;;  %v1814_v20 = vsel %vm1797_vm7, %v1781_v19, %v1314_v22 }
 0x1a6   : > { %1075 = vrot.lane.b32.xlu1 %v568_v12, %s5359_s18 }
 0x1a7   : > { %v6199_v44 = vpop.permute.xlu0 %807 }
 0x1a8   : > { %v6197_v63 = vpop.permute.xlu1 %933  ;;  %v1685_v42 = vsel %vm1665_vm4, %v1652_v54, %v6199_v44 }
 0x1a9   : > { %1201 = vrot.lane.b32.xlu0 %v599_v17, %s5362_s21 }
 0x1aa   : > { %1583 = vrot.lane.b32.xlu1 %v600_v56, %s5366_s8 }
 0x1ab   : > { %v1316_v47 = vpop.permute.xlu0 %1315 }
 0x1ac   : > { %v1442_v59 = vpop.permute.xlu1 %1441  ;;  %v1815_v58 = vsel %vm1797_vm7, %v1782_v2, %v1316_v47 }
 0x1ad   : > { %695 = vrot.lane.b32.xlu0 %v568_v12, %s5361_s20  ;;  %v1847_v48 = vsel %vm1830_vm8, %v1814_v20, %v1442_v59  ;;  %v1717_v12 = vsel %vm1698_vm3, %v1684_v14, %v6197_v63 }
 0x1ae   : > { %821 = vrot.lane.b32.xlu1 %v599_v17, %s5363_s22  ;;  %v6272_v17 = vld [vmem:[#allocation2 + $0x168] sm:$0xff] }
 0x1af   : > { %v6214_v16 = vpop.permute.xlu0 %935 }
 0x1b0   : > { %v1062_v8 = vpop.permute.xlu1 %1061 }
 0x1b1   : > { %1203 = vrot.lane.b32.xlu0 %v600_v56, %s5362_s21 }
 0x1b2   : > { %1329 = vrot.lane.b32.xlu1 %v6210_v57, %s5364_s23 }
 0x1b3   : > { %v1444_v10 = vpop.permute.xlu0 %1443 }
 0x1b4   : > { %v1570_v15 = vpop.permute.xlu1 %1569  ;;  %v1848_v25 = vsel %vm1830_vm8, %v1815_v58, %v1444_v10  ;;  %v603_v10 = vld [vmem:[#allocation2 + $0x16a] sm:$0xff] }
 0x1b5   : > { %v1880_v49 = vsel %vm1863_vm9, %v1847_v48, %v1570_v15  ;;  %823 = vrot.lane.b32.xlu0 %v600_v56, %s5363_s22  ;;  %v1750_v56 = vsel %vm1731_vm5, %v1717_v12, %v1062_v8  ;;  %v1718_v8 = vsel %vm1698_vm3, %v1685_v42, %v6214_v16  ;;  %v512_v42 = vld [vmem:[#allocation2 + $0x18a] sm:$0xff] }
 0x1b6   : > { %949 = vrot.lane.b32.xlu1 %v6210_v57, %s5360_s19  ;;  %5248 = vmatprep.mubr.msk.f32.mxu0 %vm1901_vm10, %v1880_v49 }
 0x1b7   : > { %v6237_v5 = vpop.permute.xlu0 %681 }
 0x1b8   : > { %v1064_v0 = vpop.permute.xlu1 %1063 }
 0x1b9   : > { %1331 = vrot.lane.b32.xlu0 %v6233_v6, %s5364_s23  ;;  %v1751_v1 = vsel %vm1731_vm5, %v1718_v8, %v1064_v0 }
 0x1ba   : > { %1457 = vrot.lane.b32.xlu1 %v569_v60, %s5365_s5 }
 0x1bb   : > { %v1190_v23 = vpop.permute.xlu0 %1189 }
 0x1bc   : > { %v1572_v33 = vpop.permute.xlu1 %1571  ;;  %v1783_v59 = vsel %vm1764_vm6, %v1750_v56, %v1190_v23 }
 0x1bd   : > { %v1881_v29 = vsel %vm1863_vm9, %v1848_v25, %v1572_v33  ;;  %951 = vrot.lane.b32.xlu0 %v6233_v6, %s5360_s19  ;;  %v1653_v25 = vsel %vm204_vm0, %v5917_v53, %v6237_v5  ;;  %v541_v33 = vld [vmem:[#allocation2 + $0x180] sm:$0xff] }
 0x1be   : > { %1077 = vrot.lane.b32.xlu1 %v569_v60, %s5359_s18  ;;  %5249 = vmatmul.mubr.msk.f32.gmra.mxu0 %vm1901_vm10, %v1881_v29 }
 0x1bf   : > { %v6253_v18 = vpop.permute.xlu0 %683 }
 0x1c0   : > { %v6251_v40 = vpop.permute.xlu1 %809 }
 0x1c1   : > { %1459 = vrot.lane.b32.xlu0 %v570_v45, %s5365_s5 }
 0x1c2   : > { %1585 = vrot.lane.b32.xlu1 %v601_v27, %s5366_s8 }
 0x1c3   : > { %v1192_v36 = vpop.permute.xlu0 %1191 }
 0x1c4   : > { %v1318_v31 = vpop.permute.xlu1 %1317  ;;  %v1784_v61 = vsel %vm1764_vm6, %v1751_v1, %v1192_v36  ;;  %v544_v1 = vld [vmem:[#allocation2 + $0x1a0] sm:$0xff] }
 0x1c5   : > { %697 = vrot.lane.b32.xlu0 %v569_v60, %s5361_s20  ;;  %v1816_v3 = vsel %vm1797_vm7, %v1783_v59, %v1318_v31 }
 0x1c6   : > { %1079 = vrot.lane.b32.xlu1 %v570_v45, %s5359_s18 }
 0x1c7   : > { %v6261_v32 = vpop.permute.xlu0 %811 }
 0x1c8   : > { %v6259_v62 = vpop.permute.xlu1 %937 }
 0x1c9   : > { %1205 = vrot.lane.b32.xlu0 %v601_v27, %s5362_s21 }
 0x1ca   : > { %1587 = vrot.lane.b32.xlu1 %v602_v46, %s5366_s8 }
 0x1cb   : > { %v1320_v43 = vpop.permute.xlu0 %1319 }
 0x1cc   : > { %v1446_v7 = vpop.permute.xlu1 %1445  ;;  %v1817_v44 = vsel %vm1797_vm7, %v1784_v61, %v1320_v43  ;;  %v542_v43 = vld [vmem:[#allocation2 + $0x188] sm:$0xff]  ;;  %v543_v61 = vld [vmem:[#allocation2 + $0x198] sm:$0xff] }
 0x1cd   : > { %699 = vrot.lane.b32.xlu0 %v570_v45, %s5361_s20  ;;  %v1849_v11 = vsel %vm1830_vm8, %v1816_v3, %v1446_v7  ;;  %v573_v7 = vld [vmem:[#allocation2 + $0x181] sm:$0xff] }
 0x1ce   : > { %825 = vrot.lane.b32.xlu1 %v601_v27, %s5363_s22 }
 0x1cf   : > { %v6276_v35 = vpop.permute.xlu0 %939 }
 0x1d0   : > { %v1066_v22 = vpop.permute.xlu1 %1065 }
 0x1d1   : > { %1207 = vrot.lane.b32.xlu0 %v602_v46, %s5362_s21 }
 0x1d2   : > { %1333 = vrot.lane.b32.xlu1 %v6272_v17, %s5364_s23 }
 0x1d3   : > { %v1448_v47 = vpop.permute.xlu0 %1447 }
 0x1d4   : > { %v1574_v34 = vpop.permute.xlu1 %1573  ;;  %v1850_v20 = vsel %vm1830_vm8, %v1817_v44, %v1448_v47 }
 0x1d5   : > { %v1882_v63 = vsel %vm1863_vm9, %v1849_v11, %v1574_v34  ;;  %827 = vrot.lane.b32.xlu0 %v602_v46, %s5363_s22  ;;  %v1654_v46 = vsel %vm204_vm0, %v5945_v51, %v6253_v18  ;;  %v574_v11 = vld [vmem:[#allocation2 + $0x189] sm:$0xff] }
 0x1d6   : > { %953 = vrot.lane.b32.xlu1 %v6272_v17, %s5360_s19  ;;  %5251 = vmatprep.mubr.msk.f32.mxu0 %vm1901_vm10, %v1882_v63 }
 0x1d7   : > { %v6299_v19 = vpop.permute.xlu0 %685 }
 0x1d8   : > { %v1068_v55 = vpop.permute.xlu1 %1067 }
 0x1d9   : > { %1335 = vrot.lane.b32.xlu0 %v6295_v4, %s5364_s23 }
 0x1da   : > { %1461 = vrot.lane.b32.xlu1 %v6029_v26, %s5365_s5 }
 0x1db   : > { %v1194_v15 = vpop.permute.xlu0 %1193 }
 0x1dc   : > { %v1576_v48 = vpop.permute.xlu1 %1575 }
 0x1dd   : > { %v1883_v16 = vsel %vm1863_vm9, %v1850_v20, %v1576_v48  ;;  %955 = vrot.lane.b32.xlu0 %v6295_v4, %s5360_s19  ;;  %v1655_v48 = vsel %vm204_vm0, %v5991_v39, %v6299_v19  ;;  %v608_v19 = vld [vmem:[#allocation2 + $0x1a2] sm:$0xff] }
 0x1de   : > { %1081 = vrot.lane.b32.xlu1 %v6029_v26, %s5359_s18  ;;  %5252 = vmatmul.mubr.msk.f32.gmra.mxu0 %vm1901_vm10, %v1883_v16  ;;  %v576_v16 = vld [vmem:[#allocation2 + $0x1a1] sm:$0xff] }
 0x1df   : > { %v6317_v21 = vpop.permute.xlu0 %687 }
 0x1e0   : > { %v6315_v49 = vpop.permute.xlu1 %813 }
 0x1e1   : > { %1463 = vrot.lane.b32.xlu0 %v6050_v50, %s5365_s5 }
 0x1e2   : > { %1589 = vrot.lane.b32.xlu1 %v603_v10, %s5366_s8 }
 0x1e3   : > { %v1196_v60 = vpop.permute.xlu0 %1195 }
 0x1e4   : > { %v1322_v24 = vpop.permute.xlu1 %1321 }
 0x1e5   : > { %701 = vrot.lane.b32.xlu0 %v6029_v26, %s5361_s20  ;;  %v1686_v26 = vsel %vm1665_vm4, %v1653_v25, %v6251_v40  ;;  %v607_v25 = vld [vmem:[#allocation2 + $0x19a] sm:$0xff] }
 0x1e6   : > { %1083 = vrot.lane.b32.xlu1 %v6050_v50, %s5359_s18  ;;  %v1719_v23 = vsel %vm1698_vm3, %v1686_v26, %v6259_v62  ;;  %v1687_v62 = vsel %vm1665_vm4, %v1654_v46, %v6261_v32 }
 0x1e7   : > { %v6328_v9 = vpop.permute.xlu0 %815  ;;  %v1752_v45 = vsel %vm1731_vm5, %v1719_v23, %v1066_v22  ;;  %v1720_v28 = vsel %vm1698_vm3, %v1687_v62, %v6276_v35  ;;  %v605_v35 = vld [vmem:[#allocation2 + $0x182] sm:$0xff]  ;;  %v1656_v23 = vsel %vm204_vm0, %v6019_v38, %v6317_v21 }
 0x1e8   : > { %v6326_v0 = vpop.permute.xlu1 %941  ;;  %v1785_v31 = vsel %vm1764_vm6, %v1752_v45, %v1194_v15  ;;  %v1753_v22 = vsel %vm1731_vm5, %v1720_v28, %v1068_v55  ;;  %v1688_v15 = vsel %vm1665_vm4, %v1655_v48, %v6315_v49 }
 0x1e9   : > { %1209 = vrot.lane.b32.xlu0 %v603_v10, %s5362_s21  ;;  %v1818_v53 = vsel %vm1797_vm7, %v1785_v31, %v1322_v24  ;;  %v1786_v51 = vsel %vm1764_vm6, %v1753_v22, %v1196_v60  ;;  %v1721_v24 = vsel %vm1698_vm3, %v1688_v15, %v6326_v0 }
 0x1ea   : > { %1591 = vrot.lane.b32.xlu1 %v604_v30, %s5366_s8 }
 0x1eb   : > { %v1324_v58 = vpop.permute.xlu0 %1323 }
 0x1ec   : > { %v1450_v2 = vpop.permute.xlu1 %1449  ;;  %v1819_v18 = vsel %vm1797_vm7, %v1786_v51, %v1324_v58 }
 0x1ed   : > { %703 = vrot.lane.b32.xlu0 %v6050_v50, %s5361_s20  ;;  %v1851_v50 = vsel %vm1830_vm8, %v1818_v53, %v1450_v2 }
 0x1ee   : > { %829 = vrot.lane.b32.xlu1 %v603_v10, %s5363_s22  ;;  %v575_v10 = vld [vmem:[#allocation2 + $0x199] sm:$0xff] }
 0x1ef   : > { %v6342_v27 = vpop.permute.xlu0 %943 }
 0x1f0   : > { %v1070_v29 = vpop.permute.xlu1 %1069 }
 0x1f1   : > { %1211 = vrot.lane.b32.xlu0 %v604_v30, %s5362_s21  ;;  %v1754_v2 = vsel %vm1731_vm5, %v1721_v24, %v1070_v29  ;;  %v1689_v29 = vsel %vm1665_vm4, %v1656_v23, %v6328_v9 }
 0x1f2   : > { %1337 = vrot.lane.b32.xlu1 %v541_v33, %s5364_s23  ;;  %v1722_v45 = vsel %vm1698_vm3, %v1689_v29, %v6342_v27 }
 0x1f3   : > { %v1452_v40 = vpop.permute.xlu0 %1451 }
 0x1f4   : > { %v1578_v5 = vpop.permute.xlu1 %1577  ;;  %v1852_v32 = vsel %vm1830_vm8, %v1819_v18, %v1452_v40 }
 0x1f5   : > { %v1884_v36 = vsel %vm1863_vm9, %v1851_v50, %v1578_v5  ;;  %831 = vrot.lane.b32.xlu0 %v604_v30, %s5363_s22 }
 0x1f6   : > { %957 = vrot.lane.b32.xlu1 %v541_v33, %s5360_s19  ;;  %5254 = vmatprep.mubr.msk.f32.mxu0 %vm1901_vm10, %v1884_v36 }
 0x1f7   : > { %v6361_v12 = vpop.permute.xlu0 %689 }
 0x1f8   : > { %v1072_v14 = vpop.permute.xlu1 %1071  ;;  %v1657_v51 = vsel %vm204_vm0, %v6073_v37, %v6361_v12 }
 0x1f9   : > { %1339 = vrot.lane.b32.xlu0 %v542_v43, %s5364_s23  ;;  %v1755_v50 = vsel %vm1731_vm5, %v1722_v45, %v1072_v14 }
 0x1fa   : > { %1465 = vrot.lane.b32.xlu1 %v573_v7, %s5365_s5 }
 0x1fb   : > { %v1198_v59 = vpop.permute.xlu0 %1197 }
 0x1fc   : > { %v1580_v56 = vpop.permute.xlu1 %1579  ;;  %v1787_v58 = vsel %vm1764_vm6, %v1754_v2, %v1198_v59 }
 0x1fd   : > { %v1885_v3 = vsel %vm1863_vm9, %v1852_v32, %v1580_v56  ;;  %959 = vrot.lane.b32.xlu0 %v542_v43, %s5360_s19 }
 0x1fe   : > { %1085 = vrot.lane.b32.xlu1 %v573_v7, %s5359_s18  ;;  %5255 = vmatmul.mubr.msk.f32.gmra.mxu0 %vm1901_vm10, %v1885_v3 }
 0x1ff   : > { %v6375_v47 = vpop.permute.xlu0 %691 }
 0x200   : > { %v6373_v34 = vpop.permute.xlu1 %817  ;;  %v1658_v37 = vsel %vm204_vm0, %v6101_v41, %v6375_v47 }
 0x201   : > { %1467 = vrot.lane.b32.xlu0 %v574_v11, %s5365_s5  ;;  %v1690_v18 = vsel %vm1665_vm4, %v1657_v51, %v6373_v34 }
 0x202   : > { %1593 = vrot.lane.b32.xlu1 %v605_v35, %s5366_s8 }
 0x203   : > { %v1200_v54 = vpop.permute.xlu0 %1199 }
 0x204   : > { %v1326_v63 = vpop.permute.xlu1 %1325  ;;  %v1788_v5 = vsel %vm1764_vm6, %v1755_v50, %v1200_v54 }
 0x205   : > { %1087 = vrot.lane.b32.xlu0 %v574_v11, %s5359_s18  ;;  %v1820_v39 = vsel %vm1797_vm7, %v1787_v58, %v1326_v63 }
 0x206   : > { %1213 = vrot.lane.b32.xlu1 %v605_v35, %s5362_s21 }
 0x207   : > { %v6381_v55 = vpop.permute.xlu0 %819 }
 0x208   : > { %v946_v8 = vpop.permute.xlu1 %945  ;;  %v1691_v12 = vsel %vm1665_vm4, %v1658_v37, %v6381_v55 }
 0x209   : > { %1595 = vrot.lane.b32.xlu0 %v512_v42, %s5366_s8  ;;  %v1723_v32 = vsel %vm1698_vm3, %v1690_v18, %v946_v8 }
 0x20a   : > { %1215 = vrot.lane.b32.xlu1 %v512_v42, %s5362_s21 }
 0x20b   : > { %v1328_v20 = vpop.permute.xlu0 %1327 }
 0x20c   : > { %v1454_v44 = vpop.permute.xlu1 %1453  ;;  %v1821_v38 = vsel %vm1797_vm7, %v1788_v5, %v1328_v20 }
 0x20d   : > { %1341 = vrot.lane.b32.xlu0 %v543_v61, %s5364_s23  ;;  %v1853_v49 = vsel %vm1830_vm8, %v1820_v39, %v1454_v44 }
 0x20e   : > { %1343 = vrot.lane.b32.xlu1 %v544_v1, %s5364_s23 }
 0x20f   : > { %v948_v30 = vpop.permute.xlu0 %947 }
 0x210   : > { %v1074_v60 = vpop.permute.xlu1 %1073  ;;  %v1724_v34 = vsel %vm1698_vm3, %v1691_v12, %v948_v30 }
 0x211   : > { %1469 = vrot.lane.b32.xlu0 %v575_v10, %s5365_s5  ;;  %v1756_v3 = vsel %vm1731_vm5, %v1723_v32, %v1074_v60 }
 0x212   : > { %1471 = vrot.lane.b32.xlu1 %v576_v16, %s5365_s5 }
 0x213   : > { %v1456_v33 = vpop.permute.xlu0 %1455 }
 0x214   : > { %v1582_v26 = vpop.permute.xlu1 %1581  ;;  %v1854_v21 = vsel %vm1830_vm8, %v1821_v38, %v1456_v33 }
 0x215   : > { %v1886_v0 = vsel %vm1863_vm9, %v1853_v49, %v1582_v26  ;;  %1597 = vrot.lane.b32.xlu0 %v607_v25, %s5366_s8 }
 0x216   : > { %1599 = vrot.lane.b32.xlu1 %v608_v19, %s5366_s8  ;;  %5257 = vmatprep.mubr.msk.f32.mxu0 %vm1901_vm10, %v1886_v0 }
 0x217   : > { %v694_v53 = vpop.permute.xlu0 %693 }
 0x218   : > { %v1076_v31 = vpop.permute.xlu1 %1075  ;;  %v1659_v19 = vsel %vm204_vm0, %v6145_v52, %v694_v53 }
 0x219   : > { %v1757_v44 = vsel %vm1731_vm5, %v1724_v34, %v1076_v31 }
 0x21b   : > { %v1202_v36 = vpop.permute.xlu0 %1201 }
 0x21c   : > { %v1584_v40 = vpop.permute.xlu1 %1583  ;;  %v1789_v35 = vsel %vm1764_vm6, %v1756_v3, %v1202_v36 }
 0x21d   : > { %v1887_v46 = vsel %vm1863_vm9, %v1854_v21, %v1584_v40 }
 0x21e   : > { %5258 = vmatmul.mubr.msk.f32.gmra.mxu0 %vm1901_vm10, %v1887_v46 }
 0x21f   : > { %v696_v62 = vpop.permute.xlu0 %695 }
 0x220   : > { %v822_v9 = vpop.permute.xlu1 %821  ;;  %v1660_v52 = vsel %vm204_vm0, %v6170_v13, %v696_v62 }
 0x221   : > { %v1692_v25 = vsel %vm1665_vm4, %v1659_v19, %v822_v9 }
 0x223   : > { %v1204_v27 = vpop.permute.xlu0 %1203 }
 0x224   : > { %v1330_v7 = vpop.permute.xlu1 %1329  ;;  %v1790_v20 = vsel %vm1764_vm6, %v1757_v44, %v1204_v27 }
 0x225   : > { %v1822_v11 = vsel %vm1797_vm7, %v1789_v35, %v1330_v7 }
 0x227   : > { %v824_v28 = vpop.permute.xlu0 %823 }
 0x228   : > { %v950_v43 = vpop.permute.xlu1 %949  ;;  %v1693_v53 = vsel %vm1665_vm4, %v1660_v52, %v824_v28 }
 0x229   : > { %v1725_v49 = vsel %vm1698_vm3, %v1692_v25, %v950_v43 }
 0x22b   : > { %v1332_v14 = vpop.permute.xlu0 %1331 }
 0x22c   : > { %v1458_v22 = vpop.permute.xlu1 %1457  ;;  %v1823_v48 = vsel %vm1797_vm7, %v1790_v20, %v1332_v14 }
 0x22d   : > { %v1855_v63 = vsel %vm1830_vm8, %v1822_v11, %v1458_v22 }
 0x22f   : > { %v952_v59 = vpop.permute.xlu0 %951 }
 0x230   : > { %v1078_v56 = vpop.permute.xlu1 %1077  ;;  %v1726_v38 = vsel %vm1698_vm3, %v1693_v53, %v952_v59 }
 0x231   : > { %v1758_v0 = vsel %vm1731_vm5, %v1725_v49, %v1078_v56 }
 0x233   : > { %v1460_v42 = vpop.permute.xlu0 %1459 }
 0x234   : > { %v1586_v54 = vpop.permute.xlu1 %1585  ;;  %v1856_v15 = vsel %vm1830_vm8, %v1823_v48, %v1460_v42 }
 0x235   : > { %v1888_v1 = vsel %vm1863_vm9, %v1855_v63, %v1586_v54 }
 0x236   : > { %5260 = vmatprep.mubr.msk.f32.mxu0 %vm1901_vm10, %v1888_v1 }
 0x237   : > { %v698_v61 = vpop.permute.xlu0 %697 }
 0x238   : > { %v1080_v8 = vpop.permute.xlu1 %1079  ;;  %v1661_v59 = vsel %vm204_vm0, %v6210_v57, %v698_v61 }
 0x239   : > { %v1759_v36 = vsel %vm1731_vm5, %v1726_v38, %v1080_v8  ;;  %v8387_v38 = vmov 1.0  }
 0x23a   : > { %2291 = vmatprep.mubr.f32.mxu1 %v8387_v38 }
 0x23b   : > { %v1206_v10 = vpop.permute.xlu0 %1205 }
 0x23c   : > { %v1588_v16 = vpop.permute.xlu1 %1587  ;;  %v1791_v23 = vsel %vm1764_vm6, %v1758_v0, %v1206_v10 }
 0x23d   : > { %v1889_v41 = vsel %vm1863_vm9, %v1856_v15, %v1588_v16 }
 0x23e   : > { %5261 = vmatmul.mubr.msk.f32.gmra.mxu0 %vm1901_vm10, %v1889_v41 }
 0x23f   : > { %v700_v55 = vpop.permute.xlu0 %699 }
 0x240   : > { %v826_v47 = vpop.permute.xlu1 %825  ;;  %v1662_v57 = vsel %vm204_vm0, %v6233_v6, %v700_v55 }
 0x241   : > { %v1694_v3 = vsel %vm1665_vm4, %v1661_v59, %v826_v47 }
 0x243   : > { %v1208_v60 = vpop.permute.xlu0 %1207 }
 0x244   : > { %v1334_v24 = vpop.permute.xlu1 %1333  ;;  %v1792_v46 = vsel %vm1764_vm6, %v1759_v36, %v1208_v60 }
 0x245   : > { %v1824_v29 = vsel %vm1797_vm7, %v1791_v23, %v1334_v24 }
 0x247   : > { %v828_v2 = vpop.permute.xlu0 %827 }
 0x248   : > { %v954_v30 = vpop.permute.xlu1 %953  ;;  %v1695_v61 = vsel %vm1665_vm4, %v1662_v57, %v828_v2 }
 0x249   : > { %v1727_v35 = vsel %vm1698_vm3, %v1694_v3, %v954_v30 }
 0x24b   : > { %v1336_v39 = vpop.permute.xlu0 %1335 }
 0x24c   : > { %v1462_v58 = vpop.permute.xlu1 %1461  ;;  %v1825_v9 = vsel %vm1797_vm7, %v1792_v46, %v1336_v39 }
 0x24d   : > { %v1857_v45 = vsel %vm1830_vm8, %v1824_v29, %v1462_v58 }
 0x24f   : > { %v956_v33 = vpop.permute.xlu0 %955 }
 0x250   : > { %v1082_v26 = vpop.permute.xlu1 %1081  ;;  %v1728_v44 = vsel %vm1698_vm3, %v1695_v61, %v956_v33 }
 0x251   : > { %v1760_v54 = vsel %vm1731_vm5, %v1727_v35, %v1082_v26 }
 0x253   : > { %v1464_v50 = vpop.permute.xlu0 %1463 }
 0x254   : > { %v1590_v31 = vpop.permute.xlu1 %1589  ;;  %v1858_v7 = vsel %vm1830_vm8, %v1825_v9, %v1464_v50 }
 0x255   : > { %v1890_v5 = vsel %vm1863_vm9, %v1857_v45, %v1590_v31 }
 0x256   : > { %5263 = vmatprep.mubr.msk.f32.mxu0 %vm1901_vm10, %v1890_v5 }
 0x257   : > { %v702_v40 = vpop.permute.xlu0 %701 }
 0x258   : > { %v1084_v21 = vpop.permute.xlu1 %1083  ;;  %v1663_v30 = vsel %vm204_vm0, %v6272_v17, %v702_v40 }
 0x259   : > { %v1761_v15 = vsel %vm1731_vm5, %v1728_v44, %v1084_v21  ;;  %v6502_v21 = vpop.f32.mrf.mxu0 }
 0x25b   : > { %v1210_v43 = vpop.permute.xlu0 %1209  ;;  %v6504_v40 = vpop.f32.mrf.mxu0 }
 0x25c   : > { %v1592_v27 = vpop.permute.xlu1 %1591  ;;  %v1793_v42 = vsel %vm1764_vm6, %v1760_v54, %v1210_v43 }
 0x25d   : > { %v1891_v13 = vsel %vm1863_vm9, %v1858_v7, %v1592_v27  ;;  %v6506_v36 = vpop.f32.mrf.mxu0 }
 0x25e   : > { %5264 = vmatmul.mubr.msk.f32.gmra.mxu0 %vm1901_vm10, %v1891_v13 }
 0x25f   : > { %v704_v28 = vpop.permute.xlu0 %703  ;;  %v6508_v46 = vpop.f32.mrf.mxu0 }
 0x260   : > { %v830_v62 = vpop.permute.xlu1 %829  ;;  %v1664_v2 = vsel %vm204_vm0, %v6295_v4, %v704_v28 }
 0x261   : > { %v1696_v58 = vsel %vm1665_vm4, %v1663_v30, %v830_v62  ;;  %v6510_v9 = vpop.f32.mrf.mxu0 }
 0x263   : > { %v1212_v14 = vpop.permute.xlu0 %1211  ;;  %v6512_v7 = vpop.f32.mrf.mxu0 }
 0x264   : > { %v1338_v22 = vpop.permute.xlu1 %1337  ;;  %v1794_v16 = vsel %vm1764_vm6, %v1761_v15, %v1212_v14 }
 0x265   : > { %v1826_v1 = vsel %vm1797_vm7, %v1793_v42, %v1338_v22  ;;  %v6514_v27 = vpop.f32.mrf.mxu0 }
 0x267   : > { %v832_v18 = vpop.permute.xlu0 %831  ;;  %v6516_v43 = vpop.f32.mrf.mxu0 }
 0x268   : > { %v958_v51 = vpop.permute.xlu1 %957  ;;  %v1697_v39 = vsel %vm1665_vm4, %v1664_v2, %v832_v18 }
 0x269   : > { %v1729_v19 = vsel %vm1698_vm3, %v1696_v58, %v958_v51  ;;  %v6518_v13 = vpop.f32.mrf.mxu0 }
 0x26a   : > { %v2306_v58 = vmul.f32 %v6518_v13, %v6518_v13 }
 0x26b   : > { %v1340_v56 = vpop.permute.xlu0 %1339  ;;  %v6520_v62 = vpop.f32.mrf.mxu0 }
 0x26c   : > { %v1466_v32 = vpop.permute.xlu1 %1465  ;;  %v1827_v10 = vsel %vm1797_vm7, %v1794_v16, %v1340_v56 }
 0x26d   : > { %v1859_v37 = vsel %vm1830_vm8, %v1826_v1, %v1466_v32  ;;  %v6522_v28 = vpop.f32.mrf.mxu0 }
 0x26f   : > { %v960_v63 = vpop.permute.xlu0 %959  ;;  %v6524_v22 = vpop.f32.mrf.mxu0 }
 0x270   : > { %v1086_v11 = vpop.permute.xlu1 %1085  ;;  %v1730_v25 = vsel %vm1698_vm3, %v1697_v39, %v960_v63  ;;  %v2307_v30 = vmul.f32 %v6524_v22, %v6524_v22 }
 0x271   : > { %v1762_v33 = vsel %vm1731_vm5, %v1729_v19, %v1086_v11  ;;  %v6526_v14 = vpop.f32.mrf.mxu0  ;;  %v2305_v19 = vmul.f32 %v6520_v62, %v6520_v62 }
 0x273   : > { %v1468_v34 = vpop.permute.xlu0 %1467  ;;  %v6528_v51 = vpop.f32.mrf.mxu0 }
 0x274   : > { %v1594_v12 = vpop.permute.xlu1 %1593  ;;  %v1860_v41 = vsel %vm1830_vm8, %v1827_v10, %v1468_v34 }
 0x275   : > { %v1892_v8 = vsel %vm1863_vm9, %v1859_v37, %v1594_v12  ;;  %v6530_v18 = vpop.f32.mrf.mxu0 }
 0x276   : > { %5266 = vmatprep.mubr.msk.f32.mxu0 %vm1901_vm10, %v1892_v8 }
 0x277   : > { %v1088_v48 = vpop.permute.xlu0 %1087  ;;  %v6532_v32 = vpop.f32.mrf.mxu0 }
 0x278   : > { %v1214_v20 = vpop.permute.xlu1 %1213  ;;  %v1763_v0 = vsel %vm1731_vm5, %v1730_v25, %v1088_v48  ;;  %v2312_v48 = vmul.f32 %v6530_v18, %v6530_v18  ;;  %v2311_v16 = vmul.f32 %v6532_v32, %v6532_v32 }
 0x279   : > { %v1795_v23 = vsel %vm1764_vm6, %v1762_v33, %v1214_v20  ;;  %v2303_v33 = vmul.f32 %v6516_v43, %v6516_v43 }
 0x27b   : > { %v1596_v24 = vpop.permute.xlu0 %1595 }
 0x27c   : > { %v1216_v47 = vpop.permute.xlu1 %1215  ;;  %v1893_v6 = vsel %vm1863_vm9, %v1860_v41, %v1596_v24  ;;  %v2310_v41 = vmul.f32 %v6526_v14, %v6526_v14  ;;  %v2309_v24 = vmul.f32 %v6528_v51, %v6528_v51 }
 0x27d   : > { %5267 = vmatmul.mubr.msk.f32.gmra.mxu0 %vm1901_vm10, %v1893_v6  ;;  %v1796_v17 = vsel %vm1764_vm6, %v1763_v0, %v1216_v47 }
 0x27e   : > { %v6534_v56 = vpop.f32.mrf.mxu0 }
 0x27f   : > { %v1342_v60 = vpop.permute.xlu0 %1341 }
 0x280   : > { %v1344_v55 = vpop.permute.xlu1 %1343  ;;  %v1828_v29 = vsel %vm1797_vm7, %v1795_v23, %v1342_v60  ;;  %v6536_v59 = vpop.f32.mrf.mxu0  ;;  %v2302_v23 = vmul.f32 %v6510_v9, %v6510_v9 }
 0x281   : > { %v1829_v4 = vsel %vm1797_vm7, %v1796_v17, %v1344_v55  ;;  %v2308_v55 = vmul.f32 %v6522_v28, %v6522_v28 }
 0x283   : > { %v1470_v26 = vpop.permute.xlu0 %1469 }
 0x284   : > { %v1472_v49 = vpop.permute.xlu1 %1471  ;;  %v1861_v31 = vsel %vm1830_vm8, %v1828_v29, %v1470_v26 }
 0x285   : > { %v1862_v45 = vsel %vm1830_vm8, %v1829_v4, %v1472_v49  ;;  %v2304_v49 = vmul.f32 %v6514_v27, %v6514_v27  ;;  %v2301_v4 = vmul.f32 %v6512_v7, %v6512_v7 }
 0x287   : > { %v1598_v5 = vpop.permute.xlu0 %1597 }
 0x288   : > { %v1600_v50 = vpop.permute.xlu1 %1599  ;;  %v1894_v53 = vsel %vm1863_vm9, %v1861_v31, %v1598_v5  ;;  %v2314_v5 = vmul.f32 %v6534_v56, %v6534_v56 }
 0x289   : > { %v1895_v52 = vsel %vm1863_vm9, %v1862_v45, %v1600_v50  ;;  %5269 = vmatprep.mubr.msk.f32.mxu0 %vm1901_vm10, %v1894_v53  ;;  %v2300_v45 = vmul.f32 %v6506_v36, %v6506_v36  ;;  %v2299_v50 = vmul.f32 %v6508_v46, %v6508_v46  ;;  %v2313_v53 = vmul.f32 %v6536_v59, %v6536_v59 }
 0x28a   : > { %5270 = vmatmul.mubr.msk.f32.gmra.mxu0 %vm1901_vm10, %v1895_v52  ;;  %v2298_v52 = vmul.f32 %v6502_v21, %v6502_v21 }
 0x29e   : > { %v6538_v3 = vpop.f32.mrf.mxu0 }
 0x29f   : > { %v2316_v29 = vmul.f32 %v6538_v3, %v6538_v3 }
 0x2a0   : > { %v6540_v35 = vpop.f32.mrf.mxu0 }
 0x2a1   : > { %v2315_v31 = vmul.f32 %v6540_v35, %v6540_v35 }
 0x2be   : > { %v6542_v11 = vpop.f32.mrf.mxu0 }
 0x2bf   : > { %v2318_v0 = vmul.f32 %v6542_v11, %v6542_v11 }
 0x2c0   : > { %v6544_v63 = vpop.f32.mrf.mxu0 }
 0x2c1   : > { %v2317_v17 = vmul.f32 %v6544_v63, %v6544_v63 }
 0x2de   : > { %v6546_v54 = vpop.f32.mrf.mxu0 }
 0x2df   : > { %v2320_v25 = vmul.f32 %v6546_v54, %v6546_v54 }
 0x2e0   : > { %v6548_v42 = vpop.f32.mrf.mxu0 }
 0x2e1   : > { %v2319_v26 = vmul.f32 %v6548_v42, %v6548_v42 }
 0x2fe   : > { %v6550_v1 = vpop.f32.mrf.mxu0 }
 0x2ff   : > { %v2322_v2 = vmul.f32 %v6550_v1, %v6550_v1 }
 0x300   : > { %v6552_v37 = vpop.f32.mrf.mxu0 }
 0x301   : > { %v2321_v39 = vmul.f32 %v6552_v37, %v6552_v37 }
 0x31e   : > { %v6554_v12 = vpop.f32.mrf.mxu0 }
 0x31f   : > { %v2324_v6 = vmul.f32 %v6554_v12, %v6554_v12 }
 0x320   : > { %v6556_v34 = vpop.f32.mrf.mxu0 }
 0x321   : > { %v2323_v60 = vmul.f32 %v6556_v34, %v6556_v34 }
 0x33d   : > { %v6558_v8 = vpop.f32.mrf.mxu0 }
 0x33e   : > { %v2326_v10 = vmul.f32 %v6558_v8, %v6558_v8 }
 0x33f   : > { %v6560_v57 = vpop.f32.mrf.mxu0 }
 0x340   : > { %v2325_v47 = vmul.f32 %v6560_v57, %v6560_v57 }
 0x34a   : > { %v6562_v61 = vpop.f32.mrf.mxu0 }
 0x34b   : > { %5037 = vmatprep.subr.mxu1 %v6562_v61  ;;  %v2328_v20 = vmul.f32 %v6562_v61, %v6562_v61 }
 0x34c   : > { %v6565_v44 = vpop.f32.mrf.mxu0  ;;  %5038 = vmatpush3.msra.mxu1 %v6530_v18 }
 0x34d   : > { %5039 = vmatprep.subr.mxu1 %v6565_v44  ;;  %v2327_v15 = vmul.f32 %v6565_v44, %v6565_v44 }
 0x34e   : > { %5040 = vmatpush3.msra.mxu1 %v6532_v32 }
 0x34f   : > { %5041 = vmatprep.subr.mxu1 %v6558_v8 }
 0x350   : > { %5042 = vmatpush3.msra.mxu1 %v6526_v14 }
 0x351   : > { %5043 = vmatprep.subr.mxu1 %v6560_v57 }
 0x352   : > { %5044 = vmatpush3.msra.mxu1 %v6528_v51 }
 0x353   : > { %5045 = vmatprep.subr.mxu1 %v6554_v12 }
 0x354   : > { %5046 = vmatpush3.msra.mxu1 %v6522_v28 }
 0x355   : > { %5047 = vmatprep.subr.mxu1 %v6556_v34 }
 0x356   : > { %5048 = vmatpush3.msra.mxu1 %v6524_v22 }
 0x357   : > { %5049 = vmatprep.subr.mxu1 %v6550_v1 }
 0x358   : > { %5050 = vmatpush3.msra.mxu1 %v6518_v13 }
 0x359   : > { %5051 = vmatprep.subr.mxu1 %v6552_v37 }
 0x35a   : > { %5052 = vmatpush3.msra.mxu1 %v6520_v62 }
 0x35b   : > { %5053 = vmatprep.subr.mxu1 %v6546_v54 }
 0x35c   : > { %5054 = vmatpush3.msra.mxu1 %v6514_v27 }
 0x35d   : > { %5055 = vmatprep.subr.mxu1 %v6548_v42 }
 0x35e   : > { %5056 = vmatpush3.msra.mxu1 %v6516_v43 }
 0x35f   : > { %5057 = vmatprep.subr.mxu1 %v6542_v11 }
 0x360   : > { %5058 = vmatpush3.msra.mxu1 %v6510_v9 }
 0x361   : > { %5059 = vmatprep.subr.mxu1 %v6544_v63 }
 0x362   : > { %5060 = vmatpush3.msra.mxu1 %v6512_v7 }
 0x363   : > { %5061 = vmatprep.subr.mxu1 %v6538_v3 }
 0x364   : > { %5062 = vmatpush3.msra.mxu1 %v6506_v36 }
 0x365   : > { %5063 = vmatprep.subr.mxu1 %v6540_v35 }
 0x366   : > { %5064 = vmatpush3.msra.mxu1 %v6508_v46 }
 0x367   : > { %5065 = vmatprep.subr.mxu1 %v6534_v56 }
 0x368   : > { %5066 = vmatpush3.msra.mxu1 %v6502_v21 }
 0x369   : > { %5067 = vmatprep.subr.mxu1 %v6536_v59 }
 0x36a   : > { %5068 = vmatpush3.msra.mxu1 %v6504_v40 }
 0x36b   : > { %2292 = vmatmul.mubr.f32.vlgmr.msra.gmra.mxu1 %v8387_v38  ;;  %5072 = vmatprep.subr.mxu1 %v2328_v20  ;;  %v2297_v20 = vmul.f32 %v6504_v40, %v6504_v40 }
 0x36c   : > { %5073 = vmatpush3.msra.mxu1 %v2312_v48  ;;  %2393 = vmatprep.mubr.f32.mxu1 %v8387_v38 }
 0x36d   : > { %5074 = vmatprep.subr.mxu1 %v2327_v15 }
 0x36e   : > { %5075 = vmatpush3.msra.mxu1 %v2311_v16 }
 0x36f   : > { %5076 = vmatprep.subr.mxu1 %v2326_v10 }
 0x370   : > { %5077 = vmatpush3.msra.mxu1 %v2310_v41 }
 0x371   : > { %5078 = vmatprep.subr.mxu1 %v2325_v47 }
 0x372   : > { %5079 = vmatpush3.msra.mxu1 %v2309_v24 }
 0x373   : > { %5080 = vmatprep.subr.mxu1 %v2324_v6  ;;  %v2406_v6 = vlaneseq }
 0x374   : > { %5081 = vmatpush3.msra.mxu1 %v2308_v55 }
 0x375   : > { %5082 = vmatprep.subr.mxu1 %v2323_v60 }
 0x376   : > { %5083 = vmatpush3.msra.mxu1 %v2307_v30 }
 0x377   : > { %5084 = vmatprep.subr.mxu1 %v2322_v2  ;;  %v2407_v2 = vshrl.u32 %v2406_v6, 7 }
 0x378   : > { %5085 = vmatpush3.msra.mxu1 %v2306_v58 }
 0x379   : > { %5086 = vmatprep.subr.mxu1 %v2321_v39 }
 0x37a   : > { %5087 = vmatpush3.msra.mxu1 %v2305_v19  ;;  %v6666_v19 = vsub.s32 0, %v2407_v2 }
 0x37b   : > { %5088 = vmatprep.subr.mxu1 %v2320_v25 }
 0x37c   : > { %5089 = vmatpush3.msra.mxu1 %v2304_v49  ;;  %8406 = vst [vmem:[#allocation3_spill] sm:$0xff] %v6666_v19 }
 0x37d   : > { %5090 = vmatprep.subr.mxu1 %v2319_v26 }
 0x37e   : > { %5091 = vmatpush3.msra.mxu1 %v2303_v33 }
 0x37f   : > { %5092 = vmatprep.subr.mxu1 %v2318_v0 }
 0x380   : > { %5093 = vmatpush3.msra.mxu1 %v2302_v23 }
 0x381   : > { %5094 = vmatprep.subr.mxu1 %v2317_v17 }
 0x382   : > { %5095 = vmatpush3.msra.mxu1 %v2301_v4 }
 0x383   : > { %5096 = vmatprep.subr.mxu1 %v2316_v29 }
 0x384   : > { %5097 = vmatpush3.msra.mxu1 %v2300_v45 }
 0x385   : > { %5098 = vmatprep.subr.mxu1 %v2315_v31 }
 0x386   : > { %5099 = vmatpush3.msra.mxu1 %v2299_v50 }
 0x387   : > { %5100 = vmatprep.subr.mxu1 %v2314_v5 }
 0x388   : > { %5101 = vmatpush3.msra.mxu1 %v2298_v52 }
 0x389   : > { %5102 = vmatprep.subr.mxu1 %v2313_v53 }
 0x38a   : > { %5103 = vmatpush3.msra.mxu1 %v2297_v20 }
 0x38b   : > { %2394 = vmatmul.mubr.f32.vlgmr.msra.gmra.mxu1 %v8387_v38 }
 0x38c   : > { %4583 = vmatprep.mubr.f32.mxu1 %v8387_v38 }
 0x42b   : > { %v5069_v48 = vpop.f32.mrf.mxu1 }
 0x42d   : > { %v5070_v15 = vpop.f32.mrf.mxu1 }
 0x42e   : > { %v5071_v16 = vadd.f32 %v5070_v15, %v5069_v48 }
 0x430   : > { %v2399_v41 = vmul.f32 0.00390625, %v5071_v16 }
 0x432   : > { %v2401_v55 = vmul.f32 %v2399_v41, %v2399_v41  ;;  %v6669_v25 = vrot.slane %v2399_v41, %v6666_v19 }
 0x434   : > { %v2410_v49 = vsub.f32 %v6504_v40, %v6669_v25  ;;  %v2411_v26 = vsub.f32 %v6502_v21, %v6669_v25  ;;  %v2412_v33 = vsub.f32 %v6508_v46, %v6669_v25  ;;  %v2413_v0 = vsub.f32 %v6506_v36, %v6669_v25 }
 0x435   : > { %v2414_v23 = vsub.f32 %v6512_v7, %v6669_v25  ;;  %v2415_v17 = vsub.f32 %v6510_v9, %v6669_v25  ;;  %v2416_v4 = vsub.f32 %v6516_v43, %v6669_v25  ;;  %v2417_v40 = vsub.f32 %v6514_v27, %v6669_v25 }
 0x436   : > { %v2418_v21 = vsub.f32 %v6520_v62, %v6669_v25  ;;  %v2419_v46 = vsub.f32 %v6518_v13, %v6669_v25  ;;  %v2420_v36 = vsub.f32 %v6524_v22, %v6669_v25  ;;  %v2421_v7 = vsub.f32 %v6522_v28, %v6669_v25 }
 0x437   : > { %v2422_v9 = vsub.f32 %v6528_v51, %v6669_v25  ;;  %v2423_v43 = vsub.f32 %v6526_v14, %v6669_v25  ;;  %v2424_v27 = vsub.f32 %v6532_v32, %v6669_v25  ;;  %v2425_v62 = vsub.f32 %v6530_v18, %v6669_v25 }
 0x438   : > { %v2426_v13 = vsub.f32 %v6536_v59, %v6669_v25  ;;  %v2427_v22 = vsub.f32 %v6534_v56, %v6669_v25  ;;  %v2428_v28 = vsub.f32 %v6540_v35, %v6669_v25  ;;  %v2429_v51 = vsub.f32 %v6538_v3, %v6669_v25 }
 0x439   : > { %v2430_v14 = vsub.f32 %v6544_v63, %v6669_v25  ;;  %v2431_v32 = vsub.f32 %v6542_v11, %v6669_v25  ;;  %v2432_v18 = vsub.f32 %v6548_v42, %v6669_v25  ;;  %v2433_v59 = vsub.f32 %v6546_v54, %v6669_v25 }
 0x43a   : > { %v2434_v56 = vsub.f32 %v6552_v37, %v6669_v25  ;;  %v2435_v35 = vsub.f32 %v6550_v1, %v6669_v25  ;;  %v2436_v3 = vsub.f32 %v6556_v34, %v6669_v25  ;;  %v2437_v63 = vsub.f32 %v6554_v12, %v6669_v25 }
 0x43b   : > { %v2438_v42 = vsub.f32 %v6560_v57, %v6669_v25  ;;  %v2439_v54 = vsub.f32 %v6558_v8, %v6669_v25  ;;  %v2440_v37 = vsub.f32 %v6565_v44, %v6669_v25  ;;  %v2441_v1 = vsub.f32 %v6562_v61, %v6669_v25 }
 0x44b   : > { %v5104_v10 = vpop.f32.mrf.mxu1 }
 0x44d   : > { %v5105_v47 = vpop.f32.mrf.mxu1 }
 0x44e   : > { %v5106_v24 = vadd.f32 %v5105_v47, %v5104_v10 }
 0x450   : > { %v2400_v60 = vmul.f32 0.00390625, %v5106_v24 }
 0x452   : > { %v2402_v30 = vsub.f32 %v2400_v60, %v2401_v55 }
 0x454   : > { %v2403_v58 = vmax.f32 %v2402_v30, 0.0 }
 0x456   : > { %v2404_v39 = vadd.f32 1e-05, %v2403_v58 }
 0x458   : > { %5347 = vrsqrt.f32 %v2404_v39 }
 0x465   : > { %v5348_v29 = vpop.eup %5347 }
 0x466   : > { %v2445_v11 = vrot.slane %v5348_v29, %v6666_v19  ;;  %v4192_v19 = vld [vmem:[%s8385_s2 + $0x10] sm:$0xff] }
 0x468   : > { %v2446_v45 = vmul.f32 %v2445_v11, %v2410_v49  ;;  %v2447_v31 = vmul.f32 %v2445_v11, %v2411_v26  ;;  %v2448_v34 = vmul.f32 %v2445_v11, %v2412_v33  ;;  %v2449_v50 = vmul.f32 %v2445_v11, %v2413_v0 }
 0x469   : > { %v2450_v5 = vmul.f32 %v2445_v11, %v2414_v23  ;;  %v2451_v12 = vmul.f32 %v2445_v11, %v2415_v17  ;;  %v2452_v52 = vmul.f32 %v2445_v11, %v2416_v4  ;;  %v2453_v53 = vmul.f32 %v2445_v11, %v2417_v40 }
 0x46a   : > { %v2454_v20 = vmul.f32 %v2445_v11, %v2418_v21  ;;  %v2455_v48 = vmul.f32 %v2445_v11, %v2419_v46  ;;  %v2456_v57 = vmul.f32 %v2445_v11, %v2420_v36  ;;  %v2457_v15 = vmul.f32 %v2445_v11, %v2421_v7 }
 0x46b   : > { %v2458_v16 = vmul.f32 %v2445_v11, %v2422_v9  ;;  %v2459_v8 = vmul.f32 %v2445_v11, %v2423_v43  ;;  %v2460_v10 = vmul.f32 %v2445_v11, %v2424_v27  ;;  %v2461_v41 = vmul.f32 %v2445_v11, %v2425_v62 }
 0x46c   : > { %v2462_v44 = vmul.f32 %v2445_v11, %v2426_v13  ;;  %v2463_v47 = vmul.f32 %v2445_v11, %v2427_v22  ;;  %v2464_v24 = vmul.f32 %v2445_v11, %v2428_v28  ;;  %v2465_v61 = vmul.f32 %v2445_v11, %v2429_v51 }
 0x46d   : > { %v6736_v6 = vmul.f32 %v2445_v11, %v2430_v14  ;;  %v6738_v55 = vmul.f32 %v2445_v11, %v2431_v32  ;;  %v6740_v60 = vmul.f32 %v2445_v11, %v2432_v18  ;;  %v6742_v30 = vmul.f32 %v2445_v11, %v2433_v59 }
 0x46e   : > { %v6744_v2 = vmul.f32 %v2445_v11, %v2434_v56  ;;  %v6746_v58 = vmul.f32 %v2445_v11, %v2435_v35  ;;  %v6748_v39 = vmul.f32 %v2445_v11, %v2436_v3  ;;  %v6750_v25 = vmul.f32 %v2445_v11, %v2437_v63 }
 0x46f   : > { %v6752_v49 = vmul.f32 %v2445_v11, %v2438_v42  ;;  %v6754_v26 = vmul.f32 %v2445_v11, %v2439_v54  ;;  %v6756_v33 = vmul.f32 %v2445_v11, %v2440_v37  ;;  %v6758_v0 = vmul.f32 %v2445_v11, %v2441_v1 }
 0x470   : > { %v2478_v23 = vmax.f32 %v2446_v45, 0.0  ;;  %v2479_v17 = vmax.f32 %v2447_v31, 0.0  ;;  %v2480_v4 = vmax.f32 %v2448_v34, 0.0  ;;  %v2481_v40 = vmax.f32 %v2449_v50, 0.0 }
 0x471   : > { %v2482_v21 = vmax.f32 %v2450_v5, 0.0  ;;  %v2483_v46 = vmax.f32 %v2451_v12, 0.0  ;;  %v2484_v36 = vmax.f32 %v2452_v52, 0.0  ;;  %v2485_v7 = vmax.f32 %v2453_v53, 0.0 }
 0x472   : > { %2510 = vst.msk [vmem:[#allocation2 + $0x19] sm:$0xff] %vm204_vm0, %v2478_v23  ;;  %v2486_v9 = vmax.f32 %v2454_v20, 0.0  ;;  %v2487_v43 = vmax.f32 %v2455_v48, 0.0  ;;  %v2488_v27 = vmax.f32 %v2456_v57, 0.0  ;;  %v2489_v62 = vmax.f32 %v2457_v15, 0.0  ;;  %2511 = vst.msk [vmem:[#allocation2 + $0x21] sm:$0xff] %vm204_vm0, %v2479_v17 }
 0x473   : > { %2512 = vst.msk [vmem:[#allocation2 + $0x31] sm:$0xff] %vm204_vm0, %v2480_v4  ;;  %2513 = vst.msk [vmem:[#allocation2 + $0x39] sm:$0xff] %vm204_vm0, %v2481_v40  ;;  %v2490_v13 = vmax.f32 %v2458_v16, 0.0  ;;  %v2491_v22 = vmax.f32 %v2459_v8, 0.0  ;;  %v2492_v28 = vmax.f32 %v2460_v10, 0.0  ;;  %v2493_v51 = vmax.f32 %v2461_v41, 0.0 }
 0x474   : > { %2514 = vst.msk [vmem:[#allocation2 + $0x49] sm:$0xff] %vm204_vm0, %v2482_v21  ;;  %2515 = vst.msk [vmem:[#allocation2 + $0x51] sm:$0xff] %vm204_vm0, %v2483_v46  ;;  %v2494_v14 = vmax.f32 %v2462_v44, 0.0  ;;  %v2495_v29 = vmax.f32 %v2463_v47, 0.0  ;;  %v2496_v32 = vmax.f32 %v2464_v24, 0.0  ;;  %v2497_v18 = vmax.f32 %v2465_v61, 0.0 }
 0x475   : > { %2516 = vst.msk [vmem:[#allocation2 + $0x61] sm:$0xff] %vm204_vm0, %v2484_v36  ;;  %2517 = vst.msk [vmem:[#allocation2 + $0x69] sm:$0xff] %vm204_vm0, %v2485_v7  ;;  %v2498_v59 = vmax.f32 %v6736_v6, 0.0  ;;  %v2499_v56 = vmax.f32 %v6738_v55, 0.0  ;;  %v2500_v35 = vmax.f32 %v6740_v60, 0.0  ;;  %v2501_v3 = vmax.f32 %v6742_v30, 0.0 }
 0x476   : > { %2518 = vst.msk [vmem:[#allocation2 + $0x79] sm:$0xff] %vm204_vm0, %v2486_v9  ;;  %2519 = vst.msk [vmem:[#allocation2 + $0x81] sm:$0xff] %vm204_vm0, %v2487_v43  ;;  %v2502_v63 = vmax.f32 %v6744_v2, 0.0  ;;  %v2503_v11 = vmax.f32 %v6746_v58, 0.0  ;;  %v2504_v42 = vmax.f32 %v6748_v39, 0.0  ;;  %v2505_v54 = vmax.f32 %v6750_v25, 0.0 }
 0x477   : > { %2520 = vst.msk [vmem:[#allocation2 + $0x91] sm:$0xff] %vm204_vm0, %v2488_v27  ;;  %2521 = vst.msk [vmem:[#allocation2 + $0x99] sm:$0xff] %vm204_vm0, %v2489_v62  ;;  %v2506_v37 = vmax.f32 %v6752_v49, 0.0  ;;  %v2507_v1 = vmax.f32 %v6754_v26, 0.0  ;;  %v2508_v45 = vmax.f32 %v6756_v33, 0.0  ;;  %v2509_v31 = vmax.f32 %v6758_v0, 0.0 }
 0x478   : > { %2522 = vst.msk [vmem:[#allocation2 + $0xa9] sm:$0xff] %vm204_vm0, %v2490_v13  ;;  %2523 = vst.msk [vmem:[#allocation2 + $0xb1] sm:$0xff] %vm204_vm0, %v2491_v22 }
 0x479   : > { %2524 = vst.msk [vmem:[#allocation2 + $0xc1] sm:$0xff] %vm204_vm0, %v2492_v28  ;;  %2525 = vst.msk [vmem:[#allocation2 + $0xc9] sm:$0xff] %vm204_vm0, %v2493_v51  ;;  %v2750_v34 = vld [vmem:[#allocation2 + $0x19] sm:$0xff]  ;;  %v2751_v52 = vld [vmem:[#allocation2 + $0x21] sm:$0xff] }
 0x47a   : > { %2526 = vst.msk [vmem:[#allocation2 + $0xd9] sm:$0xff] %vm204_vm0, %v2494_v14  ;;  %2527 = vst.msk [vmem:[#allocation2 + $0xe1] sm:$0xff] %vm204_vm0, %v2495_v29  ;;  %v6800_v50 = vld [vmem:[#allocation2 + $0x20] sm:$0xff]  ;;  %3326 = vrot.lane.b32.xlu0 %v2750_v34, %s5359_s18  ;;  %v2846_v5 = vld [vmem:[#allocation2 + $0x31] sm:$0xff] }
 0x47b   : > { %2528 = vst.msk [vmem:[#allocation2 + $0xf1] sm:$0xff] %vm204_vm0, %v2496_v32  ;;  %2529 = vst.msk [vmem:[#allocation2 + $0xf9] sm:$0xff] %vm204_vm0, %v2497_v18  ;;  %3200 = vrot.lane.b32.xlu1 %v6800_v50, %s5360_s19  ;;  %v6809_v12 = vld [vmem:[#allocation2 + $0x39] sm:$0xff]  ;;  %v2552_v48 = vld [vmem:[#allocation2 + $0x32] sm:$0x1] }
 0x47c   : > { %2530 = vst.msk [vmem:[#allocation2 + $0x109] sm:$0xff] %vm204_vm0, %v2498_v59  ;;  %2531 = vst.msk [vmem:[#allocation2 + $0x111] sm:$0xff] %vm204_vm0, %v2499_v56  ;;  %v2782_v53 = vld [vmem:[#allocation2 + $0x1a] sm:$0xff]  ;;  %v2553_v16 = vld [vmem:[#allocation2 + $0x4a] sm:$0x1] }
 0x47d   : > { %2532 = vst.msk [vmem:[#allocation2 + $0x121] sm:$0xff] %vm204_vm0, %v2500_v35  ;;  %2533 = vst.msk [vmem:[#allocation2 + $0x129] sm:$0xff] %vm204_vm0, %v2501_v3  ;;  %v2551_v20 = vld [vmem:[#allocation2 + $0x1a] sm:$0x1]  ;;  %v2588_v57 = vld [vmem:[#allocation2 + $0x3f] sm:$0x1] }
 0x47e   : > { %2534 = vst.msk [vmem:[#allocation2 + $0x139] sm:$0xff] %vm204_vm0, %v2502_v63  ;;  %2535 = vst.msk [vmem:[#allocation2 + $0x141] sm:$0xff] %vm204_vm0, %v2503_v11  ;;  %3328 = vrot.lane.b32.xlu0 %v2751_v52, %s5359_s18  ;;  %v6820_v15 = vld [vmem:[#allocation2 + $0x38] sm:$0xff]  ;;  %v2589_v8 = vld [vmem:[#allocation2 + $0x57] sm:$0x1] }
 0x47f   : > { %2536 = vst.msk [vmem:[#allocation2 + $0x151] sm:$0xff] %vm204_vm0, %v2504_v42  ;;  %2537 = vst.msk [vmem:[#allocation2 + $0x159] sm:$0xff] %vm204_vm0, %v2505_v54  ;;  %2946 = vrot.lane.b32.xlu1 %v2750_v34, %s5361_s20  ;;  %v2554_v10 = vld [vmem:[#allocation2 + $0x62] sm:$0x1]  ;;  %v2587_v41 = vld [vmem:[#allocation2 + $0x27] sm:$0x1] }
 0x480   : > { %2538 = vst.msk [vmem:[#allocation2 + $0x169] sm:$0xff] %vm204_vm0, %v2506_v37  ;;  %2539 = vst.msk [vmem:[#allocation2 + $0x171] sm:$0xff] %vm204_vm0, %v2507_v1  ;;  %v2590_v44 = vld [vmem:[#allocation2 + $0x6f] sm:$0x1]  ;;  %v2555_v47 = vld [vmem:[#allocation2 + $0x7a] sm:$0x1] }
 0x481   : > { %2540 = vst.msk [vmem:[#allocation2 + $0x181] sm:$0xff] %vm204_vm0, %v2508_v45  ;;  %2541 = vst.msk [vmem:[#allocation2 + $0x189] sm:$0xff] %vm204_vm0, %v2509_v31  ;;  %v2591_v24 = vld [vmem:[#allocation2 + $0x87] sm:$0x1]  ;;  %v2556_v61 = vld [vmem:[#allocation2 + $0x92] sm:$0x1] }
 0x482   : > { %2544 = vst.msk [vmem:[#allocation2 + $0x1] sm:$0xff] %vm204_vm0, %v2846_v5  ;;  %2545 = vst.msk [vmem:[#allocation2 + $0x9] sm:$0xff] %vm204_vm0, %v6809_v12  ;;  %2948 = vrot.lane.b32.xlu0 %v2751_v52, %s5361_s20  ;;  %v2592_v6 = vld [vmem:[#allocation2 + $0x9f] sm:$0x1]  ;;  %v2557_v55 = vld [vmem:[#allocation2 + $0xaa] sm:$0x1] }
 0x483   : > { %3454 = vrot.lane.b32.xlu1 %v2782_v53, %s5362_s21  ;;  %2569 = vst.msk [vmem:[#allocation2 + $0x18] sm:$0x1] %vm266_vm1, %v2551_v20  ;;  %2570 = vst.msk [vmem:[#allocation2 + $0x30] sm:$0x1] %vm266_vm1, %v2552_v48  ;;  %v2593_v30 = vld [vmem:[#allocation2 + $0xb7] sm:$0x1] }
 0x484   : > { %2606 = vst.msk [vmem:[#allocation2 + $0x41] sm:$0x1] %vm266_vm1, %v2588_v57  ;;  %2571 = vst.msk [vmem:[#allocation2 + $0x48] sm:$0x1] %vm266_vm1, %v2553_v16  ;;  %v2558_v2 = vld [vmem:[#allocation2 + $0xc2] sm:$0x1] }
 0x485   : > { %2607 = vst.msk [vmem:[#allocation2 + $0x59] sm:$0x1] %vm266_vm1, %v2589_v8  ;;  %2572 = vst.msk [vmem:[#allocation2 + $0x60] sm:$0x1] %vm266_vm1, %v2554_v10  ;;  %v2594_v58 = vld [vmem:[#allocation2 + $0xcf] sm:$0x1] }
 0x486   : > { %2605 = vst.msk [vmem:[#allocation2 + $0x29] sm:$0x1] %vm266_vm1, %v2587_v41  ;;  %3584 = vrot.lane.b32.xlu0 %v6820_v15, %s5364_s23  ;;  %2608 = vst.msk [vmem:[#allocation2 + $0x71] sm:$0x1] %vm266_vm1, %v2590_v44  ;;  %v2559_v39 = vld [vmem:[#allocation2 + $0xda] sm:$0x1] }
 0x487   : > { %3074 = vrot.lane.b32.xlu1 %v2782_v53, %s5363_s22  ;;  %2573 = vst.msk [vmem:[#allocation2 + $0x78] sm:$0x1] %vm266_vm1, %v2555_v47  ;;  %2609 = vst.msk [vmem:[#allocation2 + $0x89] sm:$0x1] %vm266_vm1, %v2591_v24  ;;  %v2878_v49 = vld [vmem:[#allocation2 + $0x32] sm:$0xff]  ;;  %v2848_v9 = vld [vmem:[#allocation2 + $0x49] sm:$0xff] }
 0x488   : > { %2574 = vst.msk [vmem:[#allocation2 + $0x90] sm:$0x1] %vm266_vm1, %v2556_v61  ;;  %2610 = vst.msk [vmem:[#allocation2 + $0xa1] sm:$0x1] %vm266_vm1, %v2592_v6  ;;  %v2595_v26 = vld [vmem:[#allocation2 + $0xe7] sm:$0x1] }
 0x489   : > { %2575 = vst.msk [vmem:[#allocation2 + $0xa8] sm:$0x1] %vm266_vm1, %v2557_v55  ;;  %v2586_v60 = vld [vmem:[#allocation2 + $0xf] sm:$0x1]  ;;  %2611 = vst.msk [vmem:[#allocation2 + $0xb9] sm:$0x1] %vm266_vm1, %v2593_v30 }
 0x48a   : > { %2604 = vst.msk [vmem:[#allocation2 + $0x11] sm:$0x1] %vm266_vm1, %v2586_v60  ;;  %2576 = vst.msk [vmem:[#allocation2 + $0xc0] sm:$0x1] %vm266_vm1, %v2558_v2  ;;  %3204 = vrot.lane.b32.xlu0 %v6820_v15, %s5360_s19  ;;  %v2550_v25 = vld [vmem:[#allocation2 + $0x2] sm:$0x1] }
 0x48b   : > { %3710 = vrot.lane.b32.xlu1 %v2846_v5, %s5365_s5  ;;  %2612 = vst.msk [vmem:[#allocation2 + $0xd1] sm:$0x1] %vm266_vm1, %v2594_v58  ;;  %2577 = vst.msk [vmem:[#allocation2 + $0xd8] sm:$0x1] %vm266_vm1, %v2559_v39  ;;  %v2560_v33 = vld [vmem:[#allocation2 + $0xf2] sm:$0x1] }
 0x48c   : > { %2568 = vst.msk [vmem:[#allocation2] sm:$0x1] %vm266_vm1, %v2550_v25  ;;  %2613 = vst.msk [vmem:[#allocation2 + $0xe9] sm:$0x1] %vm266_vm1, %v2595_v26  ;;  %v2596_v0 = vld [vmem:[#allocation2 + $0xff] sm:$0x1] }
 0x48d   : > { %2578 = vst.msk [vmem:[#allocation2 + $0xf0] sm:$0x1] %vm266_vm1, %v2560_v33  ;;  %v2561_v23 = vld [vmem:[#allocation2 + $0x10a] sm:$0x1]  ;;  %2614 = vst.msk [vmem:[#allocation2 + $0x101] sm:$0x1] %vm266_vm1, %v2596_v0 }
 0x48e   : > { %3712 = vrot.lane.b32.xlu0 %v6809_v12, %s5365_s5  ;;  %2579 = vst.msk [vmem:[#allocation2 + $0x108] sm:$0x1] %vm266_vm1, %v2561_v23  ;;  %v2597_v17 = vld [vmem:[#allocation2 + $0x117] sm:$0x1]  ;;  %v2562_v4 = vld [vmem:[#allocation2 + $0x122] sm:$0x1] }
 0x48f   : > { %3330 = vrot.lane.b32.xlu1 %v2846_v5, %s5359_s18  ;;  %2615 = vst.msk [vmem:[#allocation2 + $0x119] sm:$0x1] %vm266_vm1, %v2597_v17  ;;  %2580 = vst.msk [vmem:[#allocation2 + $0x120] sm:$0x1] %vm266_vm1, %v2562_v4  ;;  %v2598_v40 = vld [vmem:[#allocation2 + $0x12f] sm:$0x1] }
 0x490   : > { %v2563_v21 = vld [vmem:[#allocation2 + $0x13a] sm:$0x1]  ;;  %2616 = vst.msk [vmem:[#allocation2 + $0x131] sm:$0x1] %vm266_vm1, %v2598_v40  ;;  %v2599_v46 = vld [vmem:[#allocation2 + $0x147] sm:$0x1] }
 0x491   : > { %2581 = vst.msk [vmem:[#allocation2 + $0x138] sm:$0x1] %vm266_vm1, %v2563_v21  ;;  %2617 = vst.msk [vmem:[#allocation2 + $0x149] sm:$0x1] %vm266_vm1, %v2599_v46  ;;  %v2564_v36 = vld [vmem:[#allocation2 + $0x152] sm:$0x1] }
 0x492   : > { %2950 = vrot.lane.b32.xlu0 %v2846_v5, %s5361_s20  ;;  %v6865_v7 = vld [vmem:[#allocation2 + $0x50] sm:$0xff]  ;;  %2582 = vst.msk [vmem:[#allocation2 + $0x150] sm:$0x1] %vm266_vm1, %v2564_v36  ;;  %v2600_v43 = vld [vmem:[#allocation2 + $0x15f] sm:$0x1]  ;;  %v2850_v59 = vld [vmem:[#allocation2 + $0x61] sm:$0xff] }
 0x493   : > { %3838 = vrot.lane.b32.xlu1 %v2878_v49, %s5366_s8  ;;  %v2565_v27 = vld [vmem:[#allocation2 + $0x16a] sm:$0x1]  ;;  %2618 = vst.msk [vmem:[#allocation2 + $0x161] sm:$0x1] %vm266_vm1, %v2600_v43  ;;  %v6875_v13 = vld [vmem:[#allocation2 + $0x171] sm:$0xff]  ;;  %v2882_v35 = vld [vmem:[#allocation2 + $0x62] sm:$0xff] }
 0x494   : > { %v6871_v62 = vld [vmem:[#allocation2 + $0x169] sm:$0xff]  ;;  %2583 = vst.msk [vmem:[#allocation2 + $0x168] sm:$0x1] %vm266_vm1, %v2565_v27  ;;  %8408 = vst [vmem:[#allocation5_spill] sm:$0xff] %v6875_v13  ;;  %v2601_v22 = vld [vmem:[#allocation2 + $0x177] sm:$0x1] }
 0x495   : > { %8407 = vst [vmem:[#allocation4_spill] sm:$0xff] %v6871_v62  ;;  %2548 = vst.msk [vmem:[#allocation2 + $0x199] sm:$0xff] %vm204_vm0, %v6871_v62  ;;  %v2566_v28 = vld [vmem:[#allocation2 + $0x182] sm:$0x1]  ;;  %v2602_v51 = vld [vmem:[#allocation2 + $0x18f] sm:$0x1] }
 0x496   : > { %3458 = vrot.lane.b32.xlu0 %v2878_v49, %s5362_s21  ;;  %2549 = vst.msk [vmem:[#allocation2 + $0x1a1] sm:$0xff] %vm204_vm0, %v6875_v13  ;;  %v2849_v14 = vld [vmem:[#allocation2 + $0x51] sm:$0xff]  ;;  %v6897_v56 = vld [vmem:[#allocation2 + $0x68] sm:$0xff]  ;;  %v2852_v63 = vld [vmem:[#allocation2 + $0x79] sm:$0xff] }
 0x497   : > { %3332 = vrot.lane.b32.xlu1 %v6809_v12, %s5359_s18  ;;  %2619 = vst.msk [vmem:[#allocation2 + $0x179] sm:$0x1] %vm266_vm1, %v2601_v22  ;;  %2584 = vst.msk [vmem:[#allocation2 + $0x180] sm:$0x1] %vm266_vm1, %v2566_v28  ;;  %v2880_v29 = vld [vmem:[#allocation2 + $0x4a] sm:$0xff]  ;;  %v6913_v11 = vld [vmem:[#allocation2 + $0x80] sm:$0xff] }
 0x498   : > { %2620 = vst.msk [vmem:[#allocation2 + $0x191] sm:$0x1] %vm266_vm1, %v2602_v51  ;;  %v2851_v3 = vld [vmem:[#allocation2 + $0x69] sm:$0xff]  ;;  %8409 = vst [vmem:[#allocation6_spill] sm:$0xff] %v6913_v11  ;;  %v2884_v42 = vld [vmem:[#allocation2 + $0x7a] sm:$0xff] }
 0x499   : > { %v2759_v54 = vld [vmem:[#allocation2 + $0x81] sm:$0xff]  ;;  %v2854_v37 = vld [vmem:[#allocation2 + $0x91] sm:$0xff]  ;;  %v2761_v31 = vld [vmem:[#allocation2 + $0x99] sm:$0xff] }
 0x49a   : > { %2952 = vrot.lane.b32.xlu0 %v6809_v12, %s5361_s20  ;;  %v2886_v1 = vld [vmem:[#allocation2 + $0x92] sm:$0xff]  ;;  %v6941_v12 = vld [vmem:[#allocation2 + $0xa9] sm:$0xff]  ;;  %v2879_v6 = vld [vmem:[#allocation2 + $0x3a] sm:$0xff] }
 0x49b   : > { %3078 = vrot.lane.b32.xlu1 %v2878_v49, %s5363_s22  ;;  %v6929_v45 = vld [vmem:[#allocation2 + $0x98] sm:$0xff]  ;;  %v2655_v57 = vld [vmem:[#allocation2 + $0x9] sm:$0xff]  ;;  %v2654_v30 = vld [vmem:[#allocation2 + $0x1] sm:$0xff] }
 0x49c   : > { %v2567_v32 = vld [vmem:[#allocation2 + $0x19a] sm:$0x1]  ;;  %8410 = vst [vmem:[#allocation7_spill] sm:$0xff] %v6929_v45  ;;  %v6963_v10 = vld [vmem:[#allocation2 + $0x30] sm:$0xff]  ;;  %v6989_v2 = vld [vmem:[#allocation2 + $0x48] sm:$0xff] }
 0x49d   : > { %2585 = vst.msk [vmem:[#allocation2 + $0x198] sm:$0x1] %vm266_vm1, %v2567_v32  ;;  %v2603_v18 = vld [vmem:[#allocation2 + $0x1a7] sm:$0x1]  ;;  %v6972_v47 = vld [vmem:[#allocation2 + $0xb0] sm:$0xff]  ;;  %v7005_v33 = vld [vmem:[#allocation2 + $0x18] sm:$0xff] }
 0x49e   : > { %3588 = vrot.lane.b32.xlu0 %v6865_v7, %s5364_s23  ;;  %2621 = vst.msk [vmem:[#allocation2 + $0x1a9] sm:$0x1] %vm266_vm1, %v2603_v18  ;;  %8411 = vst [vmem:[#allocation8_spill] sm:$0xff] %v6972_v47  ;;  %v2686_v25 = vld [vmem:[#allocation2 + $0x2] sm:$0xff]  ;;  %v2881_v0 = vld [vmem:[#allocation2 + $0x52] sm:$0xff] }
 0x49f   : > { %3714 = vrot.lane.b32.xlu1 %v2848_v9, %s5365_s5  ;;  %v7014_v4 = vld [vmem:[#allocation2 + $0x60] sm:$0xff]  ;;  %v2883_v43 = vld [vmem:[#allocation2 + $0x6a] sm:$0xff]  ;;  %v7036_v28 = vld [vmem:[#allocation2 + $0x78] sm:$0xff] }
 0x4a0   : > { %v2783_v40 = vld [vmem:[#allocation2 + $0x22] sm:$0xff]  ;;  %v2763_v62 = vld [vmem:[#allocation2 + $0xb1] sm:$0xff] }
 0x4a1   : > { %v2885_v18 = vld [vmem:[#allocation2 + $0x82] sm:$0xff] }
 0x4a2   : > { %3208 = vrot.lane.b32.xlu0 %v6865_v7, %s5360_s19 }
 0x4a3   : > { %3334 = vrot.lane.b32.xlu1 %v2848_v9, %s5359_s18 }
 0x4a6   : > { %3716 = vrot.lane.b32.xlu0 %v2849_v14, %s5365_s5 }
 0x4a7   : > { %3842 = vrot.lane.b32.xlu1 %v2880_v29, %s5366_s8 }
 0x4aa   : > { %2954 = vrot.lane.b32.xlu0 %v2848_v9, %s5361_s20 }
 0x4ab   : > { %3336 = vrot.lane.b32.xlu1 %v2849_v14, %s5359_s18 }
 0x4ae   : > { %3462 = vrot.lane.b32.xlu0 %v2880_v29, %s5362_s21 }
 0x4af   : > { %3082 = vrot.lane.b32.xlu1 %v2880_v29, %s5363_s22 }
 0x4b2   : > { %2956 = vrot.lane.b32.xlu0 %v2849_v14, %s5361_s20 }
 0x4b3   : > { %3718 = vrot.lane.b32.xlu1 %v2850_v59, %s5365_s5 }
 0x4b6   : > { %3592 = vrot.lane.b32.xlu0 %v6897_v56, %s5364_s23 }
 0x4b7   : > { %3338 = vrot.lane.b32.xlu1 %v2850_v59, %s5359_s18 }
 0x4ba   : > { %3212 = vrot.lane.b32.xlu0 %v6897_v56, %s5360_s19 }
 0x4bb   : > { %3846 = vrot.lane.b32.xlu1 %v2882_v35, %s5366_s8 }
 0x4be   : > { %3720 = vrot.lane.b32.xlu0 %v2851_v3, %s5365_s5 }
 0x4bf   : > { %3340 = vrot.lane.b32.xlu1 %v2851_v3, %s5359_s18 }
 0x4c2   : > { %2958 = vrot.lane.b32.xlu0 %v2850_v59, %s5361_s20 }
 0x4c3   : > { %3086 = vrot.lane.b32.xlu1 %v2882_v35, %s5363_s22 }
 0x4c6   : > { %3466 = vrot.lane.b32.xlu0 %v2882_v35, %s5362_s21 }
 0x4c7   : > { %3722 = vrot.lane.b32.xlu1 %v2852_v63, %s5365_s5 }
 0x4ca   : > { %2960 = vrot.lane.b32.xlu0 %v2851_v3, %s5361_s20  ;;  %v7058_v3 = vld [vmem:[#allocation2 + $0x90] sm:$0xff] }
 0x4cb   : > { %3342 = vrot.lane.b32.xlu1 %v2852_v63, %s5359_s18  ;;  %8416 = vst [vmem:[#allocation13_spill] sm:$0xff] %v7058_v3 }
 0x4ce   : > { %3596 = vrot.lane.b32.xlu0 %v6913_v11, %s5364_s23 }
 0x4cf   : > { %3850 = vrot.lane.b32.xlu1 %v2884_v42, %s5366_s8 }
 0x4d2   : > { %3216 = vrot.lane.b32.xlu0 %v6913_v11, %s5360_s19 }
 0x4d3   : > { %3344 = vrot.lane.b32.xlu1 %v2759_v54, %s5359_s18 }
 0x4d6   : > { %3724 = vrot.lane.b32.xlu0 %v2759_v54, %s5365_s5 }
 0x4d7   : > { %3090 = vrot.lane.b32.xlu1 %v2884_v42, %s5363_s22 }
 0x4da   : > { %2962 = vrot.lane.b32.xlu0 %v2852_v63, %s5361_s20 }
 0x4db   : > { %3726 = vrot.lane.b32.xlu1 %v2854_v37, %s5365_s5 }
 0x4de   : > { %3470 = vrot.lane.b32.xlu0 %v2884_v42, %s5362_s21 }
 0x4df   : > { %3346 = vrot.lane.b32.xlu1 %v2854_v37, %s5359_s18 }
 0x4e2   : > { %2964 = vrot.lane.b32.xlu0 %v2759_v54, %s5361_s20 }
 0x4e3   : > { %3854 = vrot.lane.b32.xlu1 %v2886_v1, %s5366_s8 }
 0x4e6   : > { %3600 = vrot.lane.b32.xlu0 %v6929_v45, %s5364_s23 }
 0x4e7   : > { %3348 = vrot.lane.b32.xlu1 %v2761_v31, %s5359_s18 }
 0x4ea   : > { %3220 = vrot.lane.b32.xlu0 %v6929_v45, %s5360_s19  ;;  %v2687_v45 = vld [vmem:[#allocation2 + $0xa] sm:$0xff] }
 0x4eb   : > { %3094 = vrot.lane.b32.xlu1 %v2886_v1, %s5363_s22 }
 0x4ec   : > { %v6937_v34 = vpop.permute.xlu0 %3326 }
 0x4ed   : > { %v6939_v5 = vpop.permute.xlu1 %3200 }
 0x4ee   : > { %3728 = vrot.lane.b32.xlu0 %v2761_v31, %s5365_s5 }
 0x4ef   : > { %3730 = vrot.lane.b32.xlu1 %v6941_v12, %s5365_s5 }
 0x4f0   : > { %v6946_v52 = vpop.permute.xlu0 %3328 }
 0x4f1   : > { %v6948_v53 = vpop.permute.xlu1 %2946 }
 0x4f2   : > { %2966 = vrot.lane.b32.xlu0 %v2854_v37, %s5361_s20 }
 0x4f3   : > { %3350 = vrot.lane.b32.xlu1 %v6941_v12, %s5359_s18 }
 0x4f4   : > { %v6953_v20 = vpop.permute.xlu0 %2948 }
 0x4f5   : > { %v6955_v48 = vpop.permute.xlu1 %3454 }
 0x4f6   : > { %3474 = vrot.lane.b32.xlu0 %v2886_v1, %s5362_s21  ;;  %v2887_v1 = vld [vmem:[#allocation2 + $0x9a] sm:$0xff] }
 0x4f7   : > { %2944 = vrot.lane.b32.xlu1 %v2655_v57, %s5361_s20 }
 0x4f8   : > { %v6959_v16 = vpop.permute.xlu0 %3584 }
 0x4f9   : > { %v6961_v8 = vpop.permute.xlu1 %3074 }
 0x4fa   : > { %2968 = vrot.lane.b32.xlu0 %v2761_v31, %s5361_s20 }
 0x4fb   : > { %3582 = vrot.lane.b32.xlu1 %v6963_v10, %s5364_s23 }
 0x4fc   : > { %v6968_v41 = vpop.permute.xlu0 %3204 }
 0x4fd   : > { %v6970_v44 = vpop.permute.xlu1 %3710 }
 0x4fe   : > { %3604 = vrot.lane.b32.xlu0 %v6972_v47, %s5364_s23 }
 0x4ff   : > { %3202 = vrot.lane.b32.xlu1 %v6963_v10, %s5360_s19 }
 0x500   : > { %v6978_v24 = vpop.permute.xlu0 %3712 }
 0x501   : > { %v6980_v61 = vpop.permute.xlu1 %3330 }
 0x502   : > { %3224 = vrot.lane.b32.xlu0 %v6972_v47, %s5360_s19  ;;  %v4190_v47 = vld [vmem:[%s8385_s2] sm:$0xff] }
 0x503   : > { %3840 = vrot.lane.b32.xlu1 %v2879_v6, %s5366_s8 }
 0x504   : > { %v6985_v55 = vpop.permute.xlu0 %2950 }
 0x505   : > { %v6987_v60 = vpop.permute.xlu1 %3838 }
 0x506   : > { %2942 = vrot.lane.b32.xlu0 %v2654_v30, %s5361_s20  ;;  %v4194_v30 = vld [vmem:[%s8385_s2 + $0x20] sm:$0xf] }
 0x507   : > { %3586 = vrot.lane.b32.xlu1 %v6989_v2, %s5364_s23  ;;  %5272 = vmatprep.subr.msk.mxu0 %vm1998_vm2, %v4194_v30 }
 0x508   : > { %v6994_v58 = vpop.permute.xlu0 %3458  ;;  %5273 = vmatpush3.msk.msra.mxu0 %vm1998_vm2, %v4194_v30  ;;  %v4191_v30 = vld [vmem:[%s8385_s2 + $0x8] sm:$0xff] }
 0x509   : > { %v6996_v39 = vpop.permute.xlu1 %3332 }
 0x50a   : > { %3070 = vrot.lane.b32.xlu0 %v2686_v25, %s5363_s22  ;;  %v4193_v25 = vld [vmem:[%s8385_s2 + $0x18] sm:$0xff] }
 0x50b   : > { %3206 = vrot.lane.b32.xlu1 %v6989_v2, %s5360_s19  ;;  %5274 = vmatprep.subr.mxu0 %v4193_v25 }
 0x50c   : > { %v7001_v49 = vpop.permute.xlu0 %2952  ;;  %5275 = vmatpush3.msra.mxu0 %v4193_v25 }
 0x50d   : > { %v7003_v26 = vpop.permute.xlu1 %3078  ;;  %5276 = vmatprep.subr.mxu0 %v4192_v19 }
 0x50e   : > { %3198 = vrot.lane.b32.xlu0 %v7005_v33, %s5360_s19  ;;  %5277 = vmatpush3.msra.mxu0 %v4192_v19 }
 0x50f   : > { %3844 = vrot.lane.b32.xlu1 %v2881_v0, %s5366_s8  ;;  %5278 = vmatprep.subr.mxu0 %v4191_v30 }
 0x510   : > { %v7010_v23 = vpop.permute.xlu0 %3588  ;;  %5279 = vmatpush3.msra.mxu0 %v4191_v30 }
 0x511   : > { %v7012_v17 = vpop.permute.xlu1 %3714  ;;  %5280 = vmatprep.subr.mxu0 %v4190_v47 }
 0x512   : > { %3456 = vrot.lane.b32.xlu0 %v2783_v40, %s5362_s21  ;;  %5281 = vmatpush3.msra.mxu0 %v4190_v47  ;;  %v7144_v47 = vld [vmem:[#allocation2 + $0xc0] sm:$0xff] }
 0x513   : > { %3590 = vrot.lane.b32.xlu1 %v7014_v4, %s5364_s23  ;;  %8432 = vst [vmem:[#allocation29_spill] sm:$0xff] %v7144_v47 }
 0x514   : > { %v7019_v21 = vpop.permute.xlu0 %3208 }
 0x515   : > { %v7021_v46 = vpop.permute.xlu1 %3334 }
 0x516   : > { %3076 = vrot.lane.b32.xlu0 %v2783_v40, %s5363_s22 }
 0x517   : > { %3210 = vrot.lane.b32.xlu1 %v7014_v4, %s5360_s19 }
 0x518   : > { %v7026_v36 = vpop.permute.xlu0 %3716 }
 0x519   : > { %8412 = vst [vmem:[#allocation9_spill] sm:$0xff] %v7026_v36  ;;  %v7028_v9 = vpop.permute.xlu1 %3842  ;;  %v2861_v36 = vld [vmem:[#allocation2 + $0xe1] sm:$0xff] }
 0x51a   : > { %8413 = vst [vmem:[#allocation10_spill] sm:$0xff] %v7028_v9  ;;  %3460 = vrot.lane.b32.xlu0 %v2879_v6, %s5362_s21 }
 0x51b   : > { %3848 = vrot.lane.b32.xlu1 %v2883_v43, %s5366_s8 }
 0x51c   : > { %v7032_v27 = vpop.permute.xlu0 %2954 }
 0x51d   : > { %v7034_v22 = vpop.permute.xlu1 %3336 }
 0x51e   : > { %3080 = vrot.lane.b32.xlu0 %v2879_v6, %s5363_s22  ;;  %v7080_v6 = vld [vmem:[#allocation2 + $0xa8] sm:$0xff] }
 0x51f   : > { %3594 = vrot.lane.b32.xlu1 %v7036_v28, %s5364_s23  ;;  %8419 = vst [vmem:[#allocation16_spill] sm:$0xff] %v7080_v6 }
 0x520   : > { %v7041_v51 = vpop.permute.xlu0 %3462 }
 0x521   : > { %v7043_v14 = vpop.permute.xlu1 %3082 }
 0x522   : > { %3464 = vrot.lane.b32.xlu0 %v2881_v0, %s5362_s21 }
 0x523   : > { %3214 = vrot.lane.b32.xlu1 %v7036_v28, %s5360_s19 }
 0x524   : > { %v7048_v29 = vpop.permute.xlu0 %2956 }
 0x525   : > { %v7050_v32 = vpop.permute.xlu1 %3718 }
 0x526   : > { %8414 = vst [vmem:[#allocation11_spill] sm:$0xff] %v7050_v32  ;;  %3084 = vrot.lane.b32.xlu0 %v2881_v0, %s5363_s22  ;;  %v2892_v32 = vld [vmem:[#allocation2 + $0xda] sm:$0xff] }
 0x527   : > { %3852 = vrot.lane.b32.xlu1 %v2885_v18, %s5366_s8 }
 0x528   : > { %v7054_v59 = vpop.permute.xlu0 %3592 }
 0x529   : > { %8415 = vst [vmem:[#allocation12_spill] sm:$0xff] %v7054_v59  ;;  %v7056_v35 = vpop.permute.xlu1 %3338 }
 0x52a   : > { %3468 = vrot.lane.b32.xlu0 %v2883_v43, %s5362_s21 }
 0x52b   : > { %3598 = vrot.lane.b32.xlu1 %v7058_v3, %s5364_s23 }
 0x52c   : > { %v7063_v63 = vpop.permute.xlu0 %3212 }
 0x52d   : > { %v7065_v42 = vpop.permute.xlu1 %3846 }
 0x52e   : > { %8417 = vst [vmem:[#allocation14_spill] sm:$0xff] %v7065_v42  ;;  %3088 = vrot.lane.b32.xlu0 %v2883_v43, %s5363_s22  ;;  %v2888_v43 = vld [vmem:[#allocation2 + $0xaa] sm:$0xff] }
 0x52f   : > { %3218 = vrot.lane.b32.xlu1 %v7058_v3, %s5360_s19 }
 0x530   : > { %v7070_v54 = vpop.permute.xlu0 %3720 }
 0x531   : > { %8418 = vst [vmem:[#allocation15_spill] sm:$0xff] %v7070_v54  ;;  %v7072_v37 = vpop.permute.xlu1 %3340 }
 0x532   : > { %3472 = vrot.lane.b32.xlu0 %v2885_v18, %s5362_s21 }
 0x533   : > { %3856 = vrot.lane.b32.xlu1 %v2887_v1, %s5366_s8 }
 0x534   : > { %v7076_v31 = vpop.permute.xlu0 %2958 }
 0x535   : > { %v7078_v57 = vpop.permute.xlu1 %3086 }
 0x536   : > { %3092 = vrot.lane.b32.xlu0 %v2885_v18, %s5363_s22 }
 0x537   : > { %3602 = vrot.lane.b32.xlu1 %v7080_v6, %s5364_s23 }
 0x538   : > { %v7092_v0 = vpop.permute.xlu0 %3466 }
 0x539   : > { %8420 = vst [vmem:[#allocation17_spill] sm:$0xff] %v7092_v0  ;;  %v7094_v40 = vpop.permute.xlu1 %3722 }
 0x53a   : > { %8421 = vst [vmem:[#allocation18_spill] sm:$0xff] %v7094_v40  ;;  %3476 = vrot.lane.b32.xlu0 %v2887_v1, %s5362_s21 }
 0x53b   : > { %3858 = vrot.lane.b32.xlu1 %v2888_v43, %s5366_s8 }
 0x53c   : > { %v7099_v18 = vpop.permute.xlu0 %2960 }
 0x53d   : > { %v7101_v38 = vpop.permute.xlu1 %3342 }
 0x53e   : > { %8422 = vst [vmem:[#allocation19_spill] sm:$0xff] %v7101_v38  ;;  %3096 = vrot.lane.b32.xlu0 %v2887_v1, %s5363_s22 }
 0x53f   : > { %3222 = vrot.lane.b32.xlu1 %v7080_v6, %s5360_s19 }
 0x540   : > { %v7112_v13 = vpop.permute.xlu0 %3596 }
 0x541   : > { %8423 = vst [vmem:[#allocation20_spill] sm:$0xff] %v7112_v13  ;;  %v7114_v25 = vpop.permute.xlu1 %3850 }
 0x542   : > { %8424 = vst [vmem:[#allocation21_spill] sm:$0xff] %v7114_v25  ;;  %3732 = vrot.lane.b32.xlu0 %v2763_v62, %s5365_s5  ;;  %v2889_v25 = vld [vmem:[#allocation2 + $0xb2] sm:$0xff] }
 0x543   : > { %3352 = vrot.lane.b32.xlu1 %v2763_v62, %s5359_s18 }
 0x544   : > { %v7121_v1 = vpop.permute.xlu0 %3216 }
 0x545   : > { %8425 = vst [vmem:[#allocation22_spill] sm:$0xff] %v7121_v1  ;;  %v7123_v6 = vpop.permute.xlu1 %3344 }
 0x546   : > { %8426 = vst [vmem:[#allocation23_spill] sm:$0xff] %v7123_v6  ;;  %2970 = vrot.lane.b32.xlu0 %v6941_v12, %s5361_s20  ;;  %v2622_v6 = vld [vmem:[#allocation2] sm:$0xff] }
 0x547   : > { %3072 = vrot.lane.b32.xlu1 %v2687_v45, %s5363_s22 }
 0x548   : > { %v7128_v19 = vpop.permute.xlu0 %3724 }
 0x549   : > { %8427 = vst [vmem:[#allocation24_spill] sm:$0xff] %v7128_v19  ;;  %v7130_v3 = vpop.permute.xlu1 %3090 }
 0x54a   : > { %8428 = vst [vmem:[#allocation25_spill] sm:$0xff] %v7130_v3  ;;  %3478 = vrot.lane.b32.xlu0 %v2888_v43, %s5362_s21 }
 0x54b   : > { %3860 = vrot.lane.b32.xlu1 %v2889_v25, %s5366_s8 }
 0x54c   : > { %v7134_v30 = vpop.permute.xlu0 %2962 }
 0x54d   : > { %v7136_v13 = vpop.permute.xlu1 %3726 }
 0x54e   : > { %8429 = vst [vmem:[#allocation26_spill] sm:$0xff] %v7136_v13  ;;  %2972 = vrot.lane.b32.xlu0 %v2763_v62, %s5361_s20  ;;  %v2858_v13 = vld [vmem:[#allocation2 + $0xc1] sm:$0xff] }
 0x54f   : > { %3098 = vrot.lane.b32.xlu1 %v2888_v43, %s5363_s22 }
 0x550   : > { %v7140_v45 = vpop.permute.xlu0 %3470 }
 0x551   : > { %8430 = vst [vmem:[#allocation27_spill] sm:$0xff] %v7140_v45  ;;  %v7142_v12 = vpop.permute.xlu1 %3346 }
 0x552   : > { %8431 = vst [vmem:[#allocation28_spill] sm:$0xff] %v7142_v12  ;;  %3480 = vrot.lane.b32.xlu0 %v2889_v25, %s5362_s21  ;;  %v7160_v12 = vld [vmem:[#allocation2 + $0xc8] sm:$0xff] }
 0x553   : > { %3606 = vrot.lane.b32.xlu1 %v7144_v47, %s5364_s23  ;;  %8437 = vst [vmem:[#allocation34_spill] sm:$0xff] %v7160_v12 }
 0x554   : > { %v7149_v19 = vpop.permute.xlu0 %2964 }
 0x555   : > { %8433 = vst [vmem:[#allocation30_spill] sm:$0xff] %v7149_v19  ;;  %v7151_v54 = vpop.permute.xlu1 %3854 }
 0x556   : > { %8434 = vst [vmem:[#allocation31_spill] sm:$0xff] %v7151_v54  ;;  %3100 = vrot.lane.b32.xlu0 %v2889_v25, %s5363_s22 }
 0x557   : > { %3226 = vrot.lane.b32.xlu1 %v7144_v47, %s5360_s19 }
 0x558   : > { %v7156_v62 = vpop.permute.xlu0 %3600 }
 0x559   : > { %8435 = vst [vmem:[#allocation32_spill] sm:$0xff] %v7156_v62  ;;  %v7158_v43 = vpop.permute.xlu1 %3348  ;;  %v2859_v62 = vld [vmem:[#allocation2 + $0xc9] sm:$0xff] }
 0x55a   : > { %8436 = vst [vmem:[#allocation33_spill] sm:$0xff] %v7158_v43  ;;  %3608 = vrot.lane.b32.xlu0 %v7160_v12, %s5364_s23  ;;  %v2890_v43 = vld [vmem:[#allocation2 + $0xc2] sm:$0xff] }
 0x55b   : > { %3734 = vrot.lane.b32.xlu1 %v2858_v13, %s5365_s5 }
 0x55c   : > { %v7165_v45 = vpop.permute.xlu0 %3220 }
 0x55d   : > { %8438 = vst [vmem:[#allocation35_spill] sm:$0xff] %v7165_v45  ;;  %v7167_v54 = vpop.permute.xlu1 %3094 }
 0x55e   : > { %8439 = vst [vmem:[#allocation36_spill] sm:$0xff] %v7167_v54  ;;  %3228 = vrot.lane.b32.xlu0 %v7160_v12, %s5360_s19 }
 0x55f   : > { %3354 = vrot.lane.b32.xlu1 %v2858_v13, %s5359_s18 }
 0x560   : > { %v7172_v25 = vpop.permute.xlu0 %3728 }
 0x561   : > { %8440 = vst [vmem:[#allocation37_spill] sm:$0xff] %v7172_v25  ;;  %v7174_v47 = vpop.permute.xlu1 %3730  ;;  %v2891_v25 = vld [vmem:[#allocation2 + $0xca] sm:$0xff] }
 0x562   : > { %8441 = vst [vmem:[#allocation38_spill] sm:$0xff] %v7174_v47  ;;  %3736 = vrot.lane.b32.xlu0 %v2859_v62, %s5365_s5 }
 0x563   : > { %3862 = vrot.lane.b32.xlu1 %v2890_v43, %s5366_s8 }
 0x564   : > { %v7178_v42 = vpop.permute.xlu0 %2966 }
 0x565   : > { %8442 = vst [vmem:[#allocation39_spill] sm:$0xff] %v7178_v42  ;;  %v7180_v45 = vpop.permute.xlu1 %3350 }
 0x566   : > { %8443 = vst [vmem:[#allocation40_spill] sm:$0xff] %v7180_v45  ;;  %2974 = vrot.lane.b32.xlu0 %v2858_v13, %s5361_s20  ;;  %v7198_v13 = vld [vmem:[#allocation2 + $0xd8] sm:$0xff] }
 0x567   : > { %3356 = vrot.lane.b32.xlu1 %v2859_v62, %s5359_s18  ;;  %8447 = vst [vmem:[#allocation44_spill] sm:$0xff] %v7198_v13 }
 0x568   : > { %v7184_v54 = vpop.permute.xlu0 %3474 }
 0x569   : > { %8444 = vst [vmem:[#allocation41_spill] sm:$0xff] %v7184_v54  ;;  %v7186_v12 = vpop.permute.xlu1 %2944 }
 0x56a   : > { %3482 = vrot.lane.b32.xlu0 %v2890_v43, %s5362_s21 }
 0x56b   : > { %3864 = vrot.lane.b32.xlu1 %v2891_v25, %s5366_s8 }
 0x56c   : > { %v7190_v47 = vpop.permute.xlu0 %2968 }
 0x56d   : > { %8445 = vst [vmem:[#allocation42_spill] sm:$0xff] %v7190_v47  ;;  %v3583_v40 = vpop.permute.xlu1 %3582  ;;  %v2860_v47 = vld [vmem:[#allocation2 + $0xd9] sm:$0xff] }
 0x56e   : > { %2976 = vrot.lane.b32.xlu0 %v2859_v62, %s5361_s20 }
 0x56f   : > { %3102 = vrot.lane.b32.xlu1 %v2890_v43, %s5363_s22 }
 0x570   : > { %v7194_v45 = vpop.permute.xlu0 %3604 }
 0x571   : > { %8446 = vst [vmem:[#allocation43_spill] sm:$0xff] %v7194_v45  ;;  %v7196_v42 = vpop.permute.xlu1 %3202  ;;  %v7212_v45 = vld [vmem:[#allocation2 + $0xe0] sm:$0xff] }
 0x572   : > { %3484 = vrot.lane.b32.xlu0 %v2891_v25, %s5362_s21  ;;  %8449 = vst [vmem:[#allocation46_spill] sm:$0xff] %v7212_v45 }
 0x573   : > { %3610 = vrot.lane.b32.xlu1 %v7198_v13, %s5364_s23 }
 0x574   : > { %v7203_v54 = vpop.permute.xlu0 %3224 }
 0x575   : > { %8448 = vst [vmem:[#allocation45_spill] sm:$0xff] %v7203_v54  ;;  %v7205_v11 = vpop.permute.xlu1 %3840 }
 0x576   : > { %3104 = vrot.lane.b32.xlu0 %v2891_v25, %s5363_s22 }
 0x577   : > { %3230 = vrot.lane.b32.xlu1 %v7198_v13, %s5360_s19 }
 0x578   : > { %v2943_v62 = vpop.permute.xlu0 %2942 }
 0x579   : > { %v7210_v43 = vpop.permute.xlu1 %3586  ;;  %v3934_v25 = vsel %vm204_vm0, %v2622_v6, %v2943_v62 }
 0x57a   : > { %3612 = vrot.lane.b32.xlu0 %v7212_v45, %s5364_s23 }
 0x57b   : > { %3738 = vrot.lane.b32.xlu1 %v2860_v47, %s5365_s5 }
 0x57c   : > { %v3071_v19 = vpop.permute.xlu0 %3070 }
 0x57d   : > { %v7217_v54 = vpop.permute.xlu1 %3206  ;;  %v3966_v13 = vsel %vm1665_vm4, %v3934_v25, %v3071_v19 }
 0x57e   : > { %3232 = vrot.lane.b32.xlu0 %v7212_v45, %s5360_s19 }
 0x57f   : > { %3358 = vrot.lane.b32.xlu1 %v2860_v47, %s5359_s18 }
 0x580   : > { %v3199_v38 = vpop.permute.xlu0 %3198 }
 0x581   : > { %v7224_v3 = vpop.permute.xlu1 %3844  ;;  %v3998_v59 = vsel %vm1698_vm3, %v3966_v13, %v3199_v38 }
 0x582   : > { %8450 = vst [vmem:[#allocation47_spill] sm:$0xff] %v7224_v3  ;;  %v4030_v9 = vsel %vm1731_vm5, %v3998_v59, %v6937_v34  ;;  %3740 = vrot.lane.b32.xlu0 %v2861_v36, %s5365_s5  ;;  %v2863_v3 = vld [vmem:[#allocation2 + $0xf9] sm:$0xff] }
 0x583   : > { %3866 = vrot.lane.b32.xlu1 %v2892_v32, %s5366_s8  ;;  %v4062_v45 = vsel %vm1764_vm6, %v4030_v9, %v6955_v48  ;;  %v2893_v9 = vld [vmem:[#allocation2 + $0xe2] sm:$0xff] }
 0x584   : > { %v7235_v19 = vpop.permute.xlu0 %3456  ;;  %v4094_v62 = vsel %vm1797_vm7, %v4062_v45, %v3583_v40 }
 0x585   : > { %v7233_v6 = vpop.permute.xlu1 %3590  ;;  %v4126_v38 = vsel %vm1830_vm8, %v4094_v62, %v6970_v44  ;;  %v2862_v62 = vld [vmem:[#allocation2 + $0xf1] sm:$0xff] }
 0x586   : > { %2978 = vrot.lane.b32.xlu0 %v2860_v47, %s5361_s20  ;;  %v4158_v34 = vsel %vm1863_vm9, %v4126_v38, %v6987_v60  ;;  %v7257_v47 = vld [vmem:[#allocation2 + $0xf0] sm:$0xff]  ;;  %v7273_v38 = vld [vmem:[#allocation2 + $0xf8] sm:$0xff] }
 0x587   : > { %3360 = vrot.lane.b32.xlu1 %v2861_v36, %s5359_s18  ;;  %5282 = vmatprep.mubr.msk.f32.mxu0 %vm1901_vm10, %v4158_v34  ;;  %8453 = vst [vmem:[#allocation50_spill] sm:$0xff] %v7257_v47  ;;  %8455 = vst [vmem:[#allocation52_spill] sm:$0xff] %v7273_v38 }
 0x588   : > { %v3077_v48 = vpop.permute.xlu0 %3076 }
 0x589   : > { %v7245_v59 = vpop.permute.xlu1 %3210 }
 0x58a   : > { %3486 = vrot.lane.b32.xlu0 %v2892_v32, %s5362_s21 }
 0x58b   : > { %3868 = vrot.lane.b32.xlu1 %v2893_v9, %s5366_s8 }
 0x58c   : > { %v7251_v44 = vpop.permute.xlu0 %3460 }
 0x58d   : > { %v7249_v40 = vpop.permute.xlu1 %3848 }
 0x58e   : > { %8451 = vst [vmem:[#allocation48_spill] sm:$0xff] %v7249_v40  ;;  %2980 = vrot.lane.b32.xlu0 %v2861_v36, %s5361_s20 }
 0x58f   : > { %3106 = vrot.lane.b32.xlu1 %v2892_v32, %s5363_s22 }
 0x590   : > { %v3081_v60 = vpop.permute.xlu0 %3080 }
 0x591   : > { %v7255_v45 = vpop.permute.xlu1 %3594 }
 0x592   : > { %8452 = vst [vmem:[#allocation49_spill] sm:$0xff] %v7255_v45  ;;  %3488 = vrot.lane.b32.xlu0 %v2893_v9, %s5362_s21 }
 0x593   : > { %3614 = vrot.lane.b32.xlu1 %v7257_v47, %s5364_s23 }
 0x594   : > { %v7264_v25 = vpop.permute.xlu0 %3464 }
 0x595   : > { %v7262_v13 = vpop.permute.xlu1 %3214 }
 0x596   : > { %3108 = vrot.lane.b32.xlu0 %v2893_v9, %s5363_s22 }
 0x597   : > { %3234 = vrot.lane.b32.xlu1 %v7257_v47, %s5360_s19 }
 0x598   : > { %v7271_v32 = vpop.permute.xlu0 %3084 }
 0x599   : > { %v7269_v36 = vpop.permute.xlu1 %3852 }
 0x59a   : > { %8454 = vst [vmem:[#allocation51_spill] sm:$0xff] %v7269_v36  ;;  %3616 = vrot.lane.b32.xlu0 %v7273_v38, %s5364_s23  ;;  %v2894_v36 = vld [vmem:[#allocation2 + $0xf2] sm:$0xff] }
 0x59b   : > { %3742 = vrot.lane.b32.xlu1 %v2862_v62, %s5365_s5 }
 0x59c   : > { %v7280_v40 = vpop.permute.xlu0 %3468 }
 0x59d   : > { %v7278_v34 = vpop.permute.xlu1 %3598  ;;  %8457 = vst [vmem:[#allocation54_spill] sm:$0xff] %v7280_v40 }
 0x59e   : > { %8456 = vst [vmem:[#allocation53_spill] sm:$0xff] %v7278_v34  ;;  %3236 = vrot.lane.b32.xlu0 %v7273_v38, %s5360_s19 }
 0x59f   : > { %3362 = vrot.lane.b32.xlu1 %v2862_v62, %s5359_s18 }
 0x5a0   : > { %v7287_v47 = vpop.permute.xlu0 %3088 }
 0x5a1   : > { %v7285_v9 = vpop.permute.xlu1 %3218 }
 0x5a2   : > { %8458 = vst [vmem:[#allocation55_spill] sm:$0xff] %v7285_v9  ;;  %3744 = vrot.lane.b32.xlu0 %v2863_v3, %s5365_s5  ;;  %v2895_v9 = vld [vmem:[#allocation2 + $0xfa] sm:$0xff] }
 0x5a3   : > { %3870 = vrot.lane.b32.xlu1 %v2894_v36, %s5366_s8 }
 0x5a4   : > { %v7293_v34 = vpop.permute.xlu0 %3472 }
 0x5a5   : > { %v7291_v45 = vpop.permute.xlu1 %3856  ;;  %8460 = vst [vmem:[#allocation57_spill] sm:$0xff] %v7293_v34 }
 0x5a6   : > { %8459 = vst [vmem:[#allocation56_spill] sm:$0xff] %v7291_v45  ;;  %2982 = vrot.lane.b32.xlu0 %v2862_v62, %s5361_s20  ;;  %v3936_v62 = vsel %vm204_vm0, %v7005_v33, %v6948_v53  ;;  %v3937_v45 = vsel %vm204_vm0, %v6800_v50, %v6953_v20  ;;  %v3938_v50 = vsel %vm204_vm0, %v6963_v10, %v6985_v55  ;;  %v2623_v55 = vld [vmem:[#allocation2 + $0x8] sm:$0xff] }
 0x5a7   : > { %3364 = vrot.lane.b32.xlu1 %v2863_v3, %s5359_s18  ;;  %v3939_v53 = vsel %vm204_vm0, %v6820_v15, %v7001_v49  ;;  %v3940_v10 = vsel %vm204_vm0, %v6989_v2, %v7032_v27  ;;  %v3942_v2 = vsel %vm204_vm0, %v7014_v4, %v7076_v31  ;;  %v7379_v31 = vld [vmem:[#allocation2 + $0x109] sm:$0xff] }
 0x5a8   : > { %v7299_v38 = vpop.permute.xlu0 %3092 }
 0x5a9   : > { %v7297_v40 = vpop.permute.xlu1 %3602 }
 0x5aa   : > { %8461 = vst [vmem:[#allocation58_spill] sm:$0xff] %v7297_v40  ;;  %3490 = vrot.lane.b32.xlu0 %v2894_v36, %s5362_s21 }
 0x5ab   : > { %3872 = vrot.lane.b32.xlu1 %v2895_v9, %s5366_s8 }
 0x5ac   : > { %v7305_v0 = vpop.permute.xlu0 %3476 }
 0x5ad   : > { %v7303_v1 = vpop.permute.xlu1 %3858  ;;  %8463 = vst [vmem:[#allocation60_spill] sm:$0xff] %v7305_v0  ;;  %v3969_v0 = vsel %vm1665_vm4, %v3937_v45, %v3077_v48  ;;  %v3971_v48 = vsel %vm1665_vm4, %v3939_v53, %v3081_v60  ;;  %v3943_v45 = vsel %vm204_vm0, %v6897_v56, %v7099_v18  ;;  %v8468_v53 = vld [vmem:[#allocation11_spill] sm:$0xff] }
 0x5ae   : > { %8462 = vst [vmem:[#allocation59_spill] sm:$0xff] %v7303_v1  ;;  %2984 = vrot.lane.b32.xlu0 %v2863_v3, %s5361_s20  ;;  %v3968_v1 = vsel %vm1665_vm4, %v3936_v62, %v6961_v8  ;;  %v4001_v20 = vsel %vm1698_vm3, %v3969_v0, %v6968_v41  ;;  %v3972_v41 = vsel %vm1665_vm4, %v3940_v10, %v7043_v14  ;;  %v8465_v62 = vld [vmem:[#allocation22_spill] sm:$0xff] }
 0x5af   : > { %3110 = vrot.lane.b32.xlu1 %v2894_v36, %s5363_s22  ;;  %v7322_v36 = vld [vmem:[#allocation2 + $0x108] sm:$0xff]  ;;  %v4000_v3 = vsel %vm1698_vm3, %v3968_v1, %v7196_v42  ;;  %v3970_v42 = vsel %vm1665_vm4, %v3938_v50, %v7003_v26  ;;  %v4033_v49 = vsel %vm1731_vm5, %v4001_v20, %v6996_v39  ;;  %v3935_v26 = vsel %vm204_vm0, %v2623_v55, %v7186_v12  ;;  %v8467_v50 = vld [vmem:[#allocation9_spill] sm:$0xff] }
 0x5b0   : > { %v7317_v34 = vpop.permute.xlu0 %3096  ;;  %v4032_v1 = vsel %vm1731_vm5, %v4000_v3, %v6980_v61  ;;  %v4002_v15 = vsel %vm1698_vm3, %v3970_v42, %v7217_v54  ;;  %v3941_v61 = vsel %vm204_vm0, %v6865_v7, %v7048_v29  ;;  %v4003_v14 = vsel %vm1698_vm3, %v3971_v48, %v7019_v21  ;;  %v8469_v20 = vld [vmem:[#allocation49_spill] sm:$0xff]  ;;  %v2896_v10 = vld [vmem:[#allocation2 + $0x10a] sm:$0xff] }
 0x5b1   : > { %v7315_v40 = vpop.permute.xlu1 %3222  ;;  %v4064_v27 = vsel %vm1764_vm6, %v4032_v1, %v6994_v58  ;;  %v4034_v39 = vsel %vm1731_vm5, %v4002_v15, %v7021_v46  ;;  %v3973_v4 = vsel %vm1665_vm4, %v3941_v61, %v7271_v32  ;;  %v7381_v58 = vld [vmem:[#allocation2 + $0x110] sm:$0xff]  ;;  %v4004_v21 = vsel %vm1698_vm3, %v3972_v41, %v7245_v59  ;;  %v8470_v1 = vld [vmem:[#allocation12_spill] sm:$0xff]  ;;  %v8472_v55 = vld [vmem:[#allocation54_spill] sm:$0xff] }
 0x5b2   : > { %3492 = vrot.lane.b32.xlu0 %v2895_v9, %s5362_s21  ;;  %v4096_v7 = vsel %vm1797_vm7, %v4064_v27, %v7210_v43  ;;  %v4065_v12 = vsel %vm1764_vm6, %v4033_v49, %v7251_v44  ;;  %v3974_v46 = vsel %vm1665_vm4, %v3942_v2, %v7078_v57  ;;  %v4035_v59 = vsel %vm1731_vm5, %v4003_v14, %v7034_v22  ;;  %v2865_v15 = vld [vmem:[#allocation2 + $0x111] sm:$0xff]  ;;  %v8473_v2 = vld [vmem:[#allocation25_spill] sm:$0xff] }
 0x5b3   : > { %3618 = vrot.lane.b32.xlu1 %v7322_v36, %s5364_s23  ;;  %v4066_v60 = vsel %vm1764_vm6, %v4034_v39, %v7041_v51  ;;  %v4005_v32 = vsel %vm1698_vm3, %v3973_v4, %v7063_v63  ;;  %v4036_v22 = vsel %vm1731_vm5, %v4004_v21, %v7056_v35  ;;  %v4067_v18 = vsel %vm1764_vm6, %v4035_v59, %v7264_v25  ;;  %v8471_v41 = vld [vmem:[#allocation19_spill] sm:$0xff]  ;;  %v8476_v39 = vld [vmem:[#allocation30_spill] sm:$0xff] }
 0x5b4   : > { %v7339_v33 = vpop.permute.xlu0 %3732  ;;  %v4098_v63 = vsel %vm1797_vm7, %v4066_v60, %v7233_v6  ;;  %v3944_v35 = vsel %vm204_vm0, %v7036_v28, %v7134_v30  ;;  %v4037_v6 = vsel %vm1731_vm5, %v4005_v32, %v7072_v37  ;;  %v8466_v30 = vld [vmem:[#allocation10_spill] sm:$0xff]  ;;  %v4099_v48 = vsel %vm1797_vm7, %v4067_v18, %v8470_v1  ;;  %v8474_v27 = vld [vmem:[#allocation23_spill] sm:$0xff] }
 0x5b5   : > { %v7337_v8 = vpop.permute.xlu1 %3352  ;;  %v4069_v49 = vsel %vm1764_vm6, %v4037_v6, %v8472_v55  ;;  %v8477_v4 = vld [vmem:[#allocation6_spill] sm:$0xff]  ;;  %v8481_v60 = vld [vmem:[#allocation27_spill] sm:$0xff] }
 0x5b6   : > { %3112 = vrot.lane.b32.xlu0 %v2895_v9, %s5363_s22  ;;  %v8478_v21 = vld [vmem:[#allocation18_spill] sm:$0xff]  ;;  %v8493_v1 = vld [vmem:[#allocation39_spill] sm:$0xff] }
 0x5b7   : > { %3238 = vrot.lane.b32.xlu1 %v7322_v36, %s5360_s19 }
 0x5b8   : > { %v7370_v0 = vpop.permute.xlu0 %2970 }
 0x5b9   : > { %v3073_v54 = vpop.permute.xlu1 %3072 }
 0x5ba   : > { %v3967_v29 = vsel %vm1665_vm4, %v3935_v26, %v3073_v54  ;;  %3620 = vrot.lane.b32.xlu0 %v7381_v58, %s5364_s23  ;;  %v3976_v26 = vsel %vm1665_vm4, %v3944_v35, %v8473_v2  ;;  %v8475_v54 = vld [vmem:[#allocation47_spill] sm:$0xff] }
 0x5bb   : > { %v3999_v43 = vsel %vm1698_vm3, %v3967_v29, %v6939_v5  ;;  %3746 = vrot.lane.b32.xlu1 %v7379_v31, %s5365_s5  ;;  %v4128_v5 = vsel %vm1830_vm8, %v4096_v7, %v7012_v17  ;;  %v3975_v17 = vsel %vm1665_vm4, %v3943_v45, %v7287_v47  ;;  %v8464_v47 = vld [vmem:[#allocation17_spill] sm:$0xff]  ;;  %v3945_v29 = vsel %vm204_vm0, %v8477_v4, %v8476_v39  ;;  %v8479_v45 = vld [vmem:[#allocation14_spill] sm:$0xff]  ;;  %v8499_v4 = vld [vmem:[#allocation31_spill] sm:$0xff] }
 0x5bc   : > { %v4031_v44 = vsel %vm1731_vm5, %v3999_v43, %v6946_v52  ;;  %v7412_v56 = vpop.permute.xlu0 %3478  ;;  %v4097_v52 = vsel %vm1797_vm7, %v4065_v12, %v7010_v23  ;;  %v4068_v25 = vsel %vm1764_vm6, %v4036_v22, %v8464_v47  ;;  %v4007_v3 = vsel %vm1698_vm3, %v3975_v17, %v8465_v62 }
 0x5bd   : > { %v4063_v57 = vsel %vm1764_vm6, %v4031_v44, %v7235_v19  ;;  %v7410_v9 = vpop.permute.xlu1 %3860  ;;  %v4129_v37 = vsel %vm1830_vm8, %v4097_v52, %v8467_v50  ;;  %v4100_v42 = vsel %vm1797_vm7, %v4068_v25, %v8469_v20  ;;  %v4039_v14 = vsel %vm1731_vm5, %v4007_v3, %v8474_v27  ;;  %v8480_v44 = vld [vmem:[#allocation15_spill] sm:$0xff]  ;;  %v8490_v50 = vld [vmem:[#allocation24_spill] sm:$0xff] }
 0x5be   : > { %v4095_v51 = vsel %vm1797_vm7, %v4063_v57, %v6959_v16  ;;  %3240 = vrot.lane.b32.xlu0 %v7381_v58, %s5360_s19  ;;  %v4006_v16 = vsel %vm1698_vm3, %v3974_v46, %v7262_v13  ;;  %v4160_v13 = vsel %vm1863_vm9, %v4128_v5, %v8466_v30  ;;  %v4161_v7 = vsel %vm1863_vm9, %v4129_v37, %v8475_v54  ;;  %v8482_v57 = vld [vmem:[#allocation20_spill] sm:$0xff]  ;;  %v8483_v52 = vld [vmem:[#allocation55_spill] sm:$0xff]  ;;  %v8489_v30 = vld [vmem:[#allocation21_spill] sm:$0xff] }
 0x5bf   : > { %3366 = vrot.lane.b32.xlu1 %v7379_v31, %s5359_s18  ;;  %v4127_v23 = vsel %vm1830_vm8, %v4095_v51, %v6978_v24  ;;  %v4038_v61 = vsel %vm1731_vm5, %v4006_v16, %v8471_v41  ;;  %v4132_v12 = vsel %vm1830_vm8, %v4100_v42, %v8478_v21  ;;  %v4131_v5 = vsel %vm1830_vm8, %v4099_v48, %v8480_v44  ;;  %v8486_v16 = vld [vmem:[#allocation48_spill] sm:$0xff]  ;;  %v8491_v37 = vld [vmem:[#allocation26_spill] sm:$0xff]  ;;  %v8494_v48 = vld [vmem:[#allocation13_spill] sm:$0xff] }
 0x5c0   : > { %v4159_v19 = vsel %vm1863_vm9, %v4127_v23, %v7205_v11  ;;  %v7448_v28 = vpop.permute.xlu0 %2972  ;;  %v4130_v11 = vsel %vm1830_vm8, %v4098_v63, %v8468_v53  ;;  %v4070_v32 = vsel %vm1764_vm6, %v4038_v61, %v8481_v60  ;;  %v4101_v22 = vsel %vm1797_vm7, %v4069_v49, %v8482_v57  ;;  %v8484_v63 = vld [vmem:[#allocation53_spill] sm:$0xff]  ;;  %v2897_v42 = vld [vmem:[#allocation2 + $0x112] sm:$0xff] }
 0x5c1   : > { %v7445_v24 = vpop.permute.xlu1 %3098  ;;  %5283 = vmatmul.mubr.msk.f32.vlgmr.msra.gmra.mxu0 %vm1901_vm10, %v4159_v19  ;;  %v4162_v59 = vsel %vm1863_vm9, %v4130_v11, %v8479_v45  ;;  %v4008_v17 = vsel %vm1698_vm3, %v3976_v26, %v8483_v52  ;;  %v3977_v51 = vsel %vm1665_vm4, %v3945_v29, %v7299_v38  ;;  %v4102_v18 = vsel %vm1797_vm7, %v4070_v32, %v8484_v63  ;;  %v8485_v23 = vld [vmem:[#allocation57_spill] sm:$0xff]  ;;  %v8487_v19 = vld [vmem:[#allocation28_spill] sm:$0xff]  ;;  %v8488_v38 = vld [vmem:[#allocation35_spill] sm:$0xff] }
 0x5c2   : > { %5285 = vmatprep.mubr.msk.f32.mxu0 %vm1901_vm10, %v4160_v13  ;;  %3748 = vrot.lane.b32.xlu0 %v2865_v15, %s5365_s5  ;;  %v4071_v35 = vsel %vm1764_vm6, %v4039_v14, %v8485_v23  ;;  %v4163_v6 = vsel %vm1863_vm9, %v4131_v5, %v8486_v16  ;;  %v4040_v47 = vsel %vm1731_vm5, %v4008_v17, %v8487_v19  ;;  %v8492_v11 = vld [vmem:[#allocation32_spill] sm:$0xff]  ;;  %v8495_v61 = vld [vmem:[#allocation41_spill] sm:$0xff]  ;;  %v8497_v26 = vld [vmem:[#allocation51_spill] sm:$0xff] }
 0x5c3   : > { %3874 = vrot.lane.b32.xlu1 %v2896_v10, %s5366_s8  ;;  %v4009_v25 = vsel %vm1698_vm3, %v3977_v51, %v8488_v38  ;;  %v4164_v13 = vsel %vm1863_vm9, %v4132_v12, %v8489_v30  ;;  %v4134_v53 = vsel %vm1830_vm8, %v4102_v18, %v8491_v37  ;;  %v4103_v20 = vsel %vm1797_vm7, %v4071_v35, %v8492_v11  ;;  %v8496_v49 = vld [vmem:[#allocation33_spill] sm:$0xff]  ;;  %v8498_v14 = vld [vmem:[#allocation58_spill] sm:$0xff]  ;;  %v8501_v45 = vld [vmem:[#allocation36_spill] sm:$0xff] }
 0x5c4   : > { %v7478_v46 = vpop.permute.xlu0 %3480  ;;  %v3946_v41 = vsel %vm204_vm0, %v8494_v48, %v8493_v1  ;;  %v4072_v55 = vsel %vm1764_vm6, %v4040_v47, %v8495_v61  ;;  %v4041_v2 = vsel %vm1731_vm5, %v4009_v25, %v8496_v49  ;;  %v4166_v29 = vsel %vm1863_vm9, %v4134_v53, %v8499_v4  ;;  %v8500_v21 = vld [vmem:[#allocation37_spill] sm:$0xff]  ;;  %v8502_v44 = vld [vmem:[#allocation60_spill] sm:$0xff]  ;;  %v8503_v32 = vld [vmem:[#allocation38_spill] sm:$0xff] }
 0x5c5   : > { %v3607_v43 = vpop.permute.xlu1 %3606  ;;  %5286 = vmatmul.mubr.msk.f32.gmra.mxu0 %vm1901_vm10, %v4161_v7  ;;  %v4104_v54 = vsel %vm1797_vm7, %v4072_v55, %v8498_v14  ;;  %v4135_v12 = vsel %vm1830_vm8, %v4103_v20, %v8500_v21  ;;  %v4073_v5 = vsel %vm1764_vm6, %v4041_v2, %v8502_v44  ;;  %v8505_v17 = vld [vmem:[#allocation59_spill] sm:$0xff]  ;;  %v8507_v23 = vld [vmem:[#allocation40_spill] sm:$0xff]  ;;  %v7564_v35 = vld [vmem:[#allocation2 + $0x120] sm:$0xff] }
 0x5c6   : > { %5288 = vmatprep.mubr.msk.f32.mxu0 %vm1901_vm10, %v4162_v59  ;;  %2986 = vrot.lane.b32.xlu0 %v7379_v31, %s5361_s20  ;;  %v4133_v31 = vsel %vm1830_vm8, %v4101_v22, %v8490_v50  ;;  %v3978_v59 = vsel %vm1665_vm4, %v3946_v41, %v8501_v45  ;;  %v4136_v57 = vsel %vm1830_vm8, %v4104_v54, %v8503_v32  ;;  %v8504_v22 = vld [vmem:[#allocation56_spill] sm:$0xff]  ;;  %v8508_v38 = vld [vmem:[#allocation42_spill] sm:$0xff]  ;;  %v8509_v25 = vld [vmem:[#allocation7_spill] sm:$0xff] }
 0x5c7   : > { %3368 = vrot.lane.b32.xlu1 %v2865_v15, %s5359_s18  ;;  %v4165_v27 = vsel %vm1863_vm9, %v4133_v31, %v8497_v26  ;;  %v4010_v60 = vsel %vm1698_vm3, %v3978_v59, %v7315_v40  ;;  %v4167_v52 = vsel %vm1863_vm9, %v4135_v12, %v8504_v22  ;;  %v4168_v51 = vsel %vm1863_vm9, %v4136_v57, %v8505_v17  ;;  %v8506_v40 = vld [vmem:[#allocation43_spill] sm:$0xff]  ;;  %v2866_v20 = vld [vmem:[#allocation2 + $0x121] sm:$0xff] }
 0x5c8   : > { %v7509_v3 = vpop.permute.xlu0 %3100  ;;  %v3947_v30 = vsel %vm204_vm0, %v8509_v25, %v8508_v38  ;;  %v2898_v49 = vld [vmem:[#allocation2 + $0x122] sm:$0xff] }
 0x5c9   : > { %v7507_v62 = vpop.permute.xlu1 %3226  ;;  %5289 = vmatmul.mubr.msk.f32.gmra.mxu0 %vm1901_vm10, %v4163_v6  ;;  %v2867_v2 = vld [vmem:[#allocation2 + $0x129] sm:$0xff] }
 0x5ca   : > { %5291 = vmatprep.mubr.msk.f32.mxu0 %vm1901_vm10, %v4164_v13  ;;  %3494 = vrot.lane.b32.xlu0 %v2896_v10, %s5362_s21 }
 0x5cb   : > { %3876 = vrot.lane.b32.xlu1 %v2897_v42, %s5366_s8 }
 0x5cc   : > { %v3609_v39 = vpop.permute.xlu0 %3608 }
 0x5cd   : > { %v3735_v7 = vpop.permute.xlu1 %3734  ;;  %5292 = vmatmul.mubr.msk.f32.gmra.mxu0 %vm1901_vm10, %v4165_v27 }
 0x5ce   : > { %5294 = vmatprep.mubr.msk.f32.mxu0 %vm1901_vm10, %v4166_v29  ;;  %2988 = vrot.lane.b32.xlu0 %v2865_v15, %s5361_s20  ;;  %v4042_v15 = vsel %vm1731_vm5, %v4010_v60, %v8507_v23  ;;  %v8511_v29 = vld [vmem:[#allocation16_spill] sm:$0xff] }
 0x5cf   : > { %3114 = vrot.lane.b32.xlu1 %v2896_v10, %s5363_s22  ;;  %v4105_v10 = vsel %vm1797_vm7, %v4073_v5, %v8506_v40  ;;  %v4074_v6 = vsel %vm1764_vm6, %v4042_v15, %v7412_v56  ;;  %v3979_v56 = vsel %vm1665_vm4, %v3947_v30, %v7317_v34  ;;  %v7594_v34 = vld [vmem:[#allocation2 + $0x128] sm:$0xff]  ;;  %v3948_v21 = vsel %vm204_vm0, %v8511_v29, %v7370_v0  ;;  %v7635_v60 = vld [vmem:[#allocation2 + $0x138] sm:$0xff] }
 0x5d0   : > { %v7556_v18 = vpop.permute.xlu0 %3228  ;;  %v4137_v16 = vsel %vm1830_vm8, %v4105_v10, %v7339_v33  ;;  %v4106_v47 = vsel %vm1797_vm7, %v4074_v6, %v3607_v43  ;;  %v3980_v12 = vsel %vm1665_vm4, %v3948_v21, %v7445_v24  ;;  %v2868_v15 = vld [vmem:[#allocation2 + $0x139] sm:$0xff] }
 0x5d1   : > { %v7554_v63 = vpop.permute.xlu1 %3354  ;;  %5295 = vmatmul.mubr.msk.f32.gmra.mxu0 %vm1901_vm10, %v4167_v52  ;;  %v4169_v19 = vsel %vm1863_vm9, %v4137_v16, %v7410_v9  ;;  %v4138_v13 = vsel %vm1830_vm8, %v4106_v47, %v3735_v7  ;;  %v8510_v9 = vld [vmem:[#allocation45_spill] sm:$0xff]  ;;  %v2899_v7 = vld [vmem:[#allocation2 + $0x12a] sm:$0xff]  ;;  %v4012_v45 = vsel %vm1698_vm3, %v3980_v12, %v7507_v62  ;;  %v8512_v52 = vld [vmem:[#allocation8_spill] sm:$0xff] }
 0x5d2   : > { %5297 = vmatprep.mubr.msk.f32.mxu0 %vm1901_vm10, %v4168_v51  ;;  %3496 = vrot.lane.b32.xlu0 %v2897_v42, %s5362_s21  ;;  %v4011_v43 = vsel %vm1698_vm3, %v3979_v56, %v8510_v9  ;;  %v4044_v5 = vsel %vm1731_vm5, %v4012_v45, %v7554_v63  ;;  %v3949_v17 = vsel %vm204_vm0, %v8512_v52, %v7448_v28  ;;  %v7658_v28 = vld [vmem:[#allocation2 + $0x140] sm:$0xff]  ;;  %v2870_v45 = vld [vmem:[#allocation2 + $0x151] sm:$0xff] }
 0x5d3   : > { %3622 = vrot.lane.b32.xlu1 %v7564_v35, %s5364_s23  ;;  %v4043_v11 = vsel %vm1731_vm5, %v4011_v43, %v7337_v8  ;;  %v3981_v51 = vsel %vm1665_vm4, %v3949_v17, %v7509_v3  ;;  %v2900_v30 = vld [vmem:[#allocation2 + $0x13a] sm:$0xff]  ;;  %v2901_v9 = vld [vmem:[#allocation2 + $0x142] sm:$0xff] }
 0x5d4   : > { %v3737_v50 = vpop.permute.xlu0 %3736  ;;  %v4075_v1 = vsel %vm1764_vm6, %v4043_v11, %v7478_v46  ;;  %v4013_v63 = vsel %vm1698_vm3, %v3981_v51, %v7556_v18  ;;  %v8513_v11 = vld [vmem:[#allocation29_spill] sm:$0xff] }
 0x5d5   : > { %v3863_v33 = vpop.permute.xlu1 %3862  ;;  %5298 = vmatmul.mubr.msk.f32.gmra.mxu0 %vm1901_vm10, %v4169_v19 }
 0x5d6   : > { %v4170_v31 = vsel %vm1863_vm9, %v4138_v13, %v3863_v33  ;;  %3116 = vrot.lane.b32.xlu0 %v2897_v42, %s5363_s22  ;;  %v4107_v42 = vsel %vm1797_vm7, %v4075_v1, %v3609_v39  ;;  %v2869_v13 = vld [vmem:[#allocation2 + $0x141] sm:$0xff] }
 0x5d7   : > { %3242 = vrot.lane.b32.xlu1 %v7564_v35, %s5360_s19  ;;  %5300 = vmatprep.mubr.msk.f32.mxu0 %vm1901_vm10, %v4170_v31  ;;  %v4139_v48 = vsel %vm1830_vm8, %v4107_v42, %v3737_v50 }
 0x5d8   : > { %v7590_v53 = vpop.permute.xlu0 %2974 }
 0x5d9   : > { %v3357_v37 = vpop.permute.xlu1 %3356 }
 0x5da   : > { %3624 = vrot.lane.b32.xlu0 %v7594_v34, %s5364_s23  ;;  %v4045_v23 = vsel %vm1731_vm5, %v4013_v63, %v3357_v37 }
 0x5db   : > { %3750 = vrot.lane.b32.xlu1 %v2866_v20, %s5365_s5 }
 0x5dc   : > { %v3483_v61 = vpop.permute.xlu0 %3482 }
 0x5dd   : > { %v3865_v41 = vpop.permute.xlu1 %3864  ;;  %v4076_v0 = vsel %vm1764_vm6, %v4044_v5, %v3483_v61 }
 0x5de   : > { %v4171_v55 = vsel %vm1863_vm9, %v4139_v48, %v3865_v41  ;;  %3244 = vrot.lane.b32.xlu0 %v7594_v34, %s5360_s19 }
 0x5df   : > { %3370 = vrot.lane.b32.xlu1 %v2866_v20, %s5359_s18  ;;  %5301 = vmatmul.mubr.msk.f32.gmra.mxu0 %vm1901_vm10, %v4171_v55  ;;  %v7697_v55 = vld [vmem:[#allocation2 + $0x150] sm:$0xff] }
 0x5e0   : > { %v7610_v46 = vpop.permute.xlu0 %2976 }
 0x5e1   : > { %v7608_v8 = vpop.permute.xlu1 %3102 }
 0x5e2   : > { %3752 = vrot.lane.b32.xlu0 %v2867_v2, %s5365_s5 }
 0x5e3   : > { %3878 = vrot.lane.b32.xlu1 %v2898_v49, %s5366_s8 }
 0x5e4   : > { %v3485_v27 = vpop.permute.xlu0 %3484 }
 0x5e5   : > { %v3611_v26 = vpop.permute.xlu1 %3610  ;;  %v4077_v16 = vsel %vm1764_vm6, %v4045_v23, %v3485_v27 }
 0x5e6   : > { %2990 = vrot.lane.b32.xlu0 %v2866_v20, %s5361_s20  ;;  %v4108_v24 = vsel %vm1797_vm7, %v4076_v0, %v3611_v26  ;;  %v3950_v20 = vsel %vm204_vm0, %v8513_v11, %v7590_v53 }
 0x5e7   : > { %3372 = vrot.lane.b32.xlu1 %v2867_v2, %s5359_s18  ;;  %v3982_v1 = vsel %vm1665_vm4, %v3950_v20, %v7608_v8 }
 0x5e8   : > { %v7618_v54 = vpop.permute.xlu0 %3104 }
 0x5e9   : > { %v7616_v14 = vpop.permute.xlu1 %3230 }
 0x5ea   : > { %3498 = vrot.lane.b32.xlu0 %v2898_v49, %s5362_s21  ;;  %v4014_v42 = vsel %vm1698_vm3, %v3982_v1, %v7616_v14  ;;  %v8514_v14 = vld [vmem:[#allocation34_spill] sm:$0xff] }
 0x5eb   : > { %3880 = vrot.lane.b32.xlu1 %v2899_v7, %s5366_s8 }
 0x5ec   : > { %v3613_v4 = vpop.permute.xlu0 %3612 }
 0x5ed   : > { %v3739_v39 = vpop.permute.xlu1 %3738  ;;  %v4109_v3 = vsel %vm1797_vm7, %v4077_v16, %v3613_v4  ;;  %v8515_v16 = vld [vmem:[#allocation44_spill] sm:$0xff] }
 0x5ee   : > { %2992 = vrot.lane.b32.xlu0 %v2867_v2, %s5361_s20  ;;  %v4140_v32 = vsel %vm1830_vm8, %v4108_v24, %v3739_v39 }
 0x5ef   : > { %3118 = vrot.lane.b32.xlu1 %v2898_v49, %s5363_s22 }
 0x5f0   : > { %v7631_v44 = vpop.permute.xlu0 %3232 }
 0x5f1   : > { %v3359_v59 = vpop.permute.xlu1 %3358 }
 0x5f2   : > { %3500 = vrot.lane.b32.xlu0 %v2899_v7, %s5362_s21  ;;  %v4046_v61 = vsel %vm1731_vm5, %v4014_v42, %v3359_v59 }
 0x5f3   : > { %3626 = vrot.lane.b32.xlu1 %v7635_v60, %s5364_s23 }
 0x5f4   : > { %v3741_v57 = vpop.permute.xlu0 %3740 }
 0x5f5   : > { %v3867_v62 = vpop.permute.xlu1 %3866  ;;  %v4141_v6 = vsel %vm1830_vm8, %v4109_v3, %v3741_v57  ;;  %v2902_v57 = vld [vmem:[#allocation2 + $0x152] sm:$0xff] }
 0x5f6   : > { %v4172_v22 = vsel %vm1863_vm9, %v4140_v32, %v3867_v62  ;;  %3120 = vrot.lane.b32.xlu0 %v2899_v7, %s5363_s22  ;;  %v3951_v7 = vsel %vm204_vm0, %v8514_v14, %v7610_v46  ;;  %v7720_v46 = vld [vmem:[#allocation2 + $0x158] sm:$0xff]  ;;  %v2904_v14 = vld [vmem:[#allocation2 + $0x16a] sm:$0xff] }
 0x5f7   : > { %3246 = vrot.lane.b32.xlu1 %v7635_v60, %s5360_s19  ;;  %5303 = vmatprep.mubr.msk.f32.mxu0 %vm1901_vm10, %v4172_v22  ;;  %v3983_v39 = vsel %vm1665_vm4, %v3951_v7, %v7618_v54  ;;  %v2871_v22 = vld [vmem:[#allocation2 + $0x159] sm:$0xff] }
 0x5f8   : > { %v7655_v10 = vpop.permute.xlu0 %2978  ;;  %v4015_v4 = vsel %vm1698_vm3, %v3983_v39, %v7631_v44  ;;  %v8518_v7 = vld [vmem:[#allocation5_spill] sm:$0xff] }
 0x5f9   : > { %v3361_v40 = vpop.permute.xlu1 %3360  ;;  %v3952_v3 = vsel %vm204_vm0, %v8515_v16, %v7655_v10  ;;  %v8520_v16 = vld [vmem:[#allocation52_spill] sm:$0xff] }
 0x5fa   : > { %3628 = vrot.lane.b32.xlu0 %v7658_v28, %s5364_s23  ;;  %v4047_v12 = vsel %vm1731_vm5, %v4015_v4, %v3361_v40  ;;  %v2903_v40 = vld [vmem:[#allocation2 + $0x15a] sm:$0xff] }
 0x5fb   : > { %3754 = vrot.lane.b32.xlu1 %v2868_v15, %s5365_s5 }
 0x5fc   : > { %v3487_v19 = vpop.permute.xlu0 %3486 }
 0x5fd   : > { %v3869_v18 = vpop.permute.xlu1 %3868  ;;  %v4078_v49 = vsel %vm1764_vm6, %v4046_v61, %v3487_v19  ;;  %v7782_v61 = vld [vmem:[#allocation2 + $0x170] sm:$0xff] }
 0x5fe   : > { %v4173_v47 = vsel %vm1863_vm9, %v4141_v6, %v3869_v18  ;;  %3248 = vrot.lane.b32.xlu0 %v7658_v28, %s5360_s19 }
 0x5ff   : > { %3374 = vrot.lane.b32.xlu1 %v2868_v15, %s5359_s18  ;;  %5304 = vmatmul.mubr.msk.f32.gmra.mxu0 %vm1901_vm10, %v4173_v47 }
 0x600   : > { %v7673_v25 = vpop.permute.xlu0 %2980 }
 0x601   : > { %v7671_v38 = vpop.permute.xlu1 %3106 }
 0x602   : > { %3756 = vrot.lane.b32.xlu0 %v2869_v13, %s5365_s5  ;;  %v3984_v6 = vsel %vm1665_vm4, %v3952_v3, %v7671_v38 }
 0x603   : > { %3882 = vrot.lane.b32.xlu1 %v2900_v30, %s5366_s8 }
 0x604   : > { %v3489_v50 = vpop.permute.xlu0 %3488 }
 0x605   : > { %v3615_v33 = vpop.permute.xlu1 %3614  ;;  %v4079_v59 = vsel %vm1764_vm6, %v4047_v12, %v3489_v50 }
 0x606   : > { %2994 = vrot.lane.b32.xlu0 %v2868_v15, %s5361_s20  ;;  %v4110_v53 = vsel %vm1797_vm7, %v4078_v49, %v3615_v33  ;;  %v8517_v49 = vld [vmem:[#allocation4_spill] sm:$0xff] }
 0x607   : > { %3376 = vrot.lane.b32.xlu1 %v2869_v13, %s5359_s18 }
 0x608   : > { %v7681_v31 = vpop.permute.xlu0 %3108 }
 0x609   : > { %v7679_v56 = vpop.permute.xlu1 %3234 }
 0x60a   : > { %3502 = vrot.lane.b32.xlu0 %v2900_v30, %s5362_s21  ;;  %v4016_v18 = vsel %vm1698_vm3, %v3984_v6, %v7679_v56 }
 0x60b   : > { %3884 = vrot.lane.b32.xlu1 %v2901_v9, %s5366_s8 }
 0x60c   : > { %v3617_v37 = vpop.permute.xlu0 %3616 }
 0x60d   : > { %v3743_v43 = vpop.permute.xlu1 %3742  ;;  %v4111_v54 = vsel %vm1797_vm7, %v4079_v59, %v3617_v37 }
 0x60e   : > { %2996 = vrot.lane.b32.xlu0 %v2869_v13, %s5361_s20  ;;  %v4142_v8 = vsel %vm1830_vm8, %v4110_v53, %v3743_v43  ;;  %v7759_v13 = vld [vmem:[#allocation2 + $0x168] sm:$0xff] }
 0x60f   : > { %3122 = vrot.lane.b32.xlu1 %v2900_v30, %s5363_s22  ;;  %v8516_v43 = vld [vmem:[#allocation46_spill] sm:$0xff] }
 0x610   : > { %v7694_v41 = vpop.permute.xlu0 %3236  ;;  %v3953_v37 = vsel %vm204_vm0, %v8516_v43, %v7673_v25 }
 0x611   : > { %v3363_v48 = vpop.permute.xlu1 %3362  ;;  %v3985_v11 = vsel %vm1665_vm4, %v3953_v37, %v7681_v31 }
 0x612   : > { %3504 = vrot.lane.b32.xlu0 %v2901_v9, %s5362_s21  ;;  %v4048_v30 = vsel %vm1731_vm5, %v4016_v18, %v3363_v48  ;;  %v4017_v20 = vsel %vm1698_vm3, %v3985_v11, %v7694_v41  ;;  %v2906_v11 = vld [vmem:[#allocation2 + $0x182] sm:$0xff] }
 0x613   : > { %3630 = vrot.lane.b32.xlu1 %v7697_v55, %s5364_s23 }
 0x614   : > { %v3745_v26 = vpop.permute.xlu0 %3744 }
 0x615   : > { %v3871_v2 = vpop.permute.xlu1 %3870  ;;  %v4143_v5 = vsel %vm1830_vm8, %v4111_v54, %v3745_v26 }
 0x616   : > { %v4174_v27 = vsel %vm1863_vm9, %v4142_v8, %v3871_v2  ;;  %3124 = vrot.lane.b32.xlu0 %v2901_v9, %s5363_s22 }
 0x617   : > { %3250 = vrot.lane.b32.xlu1 %v7697_v55, %s5360_s19  ;;  %5306 = vmatprep.mubr.msk.f32.mxu0 %vm1901_vm10, %v4174_v27 }
 0x618   : > { %v7717_v21 = vpop.permute.xlu0 %2982 }
 0x619   : > { %v3365_v29 = vpop.permute.xlu1 %3364 }
 0x61a   : > { %3632 = vrot.lane.b32.xlu0 %v7720_v46, %s5364_s23  ;;  %v4049_v48 = vsel %vm1731_vm5, %v4017_v20, %v3365_v29  ;;  %v2875_v20 = vld [vmem:[#allocation2 + $0x189] sm:$0xff] }
 0x61b   : > { %3758 = vrot.lane.b32.xlu1 %v2870_v45, %s5365_s5 }
 0x61c   : > { %v3491_v0 = vpop.permute.xlu0 %3490 }
 0x61d   : > { %v3873_v44 = vpop.permute.xlu1 %3872  ;;  %v4080_v33 = vsel %vm1764_vm6, %v4048_v30, %v3491_v0 }
 0x61e   : > { %v4175_v24 = vsel %vm1863_vm9, %v4143_v5, %v3873_v44  ;;  %3252 = vrot.lane.b32.xlu0 %v7720_v46, %s5360_s19  ;;  %v8519_v5 = vld [vmem:[#allocation50_spill] sm:$0xff] }
 0x61f   : > { %3378 = vrot.lane.b32.xlu1 %v2870_v45, %s5359_s18  ;;  %5307 = vmatmul.mubr.msk.f32.gmra.mxu0 %vm1901_vm10, %v4175_v24  ;;  %v3954_v44 = vsel %vm204_vm0, %v8519_v5, %v7717_v21  ;;  %v2876_v5 = vld [vmem:[#allocation2 + $0x199] sm:$0xff] }
 0x620   : > { %v7735_v62 = vpop.permute.xlu0 %2984 }
 0x621   : > { %v7733_v32 = vpop.permute.xlu1 %3110  ;;  %v3955_v3 = vsel %vm204_vm0, %v8520_v16, %v7735_v62  ;;  %v2843_v62 = vld [vmem:[#allocation2 + $0x188] sm:$0xff] }
 0x622   : > { %3760 = vrot.lane.b32.xlu0 %v2871_v22, %s5365_s5  ;;  %v3986_v0 = vsel %vm1665_vm4, %v3954_v44, %v7733_v32 }
 0x623   : > { %3886 = vrot.lane.b32.xlu1 %v2902_v57, %s5366_s8 }
 0x624   : > { %v3493_v17 = vpop.permute.xlu0 %3492 }
 0x625   : > { %v3619_v52 = vpop.permute.xlu1 %3618  ;;  %v4081_v25 = vsel %vm1764_vm6, %v4049_v48, %v3493_v17  ;;  %v2842_v17 = vld [vmem:[#allocation2 + $0x180] sm:$0xff] }
 0x626   : > { %2998 = vrot.lane.b32.xlu0 %v2870_v45, %s5361_s20  ;;  %v4112_v10 = vsel %vm1797_vm7, %v4080_v33, %v3619_v52  ;;  %v2905_v45 = vld [vmem:[#allocation2 + $0x172] sm:$0xff] }
 0x627   : > { %3380 = vrot.lane.b32.xlu1 %v2871_v22, %s5359_s18 }
 0x628   : > { %v7743_v63 = vpop.permute.xlu0 %3112 }
 0x629   : > { %v7741_v51 = vpop.permute.xlu1 %3238  ;;  %v3987_v6 = vsel %vm1665_vm4, %v3955_v3, %v7743_v63 }
 0x62a   : > { %3506 = vrot.lane.b32.xlu0 %v2902_v57, %s5362_s21  ;;  %v4018_v24 = vsel %vm1698_vm3, %v3986_v0, %v7741_v51 }
 0x62b   : > { %3888 = vrot.lane.b32.xlu1 %v2903_v40, %s5366_s8 }
 0x62c   : > { %v3621_v15 = vpop.permute.xlu0 %3620 }
 0x62d   : > { %v3747_v23 = vpop.permute.xlu1 %3746  ;;  %v4113_v31 = vsel %vm1797_vm7, %v4081_v25, %v3621_v15 }
 0x62e   : > { %3000 = vrot.lane.b32.xlu0 %v2871_v22, %s5361_s20  ;;  %v4144_v38 = vsel %vm1830_vm8, %v4112_v10, %v3747_v23  ;;  %v2874_v10 = vld [vmem:[#allocation2 + $0x181] sm:$0xff] }
 0x62f   : > { %3126 = vrot.lane.b32.xlu1 %v2902_v57, %s5363_s22 }
 0x630   : > { %v7756_v47 = vpop.permute.xlu0 %3240 }
 0x631   : > { %v3367_v19 = vpop.permute.xlu1 %3366  ;;  %v4019_v18 = vsel %vm1698_vm3, %v3987_v6, %v7756_v47 }
 0x632   : > { %3508 = vrot.lane.b32.xlu0 %v2903_v40, %s5362_s21  ;;  %v4050_v52 = vsel %vm1731_vm5, %v4018_v24, %v3367_v19  ;;  %v2909_v24 = vld [vmem:[#allocation2 + $0x1a2] sm:$0xff] }
 0x633   : > { %3634 = vrot.lane.b32.xlu1 %v7759_v13, %s5364_s23 }
 0x634   : > { %v3749_v56 = vpop.permute.xlu0 %3748 }
 0x635   : > { %v3875_v50 = vpop.permute.xlu1 %3874  ;;  %v4145_v53 = vsel %vm1830_vm8, %v4113_v31, %v3749_v56  ;;  %v2813_v31 = vld [vmem:[#allocation2 + $0x18a] sm:$0xff] }
 0x636   : > { %v4176_v9 = vsel %vm1863_vm9, %v4144_v38, %v3875_v50  ;;  %3128 = vrot.lane.b32.xlu0 %v2903_v40, %s5363_s22 }
 0x637   : > { %3254 = vrot.lane.b32.xlu1 %v7759_v13, %s5360_s19  ;;  %5309 = vmatprep.mubr.msk.f32.mxu0 %vm1901_vm10, %v4176_v9 }
 0x638   : > { %v7779_v42 = vpop.permute.xlu0 %2986 }
 0x639   : > { %v3369_v1 = vpop.permute.xlu1 %3368 }
 0x63a   : > { %3636 = vrot.lane.b32.xlu0 %v7782_v61, %s5364_s23  ;;  %v4051_v33 = vsel %vm1731_vm5, %v4019_v18, %v3369_v1 }
 0x63b   : > { %3762 = vrot.lane.b32.xlu1 %v8517_v49, %s5365_s5 }
 0x63c   : > { %v3495_v8 = vpop.permute.xlu0 %3494 }
 0x63d   : > { %v3877_v41 = vpop.permute.xlu1 %3876  ;;  %v4082_v40 = vsel %vm1764_vm6, %v4050_v52, %v3495_v8  ;;  %v2845_v8 = vld [vmem:[#allocation2 + $0x1a0] sm:$0xff] }
 0x63e   : > { %v4177_v2 = vsel %vm1863_vm9, %v4145_v53, %v3877_v41  ;;  %3256 = vrot.lane.b32.xlu0 %v7782_v61, %s5360_s19  ;;  %v2908_v52 = vld [vmem:[#allocation2 + $0x19a] sm:$0xff] }
 0x63f   : > { %3382 = vrot.lane.b32.xlu1 %v8517_v49, %s5359_s18  ;;  %5310 = vmatmul.mubr.msk.f32.gmra.mxu0 %vm1901_vm10, %v4177_v2  ;;  %v2844_v2 = vld [vmem:[#allocation2 + $0x198] sm:$0xff] }
 0x640   : > { %v7799_v27 = vpop.permute.xlu0 %2988 }
 0x641   : > { %v7797_v26 = vpop.permute.xlu1 %3114 }
 0x642   : > { %3764 = vrot.lane.b32.xlu0 %v8518_v7, %s5365_s5 }
 0x643   : > { %3890 = vrot.lane.b32.xlu1 %v2904_v14, %s5366_s8 }
 0x644   : > { %v3497_v4 = vpop.permute.xlu0 %3496 }
 0x645   : > { %v3623_v39 = vpop.permute.xlu1 %3622  ;;  %v4083_v38 = vsel %vm1764_vm6, %v4051_v33, %v3497_v4 }
 0x646   : > { %3002 = vrot.lane.b32.xlu0 %v8517_v49, %s5361_s20  ;;  %v4114_v21 = vsel %vm1797_vm7, %v4082_v40, %v3623_v39 }
 0x647   : > { %3384 = vrot.lane.b32.xlu1 %v8518_v7, %s5359_s18 }
 0x648   : > { %v7810_v12 = vpop.permute.xlu0 %3116 }
 0x649   : > { %v7808_v29 = vpop.permute.xlu1 %3242 }
 0x64a   : > { %3510 = vrot.lane.b32.xlu0 %v2904_v14, %s5362_s21 }
 0x64b   : > { %3892 = vrot.lane.b32.xlu1 %v2905_v45, %s5366_s8 }
 0x64c   : > { %v3625_v54 = vpop.permute.xlu0 %3624 }
 0x64d   : > { %v3751_v59 = vpop.permute.xlu1 %3750  ;;  %v4115_v63 = vsel %vm1797_vm7, %v4083_v38, %v3625_v54  ;;  %v2877_v54 = vld [vmem:[#allocation2 + $0x1a1] sm:$0xff] }
 0x64e   : > { %3004 = vrot.lane.b32.xlu0 %v8518_v7, %s5361_s20  ;;  %v4146_v23 = vsel %vm1830_vm8, %v4114_v21, %v3751_v59  ;;  %s8268_s20 = scalar_lea.vmem %s8386_s3, %s4998_s14 }
 0x64f   : > { %3130 = vrot.lane.b32.xlu1 %v2904_v14, %s5363_s22  ;;  %v3956_v14 = vsel %vm204_vm0, %v7322_v36, %v7779_v42 }
 0x650   : > { %v7824_v22 = vpop.permute.xlu0 %3244  ;;  %v3988_v7 = vsel %vm1665_vm4, %v3956_v14, %v7797_v26 }
 0x651   : > { %v3371_v57 = vpop.permute.xlu1 %3370  ;;  %v4020_v39 = vsel %vm1698_vm3, %v3988_v7, %v7808_v29 }
 0x652   : > { %3512 = vrot.lane.b32.xlu0 %v2905_v45, %s5362_s21  ;;  %v4052_v59 = vsel %vm1731_vm5, %v4020_v39, %v3371_v57  ;;  %v3957_v57 = vsel %vm204_vm0, %v7381_v58, %v7799_v27 }
 0x653   : > { %3638 = vrot.lane.b32.xlu1 %v2842_v17, %s5364_s23 }
 0x654   : > { %v3753_v15 = vpop.permute.xlu0 %3752 }
 0x655   : > { %v3879_v32 = vpop.permute.xlu1 %3878  ;;  %v4147_v50 = vsel %vm1830_vm8, %v4115_v63, %v3753_v15 }
 0x656   : > { %v4178_v51 = vsel %vm1863_vm9, %v4146_v23, %v3879_v32  ;;  %3132 = vrot.lane.b32.xlu0 %v2905_v45, %s5363_s22 }
 0x657   : > { %3258 = vrot.lane.b32.xlu1 %v2842_v17, %s5360_s19  ;;  %5312 = vmatprep.mubr.msk.f32.mxu0 %vm1901_vm10, %v4178_v51  ;;  %v3989_v17 = vsel %vm1665_vm4, %v3957_v57, %v7810_v12 }
 0x658   : > { %v7845_v30 = vpop.permute.xlu0 %2990  ;;  %v4021_v40 = vsel %vm1698_vm3, %v3989_v17, %v7824_v22 }
 0x659   : > { %v7843_v19 = vpop.permute.xlu1 %3372  ;;  %v3958_v38 = vsel %vm204_vm0, %v7564_v35, %v7845_v30 }
 0x65a   : > { %3640 = vrot.lane.b32.xlu0 %v2843_v62, %s5364_s23  ;;  %v4053_v32 = vsel %vm1731_vm5, %v4021_v40, %v7843_v19 }
 0x65b   : > { %3766 = vrot.lane.b32.xlu1 %v2874_v10, %s5365_s5 }
 0x65c   : > { %v3499_v47 = vpop.permute.xlu0 %3498 }
 0x65d   : > { %v3881_v56 = vpop.permute.xlu1 %3880  ;;  %v4084_v44 = vsel %vm1764_vm6, %v4052_v59, %v3499_v47 }
 0x65e   : > { %v4179_v9 = vsel %vm1863_vm9, %v4147_v50, %v3881_v56  ;;  %3260 = vrot.lane.b32.xlu0 %v2843_v62, %s5360_s19 }
 0x65f   : > { %3386 = vrot.lane.b32.xlu1 %v2874_v10, %s5359_s18  ;;  %5313 = vmatmul.mubr.msk.f32.gmra.mxu0 %vm1901_vm10, %v4179_v9 }
 0x660   : > { %v7859_v37 = vpop.permute.xlu0 %2992 }
 0x661   : > { %v7857_v43 = vpop.permute.xlu1 %3118  ;;  %v3959_v35 = vsel %vm204_vm0, %v7594_v34, %v7859_v37 }
 0x662   : > { %3768 = vrot.lane.b32.xlu0 %v2875_v20, %s5365_s5  ;;  %v3990_v63 = vsel %vm1665_vm4, %v3958_v38, %v7857_v43 }
 0x663   : > { %3894 = vrot.lane.b32.xlu1 %v2906_v11, %s5366_s8 }
 0x664   : > { %v3501_v48 = vpop.permute.xlu0 %3500 }
 0x665   : > { %v3627_v1 = vpop.permute.xlu1 %3626  ;;  %v4085_v15 = vsel %vm1764_vm6, %v4053_v32, %v3501_v48 }
 0x666   : > { %3388 = vrot.lane.b32.xlu0 %v2875_v20, %s5359_s18  ;;  %v4116_v36 = vsel %vm1797_vm7, %v4084_v44, %v3627_v1 }
 0x667   : > { %3514 = vrot.lane.b32.xlu1 %v2906_v11, %s5362_s21 }
 0x668   : > { %v7865_v49 = vpop.permute.xlu0 %3120 }
 0x669   : > { %v3247_v25 = vpop.permute.xlu1 %3246  ;;  %v3991_v30 = vsel %vm1665_vm4, %v3959_v35, %v7865_v49 }
 0x66a   : > { %3896 = vrot.lane.b32.xlu0 %v2813_v31, %s5366_s8  ;;  %v4022_v50 = vsel %vm1698_vm3, %v3990_v63, %v3247_v25 }
 0x66b   : > { %3516 = vrot.lane.b32.xlu1 %v2813_v31, %s5362_s21 }
 0x66c   : > { %v3629_v41 = vpop.permute.xlu0 %3628 }
 0x66d   : > { %v3755_v53 = vpop.permute.xlu1 %3754  ;;  %v4117_v58 = vsel %vm1797_vm7, %v4085_v15, %v3629_v41 }
 0x66e   : > { %3642 = vrot.lane.b32.xlu0 %v2844_v2, %s5364_s23  ;;  %v4148_v42 = vsel %vm1830_vm8, %v4116_v36, %v3755_v53 }
 0x66f   : > { %3644 = vrot.lane.b32.xlu1 %v2845_v8, %s5364_s23 }
 0x670   : > { %v3249_v45 = vpop.permute.xlu0 %3248 }
 0x671   : > { %v3375_v4 = vpop.permute.xlu1 %3374  ;;  %v4023_v43 = vsel %vm1698_vm3, %v3991_v30, %v3249_v45 }
 0x672   : > { %3770 = vrot.lane.b32.xlu0 %v2876_v5, %s5365_s5  ;;  %v4054_v47 = vsel %vm1731_vm5, %v4022_v50, %v3375_v4 }
 0x673   : > { %3772 = vrot.lane.b32.xlu1 %v2877_v54, %s5365_s5 }
 0x674   : > { %v3757_v0 = vpop.permute.xlu0 %3756 }
 0x675   : > { %v3883_v26 = vpop.permute.xlu1 %3882  ;;  %v4149_v27 = vsel %vm1830_vm8, %v4117_v58, %v3757_v0 }
 0x676   : > { %v4180_v29 = vsel %vm1863_vm9, %v4148_v42, %v3883_v26  ;;  %3898 = vrot.lane.b32.xlu0 %v2908_v52, %s5366_s8 }
 0x677   : > { %3900 = vrot.lane.b32.xlu1 %v2909_v24, %s5366_s8  ;;  %5315 = vmatprep.mubr.msk.f32.mxu0 %vm1901_vm10, %v4180_v29 }
 0x678   : > { %v2995_v23 = vpop.permute.xlu0 %2994 }
 0x679   : > { %v3377_v21 = vpop.permute.xlu1 %3376  ;;  %v3960_v42 = vsel %vm204_vm0, %v7635_v60, %v2995_v23 }
 0x67a   : > { %v4055_v41 = vsel %vm1731_vm5, %v4023_v43, %v3377_v21 }
 0x67c   : > { %v3503_v16 = vpop.permute.xlu0 %3502 }
 0x67d   : > { %v3885_v51 = vpop.permute.xlu1 %3884  ;;  %v4086_v11 = vsel %vm1764_vm6, %v4054_v47, %v3503_v16 }
 0x67e   : > { %v4181_v12 = vsel %vm1863_vm9, %v4149_v27, %v3885_v51 }
 0x67f   : > { %5316 = vmatmul.mubr.msk.f32.gmra.mxu0 %vm1901_vm10, %v4181_v12 }
 0x680   : > { %v2997_v6 = vpop.permute.xlu0 %2996 }
 0x681   : > { %v3123_v3 = vpop.permute.xlu1 %3122  ;;  %v3961_v60 = vsel %vm204_vm0, %v7658_v28, %v2997_v6 }
 0x682   : > { %v3992_v26 = vsel %vm1665_vm4, %v3960_v42, %v3123_v3 }
 0x684   : > { %v3505_v18 = vpop.permute.xlu0 %3504 }
 0x685   : > { %v3631_v22 = vpop.permute.xlu1 %3630  ;;  %v4087_v2 = vsel %vm1764_vm6, %v4055_v41, %v3505_v18 }
 0x686   : > { %v4118_v20 = vsel %vm1797_vm7, %v4086_v11, %v3631_v22 }
 0x688   : > { %v3125_v10 = vpop.permute.xlu0 %3124 }
 0x689   : > { %v3251_v33 = vpop.permute.xlu1 %3250  ;;  %v3993_v23 = vsel %vm1665_vm4, %v3961_v60, %v3125_v10 }
 0x68a   : > { %v4024_v0 = vsel %vm1698_vm3, %v3992_v26, %v3251_v33 }
 0x68c   : > { %v3633_v19 = vpop.permute.xlu0 %3632 }
 0x68d   : > { %v3759_v62 = vpop.permute.xlu1 %3758  ;;  %v4119_v14 = vsel %vm1797_vm7, %v4087_v2, %v3633_v19 }
 0x68e   : > { %v4150_v1 = vsel %vm1830_vm8, %v4118_v20, %v3759_v62 }
 0x690   : > { %v3253_v9 = vpop.permute.xlu0 %3252 }
 0x691   : > { %v3379_v56 = vpop.permute.xlu1 %3378  ;;  %v4025_v58 = vsel %vm1698_vm3, %v3993_v23, %v3253_v9 }
 0x692   : > { %v4056_v24 = vsel %vm1731_vm5, %v4024_v0, %v3379_v56 }
 0x694   : > { %v3761_v53 = vpop.permute.xlu0 %3760 }
 0x695   : > { %v3887_v48 = vpop.permute.xlu1 %3886  ;;  %v4151_v7 = vsel %vm1830_vm8, %v4119_v14, %v3761_v53 }
 0x696   : > { %v4182_v31 = vsel %vm1863_vm9, %v4150_v1, %v3887_v48 }
 0x697   : > { %5318 = vmatprep.mubr.msk.f32.mxu0 %vm1901_vm10, %v4182_v31 }
 0x698   : > { %v2999_v8 = vpop.permute.xlu0 %2998 }
 0x699   : > { %v3381_v25 = vpop.permute.xlu1 %3380  ;;  %v3962_v47 = vsel %vm204_vm0, %v7697_v55, %v2999_v8 }
 0x69a   : > { %v4057_v51 = vsel %vm1731_vm5, %v4025_v58, %v3381_v25  ;;  %v7986_v58 = vpop.f32.mrf.mxu0 }
 0x69c   : > { %v3507_v37 = vpop.permute.xlu0 %3506 }
 0x69d   : > { %v3889_v39 = vpop.permute.xlu1 %3888  ;;  %v4088_v57 = vsel %vm1764_vm6, %v4056_v24, %v3507_v37 }
 0x69e   : > { %v4183_v34 = vsel %vm1863_vm9, %v4151_v7, %v3889_v39 }
 0x69f   : > { %5319 = vmatmul.mubr.msk.f32.gmra.mxu0 %vm1901_vm10, %v4183_v34 }
 0x6a0   : > { %v3001_v49 = vpop.permute.xlu0 %3000 }
 0x6a1   : > { %v3127_v4 = vpop.permute.xlu1 %3126  ;;  %v3963_v55 = vsel %vm204_vm0, %v7720_v46, %v3001_v49 }
 0x6a2   : > { %v3994_v9 = vsel %vm1665_vm4, %v3962_v47, %v3127_v4 }
 0x6a4   : > { %v3509_v45 = vpop.permute.xlu0 %3508 }
 0x6a5   : > { %v3635_v59 = vpop.permute.xlu1 %3634  ;;  %v4089_v12 = vsel %vm1764_vm6, %v4057_v51, %v3509_v45 }
 0x6a6   : > { %v4120_v17 = vsel %vm1797_vm7, %v4088_v57, %v3635_v59 }
 0x6a8   : > { %v3129_v5 = vpop.permute.xlu0 %3128 }
 0x6a9   : > { %v3255_v54 = vpop.permute.xlu1 %3254  ;;  %v3995_v41 = vsel %vm1665_vm4, %v3963_v55, %v3129_v5 }
 0x6aa   : > { %v4026_v11 = vsel %vm1698_vm3, %v3994_v9, %v3255_v54 }
 0x6ac   : > { %v3637_v36 = vpop.permute.xlu0 %3636 }
 0x6ad   : > { %v3763_v44 = vpop.permute.xlu1 %3762  ;;  %v4121_v3 = vsel %vm1797_vm7, %v4089_v12, %v3637_v36 }
 0x6ae   : > { %v4152_v40 = vsel %vm1830_vm8, %v4120_v17, %v3763_v44 }
 0x6b0   : > { %v3257_v52 = vpop.permute.xlu0 %3256 }
 0x6b1   : > { %v3383_v29 = vpop.permute.xlu1 %3382  ;;  %v4027_v2 = vsel %vm1698_vm3, %v3995_v41, %v3257_v52 }
 0x6b2   : > { %v4058_v1 = vsel %vm1731_vm5, %v4026_v11, %v3383_v29 }
 0x6b4   : > { %v3765_v15 = vpop.permute.xlu0 %3764 }
 0x6b5   : > { %v3891_v21 = vpop.permute.xlu1 %3890  ;;  %v4153_v22 = vsel %vm1830_vm8, %v4121_v3, %v3765_v15 }
 0x6b6   : > { %v4184_v32 = vsel %vm1863_vm9, %v4152_v40, %v3891_v21 }
 0x6b7   : > { %5321 = vmatprep.mubr.msk.f32.mxu0 %vm1901_vm10, %v4184_v32 }
 0x6b8   : > { %v3003_v16 = vpop.permute.xlu0 %3002 }
 0x6b9   : > { %v3385_v27 = vpop.permute.xlu1 %3384  ;;  %v3964_v5 = vsel %vm204_vm0, %v7759_v13, %v3003_v16 }
 0x6ba   : > { %v4059_v7 = vsel %vm1731_vm5, %v4027_v2, %v3385_v27  ;;  %v7988_v27 = vpop.f32.mrf.mxu0 }
 0x6bc   : > { %v3511_v28 = vpop.permute.xlu0 %3510  ;;  %v7990_v51 = vpop.f32.mrf.mxu0 }
 0x6bd   : > { %v3893_v18 = vpop.permute.xlu1 %3892  ;;  %v4090_v31 = vsel %vm1764_vm6, %v4058_v1, %v3511_v28 }
 0x6be   : > { %v4185_v33 = vsel %vm1863_vm9, %v4153_v22, %v3893_v18  ;;  %v7992_v16 = vpop.f32.mrf.mxu0 }
 0x6bf   : > { %5322 = vmatmul.mubr.msk.f32.gmra.mxu0 %vm1901_vm10, %v4185_v33 }
 0x6c0   : > { %v3005_v10 = vpop.permute.xlu0 %3004  ;;  %v7994_v12 = vpop.f32.mrf.mxu0 }
 0x6c1   : > { %v3131_v6 = vpop.permute.xlu1 %3130  ;;  %v3965_v54 = vsel %vm204_vm0, %v7782_v61, %v3005_v10 }
 0x6c2   : > { %v3996_v36 = vsel %vm1665_vm4, %v3964_v5, %v3131_v6  ;;  %v7996_v3 = vpop.f32.mrf.mxu0 }
 0x6c4   : > { %v3513_v19 = vpop.permute.xlu0 %3512  ;;  %v7998_v22 = vpop.f32.mrf.mxu0 }
 0x6c5   : > { %v3639_v62 = vpop.permute.xlu1 %3638  ;;  %v4091_v39 = vsel %vm1764_vm6, %v4059_v7, %v3513_v19  ;;  %v8521_v7 = vmov 1.0  }
 0x6c6   : > { %v4122_v53 = vsel %vm1797_vm7, %v4090_v31, %v3639_v62  ;;  %v8000_v18 = vpop.f32.mrf.mxu0 }
 0x6c8   : > { %v3133_v63 = vpop.permute.xlu0 %3132  ;;  %v8002_v33 = vpop.f32.mrf.mxu0 }
 0x6c9   : > { %v3259_v38 = vpop.permute.xlu1 %3258  ;;  %v3997_v44 = vsel %vm1665_vm4, %v3965_v54, %v3133_v63 }
 0x6ca   : > { %v4028_v0 = vsel %vm1698_vm3, %v3996_v36, %v3259_v38  ;;  %v8004_v28 = vpop.f32.mrf.mxu0 }
 0x6cc   : > { %v3641_v56 = vpop.permute.xlu0 %3640  ;;  %v8006_v6 = vpop.f32.mrf.mxu0 }
 0x6cd   : > { %v3767_v50 = vpop.permute.xlu1 %3766  ;;  %v4123_v34 = vsel %vm1797_vm7, %v4091_v39, %v3641_v56 }
 0x6ce   : > { %v4154_v35 = vsel %vm1830_vm8, %v4122_v53, %v3767_v50  ;;  %v8008_v10 = vpop.f32.mrf.mxu0 }
 0x6cf   : > { %v4599_v54 = vmul.f32 %v8008_v10, %v8008_v10 }
 0x6d0   : > { %v3261_v48 = vpop.permute.xlu0 %3260  ;;  %v8010_v62 = vpop.f32.mrf.mxu0 }
 0x6d1   : > { %v3387_v20 = vpop.permute.xlu1 %3386  ;;  %v4029_v42 = vsel %vm1698_vm3, %v3997_v44, %v3261_v48  ;;  %v4598_v44 = vmul.f32 %v8002_v33, %v8002_v33 }
 0x6d2   : > { %v4060_v52 = vsel %vm1731_vm5, %v4028_v0, %v3387_v20  ;;  %v8012_v19 = vpop.f32.mrf.mxu0  ;;  %v4596_v0 = vmul.f32 %v7998_v22, %v7998_v22 }
 0x6d4   : > { %v3769_v25 = vpop.permute.xlu0 %3768  ;;  %v8014_v38 = vpop.f32.mrf.mxu0 }
 0x6d5   : > { %v3895_v30 = vpop.permute.xlu1 %3894  ;;  %v4155_v4 = vsel %vm1830_vm8, %v4123_v34, %v3769_v25  ;;  %v4604_v2 = vmul.f32 %v8014_v38, %v8014_v38 }
 0x6d6   : > { %v4186_v43 = vsel %vm1863_vm9, %v4154_v35, %v3895_v30  ;;  %v8016_v63 = vpop.f32.mrf.mxu0 }
 0x6d7   : > { %5324 = vmatprep.mubr.msk.f32.mxu0 %vm1901_vm10, %v4186_v43  ;;  %v4603_v39 = vmul.f32 %v8016_v63, %v8016_v63 }
 0x6d8   : > { %v3389_v14 = vpop.permute.xlu0 %3388 }
 0x6d9   : > { %v3515_v8 = vpop.permute.xlu1 %3514  ;;  %v4061_v29 = vsel %vm1731_vm5, %v4029_v42, %v3389_v14  ;;  %v4597_v42 = vmul.f32 %v8004_v28, %v8004_v28 }
 0x6da   : > { %v4092_v61 = vsel %vm1764_vm6, %v4060_v52, %v3515_v8 }
 0x6dc   : > { %v3897_v59 = vpop.permute.xlu0 %3896 }
 0x6dd   : > { %v3517_v37 = vpop.permute.xlu1 %3516  ;;  %v4187_v45 = vsel %vm1863_vm9, %v4155_v4, %v3897_v59  ;;  %v4601_v59 = vmul.f32 %v8012_v19, %v8012_v19 }
 0x6de   : > { %5325 = vmatmul.mubr.msk.f32.gmra.mxu0 %vm1901_vm10, %v4187_v45  ;;  %v4093_v57 = vsel %vm1764_vm6, %v4061_v29, %v3517_v37  ;;  %v4602_v37 = vmul.f32 %v8010_v62, %v8010_v62 }
 0x6df   : > { %v8018_v50 = vpop.f32.mrf.mxu0 }
 0x6e0   : > { %v3643_v49 = vpop.permute.xlu0 %3642 }
 0x6e1   : > { %v3645_v46 = vpop.permute.xlu1 %3644  ;;  %v4124_v17 = vsel %vm1797_vm7, %v4092_v61, %v3643_v49  ;;  %v8020_v56 = vpop.f32.mrf.mxu0 }
 0x6e2   : > { %v4125_v13 = vsel %vm1797_vm7, %v4093_v57, %v3645_v46  ;;  %v4600_v46 = vmul.f32 %v8006_v6, %v8006_v6  ;;  %v4594_v57 = vmul.f32 %v7994_v12, %v7994_v12 }
 0x6e4   : > { %v3771_v24 = vpop.permute.xlu0 %3770 }
 0x6e5   : > { %v3773_v26 = vpop.permute.xlu1 %3772  ;;  %v4156_v32 = vsel %vm1830_vm8, %v4124_v17, %v3771_v24  ;;  %v4595_v24 = vmul.f32 %v8000_v18, %v8000_v18 }
 0x6e6   : > { %v4157_v40 = vsel %vm1830_vm8, %v4125_v13, %v3773_v26  ;;  %v4593_v13 = vmul.f32 %v7996_v3, %v7996_v3 }
 0x6e8   : > { %v3899_v60 = vpop.permute.xlu0 %3898 }
 0x6e9   : > { %v3901_v21 = vpop.permute.xlu1 %3900  ;;  %v4188_v23 = vsel %vm1863_vm9, %v4156_v32, %v3899_v60  ;;  %v4591_v32 = vmul.f32 %v7992_v16, %v7992_v16  ;;  %v4590_v60 = vmul.f32 %v7986_v58, %v7986_v58 }
 0x6ea   : > { %v4189_v15 = vsel %vm1863_vm9, %v4157_v40, %v3901_v21  ;;  %5327 = vmatprep.mubr.msk.f32.mxu0 %vm1901_vm10, %v4188_v23  ;;  %v4592_v40 = vmul.f32 %v7990_v51, %v7990_v51  ;;  %v4605_v23 = vmul.f32 %v8020_v56, %v8020_v56 }
 0x6eb   : > { %5328 = vmatmul.mubr.msk.f32.gmra.mxu0 %vm1901_vm10, %v4189_v15  ;;  %v4606_v15 = vmul.f32 %v8018_v50, %v8018_v50 }
 0x6ff   : > { %v8022_v47 = vpop.f32.mrf.mxu0 }
 0x700   : > { %v4608_v17 = vmul.f32 %v8022_v47, %v8022_v47 }
 0x701   : > { %v8024_v9 = vpop.f32.mrf.mxu0 }
 0x702   : > { %v4607_v21 = vmul.f32 %v8024_v9, %v8024_v9 }
 0x71f   : > { %v8026_v11 = vpop.f32.mrf.mxu0 }
 0x720   : > { %v4610_v52 = vmul.f32 %v8026_v11, %v8026_v11 }
 0x721   : > { %v8028_v20 = vpop.f32.mrf.mxu0 }
 0x722   : > { %v4609_v61 = vmul.f32 %v8028_v20, %v8028_v20 }
 0x73f   : > { %v8030_v1 = vpop.f32.mrf.mxu0 }
 0x740   : > { %v4612_v26 = vmul.f32 %v8030_v1, %v8030_v1 }
 0x741   : > { %v8032_v48 = vpop.f32.mrf.mxu0 }
 0x742   : > { %v4611_v29 = vmul.f32 %v8032_v48, %v8032_v48 }
 0x75f   : > { %v8034_v31 = vpop.f32.mrf.mxu0 }
 0x760   : > { %v4614_v5 = vmul.f32 %v8034_v31, %v8034_v31 }
 0x761   : > { %v8036_v53 = vpop.f32.mrf.mxu0 }
 0x762   : > { %v4613_v36 = vmul.f32 %v8036_v53, %v8036_v53 }
 0x77f   : > { %v8038_v35 = vpop.f32.mrf.mxu0 }
 0x780   : > { %v4616_v45 = vmul.f32 %v8038_v35, %v8038_v35 }
 0x781   : > { %v8040_v30 = vpop.f32.mrf.mxu0 }
 0x782   : > { %v4615_v49 = vmul.f32 %v8040_v30, %v8040_v30 }
 0x79e   : > { %v8042_v43 = vpop.f32.mrf.mxu0 }
 0x79f   : > { %v4618_v34 = vmul.f32 %v8042_v43, %v8042_v43 }
 0x7a0   : > { %v8044_v25 = vpop.f32.mrf.mxu0 }
 0x7a1   : > { %v4617_v4 = vmul.f32 %v8044_v25, %v8044_v25 }
 0x7ab   : > { %v8046_v55 = vpop.f32.mrf.mxu0 }
 0x7ac   : > { %5144 = vmatprep.subr.mxu1 %v8046_v55  ;;  %v4620_v8 = vmul.f32 %v8046_v55, %v8046_v55 }
 0x7ad   : > { %v8049_v41 = vpop.f32.mrf.mxu0  ;;  %5145 = vmatpush3.msra.mxu1 %v8014_v38 }
 0x7ae   : > { %5146 = vmatprep.subr.mxu1 %v8049_v41  ;;  %v4619_v14 = vmul.f32 %v8049_v41, %v8049_v41 }
 0x7af   : > { %5147 = vmatpush3.msra.mxu1 %v8016_v63 }
 0x7b0   : > { %5148 = vmatprep.subr.mxu1 %v8042_v43 }
 0x7b1   : > { %5149 = vmatpush3.msra.mxu1 %v8010_v62 }
 0x7b2   : > { %5150 = vmatprep.subr.mxu1 %v8044_v25 }
 0x7b3   : > { %5151 = vmatpush3.msra.mxu1 %v8012_v19 }
 0x7b4   : > { %5152 = vmatprep.subr.mxu1 %v8038_v35 }
 0x7b5   : > { %5153 = vmatpush3.msra.mxu1 %v8006_v6 }
 0x7b6   : > { %5154 = vmatprep.subr.mxu1 %v8040_v30 }
 0x7b7   : > { %5155 = vmatpush3.msra.mxu1 %v8008_v10 }
 0x7b8   : > { %5156 = vmatprep.subr.mxu1 %v8034_v31 }
 0x7b9   : > { %5157 = vmatpush3.msra.mxu1 %v8002_v33 }
 0x7ba   : > { %5158 = vmatprep.subr.mxu1 %v8036_v53 }
 0x7bb   : > { %5159 = vmatpush3.msra.mxu1 %v8004_v28 }
 0x7bc   : > { %5160 = vmatprep.subr.mxu1 %v8030_v1 }
 0x7bd   : > { %5161 = vmatpush3.msra.mxu1 %v7998_v22 }
 0x7be   : > { %5162 = vmatprep.subr.mxu1 %v8032_v48 }
 0x7bf   : > { %5163 = vmatpush3.msra.mxu1 %v8000_v18 }
 0x7c0   : > { %5164 = vmatprep.subr.mxu1 %v8026_v11 }
 0x7c1   : > { %5165 = vmatpush3.msra.mxu1 %v7994_v12 }
 0x7c2   : > { %5166 = vmatprep.subr.mxu1 %v8028_v20 }
 0x7c3   : > { %5167 = vmatpush3.msra.mxu1 %v7996_v3 }
 0x7c4   : > { %5168 = vmatprep.subr.mxu1 %v8022_v47 }
 0x7c5   : > { %5169 = vmatpush3.msra.mxu1 %v7990_v51 }
 0x7c6   : > { %5170 = vmatprep.subr.mxu1 %v8024_v9 }
 0x7c7   : > { %5171 = vmatpush3.msra.mxu1 %v7992_v16 }
 0x7c8   : > { %5172 = vmatprep.subr.mxu1 %v8018_v50 }
 0x7c9   : > { %5173 = vmatpush3.msra.mxu1 %v7986_v58 }
 0x7ca   : > { %5174 = vmatprep.subr.mxu1 %v8020_v56 }
 0x7cb   : > { %5175 = vmatpush3.msra.mxu1 %v7988_v27 }
 0x7cc   : > { %4584 = vmatmul.mubr.f32.vlgmr.msra.gmra.mxu1 %v8521_v7  ;;  %5179 = vmatprep.subr.mxu1 %v4620_v8  ;;  %v4589_v8 = vmul.f32 %v7988_v27, %v7988_v27 }
 0x7cd   : > { %5180 = vmatpush3.msra.mxu1 %v4604_v2  ;;  %4685 = vmatprep.mubr.f32.mxu1 %v8521_v7 }
 0x7ce   : > { %5181 = vmatprep.subr.mxu1 %v4619_v14 }
 0x7cf   : > { %5182 = vmatpush3.msra.mxu1 %v4603_v39 }
 0x7d0   : > { %5183 = vmatprep.subr.mxu1 %v4618_v34 }
 0x7d1   : > { %5184 = vmatpush3.msra.mxu1 %v4602_v37 }
 0x7d2   : > { %5185 = vmatprep.subr.mxu1 %v4617_v4 }
 0x7d3   : > { %5186 = vmatpush3.msra.mxu1 %v4601_v59 }
 0x7d4   : > { %5187 = vmatprep.subr.mxu1 %v4616_v45 }
 0x7d5   : > { %5188 = vmatpush3.msra.mxu1 %v4600_v46 }
 0x7d6   : > { %5189 = vmatprep.subr.mxu1 %v4615_v49 }
 0x7d7   : > { %5190 = vmatpush3.msra.mxu1 %v4599_v54 }
 0x7d8   : > { %5191 = vmatprep.subr.mxu1 %v4614_v5 }
 0x7d9   : > { %5192 = vmatpush3.msra.mxu1 %v4598_v44  ;;  %v8522_v44 = vld [vmem:[#allocation3_spill] sm:$0xff] }
 0x7da   : > { %5193 = vmatprep.subr.mxu1 %v4613_v36 }
 0x7db   : > { %5194 = vmatpush3.msra.mxu1 %v4597_v42 }
 0x7dc   : > { %5195 = vmatprep.subr.mxu1 %v4612_v26 }
 0x7dd   : > { %5196 = vmatpush3.msra.mxu1 %v4596_v0 }
 0x7de   : > { %5197 = vmatprep.subr.mxu1 %v4611_v29 }
 0x7df   : > { %5198 = vmatpush3.msra.mxu1 %v4595_v24 }
 0x7e0   : > { %5199 = vmatprep.subr.mxu1 %v4610_v52 }
 0x7e1   : > { %5200 = vmatpush3.msra.mxu1 %v4594_v57 }
 0x7e2   : > { %5201 = vmatprep.subr.mxu1 %v4609_v61 }
 0x7e3   : > { %5202 = vmatpush3.msra.mxu1 %v4593_v13 }
 0x7e4   : > { %5203 = vmatprep.subr.mxu1 %v4608_v17 }
 0x7e5   : > { %5204 = vmatpush3.msra.mxu1 %v4592_v40 }
 0x7e6   : > { %5205 = vmatprep.subr.mxu1 %v4607_v21 }
 0x7e7   : > { %5206 = vmatpush3.msra.mxu1 %v4591_v32 }
 0x7e8   : > { %5207 = vmatprep.subr.mxu1 %v4606_v15 }
 0x7e9   : > { %5208 = vmatpush3.msra.mxu1 %v4590_v60 }
 0x7ea   : > { %5209 = vmatprep.subr.mxu1 %v4605_v23 }
 0x7eb   : > { %5210 = vmatpush3.msra.mxu1 %v4589_v8 }
 0x7ec   : > { %4686 = vmatmul.mubr.f32.vlgmr.msra.gmra.mxu1 %v8521_v7 }
 0x88c   : > { %v5176_v2 = vpop.f32.mrf.mxu1 }
 0x88e   : > { %v5177_v14 = vpop.f32.mrf.mxu1 }
 0x88f   : > { %v5178_v39 = vadd.f32 %v5177_v14, %v5176_v2  ;;  %v4770_v2 = vld [vmem:[%s5404_s17] sm:$0xff]  ;;  %v4771_v14 = vld [vmem:[%s5404_s17 + $0x8] sm:$0xff] }
 0x891   : > { %v4691_v37 = vmul.f32 0.00390625, %v5178_v39  ;;  %v4772_v39 = vld [vmem:[%s5404_s17 + $0x10] sm:$0xff] }
 0x893   : > { %v4693_v45 = vmul.f32 %v4691_v37, %v4691_v37  ;;  %v8150_v36 = vrot.slane %v4691_v37, %v8522_v44 }
 0x895   : > { %v4702_v42 = vsub.f32 %v7988_v27, %v8150_v36  ;;  %v4703_v7 = vsub.f32 %v7986_v58, %v8150_v36  ;;  %v4704_v26 = vsub.f32 %v7992_v16, %v8150_v36  ;;  %v4705_v0 = vsub.f32 %v7990_v51, %v8150_v36 }
 0x896   : > { %v4706_v29 = vsub.f32 %v7996_v3, %v8150_v36  ;;  %v4707_v24 = vsub.f32 %v7994_v12, %v8150_v36  ;;  %v4708_v52 = vsub.f32 %v8000_v18, %v8150_v36  ;;  %v4709_v27 = vsub.f32 %v7998_v22, %v8150_v36 }
 0x897   : > { %v4710_v58 = vsub.f32 %v8004_v28, %v8150_v36  ;;  %v4711_v16 = vsub.f32 %v8002_v33, %v8150_v36  ;;  %v4712_v51 = vsub.f32 %v8008_v10, %v8150_v36  ;;  %v4713_v3 = vsub.f32 %v8006_v6, %v8150_v36 }
 0x898   : > { %v4714_v12 = vsub.f32 %v8012_v19, %v8150_v36  ;;  %v4715_v18 = vsub.f32 %v8010_v62, %v8150_v36  ;;  %v4716_v22 = vsub.f32 %v8016_v63, %v8150_v36  ;;  %v4717_v28 = vsub.f32 %v8014_v38, %v8150_v36 }
 0x899   : > { %v4718_v33 = vsub.f32 %v8020_v56, %v8150_v36  ;;  %v4719_v10 = vsub.f32 %v8018_v50, %v8150_v36  ;;  %v4720_v6 = vsub.f32 %v8024_v9, %v8150_v36  ;;  %v4721_v19 = vsub.f32 %v8022_v47, %v8150_v36 }
 0x89a   : > { %v4722_v62 = vsub.f32 %v8028_v20, %v8150_v36  ;;  %v4723_v63 = vsub.f32 %v8026_v11, %v8150_v36  ;;  %v4724_v38 = vsub.f32 %v8032_v48, %v8150_v36  ;;  %v4725_v56 = vsub.f32 %v8030_v1, %v8150_v36 }
 0x89b   : > { %v4726_v50 = vsub.f32 %v8036_v53, %v8150_v36  ;;  %v4727_v9 = vsub.f32 %v8034_v31, %v8150_v36  ;;  %v4728_v47 = vsub.f32 %v8040_v30, %v8150_v36  ;;  %v4729_v20 = vsub.f32 %v8038_v35, %v8150_v36 }
 0x89c   : > { %v4730_v48 = vsub.f32 %v8044_v25, %v8150_v36  ;;  %v4731_v1 = vsub.f32 %v8042_v43, %v8150_v36  ;;  %v4732_v53 = vsub.f32 %v8049_v41, %v8150_v36  ;;  %v4733_v31 = vsub.f32 %v8046_v55, %v8150_v36 }
 0x8ac   : > { %v5211_v34 = vpop.f32.mrf.mxu1 }
 0x8ae   : > { %v5212_v4 = vpop.f32.mrf.mxu1 }
 0x8af   : > { %v5213_v59 = vadd.f32 %v5212_v4, %v5211_v34  ;;  %v4773_v34 = vld [vmem:[%s5404_s17 + $0x18] sm:$0xff] }
 0x8b1   : > { %v4692_v46 = vmul.f32 0.00390625, %v5213_v59 }
 0x8b3   : > { %v4694_v49 = vsub.f32 %v4692_v46, %v4693_v45  ;;  %v4774_v46 = vld [vmem:[%s5404_s17 + $0x20] sm:$0xff] }
 0x8b5   : > { %v4695_v54 = vmax.f32 %v4694_v49, 0.0  ;;  %v4775_v49 = vld [vmem:[%s5404_s17 + $0x28] sm:$0xff] }
 0x8b7   : > { %v4696_v5 = vadd.f32 1e-05, %v4695_v54  ;;  %v4776_v54 = vld [vmem:[%s5404_s17 + $0x30] sm:$0xff] }
 0x8b9   : > { %5349 = vrsqrt.f32 %v4696_v5  ;;  %v4777_v5 = vld [vmem:[%s5404_s17 + $0x38] sm:$0xff] }
 0x8c6   : > { %v5350_v57 = vpop.eup %5349 }
 0x8c7   : > { %v4737_v11 = vrot.slane %v5350_v57, %v8522_v44  ;;  %v4789_v57 = vld [vmem:[%s5404_s17 + $0x98] sm:$0xff] }
 0x8c9   : > { %v4738_v61 = vmul.f32 %v4737_v11, %v4702_v42  ;;  %v4739_v30 = vmul.f32 %v4737_v11, %v4703_v7  ;;  %v4740_v13 = vmul.f32 %v4737_v11, %v4704_v26  ;;  %v4741_v35 = vmul.f32 %v4737_v11, %v4705_v0  ;;  %v4778_v26 = vld [vmem:[%s5404_s17 + $0x40] sm:$0xff]  ;;  %v4779_v0 = vld [vmem:[%s5404_s17 + $0x48] sm:$0xff] }
 0x8ca   : > { %v4742_v17 = vmul.f32 %v4737_v11, %v4706_v29  ;;  %v4743_v40 = vmul.f32 %v4737_v11, %v4707_v24  ;;  %v4744_v25 = vmul.f32 %v4737_v11, %v4708_v52  ;;  %v4745_v21 = vmul.f32 %v4737_v11, %v4709_v27  ;;  %v4780_v29 = vld [vmem:[%s5404_s17 + $0x50] sm:$0xff] }
 0x8cb   : > { %v4746_v32 = vmul.f32 %v4737_v11, %v4710_v58  ;;  %v4747_v43 = vmul.f32 %v4737_v11, %v4711_v16  ;;  %v4748_v41 = vmul.f32 %v4737_v11, %v4712_v51  ;;  %v4749_v15 = vmul.f32 %v4737_v11, %v4713_v3  ;;  %v4781_v16 = vld [vmem:[%s5404_s17 + $0x58] sm:$0xff]  ;;  %v4782_v51 = vld [vmem:[%s5404_s17 + $0x60] sm:$0xff]  ;;  %v4783_v3 = vld [vmem:[%s5404_s17 + $0x68] sm:$0xff] }
 0x8cc   : > { %v8217_v55 = vmul.f32 %v4737_v11, %v4714_v12  ;;  %v8219_v60 = vmul.f32 %v4737_v11, %v4715_v18  ;;  %v8221_v23 = vmul.f32 %v4737_v11, %v4716_v22  ;;  %v8223_v8 = vmul.f32 %v4737_v11, %v4717_v28 }
 0x8cd   : > { %v8229_v37 = vmul.f32 %v4737_v11, %v4718_v33  ;;  %v8231_v4 = vmul.f32 %v4737_v11, %v4719_v10  ;;  %v8233_v59 = vmul.f32 %v4737_v11, %v4720_v6  ;;  %v8235_v45 = vmul.f32 %v4737_v11, %v4721_v19  ;;  %v4784_v33 = vld [vmem:[%s5404_s17 + $0x70] sm:$0xff]  ;;  %v4785_v10 = vld [vmem:[%s5404_s17 + $0x78] sm:$0xff]  ;;  %v4786_v6 = vld [vmem:[%s5404_s17 + $0x80] sm:$0xff] }
 0x8ce   : > { %v8241_v44 = vmul.f32 %v4737_v11, %v4722_v62  ;;  %v8243_v36 = vmul.f32 %v4737_v11, %v4723_v63  ;;  %v8245_v42 = vmul.f32 %v4737_v11, %v4724_v38  ;;  %v8247_v7 = vmul.f32 %v4737_v11, %v4725_v56  ;;  %v4787_v19 = vld [vmem:[%s5404_s17 + $0x88] sm:$0xff]  ;;  %v4788_v62 = vld [vmem:[%s5404_s17 + $0x90] sm:$0xff] }
 0x8cf   : > { %v8252_v24 = vmul.f32 %v4737_v11, %v4726_v50  ;;  %v8254_v52 = vmul.f32 %v4737_v11, %v4727_v9  ;;  %v8256_v27 = vmul.f32 %v4737_v11, %v4728_v47  ;;  %v8258_v58 = vmul.f32 %v4737_v11, %v4729_v20  ;;  %v4790_v9 = vld [vmem:[%s5404_s17 + $0xa0] sm:$0xff]  ;;  %v4791_v47 = vld [vmem:[%s5404_s17 + $0xa8] sm:$0xff]  ;;  %v4792_v20 = vld [vmem:[%s5404_s17 + $0xb0] sm:$0xff] }
 0x8d0   : > { %v8270_v12 = vmul.f32 %v4737_v11, %v4730_v48  ;;  %v8272_v18 = vmul.f32 %v4737_v11, %v4731_v1  ;;  %v8274_v22 = vmul.f32 %v4737_v11, %v4732_v53  ;;  %v8276_v28 = vmul.f32 %v4737_v11, %v4733_v31  ;;  %v4793_v31 = vld [vmem:[%s5404_s17 + $0xb8] sm:$0xff] }
 0x8d1   : > { %v4802_v63 = vadd.f32 %v4770_v2, %v4738_v61  ;;  %v4803_v38 = vadd.f32 %v4771_v14, %v4739_v30  ;;  %v4804_v56 = vadd.f32 %v4772_v39, %v4740_v13  ;;  %v4805_v50 = vadd.f32 %v4773_v34, %v4741_v35  ;;  %v4795_v61 = vld [vmem:[%s5404_s17 + $0xc8] sm:$0xff] }
 0x8d2   : > { %8523 = vst [vmem:[#allocation17_spill] sm:$0xff] %v8276_v28  ;;  %v4806_v11 = vadd.f32 %v4774_v46, %v4742_v17  ;;  %v4807_v48 = vadd.f32 %v4775_v49, %v4743_v40  ;;  %v4808_v1 = vadd.f32 %v4776_v54, %v4744_v25  ;;  %v4809_v53 = vadd.f32 %v4777_v5, %v4745_v21  ;;  %v4794_v28 = vld [vmem:[%s5404_s17 + $0xc0] sm:$0xff]  ;;  %v4796_v17 = vld [vmem:[%s5404_s17 + $0xd0] sm:$0xff]  ;;  %v4797_v40 = vld [vmem:[%s5404_s17 + $0xd8] sm:$0xff] }
 0x8d3   : > { %v4810_v30 = vadd.f32 %v4778_v26, %v4746_v32  ;;  %v4811_v13 = vadd.f32 %v4779_v0, %v4747_v43  ;;  %v4812_v35 = vadd.f32 %v4780_v29, %v4748_v41  ;;  %v4813_v2 = vadd.f32 %v4781_v16, %v4749_v15  ;;  %4834 = vst.msk [vmem:[%s8268_s20] sm:$0xff] %vm204_vm0, %v4802_v63  ;;  %v4798_v25 = vld [vmem:[%s5404_s17 + $0xe0] sm:$0xff]  ;;  %v4799_v15 = vld [vmem:[%s5404_s17 + $0xe8] sm:$0xff] }
 0x8d4   : > { %4835 = vst.msk [vmem:[%s8268_s20 + $0x8] sm:$0xff] %vm204_vm0, %v4803_v38  ;;  %4836 = vst.msk [vmem:[%s8268_s20 + $0x10] sm:$0xff] %vm204_vm0, %v4804_v56  ;;  %v4814_v21 = vadd.f32 %v4782_v51, %v8217_v55  ;;  %v4815_v32 = vadd.f32 %v4783_v3, %v8219_v60  ;;  %v4816_v43 = vadd.f32 %v4784_v33, %v8221_v23  ;;  %v4800_v55 = vld [vmem:[%s5404_s17 + $0xf0] sm:$0xff]  ;;  %v4801_v60 = vld [vmem:[%s5404_s17 + $0xf8] sm:$0xff] }
 0x8d5   : > { %4837 = vst.msk [vmem:[%s8268_s20 + $0x18] sm:$0xff] %vm204_vm0, %v4805_v50  ;;  %v4817_v41 = vadd.f32 %v4785_v10, %v8223_v8  ;;  %4838 = vst.msk [vmem:[%s8268_s20 + $0x20] sm:$0xff] %vm204_vm0, %v4806_v11  ;;  %v4818_v23 = vadd.f32 %v4786_v6, %v8229_v37  ;;  %v4819_v14 = vadd.f32 %v4787_v19, %v8231_v4 }
 0x8d6   : > { %4839 = vst.msk [vmem:[%s8268_s20 + $0x28] sm:$0xff] %vm204_vm0, %v4807_v48  ;;  %4840 = vst.msk [vmem:[%s8268_s20 + $0x30] sm:$0xff] %vm204_vm0, %v4808_v1  ;;  %v4820_v8 = vadd.f32 %v4788_v62, %v8233_v59  ;;  %v4821_v39 = vadd.f32 %v4789_v57, %v8235_v45  ;;  %v4822_v34 = vadd.f32 %v4790_v9, %v8241_v44 }
 0x8d7   : > { %4841 = vst.msk [vmem:[%s8268_s20 + $0x38] sm:$0xff] %vm204_vm0, %v4809_v53  ;;  %4842 = vst.msk [vmem:[%s8268_s20 + $0x40] sm:$0xff] %vm204_vm0, %v4810_v30  ;;  %v4823_v37 = vadd.f32 %v4791_v47, %v8243_v36  ;;  %v4824_v4 = vadd.f32 %v4792_v20, %v8245_v42  ;;  %v4825_v59 = vadd.f32 %v4793_v31, %v8247_v7 }
 0x8d8   : > { %4843 = vst.msk [vmem:[%s8268_s20 + $0x48] sm:$0xff] %vm204_vm0, %v4811_v13  ;;  %4844 = vst.msk [vmem:[%s8268_s20 + $0x50] sm:$0xff] %vm204_vm0, %v4812_v35  ;;  %v4826_v45 = vadd.f32 %v4794_v28, %v8252_v24  ;;  %v4827_v46 = vadd.f32 %v4795_v61, %v8254_v52  ;;  %v4828_v49 = vadd.f32 %v4796_v17, %v8256_v27 }
 0x8d9   : > { %4845 = vst.msk [vmem:[%s8268_s20 + $0x58] sm:$0xff] %vm204_vm0, %v4813_v2  ;;  %4846 = vst.msk [vmem:[%s8268_s20 + $0x60] sm:$0xff] %vm204_vm0, %v4814_v21  ;;  %v4829_v54 = vadd.f32 %v4797_v40, %v8258_v58  ;;  %v4830_v5 = vadd.f32 %v4798_v25, %v8270_v12  ;;  %v4831_v44 = vadd.f32 %v4799_v15, %v8272_v18  ;;  %v8524_v42 = vld [vmem:[#allocation17_spill] sm:$0xff] }
 0x8da   : > { %4847 = vst.msk [vmem:[%s8268_s20 + $0x68] sm:$0xff] %vm204_vm0, %v4815_v32  ;;  %4848 = vst.msk [vmem:[%s8268_s20 + $0x70] sm:$0xff] %vm204_vm0, %v4816_v43  ;;  %v4832_v36 = vadd.f32 %v4800_v55, %v8274_v22  ;;  %v4833_v7 = vadd.f32 %v4801_v60, %v8524_v42 }
 0x8db   : > { %4849 = vst.msk [vmem:[%s8268_s20 + $0x78] sm:$0xff] %vm204_vm0, %v4817_v41  ;;  %4850 = vst.msk [vmem:[%s8268_s20 + $0x80] sm:$0xff] %vm204_vm0, %v4818_v23 }
 0x8dc   : > { %4851 = vst.msk [vmem:[%s8268_s20 + $0x88] sm:$0xff] %vm204_vm0, %v4819_v14  ;;  %4852 = vst.msk [vmem:[%s8268_s20 + $0x90] sm:$0xff] %vm204_vm0, %v4820_v8 }
 0x8dd   : > { %4853 = vst.msk [vmem:[%s8268_s20 + $0x98] sm:$0xff] %vm204_vm0, %v4821_v39  ;;  %4854 = vst.msk [vmem:[%s8268_s20 + $0xa0] sm:$0xff] %vm204_vm0, %v4822_v34 }
 0x8de   : > { %4855 = vst.msk [vmem:[%s8268_s20 + $0xa8] sm:$0xff] %vm204_vm0, %v4823_v37  ;;  %4856 = vst.msk [vmem:[%s8268_s20 + $0xb0] sm:$0xff] %vm204_vm0, %v4824_v4 }
 0x8df   : > { %4857 = vst.msk [vmem:[%s8268_s20 + $0xb8] sm:$0xff] %vm204_vm0, %v4825_v59  ;;  %4858 = vst.msk [vmem:[%s8268_s20 + $0xc0] sm:$0xff] %vm204_vm0, %v4826_v45 }
 0x8e0   : > { %4859 = vst.msk [vmem:[%s8268_s20 + $0xc8] sm:$0xff] %vm204_vm0, %v4827_v46  ;;  %4860 = vst.msk [vmem:[%s8268_s20 + $0xd0] sm:$0xff] %vm204_vm0, %v4828_v49 }
 0x8e1   : > { %4861 = vst.msk [vmem:[%s8268_s20 + $0xd8] sm:$0xff] %vm204_vm0, %v4829_v54  ;;  %4862 = vst.msk [vmem:[%s8268_s20 + $0xe0] sm:$0xff] %vm204_vm0, %v4830_v5 }
 0x8e2   : > { %4863 = vst.msk [vmem:[%s8268_s20 + $0xe8] sm:$0xff] %vm204_vm0, %v4831_v44  ;;  %4864 = vst.msk [vmem:[%s8268_s20 + $0xf0] sm:$0xff] %vm204_vm0, %v4832_v36 }
 0x8e3   : > { %4865 = vst.msk [vmem:[%s8268_s20 + $0xf8] sm:$0xff] %vm204_vm0, %v4833_v7 }
 0x8e4 PF: > { %s13_s12 = sadd.s32 1, %s5357_s12  }
 0x8e5   : > { %p10_p4 = scmp.ge.s32.totalorder %s13_s12, 4  }
 0x8e7   :  { %12 = sbr.rel (!%p10_p4) target bundleno = 1 (0x1), region = 66 }

// kernel: _residual_block_impl.1
= control target key start
LH: loop header
LB: loop body
LE: loop exit
PB: predicated region body
PF: predicated region fallthrough
CT: control target
= control target key end

     0   :  { %s5388_s12 = smov 0   ;;  %s8383_s0 = inlined_call_operand.vmem [shape: f32[2,16,16,4], index: 0, kind: input, shape index: {}]   ;;  %s8384_s1 = inlined_call_operand.vmem [shape: f32[36,4], index: 1, kind: input, shape index: {}]   ;;  %s8385_s2 = inlined_call_operand.vmem [shape: f32[36,4], index: 2, kind: input, shape index: {}]   ;;  %s8386_s3 = inlined_call_operand.vmem [shape: f32[2,16,16,4], index: 3, kind: output, shape index: {}]  }
   0x1 LB: > { %s4921_s13 = sadd.s32 4294967295, %s5357_s12   ;;  %p4925_p0 = scmp.ge.s32.totalorder %s5357_s12, 1  ;;  %s5357_s12 = sphi %s5388_s12, %s13_s12  }
   0x2   : > { %p137_p1 = scmp.lt.s32.totalorder %s5357_s12, 3 }
   0x4   : > { %p138_p2 = pnand %p4925_p0, %p137_p1 }
   0x6   : > { %141 = sbr.rel (%p138_p2) target bundleno = 2276 (0x8e4), region = 32 }
   0xb   : > { %p161_p3 = scmp.lt.s32.totalorder %s4921_s13, 1  ;;  %vm204_vm0 = vcmask 31744   ;;  %vm266_vm1 = vcmask 24576   ;;  %s5359_s18 = smov 16   ;;  %v1900_v36 = vld [vmem:[%s8384_s1 + $0x20] sm:$0xf] }
   0xc   : > { %s5360_s19 = smov 12   ;;  %s5361_s20 = smov 4   ;;  %vm1998_vm2 = vcmask 1043456   ;;  %v1899_v39 = vld [vmem:[%s8384_s1 + $0x18] sm:$0xff]  ;;  %v1898_v41 = vld [vmem:[%s8384_s1 + $0x10] sm:$0xff]  ;;  %v1897_v42 = vld [vmem:[%s8384_s1 + $0x8] sm:$0xff] }
   0xd   : > { %s8526_s13 = smov (!%p161_p3, %s4921_s13), 1  ;;  %s5362_s21 = smov 20   ;;  %5214 = vmatprep.subr.msk.mxu0 %vm1998_vm2, %v1900_v36  ;;  %v1896_v43 = vld [vmem:[%s8384_s1] sm:$0xff]  ;;  %vm1698_vm3 = vcmask 97280   ;;  %vm1665_vm4 = vcmask 64512   ;;  %vm1731_vm5 = vcmask 130048  }
   0xe   : > { %s4998_s14 = sshll.u32 %s8526_s13, 8  ;;  %s5363_s22 = smov 8   ;;  %5215 = vmatpush3.msk.msra.mxu0 %vm1998_vm2, %v1900_v36  ;;  %vm1764_vm6 = vcmask 162816   ;;  %vm1797_vm7 = vcmask 195584   ;;  %vm1830_vm8 = vcmask 228352   ;;  %vm1863_vm9 = vcmask 261120  }
   0xf   : > { %s5404_s17 = scalar_lea.vmem %s8383_s0, %s4998_s14  ;;  %s5364_s23 = smov 24   ;;  %5216 = vmatprep.subr.mxu0 %v1899_v39  ;;  %vm1901_vm10 = vcmask 293888  }
  0x10   : > { %v171_v0 = vld [vmem:[%s5404_s17] sm:$0xff]  ;;  %v172_v1 = vld [vmem:[%s5404_s17 + $0x8] sm:$0xff]  ;;  %v173_v2 = vld [vmem:[%s5404_s17 + $0x10] sm:$0xff]  ;;  %5217 = vmatpush3.msra.mxu0 %v1899_v39  ;;  %s5365_s5 = smov 28   ;;  %s5366_s8 = smov 32  }
  0x11   : > { %205 = vst.msk [vmem:[#allocation2 + $0x19] sm:$0xff] %vm204_vm0, %v171_v0  ;;  %206 = vst.msk [vmem:[#allocation2 + $0x21] sm:$0xff] %vm204_vm0, %v172_v1  ;;  %v174_v3 = vld [vmem:[%s5404_s17 + $0x18] sm:$0xff]  ;;  %v175_v4 = vld [vmem:[%s5404_s17 + $0x20] sm:$0xff]  ;;  %5218 = vmatprep.subr.mxu0 %v1898_v41 }
  0x12   : > { %207 = vst.msk [vmem:[#allocation2 + $0x31] sm:$0xff] %vm204_vm0, %v173_v2  ;;  %v176_v5 = vld [vmem:[%s5404_s17 + $0x28] sm:$0xff]  ;;  %208 = vst.msk [vmem:[#allocation2 + $0x39] sm:$0xff] %vm204_vm0, %v174_v3  ;;  %v177_v6 = vld [vmem:[%s5404_s17 + $0x30] sm:$0xff]  ;;  %5219 = vmatpush3.msra.mxu0 %v1898_v41 }
  0x13   : > { %209 = vst.msk [vmem:[#allocation2 + $0x49] sm:$0xff] %vm204_vm0, %v175_v4  ;;  %210 = vst.msk [vmem:[#allocation2 + $0x51] sm:$0xff] %vm204_vm0, %v176_v5  ;;  %v178_v7 = vld [vmem:[%s5404_s17 + $0x38] sm:$0xff]  ;;  %v179_v8 = vld [vmem:[%s5404_s17 + $0x40] sm:$0xff]  ;;  %5220 = vmatprep.subr.mxu0 %v1897_v42 }
  0x14   : > { %211 = vst.msk [vmem:[#allocation2 + $0x61] sm:$0xff] %vm204_vm0, %v177_v6  ;;  %212 = vst.msk [vmem:[#allocation2 + $0x69] sm:$0xff] %vm204_vm0, %v178_v7  ;;  %v180_v9 = vld [vmem:[%s5404_s17 + $0x48] sm:$0xff]  ;;  %v181_v31 = vld [vmem:[%s5404_s17 + $0x50] sm:$0xff]  ;;  %5221 = vmatpush3.msra.mxu0 %v1897_v42 }
  0x15   : > { %213 = vst.msk [vmem:[#allocation2 + $0x79] sm:$0xff] %vm204_vm0, %v179_v8  ;;  %214 = vst.msk [vmem:[#allocation2 + $0x81] sm:$0xff] %vm204_vm0, %v180_v9  ;;  %v182_v37 = vld [vmem:[%s5404_s17 + $0x58] sm:$0xff]  ;;  %5222 = vmatprep.subr.mxu0 %v1896_v43  ;;  %v183_v46 = vld [vmem:[%s5404_s17 + $0x60] sm:$0xff] }
  0x16   : > { %215 = vst.msk [vmem:[#allocation2 + $0x91] sm:$0xff] %vm204_vm0, %v181_v31  ;;  %216 = vst.msk [vmem:[#allocation2 + $0x99] sm:$0xff] %vm204_vm0, %v182_v37  ;;  %5223 = vmatpush3.msra.mxu0 %v1896_v43  ;;  %v184_v50 = vld [vmem:[%s5404_s17 + $0x68] sm:$0xff]  ;;  %v185_v56 = vld [vmem:[%s5404_s17 + $0x70] sm:$0xff] }
  0x17   : > { %217 = vst.msk [vmem:[#allocation2 + $0xa9] sm:$0xff] %vm204_vm0, %v183_v46  ;;  %218 = vst.msk [vmem:[#allocation2 + $0xb1] sm:$0xff] %vm204_vm0, %v184_v50  ;;  %v186_v60 = vld [vmem:[%s5404_s17 + $0x78] sm:$0xff]  ;;  %v187_v2 = vld [vmem:[%s5404_s17 + $0x80] sm:$0xff] }
  0x18   : > { %v449_v10 = vld [vmem:[#allocation2 + $0x19] sm:$0xff]  ;;  %v450_v12 = vld [vmem:[#allocation2 + $0x21] sm:$0xff]  ;;  %219 = vst.msk [vmem:[#allocation2 + $0xc1] sm:$0xff] %vm204_vm0, %v185_v56  ;;  %220 = vst.msk [vmem:[#allocation2 + $0xc9] sm:$0xff] %vm204_vm0, %v186_v60 }
  0x19   : > { %v5426_v11 = vld [vmem:[#allocation2 + $0x20] sm:$0xff]  ;;  %1025 = vrot.lane.b32.xlu0 %v449_v10, %s5359_s18  ;;  %v5431_v13 = vld [vmem:[#allocation2 + $0x31] sm:$0xff]  ;;  %v249_v16 = vld [vmem:[#allocation2 + $0x1a] sm:$0x1]  ;;  %221 = vst.msk [vmem:[#allocation2 + $0xd9] sm:$0xff] %vm204_vm0, %v187_v2 }
  0x1a   : > { %899 = vrot.lane.b32.xlu1 %v5426_v11, %s5360_s19  ;;  %v5433_v14 = vld [vmem:[#allocation2 + $0x39] sm:$0xff]  ;;  %240 = vst.msk [vmem:[#allocation2 + $0x1] sm:$0xff] %vm204_vm0, %v5431_v13  ;;  %v250_v15 = vld [vmem:[#allocation2 + $0x32] sm:$0x1]  ;;  %v286_v17 = vld [vmem:[#allocation2 + $0x27] sm:$0x1] }
  0x1b   : > { %241 = vst.msk [vmem:[#allocation2 + $0x9] sm:$0xff] %vm204_vm0, %v5433_v14  ;;  %v287_v18 = vld [vmem:[#allocation2 + $0x3f] sm:$0x1]  ;;  %v251_v19 = vld [vmem:[#allocation2 + $0x4a] sm:$0x1]  ;;  %v577_v44 = vld [vmem:[#allocation2 + $0x32] sm:$0xff] }
  0x1c   : > { %269 = vst.msk [vmem:[#allocation2 + $0x30] sm:$0x1] %vm266_vm1, %v250_v15  ;;  %268 = vst.msk [vmem:[#allocation2 + $0x18] sm:$0x1] %vm266_vm1, %v249_v16  ;;  %v288_v20 = vld [vmem:[#allocation2 + $0x57] sm:$0x1] }
  0x1d   : > { %304 = vst.msk [vmem:[#allocation2 + $0x29] sm:$0x1] %vm266_vm1, %v286_v17  ;;  %305 = vst.msk [vmem:[#allocation2 + $0x41] sm:$0x1] %vm266_vm1, %v287_v18  ;;  %1027 = vrot.lane.b32.xlu0 %v450_v12, %s5359_s18  ;;  %v481_v21 = vld [vmem:[#allocation2 + $0x1a] sm:$0xff]  ;;  %v547_v51 = vld [vmem:[#allocation2 + $0x49] sm:$0xff] }
  0x1e   : > { %645 = vrot.lane.b32.xlu1 %v449_v10, %s5361_s20  ;;  %270 = vst.msk [vmem:[#allocation2 + $0x48] sm:$0x1] %vm266_vm1, %v251_v19  ;;  %306 = vst.msk [vmem:[#allocation2 + $0x59] sm:$0x1] %vm266_vm1, %v288_v20  ;;  %v252_v22 = vld [vmem:[#allocation2 + $0x62] sm:$0x1] }
  0x1f   : > { %271 = vst.msk [vmem:[#allocation2 + $0x60] sm:$0x1] %vm266_vm1, %v252_v22  ;;  %v289_v23 = vld [vmem:[#allocation2 + $0x6f] sm:$0x1]  ;;  %v253_v24 = vld [vmem:[#allocation2 + $0x7a] sm:$0x1] }
  0x20   : > { %307 = vst.msk [vmem:[#allocation2 + $0x71] sm:$0x1] %vm266_vm1, %v289_v23  ;;  %272 = vst.msk [vmem:[#allocation2 + $0x78] sm:$0x1] %vm266_vm1, %v253_v24  ;;  %v290_v28 = vld [vmem:[#allocation2 + $0x87] sm:$0x1] }
  0x21   : > { %647 = vrot.lane.b32.xlu0 %v450_v12, %s5361_s20  ;;  %v353_v25 = vld [vmem:[#allocation2 + $0x1] sm:$0xff]  ;;  %308 = vst.msk [vmem:[#allocation2 + $0x89] sm:$0x1] %vm266_vm1, %v290_v28  ;;  %v254_v35 = vld [vmem:[#allocation2 + $0x92] sm:$0x1]  ;;  %v5485_v40 = vld [vmem:[#allocation2 + $0x38] sm:$0xff] }
  0x22   : > { %1153 = vrot.lane.b32.xlu1 %v481_v21, %s5362_s21  ;;  %v285_v26 = vld [vmem:[#allocation2 + $0xf] sm:$0x1]  ;;  %v248_v27 = vld [vmem:[#allocation2 + $0x2] sm:$0x1]  ;;  %273 = vst.msk [vmem:[#allocation2 + $0x90] sm:$0x1] %vm266_vm1, %v254_v35 }
  0x23   : > { %303 = vst.msk [vmem:[#allocation2 + $0x11] sm:$0x1] %vm266_vm1, %v285_v26  ;;  %267 = vst.msk [vmem:[#allocation2] sm:$0x1] %vm266_vm1, %v248_v27  ;;  %v354_v29 = vld [vmem:[#allocation2 + $0x9] sm:$0xff]  ;;  %v5463_v33 = vld [vmem:[#allocation2 + $0x18] sm:$0xff] }
  0x24   : > { %v385_v30 = vld [vmem:[#allocation2 + $0x2] sm:$0xff]  ;;  %v5461_v32 = vld [vmem:[#allocation2 + $0x30] sm:$0xff]  ;;  %v291_v45 = vld [vmem:[#allocation2 + $0x9f] sm:$0x1] }
  0x25   : > { %641 = vrot.lane.b32.xlu0 %v353_v25, %s5361_s20  ;;  %v482_v34 = vld [vmem:[#allocation2 + $0x22] sm:$0xff]  ;;  %309 = vst.msk [vmem:[#allocation2 + $0xa1] sm:$0x1] %vm266_vm1, %v291_v45  ;;  %v578_v47 = vld [vmem:[#allocation2 + $0x3a] sm:$0xff]  ;;  %v255_v48 = vld [vmem:[#allocation2 + $0xaa] sm:$0x1] }
  0x26   : > { %773 = vrot.lane.b32.xlu1 %v481_v21, %s5363_s22  ;;  %274 = vst.msk [vmem:[#allocation2 + $0xa8] sm:$0x1] %vm266_vm1, %v255_v48  ;;  %v5520_v49 = vld [vmem:[#allocation2 + $0x48] sm:$0xff]  ;;  %v5530_v52 = vld [vmem:[#allocation2 + $0x50] sm:$0xff]  ;;  %v256_v58 = vld [vmem:[#allocation2 + $0xc2] sm:$0x1] }
  0x27   : > { %v579_v53 = vld [vmem:[#allocation2 + $0x4a] sm:$0xff]  ;;  %v292_v55 = vld [vmem:[#allocation2 + $0xb7] sm:$0x1]  ;;  %275 = vst.msk [vmem:[#allocation2 + $0xc0] sm:$0x1] %vm266_vm1, %v256_v58  ;;  %v5550_v59 = vld [vmem:[#allocation2 + $0x60] sm:$0xff] }
  0x28   : > { %v548_v54 = vld [vmem:[#allocation2 + $0x51] sm:$0xff]  ;;  %310 = vst.msk [vmem:[#allocation2 + $0xb9] sm:$0x1] %vm266_vm1, %v292_v55  ;;  %v549_v61 = vld [vmem:[#allocation2 + $0x61] sm:$0xff]  ;;  %v550_v0 = vld [vmem:[#allocation2 + $0x69] sm:$0xff] }
  0x29   : > { %643 = vrot.lane.b32.xlu0 %v354_v29, %s5361_s20  ;;  %v580_v57 = vld [vmem:[#allocation2 + $0x52] sm:$0xff]  ;;  %v5560_v62 = vld [vmem:[#allocation2 + $0x68] sm:$0xff]  ;;  %v257_v4 = vld [vmem:[#allocation2 + $0xda] sm:$0x1] }
  0x2a   : > { %769 = vrot.lane.b32.xlu1 %v385_v30, %s5363_s22  ;;  %v386_v38 = vld [vmem:[#allocation2 + $0xa] sm:$0xff]  ;;  %v581_v63 = vld [vmem:[#allocation2 + $0x62] sm:$0xff]  ;;  %276 = vst.msk [vmem:[#allocation2 + $0xd8] sm:$0x1] %vm266_vm1, %v257_v4  ;;  %v5582_v7 = vld [vmem:[#allocation2 + $0x78] sm:$0xff] }
  0x2b   : > { %v293_v1 = vld [vmem:[#allocation2 + $0xcf] sm:$0x1]  ;;  %v5598_v15 = vld [vmem:[#allocation2 + $0x80] sm:$0xff]  ;;  %v189_v25 = vld [vmem:[%s5404_s17 + $0x90] sm:$0xff] }
  0x2c   : > { %311 = vst.msk [vmem:[#allocation2 + $0xd1] sm:$0x1] %vm266_vm1, %v293_v1  ;;  %v582_v3 = vld [vmem:[#allocation2 + $0x6a] sm:$0xff]  ;;  %v583_v20 = vld [vmem:[#allocation2 + $0x7a] sm:$0xff]  ;;  %v584_v29 = vld [vmem:[#allocation2 + $0x82] sm:$0xff] }
  0x2d   : > { %897 = vrot.lane.b32.xlu0 %v5463_v33, %s5360_s19  ;;  %v188_v10 = vld [vmem:[%s5404_s17 + $0x88] sm:$0xff]  ;;  %223 = vst.msk [vmem:[#allocation2 + $0xf1] sm:$0xff] %vm204_vm0, %v189_v25  ;;  %v321_v28 = vld [vmem:[#allocation2] sm:$0xff]  ;;  %v5630_v45 = vld [vmem:[#allocation2 + $0x90] sm:$0xff] }
  0x2e   : > { %1281 = vrot.lane.b32.xlu1 %v5461_v32, %s5364_s23  ;;  %222 = vst.msk [vmem:[#allocation2 + $0xe1] sm:$0xff] %vm204_vm0, %v188_v10  ;;  %v552_v21 = vld [vmem:[#allocation2 + $0x81] sm:$0xff]  ;;  %v553_v60 = vld [vmem:[#allocation2 + $0x91] sm:$0xff]  ;;  %v554_v10 = vld [vmem:[#allocation2 + $0x99] sm:$0xff] }
  0x31   : > { %1155 = vrot.lane.b32.xlu0 %v482_v34, %s5362_s21 }
  0x32   : > { %901 = vrot.lane.b32.xlu1 %v5461_v32, %s5360_s19 }
  0x34   : > { %v258_v37 = vld [vmem:[#allocation2 + $0xf2] sm:$0x1] }
  0x35   : > { %775 = vrot.lane.b32.xlu0 %v482_v34, %s5363_s22  ;;  %v294_v24 = vld [vmem:[#allocation2 + $0xe7] sm:$0x1]  ;;  %277 = vst.msk [vmem:[#allocation2 + $0xf0] sm:$0x1] %vm266_vm1, %v258_v37 }
  0x36   : > { %771 = vrot.lane.b32.xlu1 %v386_v38, %s5363_s22  ;;  %312 = vst.msk [vmem:[#allocation2 + $0xe9] sm:$0x1] %vm266_vm1, %v294_v24  ;;  %v322_v38 = vld [vmem:[#allocation2 + $0x8] sm:$0xff] }
  0x39   : > { %1283 = vrot.lane.b32.xlu0 %v5485_v40, %s5364_s23 }
  0x3a   : > { %1409 = vrot.lane.b32.xlu1 %v5431_v13, %s5365_s5 }
  0x3d   : > { %903 = vrot.lane.b32.xlu0 %v5485_v40, %s5360_s19 }
  0x3e   : > { %1029 = vrot.lane.b32.xlu1 %v5431_v13, %s5359_s18 }
  0x41   : > { %1411 = vrot.lane.b32.xlu0 %v5433_v14, %s5365_s5 }
  0x42   : > { %1537 = vrot.lane.b32.xlu1 %v577_v44, %s5366_s8 }
  0x45   : > { %649 = vrot.lane.b32.xlu0 %v5431_v13, %s5361_s20 }
  0x46   : > { %1031 = vrot.lane.b32.xlu1 %v5433_v14, %s5359_s18 }
  0x49   : > { %1157 = vrot.lane.b32.xlu0 %v577_v44, %s5362_s21 }
  0x4a   : > { %1539 = vrot.lane.b32.xlu1 %v578_v47, %s5366_s8 }
  0x4d   : > { %651 = vrot.lane.b32.xlu0 %v5433_v14, %s5361_s20  ;;  %v551_v14 = vld [vmem:[#allocation2 + $0x79] sm:$0xff] }
  0x4e   : > { %777 = vrot.lane.b32.xlu1 %v577_v44, %s5363_s22 }
  0x51   : > { %1159 = vrot.lane.b32.xlu0 %v578_v47, %s5362_s21 }
  0x52   : > { %1285 = vrot.lane.b32.xlu1 %v5520_v49, %s5364_s23 }
  0x55   : > { %779 = vrot.lane.b32.xlu0 %v578_v47, %s5363_s22 }
  0x56   : > { %905 = vrot.lane.b32.xlu1 %v5520_v49, %s5360_s19 }
  0x59   : > { %1287 = vrot.lane.b32.xlu0 %v5530_v52, %s5364_s23 }
  0x5a   : > { %1413 = vrot.lane.b32.xlu1 %v547_v51, %s5365_s5 }
  0x5d   : > { %907 = vrot.lane.b32.xlu0 %v5530_v52, %s5360_s19 }
  0x5e   : > { %1033 = vrot.lane.b32.xlu1 %v547_v51, %s5359_s18 }
  0x61   : > { %1415 = vrot.lane.b32.xlu0 %v548_v54, %s5365_s5 }
  0x62   : > { %1541 = vrot.lane.b32.xlu1 %v579_v53, %s5366_s8 }
  0x65   : > { %653 = vrot.lane.b32.xlu0 %v547_v51, %s5361_s20  ;;  %v190_v51 = vld [vmem:[%s5404_s17 + $0x98] sm:$0xff] }
  0x66   : > { %1035 = vrot.lane.b32.xlu1 %v548_v54, %s5359_s18  ;;  %224 = vst.msk [vmem:[#allocation2 + $0xf9] sm:$0xff] %vm204_vm0, %v190_v51 }
  0x69   : > { %1161 = vrot.lane.b32.xlu0 %v579_v53, %s5362_s21 }
  0x6a   : > { %1543 = vrot.lane.b32.xlu1 %v580_v57, %s5366_s8 }
  0x6d   : > { %655 = vrot.lane.b32.xlu0 %v548_v54, %s5361_s20 }
  0x6e   : > { %781 = vrot.lane.b32.xlu1 %v579_v53, %s5363_s22 }
  0x71   : > { %1163 = vrot.lane.b32.xlu0 %v580_v57, %s5362_s21 }
  0x72   : > { %1289 = vrot.lane.b32.xlu1 %v5550_v59, %s5364_s23 }
  0x75   : > { %783 = vrot.lane.b32.xlu0 %v580_v57, %s5363_s22 }
  0x76   : > { %909 = vrot.lane.b32.xlu1 %v5550_v59, %s5360_s19 }
  0x79   : > { %1291 = vrot.lane.b32.xlu0 %v5560_v62, %s5364_s23 }
  0x7a   : > { %1417 = vrot.lane.b32.xlu1 %v549_v61, %s5365_s5 }
  0x7d   : > { %911 = vrot.lane.b32.xlu0 %v5560_v62, %s5360_s19 }
  0x7e   : > { %1037 = vrot.lane.b32.xlu1 %v549_v61, %s5359_s18 }
  0x81   : > { %1419 = vrot.lane.b32.xlu0 %v550_v0, %s5365_s5 }
  0x82   : > { %1545 = vrot.lane.b32.xlu1 %v581_v63, %s5366_s8 }
  0x85   : > { %657 = vrot.lane.b32.xlu0 %v549_v61, %s5361_s20  ;;  %v5653_v61 = vld [vmem:[#allocation2 + $0x98] sm:$0xff] }
  0x86   : > { %1039 = vrot.lane.b32.xlu1 %v550_v0, %s5359_s18 }
  0x89   : > { %1165 = vrot.lane.b32.xlu0 %v581_v63, %s5362_s21 }
  0x8a   : > { %1547 = vrot.lane.b32.xlu1 %v582_v3, %s5366_s8 }
  0x8b   : > { %v1026_v5 = vpop.permute.xlu0 %1025 }
  0x8c   : > { %v5578_v6 = vpop.permute.xlu1 %899 }
  0x8d   : > { %659 = vrot.lane.b32.xlu0 %v550_v0, %s5361_s20 }
  0x8e   : > { %785 = vrot.lane.b32.xlu1 %v581_v63, %s5363_s22 }
  0x8f   : > { %v5584_v8 = vpop.permute.xlu0 %1027 }
  0x90   : > { %v5586_v9 = vpop.permute.xlu1 %645 }
  0x91   : > { %1167 = vrot.lane.b32.xlu0 %v582_v3, %s5362_s21 }
  0x92   : > { %1293 = vrot.lane.b32.xlu1 %v5582_v7, %s5364_s23 }
  0x93   : > { %v5593_v12 = vpop.permute.xlu0 %647 }
  0x94   : > { %v1154_v13 = vpop.permute.xlu1 %1153 }
  0x95   : > { %787 = vrot.lane.b32.xlu0 %v582_v3, %s5363_s22 }
  0x96   : > { %913 = vrot.lane.b32.xlu1 %v5582_v7, %s5360_s19 }
  0x97   : > { %v642_v16 = vpop.permute.xlu0 %641 }
  0x98   : > { %v5600_v17 = vpop.permute.xlu1 %773  ;;  %v1633_v30 = vsel %vm204_vm0, %v321_v28, %v642_v16  ;;  %v295_v16 = vld [vmem:[#allocation2 + $0xff] sm:$0x1]  ;;  %v1635_v28 = vsel %vm204_vm0, %v5463_v33, %v5586_v9  ;;  %v192_v9 = vld [vmem:[%s5404_s17 + $0xa8] sm:$0xff] }
  0x99   : > { %1295 = vrot.lane.b32.xlu0 %v5598_v15, %s5364_s23  ;;  %313 = vst.msk [vmem:[#allocation2 + $0x101] sm:$0x1] %vm266_vm1, %v295_v16 }
  0x9a   : > { %1421 = vrot.lane.b32.xlu1 %v551_v14, %s5365_s5  ;;  %226 = vst.msk [vmem:[#allocation2 + $0x111] sm:$0xff] %vm204_vm0, %v192_v9  ;;  %v5797_v9 = vld [vmem:[#allocation2 + $0xc8] sm:$0xff] }
  0x9b   : > { %v644_v18 = vpop.permute.xlu0 %643 }
  0x9c   : > { %v770_v19 = vpop.permute.xlu1 %769  ;;  %v1634_v43 = vsel %vm204_vm0, %v322_v38, %v644_v18  ;;  %v191_v18 = vld [vmem:[%s5404_s17 + $0xa0] sm:$0xff] }
  0x9d   : > { %915 = vrot.lane.b32.xlu0 %v5598_v15, %s5360_s19  ;;  %v1666_v35 = vsel %vm1665_vm4, %v1633_v30, %v770_v19  ;;  %225 = vst.msk [vmem:[#allocation2 + $0x109] sm:$0xff] %vm204_vm0, %v191_v18  ;;  %v5695_v30 = vld [vmem:[#allocation2 + $0xa8] sm:$0xff] }
  0x9e   : > { %1041 = vrot.lane.b32.xlu1 %v551_v14, %s5359_s18 }
  0x9f   : > { %v898_v23 = vpop.permute.xlu0 %897 }
  0xa0   : > { %v1282_v22 = vpop.permute.xlu1 %1281  ;;  %v1699_v36 = vsel %vm1698_vm3, %v1666_v35, %v898_v23 }
  0xa1   : > { %1423 = vrot.lane.b32.xlu0 %v552_v21, %s5365_s5  ;;  %v1732_v42 = vsel %vm1731_vm5, %v1699_v36, %v1026_v5 }
  0xa2   : > { %1549 = vrot.lane.b32.xlu1 %v583_v20, %s5366_s8  ;;  %v1765_v46 = vsel %vm1764_vm6, %v1732_v42, %v1154_v13  ;;  %v1636_v42 = vsel %vm204_vm0, %v5426_v11, %v5593_v12 }
  0xa3   : > { %v1156_v27 = vpop.permute.xlu0 %1155  ;;  %v1798_v53 = vsel %vm1797_vm7, %v1765_v46, %v1282_v22  ;;  %v5723_v46 = vld [vmem:[#allocation2 + $0xb0] sm:$0xff] }
  0xa4   : > { %v5613_v26 = vpop.permute.xlu1 %901  ;;  %v259_v24 = vld [vmem:[#allocation2 + $0x10a] sm:$0x1] }
  0xa5   : > { %661 = vrot.lane.b32.xlu0 %v551_v14, %s5361_s20  ;;  %278 = vst.msk [vmem:[#allocation2 + $0x108] sm:$0x1] %vm266_vm1, %v259_v24 }
  0xa6   : > { %1043 = vrot.lane.b32.xlu1 %v552_v21, %s5359_s18 }
  0xa7   : > { %v5618_v34 = vpop.permute.xlu0 %775 }
  0xa8   : > { %v772_v31 = vpop.permute.xlu1 %771 }
  0xa9   : > { %1169 = vrot.lane.b32.xlu0 %v583_v20, %s5362_s21  ;;  %v1667_v44 = vsel %vm1665_vm4, %v1634_v43, %v772_v31  ;;  %v1669_v43 = vsel %vm1665_vm4, %v1636_v42, %v5618_v34 }
  0xaa   : > { %1551 = vrot.lane.b32.xlu1 %v584_v29, %s5366_s8  ;;  %v1700_v50 = vsel %vm1698_vm3, %v1667_v44, %v5578_v6  ;;  %v555_v44 = vld [vmem:[#allocation2 + $0xa9] sm:$0xff] }
  0xab   : > { %v1284_v41 = vpop.permute.xlu0 %1283  ;;  %v1733_v57 = vsel %vm1731_vm5, %v1700_v50, %v5584_v8  ;;  %v585_v8 = vld [vmem:[#allocation2 + $0x92] sm:$0xff] }
  0xac   : > { %v1410_v39 = vpop.permute.xlu1 %1409  ;;  %v1766_v63 = vsel %vm1764_vm6, %v1733_v57, %v1156_v27  ;;  %v556_v57 = vld [vmem:[#allocation2 + $0xb1] sm:$0xff] }
  0xad   : > { %663 = vrot.lane.b32.xlu0 %v552_v21, %s5361_s20  ;;  %v1831_v54 = vsel %vm1830_vm8, %v1798_v53, %v1410_v39  ;;  %v1799_v2 = vsel %vm1797_vm7, %v1766_v63, %v1284_v41  ;;  %v586_v21 = vld [vmem:[#allocation2 + $0x9a] sm:$0xff]  ;;  %v296_v63 = vld [vmem:[#allocation2 + $0x117] sm:$0x1] }
  0xae   : > { %789 = vrot.lane.b32.xlu1 %v583_v20, %s5363_s22  ;;  %314 = vst.msk [vmem:[#allocation2 + $0x119] sm:$0x1] %vm266_vm1, %v296_v63 }
  0xaf   : > { %v5635_v48 = vpop.permute.xlu0 %903 }
  0xb0   : > { %v5633_v47 = vpop.permute.xlu1 %1029 }
  0xb1   : > { %1171 = vrot.lane.b32.xlu0 %v584_v29, %s5362_s21 }
  0xb2   : > { %1297 = vrot.lane.b32.xlu1 %v5630_v45, %s5364_s23 }
  0xb3   : > { %v1412_v56 = vpop.permute.xlu0 %1411 }
  0xb4   : > { %v1538_v55 = vpop.permute.xlu1 %1537  ;;  %v1832_v3 = vsel %vm1830_vm8, %v1799_v2, %v1412_v56  ;;  %v587_v56 = vld [vmem:[#allocation2 + $0xaa] sm:$0xff] }
  0xb5   : > { %v1864_v58 = vsel %vm1863_vm9, %v1831_v54, %v1538_v55  ;;  %791 = vrot.lane.b32.xlu0 %v584_v29, %s5363_s22  ;;  %v1668_v29 = vsel %vm1665_vm4, %v1635_v28, %v5600_v17 }
  0xb6   : > { %917 = vrot.lane.b32.xlu1 %v5630_v45, %s5360_s19  ;;  %5224 = vmatprep.mubr.msk.f32.mxu0 %vm1901_vm10, %v1864_v58  ;;  %v1701_v31 = vsel %vm1698_vm3, %v1668_v29, %v5613_v26 }
  0xb7   : > { %v5658_v1 = vpop.permute.xlu0 %649  ;;  %v1734_v37 = vsel %vm1731_vm5, %v1701_v31, %v5633_v47  ;;  %v1702_v47 = vsel %vm1698_vm3, %v1669_v43, %v5635_v48  ;;  %v589_v43 = vld [vmem:[#allocation2 + $0xc2] sm:$0xff] }
  0xb8   : > { %v5656_v0 = vpop.permute.xlu1 %1031  ;;  %v1637_v18 = vsel %vm204_vm0, %v5461_v32, %v5658_v1  ;;  %v194_v1 = vld [vmem:[%s5404_s17 + $0xb8] sm:$0xff] }
  0xb9   : > { %1299 = vrot.lane.b32.xlu0 %v5653_v61, %s5364_s23  ;;  %v1735_v11 = vsel %vm1731_vm5, %v1702_v47, %v5656_v0  ;;  %v193_v0 = vld [vmem:[%s5404_s17 + $0xb0] sm:$0xff]  ;;  %228 = vst.msk [vmem:[#allocation2 + $0x129] sm:$0xff] %vm204_vm0, %v194_v1  ;;  %v5871_v1 = vld [vmem:[#allocation2 + $0xe0] sm:$0xff] }
  0xba   : > { %1425 = vrot.lane.b32.xlu1 %v553_v60, %s5365_s5  ;;  %227 = vst.msk [vmem:[#allocation2 + $0x121] sm:$0xff] %vm204_vm0, %v193_v0 }
  0xbb   : > { %v1158_v5 = vpop.permute.xlu0 %1157 }
  0xbc   : > { %v1540_v4 = vpop.permute.xlu1 %1539  ;;  %v1767_v33 = vsel %vm1764_vm6, %v1734_v37, %v1158_v5 }
  0xbd   : > { %v1865_v6 = vsel %vm1863_vm9, %v1832_v3, %v1540_v4  ;;  %919 = vrot.lane.b32.xlu0 %v5653_v61, %s5360_s19  ;;  %v588_v4 = vld [vmem:[#allocation2 + $0xb2] sm:$0xff] }
  0xbe   : > { %1045 = vrot.lane.b32.xlu1 %v553_v60, %s5359_s18  ;;  %5225 = vmatmul.mubr.msk.f32.vlgmr.msra.gmra.mxu0 %vm1901_vm10, %v1865_v6 }
  0xbf   : > { %v5672_v14 = vpop.permute.xlu0 %651 }
  0xc0   : > { %v5670_v13 = vpop.permute.xlu1 %777 }
  0xc1   : > { %1427 = vrot.lane.b32.xlu0 %v554_v10, %s5365_s5 }
  0xc2   : > { %1553 = vrot.lane.b32.xlu1 %v585_v8, %s5366_s8 }
  0xc3   : > { %v1160_v20 = vpop.permute.xlu0 %1159 }
  0xc4   : > { %v1286_v19 = vpop.permute.xlu1 %1285  ;;  %v1768_v12 = vsel %vm1764_vm6, %v1735_v11, %v1160_v20  ;;  %v5769_v20 = vld [vmem:[#allocation2 + $0xc0] sm:$0xff]  ;;  %v297_v11 = vld [vmem:[#allocation2 + $0x12f] sm:$0x1] }
  0xc5   : > { %665 = vrot.lane.b32.xlu0 %v553_v60, %s5361_s20  ;;  %v1800_v17 = vsel %vm1797_vm7, %v1767_v33, %v1286_v19  ;;  %v1670_v19 = vsel %vm1665_vm4, %v1637_v18, %v5670_v13  ;;  %v557_v33 = vld [vmem:[#allocation2 + $0xc1] sm:$0xff]  ;;  %315 = vst.msk [vmem:[#allocation2 + $0x131] sm:$0x1] %vm266_vm1, %v297_v11 }
  0xc6   : > { %1047 = vrot.lane.b32.xlu1 %v554_v10, %s5359_s18 }
  0xc7   : > { %v5683_v23 = vpop.permute.xlu0 %779 }
  0xc8   : > { %v5681_v22 = vpop.permute.xlu1 %905 }
  0xc9   : > { %1173 = vrot.lane.b32.xlu0 %v585_v8, %s5362_s21 }
  0xca   : > { %1555 = vrot.lane.b32.xlu1 %v586_v21, %s5366_s8 }
  0xcb   : > { %v1288_v27 = vpop.permute.xlu0 %1287 }
  0xcc   : > { %v1414_v25 = vpop.permute.xlu1 %1413  ;;  %v1801_v34 = vsel %vm1797_vm7, %v1768_v12, %v1288_v27  ;;  %v195_v12 = vld [vmem:[%s5404_s17 + $0xc0] sm:$0xff] }
  0xcd   : > { %667 = vrot.lane.b32.xlu0 %v554_v10, %s5361_s20  ;;  %v1833_v26 = vsel %vm1830_vm8, %v1800_v17, %v1414_v25  ;;  %229 = vst.msk [vmem:[#allocation2 + $0x139] sm:$0xff] %vm204_vm0, %v195_v12 }
  0xce   : > { %793 = vrot.lane.b32.xlu1 %v585_v8, %s5363_s22  ;;  %v260_v8 = vld [vmem:[#allocation2 + $0x122] sm:$0x1] }
  0xcf   : > { %v5701_v36 = vpop.permute.xlu0 %907  ;;  %279 = vst.msk [vmem:[#allocation2 + $0x120] sm:$0x1] %vm266_vm1, %v260_v8 }
  0xd0   : > { %v5699_v35 = vpop.permute.xlu1 %1033 }
  0xd1   : > { %1175 = vrot.lane.b32.xlu0 %v586_v21, %s5362_s21 }
  0xd2   : > { %1301 = vrot.lane.b32.xlu1 %v5695_v30, %s5364_s23 }
  0xd3   : > { %v1416_v39 = vpop.permute.xlu0 %1415 }
  0xd4   : > { %v1542_v38 = vpop.permute.xlu1 %1541  ;;  %v1834_v53 = vsel %vm1830_vm8, %v1801_v34, %v1416_v39 }
  0xd5   : > { %v1866_v41 = vsel %vm1863_vm9, %v1833_v26, %v1542_v38  ;;  %795 = vrot.lane.b32.xlu0 %v586_v21, %s5363_s22  ;;  %v1703_v21 = vsel %vm1698_vm3, %v1670_v19, %v5681_v22 }
  0xd6   : > { %921 = vrot.lane.b32.xlu1 %v5695_v30, %s5360_s19  ;;  %5227 = vmatprep.mubr.msk.f32.mxu0 %vm1901_vm10, %v1866_v41  ;;  %v1736_v27 = vsel %vm1731_vm5, %v1703_v21, %v5699_v35  ;;  %v1638_v35 = vsel %vm204_vm0, %v5485_v40, %v5672_v14 }
  0xd7   : > { %v5729_v51 = vpop.permute.xlu0 %653  ;;  %v1671_v37 = vsel %vm1665_vm4, %v1638_v35, %v5683_v23 }
  0xd8   : > { %v5727_v50 = vpop.permute.xlu1 %1035  ;;  %v1704_v17 = vsel %vm1698_vm3, %v1671_v37, %v5701_v36  ;;  %v1639_v0 = vsel %vm204_vm0, %v5520_v49, %v5729_v51  ;;  %v196_v51 = vld [vmem:[%s5404_s17 + $0xc8] sm:$0xff]  ;;  %v591_v37 = vld [vmem:[#allocation2 + $0xda] sm:$0xff] }
  0xd9   : > { %1303 = vrot.lane.b32.xlu0 %v5723_v46, %s5364_s23  ;;  %v1737_v40 = vsel %vm1731_vm5, %v1704_v17, %v5727_v50  ;;  %230 = vst.msk [vmem:[#allocation2 + $0x141] sm:$0xff] %vm204_vm0, %v196_v51  ;;  %v5945_v51 = vld [vmem:[#allocation2 + $0xf8] sm:$0xff] }
  0xda   : > { %1429 = vrot.lane.b32.xlu1 %v555_v44, %s5365_s5 }
  0xdb   : > { %v1162_v54 = vpop.permute.xlu0 %1161 }
  0xdc   : > { %v1544_v48 = vpop.permute.xlu1 %1543  ;;  %v1769_v32 = vsel %vm1764_vm6, %v1736_v27, %v1162_v54 }
  0xdd   : > { %v1867_v55 = vsel %vm1863_vm9, %v1834_v53, %v1544_v48  ;;  %923 = vrot.lane.b32.xlu0 %v5723_v46, %s5360_s19  ;;  %v590_v48 = vld [vmem:[#allocation2 + $0xca] sm:$0xff] }
  0xde   : > { %1049 = vrot.lane.b32.xlu1 %v555_v44, %s5359_s18  ;;  %5228 = vmatmul.mubr.msk.f32.gmra.mxu0 %vm1901_vm10, %v1867_v55 }
  0xdf   : > { %v5746_v60 = vpop.permute.xlu0 %655 }
  0xe0   : > { %v5744_v58 = vpop.permute.xlu1 %781 }
  0xe1   : > { %1431 = vrot.lane.b32.xlu0 %v556_v57, %s5365_s5 }
  0xe2   : > { %1557 = vrot.lane.b32.xlu1 %v587_v56, %s5366_s8 }
  0xe3   : > { %v1164_v3 = vpop.permute.xlu0 %1163 }
  0xe4   : > { %v1290_v2 = vpop.permute.xlu1 %1289  ;;  %v1770_v14 = vsel %vm1764_vm6, %v1737_v40, %v1164_v3  ;;  %v5843_v3 = vld [vmem:[#allocation2 + $0xd8] sm:$0xff]  ;;  %v298_v40 = vld [vmem:[#allocation2 + $0x147] sm:$0x1] }
  0xe5   : > { %669 = vrot.lane.b32.xlu0 %v555_v44, %s5361_s20  ;;  %v1802_v13 = vsel %vm1797_vm7, %v1769_v32, %v1290_v2  ;;  %v558_v44 = vld [vmem:[#allocation2 + $0xc9] sm:$0xff]  ;;  %v1672_v2 = vsel %vm1665_vm4, %v1639_v0, %v5744_v58  ;;  %v559_v32 = vld [vmem:[#allocation2 + $0xd9] sm:$0xff]  ;;  %316 = vst.msk [vmem:[#allocation2 + $0x149] sm:$0x1] %vm266_vm1, %v298_v40 }
  0xe6   : > { %1051 = vrot.lane.b32.xlu1 %v556_v57, %s5359_s18 }
  0xe7   : > { %v5757_v6 = vpop.permute.xlu0 %783 }
  0xe8   : > { %v5755_v5 = vpop.permute.xlu1 %909 }
  0xe9   : > { %1177 = vrot.lane.b32.xlu0 %v587_v56, %s5362_s21 }
  0xea   : > { %1559 = vrot.lane.b32.xlu1 %v588_v4, %s5366_s8 }
  0xeb   : > { %v1292_v16 = vpop.permute.xlu0 %1291 }
  0xec   : > { %v1418_v10 = vpop.permute.xlu1 %1417  ;;  %v1803_v23 = vsel %vm1797_vm7, %v1770_v14, %v1292_v16  ;;  %v197_v14 = vld [vmem:[%s5404_s17 + $0xd0] sm:$0xff] }
  0xed   : > { %671 = vrot.lane.b32.xlu0 %v556_v57, %s5361_s20  ;;  %v1835_v22 = vsel %vm1830_vm8, %v1802_v13, %v1418_v10  ;;  %231 = vst.msk [vmem:[#allocation2 + $0x151] sm:$0xff] %vm204_vm0, %v197_v14 }
  0xee   : > { %797 = vrot.lane.b32.xlu1 %v587_v56, %s5363_s22  ;;  %v261_v56 = vld [vmem:[#allocation2 + $0x13a] sm:$0x1] }
  0xef   : > { %v5775_v25 = vpop.permute.xlu0 %911  ;;  %280 = vst.msk [vmem:[#allocation2 + $0x138] sm:$0x1] %vm266_vm1, %v261_v56 }
  0xf0   : > { %v5773_v24 = vpop.permute.xlu1 %1037 }
  0xf1   : > { %1179 = vrot.lane.b32.xlu0 %v588_v4, %s5362_s21 }
  0xf2   : > { %1305 = vrot.lane.b32.xlu1 %v5769_v20, %s5364_s23 }
  0xf3   : > { %v1420_v29 = vpop.permute.xlu0 %1419 }
  0xf4   : > { %v1546_v28 = vpop.permute.xlu1 %1545  ;;  %v1836_v39 = vsel %vm1830_vm8, %v1803_v23, %v1420_v29 }
  0xf5   : > { %v1868_v31 = vsel %vm1863_vm9, %v1835_v22, %v1546_v28  ;;  %799 = vrot.lane.b32.xlu0 %v588_v4, %s5363_s22  ;;  %v1705_v4 = vsel %vm1698_vm3, %v1672_v2, %v5755_v5 }
  0xf6   : > { %925 = vrot.lane.b32.xlu1 %v5769_v20, %s5360_s19  ;;  %5230 = vmatprep.mubr.msk.f32.mxu0 %vm1901_vm10, %v1868_v31  ;;  %v1738_v16 = vsel %vm1731_vm5, %v1705_v4, %v5773_v24  ;;  %v1640_v24 = vsel %vm204_vm0, %v5530_v52, %v5746_v60 }
  0xf7   : > { %v5803_v38 = vpop.permute.xlu0 %657  ;;  %v1673_v27 = vsel %vm1665_vm4, %v1640_v24, %v5757_v6 }
  0xf8   : > { %v5801_v26 = vpop.permute.xlu1 %1039  ;;  %v1706_v13 = vsel %vm1698_vm3, %v1673_v27, %v5775_v25  ;;  %v1641_v12 = vsel %vm204_vm0, %v5550_v59, %v5803_v38  ;;  %v198_v38 = vld [vmem:[%s5404_s17 + $0xd8] sm:$0xff] }
  0xf9   : > { %1307 = vrot.lane.b32.xlu0 %v5797_v9, %s5364_s23  ;;  %v1739_v52 = vsel %vm1731_vm5, %v1706_v13, %v5801_v26  ;;  %232 = vst.msk [vmem:[#allocation2 + $0x159] sm:$0xff] %vm204_vm0, %v198_v38  ;;  %v593_v27 = vld [vmem:[#allocation2 + $0xf2] sm:$0xff] }
  0xfa   : > { %1433 = vrot.lane.b32.xlu1 %v557_v33, %s5365_s5  ;;  %v6019_v38 = vld [vmem:[#allocation2 + $0x110] sm:$0xff] }
  0xfb   : > { %v1166_v41 = vpop.permute.xlu0 %1165 }
  0xfc   : > { %v1548_v36 = vpop.permute.xlu1 %1547  ;;  %v1771_v49 = vsel %vm1764_vm6, %v1738_v16, %v1166_v41 }
  0xfd   : > { %v1869_v42 = vsel %vm1863_vm9, %v1836_v39, %v1548_v36  ;;  %927 = vrot.lane.b32.xlu0 %v5797_v9, %s5360_s19  ;;  %v592_v36 = vld [vmem:[#allocation2 + $0xe2] sm:$0xff] }
  0xfe   : > { %1053 = vrot.lane.b32.xlu1 %v557_v33, %s5359_s18  ;;  %5231 = vmatmul.mubr.msk.f32.gmra.mxu0 %vm1901_vm10, %v1869_v42 }
  0xff   : > { %v5820_v50 = vpop.permute.xlu0 %659 }
 0x100   : > { %v5818_v47 = vpop.permute.xlu1 %785 }
 0x101   : > { %1435 = vrot.lane.b32.xlu0 %v558_v44, %s5365_s5 }
 0x102   : > { %1561 = vrot.lane.b32.xlu1 %v589_v43, %s5366_s8 }
 0x103   : > { %v1168_v53 = vpop.permute.xlu0 %1167 }
 0x104   : > { %v1294_v34 = vpop.permute.xlu1 %1293  ;;  %v1772_v60 = vsel %vm1764_vm6, %v1739_v52, %v1168_v53  ;;  %v5917_v53 = vld [vmem:[#allocation2 + $0xf0] sm:$0xff]  ;;  %v299_v52 = vld [vmem:[#allocation2 + $0x15f] sm:$0x1] }
 0x105   : > { %673 = vrot.lane.b32.xlu0 %v557_v33, %s5361_s20  ;;  %v1804_v58 = vsel %vm1797_vm7, %v1771_v49, %v1294_v34  ;;  %v560_v33 = vld [vmem:[#allocation2 + $0xe1] sm:$0xff]  ;;  %v1674_v34 = vsel %vm1665_vm4, %v1641_v12, %v5818_v47  ;;  %v561_v49 = vld [vmem:[#allocation2 + $0xf1] sm:$0xff]  ;;  %317 = vst.msk [vmem:[#allocation2 + $0x161] sm:$0x1] %vm266_vm1, %v299_v52 }
 0x106   : > { %1055 = vrot.lane.b32.xlu1 %v558_v44, %s5359_s18 }
 0x107   : > { %v5831_v55 = vpop.permute.xlu0 %787 }
 0x108   : > { %v5829_v54 = vpop.permute.xlu1 %913 }
 0x109   : > { %1181 = vrot.lane.b32.xlu0 %v589_v43, %s5362_s21 }
 0x10a   : > { %1563 = vrot.lane.b32.xlu1 %v590_v48, %s5366_s8 }
 0x10b   : > { %v1296_v63 = vpop.permute.xlu0 %1295 }
 0x10c   : > { %v1422_v57 = vpop.permute.xlu1 %1421  ;;  %v1805_v6 = vsel %vm1797_vm7, %v1772_v60, %v1296_v63  ;;  %v199_v60 = vld [vmem:[%s5404_s17 + $0xe0] sm:$0xff] }
 0x10d   : > { %675 = vrot.lane.b32.xlu0 %v558_v44, %s5361_s20  ;;  %v1837_v5 = vsel %vm1830_vm8, %v1804_v58, %v1422_v57  ;;  %233 = vst.msk [vmem:[#allocation2 + $0x169] sm:$0xff] %vm204_vm0, %v199_v60 }
 0x10e   : > { %801 = vrot.lane.b32.xlu1 %v589_v43, %s5363_s22  ;;  %v262_v43 = vld [vmem:[#allocation2 + $0x152] sm:$0x1] }
 0x10f   : > { %v5849_v10 = vpop.permute.xlu0 %915  ;;  %281 = vst.msk [vmem:[#allocation2 + $0x150] sm:$0x1] %vm266_vm1, %v262_v43 }
 0x110   : > { %v5847_v8 = vpop.permute.xlu1 %1041 }
 0x111   : > { %1183 = vrot.lane.b32.xlu0 %v590_v48, %s5362_s21 }
 0x112   : > { %1309 = vrot.lane.b32.xlu1 %v5843_v3, %s5364_s23 }
 0x113   : > { %v1424_v19 = vpop.permute.xlu0 %1423 }
 0x114   : > { %v1550_v18 = vpop.permute.xlu1 %1549  ;;  %v1838_v29 = vsel %vm1830_vm8, %v1805_v6, %v1424_v19 }
 0x115   : > { %v1870_v21 = vsel %vm1863_vm9, %v1837_v5, %v1550_v18  ;;  %803 = vrot.lane.b32.xlu0 %v590_v48, %s5363_s22  ;;  %v1707_v48 = vsel %vm1698_vm3, %v1674_v34, %v5829_v54 }
 0x116   : > { %929 = vrot.lane.b32.xlu1 %v5843_v3, %s5360_s19  ;;  %5233 = vmatprep.mubr.msk.f32.mxu0 %vm1901_vm10, %v1870_v21  ;;  %v1740_v63 = vsel %vm1731_vm5, %v1707_v48, %v5847_v8  ;;  %v1642_v8 = vsel %vm204_vm0, %v5560_v62, %v5820_v50 }
 0x117   : > { %v5877_v28 = vpop.permute.xlu0 %661  ;;  %v1675_v16 = vsel %vm1665_vm4, %v1642_v8, %v5831_v55 }
 0x118   : > { %v5875_v22 = vpop.permute.xlu1 %1043  ;;  %v1708_v58 = vsel %vm1698_vm3, %v1675_v16, %v5849_v10  ;;  %v1643_v14 = vsel %vm204_vm0, %v5582_v7, %v5877_v28  ;;  %v200_v28 = vld [vmem:[%s5404_s17 + $0xe8] sm:$0xff] }
 0x119   : > { %1311 = vrot.lane.b32.xlu0 %v5871_v1, %s5364_s23  ;;  %v1741_v62 = vsel %vm1731_vm5, %v1708_v58, %v5875_v22  ;;  %234 = vst.msk [vmem:[#allocation2 + $0x171] sm:$0xff] %vm204_vm0, %v200_v28  ;;  %v564_v58 = vld [vmem:[#allocation2 + $0x111] sm:$0xff] }
 0x11a   : > { %1437 = vrot.lane.b32.xlu1 %v559_v32, %s5365_s5 }
 0x11b   : > { %v1170_v31 = vpop.permute.xlu0 %1169 }
 0x11c   : > { %v1552_v25 = vpop.permute.xlu1 %1551  ;;  %v1773_v59 = vsel %vm1764_vm6, %v1740_v63, %v1170_v31 }
 0x11d   : > { %v1871_v35 = vsel %vm1863_vm9, %v1838_v29, %v1552_v25  ;;  %931 = vrot.lane.b32.xlu0 %v5871_v1, %s5360_s19  ;;  %v594_v25 = vld [vmem:[#allocation2 + $0xfa] sm:$0xff] }
 0x11e   : > { %1057 = vrot.lane.b32.xlu1 %v559_v32, %s5359_s18  ;;  %5234 = vmatmul.mubr.msk.f32.gmra.mxu0 %vm1901_vm10, %v1871_v35 }
 0x11f   : > { %v5894_v26 = vpop.permute.xlu0 %663 }
 0x120   : > { %v5892_v17 = vpop.permute.xlu1 %789 }
 0x121   : > { %1439 = vrot.lane.b32.xlu0 %v560_v33, %s5365_s5 }
 0x122   : > { %1565 = vrot.lane.b32.xlu1 %v591_v37, %s5366_s8 }
 0x123   : > { %v1172_v39 = vpop.permute.xlu0 %1171 }
 0x124   : > { %v1298_v23 = vpop.permute.xlu1 %1297  ;;  %v1774_v50 = vsel %vm1764_vm6, %v1741_v62, %v1172_v39  ;;  %v5991_v39 = vld [vmem:[#allocation2 + $0x108] sm:$0xff] }
 0x125   : > { %677 = vrot.lane.b32.xlu0 %v559_v32, %s5361_s20  ;;  %v1806_v47 = vsel %vm1797_vm7, %v1773_v59, %v1298_v23  ;;  %v562_v32 = vld [vmem:[#allocation2 + $0xf9] sm:$0xff]  ;;  %v1676_v23 = vsel %vm1665_vm4, %v1643_v14, %v5892_v17  ;;  %v563_v59 = vld [vmem:[#allocation2 + $0x109] sm:$0xff] }
 0x126   : > { %1059 = vrot.lane.b32.xlu1 %v560_v33, %s5359_s18 }
 0x127   : > { %v5905_v42 = vpop.permute.xlu0 %791 }
 0x128   : > { %v5903_v41 = vpop.permute.xlu1 %917 }
 0x129   : > { %1185 = vrot.lane.b32.xlu0 %v591_v37, %s5362_s21 }
 0x12a   : > { %1567 = vrot.lane.b32.xlu1 %v592_v36, %s5366_s8 }
 0x12b   : > { %v1300_v11 = vpop.permute.xlu0 %1299 }
 0x12c   : > { %v1426_v44 = vpop.permute.xlu1 %1425  ;;  %v1807_v55 = vsel %vm1797_vm7, %v1774_v50, %v1300_v11  ;;  %v6050_v50 = vld [vmem:[#allocation2 + $0x171] sm:$0xff] }
 0x12d   : > { %679 = vrot.lane.b32.xlu0 %v560_v33, %s5361_s20  ;;  %v1839_v54 = vsel %vm1830_vm8, %v1806_v47, %v1426_v44  ;;  %247 = vst.msk [vmem:[#allocation2 + $0x1a1] sm:$0xff] %vm204_vm0, %v6050_v50 }
 0x12e   : > { %805 = vrot.lane.b32.xlu1 %v591_v37, %s5363_s22  ;;  %v263_v37 = vld [vmem:[#allocation2 + $0x16a] sm:$0x1] }
 0x12f   : > { %v5923_v57 = vpop.permute.xlu0 %919  ;;  %282 = vst.msk [vmem:[#allocation2 + $0x168] sm:$0x1] %vm266_vm1, %v263_v37  ;;  %v6073_v37 = vld [vmem:[#allocation2 + $0x120] sm:$0xff] }
 0x130   : > { %v5921_v56 = vpop.permute.xlu1 %1045 }
 0x131   : > { %1187 = vrot.lane.b32.xlu0 %v592_v36, %s5362_s21 }
 0x132   : > { %1313 = vrot.lane.b32.xlu1 %v5917_v53, %s5364_s23 }
 0x133   : > { %v1428_v2 = vpop.permute.xlu0 %1427 }
 0x134   : > { %v1554_v0 = vpop.permute.xlu1 %1553  ;;  %v1840_v19 = vsel %vm1830_vm8, %v1807_v55, %v1428_v2  ;;  %v300_v55 = vld [vmem:[#allocation2 + $0x177] sm:$0x1] }
 0x135   : > { %v1872_v4 = vsel %vm1863_vm9, %v1839_v54, %v1554_v0  ;;  %807 = vrot.lane.b32.xlu0 %v592_v36, %s5363_s22  ;;  %v1709_v36 = vsel %vm1698_vm3, %v1676_v23, %v5903_v41  ;;  %318 = vst.msk [vmem:[#allocation2 + $0x179] sm:$0x1] %vm266_vm1, %v300_v55 }
 0x136   : > { %933 = vrot.lane.b32.xlu1 %v5917_v53, %s5360_s19  ;;  %5236 = vmatprep.mubr.msk.f32.mxu0 %vm1901_vm10, %v1872_v4  ;;  %v1742_v11 = vsel %vm1731_vm5, %v1709_v36, %v5921_v56  ;;  %v1644_v56 = vsel %vm204_vm0, %v5598_v15, %v5894_v26  ;;  %v6029_v26 = vld [vmem:[#allocation2 + $0x169] sm:$0xff] }
 0x137   : > { %v5951_v18 = vpop.permute.xlu0 %665  ;;  %v1677_v63 = vsel %vm1665_vm4, %v1644_v56, %v5905_v42  ;;  %246 = vst.msk [vmem:[#allocation2 + $0x199] sm:$0xff] %vm204_vm0, %v6029_v26 }
 0x138   : > { %v5949_v5 = vpop.permute.xlu1 %1047  ;;  %v1710_v47 = vsel %vm1698_vm3, %v1677_v63, %v5923_v57 }
 0x139   : > { %1315 = vrot.lane.b32.xlu0 %v5945_v51, %s5364_s23  ;;  %v1743_v15 = vsel %vm1731_vm5, %v1710_v47, %v5949_v5  ;;  %v597_v47 = vld [vmem:[#allocation2 + $0x122] sm:$0xff] }
 0x13a   : > { %1441 = vrot.lane.b32.xlu1 %v561_v49, %s5365_s5 }
 0x13b   : > { %v1174_v21 = vpop.permute.xlu0 %1173 }
 0x13c   : > { %v1556_v10 = vpop.permute.xlu1 %1555  ;;  %v1775_v7 = vsel %vm1764_vm6, %v1742_v11, %v1174_v21 }
 0x13d   : > { %v1873_v24 = vsel %vm1863_vm9, %v1840_v19, %v1556_v10  ;;  %935 = vrot.lane.b32.xlu0 %v5945_v51, %s5360_s19  ;;  %v201_v19 = vld [vmem:[%s5404_s17 + $0xf0] sm:$0xff] }
 0x13e   : > { %1061 = vrot.lane.b32.xlu1 %v561_v49, %s5359_s18  ;;  %5237 = vmatmul.mubr.msk.f32.gmra.mxu0 %vm1901_vm10, %v1873_v24  ;;  %235 = vst.msk [vmem:[#allocation2 + $0x181] sm:$0xff] %vm204_vm0, %v201_v19  ;;  %v596_v24 = vld [vmem:[#allocation2 + $0x112] sm:$0xff] }
 0x13f   : > { %v5968_v22 = vpop.permute.xlu0 %667 }
 0x140   : > { %v5966_v13 = vpop.permute.xlu1 %793 }
 0x141   : > { %1443 = vrot.lane.b32.xlu0 %v562_v32, %s5365_s5 }
 0x142   : > { %1569 = vrot.lane.b32.xlu1 %v593_v27, %s5366_s8 }
 0x143   : > { %v1176_v29 = vpop.permute.xlu0 %1175 }
 0x144   : > { %v1302_v6 = vpop.permute.xlu1 %1301  ;;  %v1776_v2 = vsel %vm1764_vm6, %v1743_v15, %v1176_v29  ;;  %v1645_v29 = vsel %vm204_vm0, %v5630_v45, %v5951_v18  ;;  %v202_v18 = vld [vmem:[%s5404_s17 + $0xf8] sm:$0xff] }
 0x145   : > { %681 = vrot.lane.b32.xlu0 %v561_v49, %s5361_s20  ;;  %v1808_v17 = vsel %vm1797_vm7, %v1775_v7, %v1302_v6  ;;  %v595_v49 = vld [vmem:[#allocation2 + $0x10a] sm:$0xff]  ;;  %v264_v52 = vld [vmem:[#allocation2 + $0x182] sm:$0x1]  ;;  %236 = vst.msk [vmem:[#allocation2 + $0x189] sm:$0xff] %vm204_vm0, %v202_v18  ;;  %v567_v18 = vld [vmem:[#allocation2 + $0x139] sm:$0xff] }
 0x146   : > { %1063 = vrot.lane.b32.xlu1 %v562_v32, %s5359_s18  ;;  %283 = vst.msk [vmem:[#allocation2 + $0x180] sm:$0x1] %vm266_vm1, %v264_v52  ;;  %v6145_v52 = vld [vmem:[#allocation2 + $0x138] sm:$0xff] }
 0x147   : > { %v5979_v35 = vpop.permute.xlu0 %795 }
 0x148   : > { %v5977_v31 = vpop.permute.xlu1 %921 }
 0x149   : > { %1189 = vrot.lane.b32.xlu0 %v593_v27, %s5362_s21 }
 0x14a   : > { %1571 = vrot.lane.b32.xlu1 %v594_v25, %s5366_s8 }
 0x14b   : > { %v1304_v40 = vpop.permute.xlu0 %1303 }
 0x14c   : > { %v1430_v33 = vpop.permute.xlu1 %1429  ;;  %v1809_v42 = vsel %vm1797_vm7, %v1776_v2, %v1304_v40 }
 0x14d   : > { %683 = vrot.lane.b32.xlu0 %v562_v32, %s5361_s20  ;;  %v1841_v41 = vsel %vm1830_vm8, %v1808_v17, %v1430_v33  ;;  %v565_v17 = vld [vmem:[#allocation2 + $0x121] sm:$0xff] }
 0x14e   : > { %809 = vrot.lane.b32.xlu1 %v593_v27, %s5363_s22 }
 0x14f   : > { %v5997_v44 = vpop.permute.xlu0 %923 }
 0x150   : > { %v5995_v43 = vpop.permute.xlu1 %1049 }
 0x151   : > { %1191 = vrot.lane.b32.xlu0 %v594_v25, %s5362_s21 }
 0x152   : > { %1317 = vrot.lane.b32.xlu1 %v5991_v39, %s5364_s23 }
 0x153   : > { %v1432_v34 = vpop.permute.xlu0 %1431 }
 0x154   : > { %v1558_v12 = vpop.permute.xlu1 %1557  ;;  %v1842_v57 = vsel %vm1830_vm8, %v1809_v42, %v1432_v34  ;;  %v301_v42 = vld [vmem:[#allocation2 + $0x18f] sm:$0x1] }
 0x155   : > { %v1874_v48 = vsel %vm1863_vm9, %v1841_v41, %v1558_v12  ;;  %811 = vrot.lane.b32.xlu0 %v594_v25, %s5363_s22  ;;  %v1678_v25 = vsel %vm1665_vm4, %v1645_v29, %v5966_v13  ;;  %v6101_v41 = vld [vmem:[#allocation2 + $0x128] sm:$0xff]  ;;  %319 = vst.msk [vmem:[#allocation2 + $0x191] sm:$0x1] %vm266_vm1, %v301_v42 }
 0x156   : > { %937 = vrot.lane.b32.xlu1 %v5991_v39, %s5360_s19  ;;  %5239 = vmatprep.mubr.msk.f32.mxu0 %vm1901_vm10, %v1874_v48  ;;  %v1711_v33 = vsel %vm1698_vm3, %v1678_v25, %v5977_v31 }
 0x157   : > { %v6025_v0 = vpop.permute.xlu0 %669  ;;  %v1744_v23 = vsel %vm1731_vm5, %v1711_v33, %v5995_v43  ;;  %v1646_v43 = vsel %vm204_vm0, %v5653_v61, %v5968_v22 }
 0x158   : > { %v6023_v54 = vpop.permute.xlu1 %1051  ;;  %v1679_v28 = vsel %vm1665_vm4, %v1646_v43, %v5979_v35 }
 0x159   : > { %1319 = vrot.lane.b32.xlu0 %v6019_v38, %s5364_s23  ;;  %v1712_v12 = vsel %vm1698_vm3, %v1679_v28, %v5997_v44 }
 0x15a   : > { %1445 = vrot.lane.b32.xlu1 %v563_v59, %s5365_s5  ;;  %v1745_v61 = vsel %vm1731_vm5, %v1712_v12, %v6023_v54  ;;  %v566_v54 = vld [vmem:[#allocation2 + $0x129] sm:$0xff]  ;;  %v568_v12 = vld [vmem:[#allocation2 + $0x141] sm:$0xff] }
 0x15b   : > { %v1178_v8 = vpop.permute.xlu0 %1177 }
 0x15c   : > { %v1560_v4 = vpop.permute.xlu1 %1559  ;;  %v1777_v45 = vsel %vm1764_vm6, %v1744_v23, %v1178_v8  ;;  %v265_v8 = vld [vmem:[#allocation2 + $0x19a] sm:$0x1] }
 0x15d   : > { %v1875_v16 = vsel %vm1863_vm9, %v1842_v57, %v1560_v4  ;;  %939 = vrot.lane.b32.xlu0 %v6019_v38, %s5360_s19  ;;  %284 = vst.msk [vmem:[#allocation2 + $0x198] sm:$0x1] %vm266_vm1, %v265_v8 }
 0x15e   : > { %1065 = vrot.lane.b32.xlu1 %v563_v59, %s5359_s18  ;;  %5240 = vmatmul.mubr.msk.f32.gmra.mxu0 %vm1901_vm10, %v1875_v16  ;;  %v598_v16 = vld [vmem:[#allocation2 + $0x12a] sm:$0xff] }
 0x15f   : > { %v6046_v62 = vpop.permute.xlu0 %671 }
 0x160   : > { %v6044_v5 = vpop.permute.xlu1 %797 }
 0x161   : > { %1447 = vrot.lane.b32.xlu0 %v564_v58, %s5365_s5 }
 0x162   : > { %1573 = vrot.lane.b32.xlu1 %v595_v49, %s5366_s8 }
 0x163   : > { %v1180_v21 = vpop.permute.xlu0 %1179 }
 0x164   : > { %v1306_v10 = vpop.permute.xlu1 %1305  ;;  %v1778_v22 = vsel %vm1764_vm6, %v1745_v61, %v1180_v21  ;;  %v302_v21 = vld [vmem:[#allocation2 + $0x1a7] sm:$0x1] }
 0x165   : > { %685 = vrot.lane.b32.xlu0 %v563_v59, %s5361_s20  ;;  %v1810_v13 = vsel %vm1797_vm7, %v1777_v45, %v1306_v10  ;;  %v1647_v10 = vsel %vm204_vm0, %v5695_v30, %v6025_v0  ;;  %320 = vst.msk [vmem:[#allocation2 + $0x1a9] sm:$0x1] %vm266_vm1, %v302_v21  ;;  %v1648_v45 = vsel %vm204_vm0, %v5723_v46, %v6046_v62 }
 0x166   : > { %1067 = vrot.lane.b32.xlu1 %v564_v58, %s5359_s18 }
 0x167   : > { %v6061_v32 = vpop.permute.xlu0 %799 }
 0x168   : > { %v6059_v27 = vpop.permute.xlu1 %925 }
 0x169   : > { %1193 = vrot.lane.b32.xlu0 %v595_v49, %s5362_s21 }
 0x16a   : > { %1575 = vrot.lane.b32.xlu1 %v596_v24, %s5366_s8 }
 0x16b   : > { %v1308_v6 = vpop.permute.xlu0 %1307 }
 0x16c   : > { %v1434_v60 = vpop.permute.xlu1 %1433  ;;  %v1811_v35 = vsel %vm1797_vm7, %v1778_v22, %v1308_v6 }
 0x16d   : > { %687 = vrot.lane.b32.xlu0 %v564_v58, %s5361_s20  ;;  %v1843_v31 = vsel %vm1830_vm8, %v1810_v13, %v1434_v60  ;;  %v6170_v13 = vld [vmem:[#allocation2 + $0x140] sm:$0xff] }
 0x16e   : > { %813 = vrot.lane.b32.xlu1 %v595_v49, %s5363_s22 }
 0x16f   : > { %v6079_v14 = vpop.permute.xlu0 %927 }
 0x170   : > { %v6077_v40 = vpop.permute.xlu1 %1053 }
 0x171   : > { %1195 = vrot.lane.b32.xlu0 %v596_v24, %s5362_s21 }
 0x172   : > { %1321 = vrot.lane.b32.xlu1 %v6073_v37, %s5364_s23 }
 0x173   : > { %v1436_v11 = vpop.permute.xlu0 %1435 }
 0x174   : > { %v1562_v36 = vpop.permute.xlu1 %1561  ;;  %v1844_v56 = vsel %vm1830_vm8, %v1811_v35, %v1436_v11 }
 0x175   : > { %v1876_v7 = vsel %vm1863_vm9, %v1843_v31, %v1562_v36  ;;  %815 = vrot.lane.b32.xlu0 %v596_v24, %s5363_s22  ;;  %v1680_v24 = vsel %vm1665_vm4, %v1647_v10, %v6044_v5 }
 0x176   : > { %941 = vrot.lane.b32.xlu1 %v6073_v37, %s5360_s19  ;;  %5242 = vmatprep.mubr.msk.f32.mxu0 %vm1901_vm10, %v1876_v7  ;;  %v1713_v60 = vsel %vm1698_vm3, %v1680_v24, %v6059_v27 }
 0x177   : > { %v6107_v48 = vpop.permute.xlu0 %673  ;;  %v1746_v30 = vsel %vm1731_vm5, %v1713_v60, %v6077_v40  ;;  %v1681_v40 = vsel %vm1665_vm4, %v1648_v45, %v6061_v32  ;;  %v569_v60 = vld [vmem:[#allocation2 + $0x151] sm:$0xff]  ;;  %v570_v45 = vld [vmem:[#allocation2 + $0x159] sm:$0xff] }
 0x178   : > { %v6105_v34 = vpop.permute.xlu1 %1055  ;;  %v1714_v31 = vsel %vm1698_vm3, %v1681_v40, %v6079_v14 }
 0x179   : > { %1323 = vrot.lane.b32.xlu0 %v6101_v41, %s5364_s23  ;;  %v1747_v46 = vsel %vm1731_vm5, %v1714_v31, %v6105_v34 }
 0x17a   : > { %1449 = vrot.lane.b32.xlu1 %v565_v17, %s5365_s5 }
 0x17b   : > { %v1182_v44 = vpop.permute.xlu0 %1181 }
 0x17c   : > { %v1564_v63 = vpop.permute.xlu1 %1563  ;;  %v1779_v0 = vsel %vm1764_vm6, %v1746_v30, %v1182_v44 }
 0x17d   : > { %v1877_v59 = vsel %vm1863_vm9, %v1844_v56, %v1564_v63  ;;  %943 = vrot.lane.b32.xlu0 %v6101_v41, %s5360_s19  ;;  %v600_v56 = vld [vmem:[#allocation2 + $0x142] sm:$0xff] }
 0x17e   : > { %1069 = vrot.lane.b32.xlu1 %v565_v17, %s5359_s18  ;;  %5243 = vmatmul.mubr.msk.f32.gmra.mxu0 %vm1901_vm10, %v1877_v59 }
 0x17f   : > { %v6124_v2 = vpop.permute.xlu0 %675 }
 0x180   : > { %v6122_v15 = vpop.permute.xlu1 %801  ;;  %v1650_v21 = vsel %vm204_vm0, %v5797_v9, %v6124_v2 }
 0x181   : > { %1451 = vrot.lane.b32.xlu0 %v566_v54, %s5365_s5 }
 0x182   : > { %1577 = vrot.lane.b32.xlu1 %v597_v47, %s5366_s8 }
 0x183   : > { %v1184_v4 = vpop.permute.xlu0 %1183 }
 0x184   : > { %v1310_v57 = vpop.permute.xlu1 %1309  ;;  %v1780_v62 = vsel %vm1764_vm6, %v1747_v46, %v1184_v4  ;;  %v602_v46 = vld [vmem:[#allocation2 + $0x15a] sm:$0xff] }
 0x185   : > { %689 = vrot.lane.b32.xlu0 %v565_v17, %s5361_s20  ;;  %v1812_v5 = vsel %vm1797_vm7, %v1779_v0, %v1310_v57  ;;  %v599_v17 = vld [vmem:[#allocation2 + $0x13a] sm:$0xff]  ;;  %v6210_v57 = vld [vmem:[#allocation2 + $0x150] sm:$0xff] }
 0x186   : > { %1071 = vrot.lane.b32.xlu1 %v566_v54, %s5359_s18 }
 0x187   : > { %v6134_v58 = vpop.permute.xlu0 %803 }
 0x188   : > { %v6132_v49 = vpop.permute.xlu1 %929  ;;  %v1683_v24 = vsel %vm1665_vm4, %v1650_v21, %v6134_v58 }
 0x189   : > { %1197 = vrot.lane.b32.xlu0 %v597_v47, %s5362_s21 }
 0x18a   : > { %1579 = vrot.lane.b32.xlu1 %v598_v16, %s5366_s8 }
 0x18b   : > { %v1312_v19 = vpop.permute.xlu0 %1311 }
 0x18c   : > { %v1438_v55 = vpop.permute.xlu1 %1437  ;;  %v1813_v32 = vsel %vm1797_vm7, %v1780_v62, %v1312_v19 }
 0x18d   : > { %691 = vrot.lane.b32.xlu0 %v566_v54, %s5361_s20  ;;  %v1845_v25 = vsel %vm1830_vm8, %v1812_v5, %v1438_v55  ;;  %v1649_v54 = vsel %vm204_vm0, %v5769_v20, %v6107_v48 }
 0x18e   : > { %817 = vrot.lane.b32.xlu1 %v597_v47, %s5363_s22  ;;  %v1682_v42 = vsel %vm1665_vm4, %v1649_v54, %v6122_v15 }
 0x18f   : > { %v6150_v29 = vpop.permute.xlu0 %931  ;;  %v1715_v4 = vsel %vm1698_vm3, %v1682_v42, %v6132_v49 }
 0x190   : > { %v1058_v6 = vpop.permute.xlu1 %1057  ;;  %v1716_v30 = vsel %vm1698_vm3, %v1683_v24, %v6150_v29 }
 0x191   : > { %1199 = vrot.lane.b32.xlu0 %v598_v16, %s5362_s21  ;;  %v1748_v55 = vsel %vm1731_vm5, %v1715_v4, %v1058_v6  ;;  %v6233_v6 = vld [vmem:[#allocation2 + $0x158] sm:$0xff]  ;;  %v6295_v4 = vld [vmem:[#allocation2 + $0x170] sm:$0xff] }
 0x192   : > { %1325 = vrot.lane.b32.xlu1 %v6145_v52, %s5364_s23 }
 0x193   : > { %v1440_v23 = vpop.permute.xlu0 %1439 }
 0x194   : > { %v1566_v33 = vpop.permute.xlu1 %1565  ;;  %v1846_v7 = vsel %vm1830_vm8, %v1813_v32, %v1440_v23 }
 0x195   : > { %v1878_v27 = vsel %vm1863_vm9, %v1845_v25, %v1566_v33  ;;  %819 = vrot.lane.b32.xlu0 %v598_v16, %s5363_s22 }
 0x196   : > { %945 = vrot.lane.b32.xlu1 %v6145_v52, %s5360_s19  ;;  %5245 = vmatprep.mubr.msk.f32.mxu0 %vm1901_vm10, %v1878_v27  ;;  %v601_v27 = vld [vmem:[#allocation2 + $0x152] sm:$0xff] }
 0x197   : > { %v6174_v11 = vpop.permute.xlu0 %677 }
 0x198   : > { %v1060_v36 = vpop.permute.xlu1 %1059 }
 0x199   : > { %1327 = vrot.lane.b32.xlu0 %v6170_v13, %s5364_s23  ;;  %v1749_v9 = vsel %vm1731_vm5, %v1716_v30, %v1060_v36  ;;  %v604_v30 = vld [vmem:[#allocation2 + $0x172] sm:$0xff] }
 0x19a   : > { %1453 = vrot.lane.b32.xlu1 %v567_v18, %s5365_s5 }
 0x19b   : > { %v1186_v28 = vpop.permute.xlu0 %1185 }
 0x19c   : > { %v1568_v43 = vpop.permute.xlu1 %1567  ;;  %v1781_v19 = vsel %vm1764_vm6, %v1748_v55, %v1186_v28  ;;  %v1651_v28 = vsel %vm204_vm0, %v5843_v3, %v6174_v11 }
 0x19d   : > { %v1879_v14 = vsel %vm1863_vm9, %v1846_v7, %v1568_v43  ;;  %947 = vrot.lane.b32.xlu0 %v6170_v13, %s5360_s19 }
 0x19e   : > { %1073 = vrot.lane.b32.xlu1 %v567_v18, %s5359_s18  ;;  %5246 = vmatmul.mubr.msk.f32.gmra.mxu0 %vm1901_vm10, %v1879_v14 }
 0x19f   : > { %v6191_v61 = vpop.permute.xlu0 %679 }
 0x1a0   : > { %v6189_v34 = vpop.permute.xlu1 %805  ;;  %v1652_v54 = vsel %vm204_vm0, %v5871_v1, %v6191_v61 }
 0x1a1   : > { %1455 = vrot.lane.b32.xlu0 %v568_v12, %s5365_s5  ;;  %v1684_v14 = vsel %vm1665_vm4, %v1651_v28, %v6189_v34 }
 0x1a2   : > { %1581 = vrot.lane.b32.xlu1 %v599_v17, %s5366_s8 }
 0x1a3   : > { %v1188_v35 = vpop.permute.xlu0 %1187 }
 0x1a4   : > { %v1314_v22 = vpop.permute.xlu1 %1313  ;;  %v1782_v2 = vsel %vm1764_vm6, %v1749_v9, %v1188_v35 }
 0x1a5   : > { %693 = vrot.lane.b32.xlu0 %v567_v18, %s5361_s20  ;;  %v1814_v20 = vsel %vm1797_vm7, %v1781_v19, %v1314_v22 }
 0x1a6   : > { %1075 = vrot.lane.b32.xlu1 %v568_v12, %s5359_s18 }
 0x1a7   : > { %v6199_v44 = vpop.permute.xlu0 %807 }
 0x1a8   : > { %v6197_v63 = vpop.permute.xlu1 %933  ;;  %v1685_v42 = vsel %vm1665_vm4, %v1652_v54, %v6199_v44 }
 0x1a9   : > { %1201 = vrot.lane.b32.xlu0 %v599_v17, %s5362_s21 }
 0x1aa   : > { %1583 = vrot.lane.b32.xlu1 %v600_v56, %s5366_s8 }
 0x1ab   : > { %v1316_v47 = vpop.permute.xlu0 %1315 }
 0x1ac   : > { %v1442_v59 = vpop.permute.xlu1 %1441  ;;  %v1815_v58 = vsel %vm1797_vm7, %v1782_v2, %v1316_v47 }
 0x1ad   : > { %695 = vrot.lane.b32.xlu0 %v568_v12, %s5361_s20  ;;  %v1847_v48 = vsel %vm1830_vm8, %v1814_v20, %v1442_v59  ;;  %v1717_v12 = vsel %vm1698_vm3, %v1684_v14, %v6197_v63 }
 0x1ae   : > { %821 = vrot.lane.b32.xlu1 %v599_v17, %s5363_s22  ;;  %v6272_v17 = vld [vmem:[#allocation2 + $0x168] sm:$0xff] }
 0x1af   : > { %v6214_v16 = vpop.permute.xlu0 %935 }
 0x1b0   : > { %v1062_v8 = vpop.permute.xlu1 %1061 }
 0x1b1   : > { %1203 = vrot.lane.b32.xlu0 %v600_v56, %s5362_s21 }
 0x1b2   : > { %1329 = vrot.lane.b32.xlu1 %v6210_v57, %s5364_s23 }
 0x1b3   : > { %v1444_v10 = vpop.permute.xlu0 %1443 }
 0x1b4   : > { %v1570_v15 = vpop.permute.xlu1 %1569  ;;  %v1848_v25 = vsel %vm1830_vm8, %v1815_v58, %v1444_v10  ;;  %v603_v10 = vld [vmem:[#allocation2 + $0x16a] sm:$0xff] }
 0x1b5   : > { %v1880_v49 = vsel %vm1863_vm9, %v1847_v48, %v1570_v15  ;;  %823 = vrot.lane.b32.xlu0 %v600_v56, %s5363_s22  ;;  %v1750_v56 = vsel %vm1731_vm5, %v1717_v12, %v1062_v8  ;;  %v1718_v8 = vsel %vm1698_vm3, %v1685_v42, %v6214_v16  ;;  %v512_v42 = vld [vmem:[#allocation2 + $0x18a] sm:$0xff] }
 0x1b6   : > { %949 = vrot.lane.b32.xlu1 %v6210_v57, %s5360_s19  ;;  %5248 = vmatprep.mubr.msk.f32.mxu0 %vm1901_vm10, %v1880_v49 }
 0x1b7   : > { %v6237_v5 = vpop.permute.xlu0 %681 }
 0x1b8   : > { %v1064_v0 = vpop.permute.xlu1 %1063 }
 0x1b9   : > { %1331 = vrot.lane.b32.xlu0 %v6233_v6, %s5364_s23  ;;  %v1751_v1 = vsel %vm1731_vm5, %v1718_v8, %v1064_v0 }
 0x1ba   : > { %1457 = vrot.lane.b32.xlu1 %v569_v60, %s5365_s5 }
 0x1bb   : > { %v1190_v23 = vpop.permute.xlu0 %1189 }
 0x1bc   : > { %v1572_v33 = vpop.permute.xlu1 %1571  ;;  %v1783_v59 = vsel %vm1764_vm6, %v1750_v56, %v1190_v23 }
 0x1bd   : > { %v1881_v29 = vsel %vm1863_vm9, %v1848_v25, %v1572_v33  ;;  %951 = vrot.lane.b32.xlu0 %v6233_v6, %s5360_s19  ;;  %v1653_v25 = vsel %vm204_vm0, %v5917_v53, %v6237_v5  ;;  %v541_v33 = vld [vmem:[#allocation2 + $0x180] sm:$0xff] }
 0x1be   : > { %1077 = vrot.lane.b32.xlu1 %v569_v60, %s5359_s18  ;;  %5249 = vmatmul.mubr.msk.f32.gmra.mxu0 %vm1901_vm10, %v1881_v29 }
 0x1bf   : > { %v6253_v18 = vpop.permute.xlu0 %683 }
 0x1c0   : > { %v6251_v40 = vpop.permute.xlu1 %809 }
 0x1c1   : > { %1459 = vrot.lane.b32.xlu0 %v570_v45, %s5365_s5 }
 0x1c2   : > { %1585 = vrot.lane.b32.xlu1 %v601_v27, %s5366_s8 }
 0x1c3   : > { %v1192_v36 = vpop.permute.xlu0 %1191 }
 0x1c4   : > { %v1318_v31 = vpop.permute.xlu1 %1317  ;;  %v1784_v61 = vsel %vm1764_vm6, %v1751_v1, %v1192_v36  ;;  %v544_v1 = vld [vmem:[#allocation2 + $0x1a0] sm:$0xff] }
 0x1c5   : > { %697 = vrot.lane.b32.xlu0 %v569_v60, %s5361_s20  ;;  %v1816_v3 = vsel %vm1797_vm7, %v1783_v59, %v1318_v31 }
 0x1c6   : > { %1079 = vrot.lane.b32.xlu1 %v570_v45, %s5359_s18 }
 0x1c7   : > { %v6261_v32 = vpop.permute.xlu0 %811 }
 0x1c8   : > { %v6259_v62 = vpop.permute.xlu1 %937 }
 0x1c9   : > { %1205 = vrot.lane.b32.xlu0 %v601_v27, %s5362_s21 }
 0x1ca   : > { %1587 = vrot.lane.b32.xlu1 %v602_v46, %s5366_s8 }
 0x1cb   : > { %v1320_v43 = vpop.permute.xlu0 %1319 }
 0x1cc   : > { %v1446_v7 = vpop.permute.xlu1 %1445  ;;  %v1817_v44 = vsel %vm1797_vm7, %v1784_v61, %v1320_v43  ;;  %v542_v43 = vld [vmem:[#allocation2 + $0x188] sm:$0xff]  ;;  %v543_v61 = vld [vmem:[#allocation2 + $0x198] sm:$0xff] }
 0x1cd   : > { %699 = vrot.lane.b32.xlu0 %v570_v45, %s5361_s20  ;;  %v1849_v11 = vsel %vm1830_vm8, %v1816_v3, %v1446_v7  ;;  %v573_v7 = vld [vmem:[#allocation2 + $0x181] sm:$0xff] }
 0x1ce   : > { %825 = vrot.lane.b32.xlu1 %v601_v27, %s5363_s22 }
 0x1cf   : > { %v6276_v35 = vpop.permute.xlu0 %939 }
 0x1d0   : > { %v1066_v22 = vpop.permute.xlu1 %1065 }
 0x1d1   : > { %1207 = vrot.lane.b32.xlu0 %v602_v46, %s5362_s21 }
 0x1d2   : > { %1333 = vrot.lane.b32.xlu1 %v6272_v17, %s5364_s23 }
 0x1d3   : > { %v1448_v47 = vpop.permute.xlu0 %1447 }
 0x1d4   : > { %v1574_v34 = vpop.permute.xlu1 %1573  ;;  %v1850_v20 = vsel %vm1830_vm8, %v1817_v44, %v1448_v47 }
 0x1d5   : > { %v1882_v63 = vsel %vm1863_vm9, %v1849_v11, %v1574_v34  ;;  %827 = vrot.lane.b32.xlu0 %v602_v46, %s5363_s22  ;;  %v1654_v46 = vsel %vm204_vm0, %v5945_v51, %v6253_v18  ;;  %v574_v11 = vld [vmem:[#allocation2 + $0x189] sm:$0xff] }
 0x1d6   : > { %953 = vrot.lane.b32.xlu1 %v6272_v17, %s5360_s19  ;;  %5251 = vmatprep.mubr.msk.f32.mxu0 %vm1901_vm10, %v1882_v63 }
 0x1d7   : > { %v6299_v19 = vpop.permute.xlu0 %685 }
 0x1d8   : > { %v1068_v55 = vpop.permute.xlu1 %1067 }
 0x1d9   : > { %1335 = vrot.lane.b32.xlu0 %v6295_v4, %s5364_s23 }
 0x1da   : > { %1461 = vrot.lane.b32.xlu1 %v6029_v26, %s5365_s5 }
 0x1db   : > { %v1194_v15 = vpop.permute.xlu0 %1193 }
 0x1dc   : > { %v1576_v48 = vpop.permute.xlu1 %1575 }
 0x1dd   : > { %v1883_v16 = vsel %vm1863_vm9, %v1850_v20, %v1576_v48  ;;  %955 = vrot.lane.b32.xlu0 %v6295_v4, %s5360_s19  ;;  %v1655_v48 = vsel %vm204_vm0, %v5991_v39, %v6299_v19  ;;  %v608_v19 = vld [vmem:[#allocation2 + $0x1a2] sm:$0xff] }
 0x1de   : > { %1081 = vrot.lane.b32.xlu1 %v6029_v26, %s5359_s18  ;;  %5252 = vmatmul.mubr.msk.f32.gmra.mxu0 %vm1901_vm10, %v1883_v16  ;;  %v576_v16 = vld [vmem:[#allocation2 + $0x1a1] sm:$0xff] }
 0x1df   : > { %v6317_v21 = vpop.permute.xlu0 %687 }
 0x1e0   : > { %v6315_v49 = vpop.permute.xlu1 %813 }
 0x1e1   : > { %1463 = vrot.lane.b32.xlu0 %v6050_v50, %s5365_s5 }
 0x1e2   : > { %1589 = vrot.lane.b32.xlu1 %v603_v10, %s5366_s8 }
 0x1e3   : > { %v1196_v60 = vpop.permute.xlu0 %1195 }
 0x1e4   : > { %v1322_v24 = vpop.permute.xlu1 %1321 }
 0x1e5   : > { %701 = vrot.lane.b32.xlu0 %v6029_v26, %s5361_s20  ;;  %v1686_v26 = vsel %vm1665_vm4, %v1653_v25, %v6251_v40  ;;  %v607_v25 = vld [vmem:[#allocation2 + $0x19a] sm:$0xff] }
 0x1e6   : > { %1083 = vrot.lane.b32.xlu1 %v6050_v50, %s5359_s18  ;;  %v1719_v23 = vsel %vm1698_vm3, %v1686_v26, %v6259_v62  ;;  %v1687_v62 = vsel %vm1665_vm4, %v1654_v46, %v6261_v32 }
 0x1e7   : > { %v6328_v9 = vpop.permute.xlu0 %815  ;;  %v1752_v45 = vsel %vm1731_vm5, %v1719_v23, %v1066_v22  ;;  %v1720_v28 = vsel %vm1698_vm3, %v1687_v62, %v6276_v35  ;;  %v605_v35 = vld [vmem:[#allocation2 + $0x182] sm:$0xff]  ;;  %v1656_v23 = vsel %vm204_vm0, %v6019_v38, %v6317_v21 }
 0x1e8   : > { %v6326_v0 = vpop.permute.xlu1 %941  ;;  %v1785_v31 = vsel %vm1764_vm6, %v1752_v45, %v1194_v15  ;;  %v1753_v22 = vsel %vm1731_vm5, %v1720_v28, %v1068_v55  ;;  %v1688_v15 = vsel %vm1665_vm4, %v1655_v48, %v6315_v49 }
 0x1e9   : > { %1209 = vrot.lane.b32.xlu0 %v603_v10, %s5362_s21  ;;  %v1818_v53 = vsel %vm1797_vm7, %v1785_v31, %v1322_v24  ;;  %v1786_v51 = vsel %vm1764_vm6, %v1753_v22, %v1196_v60  ;;  %v1721_v24 = vsel %vm1698_vm3, %v1688_v15, %v6326_v0 }
 0x1ea   : > { %1591 = vrot.lane.b32.xlu1 %v604_v30, %s5366_s8 }
 0x1eb   : > { %v1324_v58 = vpop.permute.xlu0 %1323 }
 0x1ec   : > { %v1450_v2 = vpop.permute.xlu1 %1449  ;;  %v1819_v18 = vsel %vm1797_vm7, %v1786_v51, %v1324_v58 }
 0x1ed   : > { %703 = vrot.lane.b32.xlu0 %v6050_v50, %s5361_s20  ;;  %v1851_v50 = vsel %vm1830_vm8, %v1818_v53, %v1450_v2 }
 0x1ee   : > { %829 = vrot.lane.b32.xlu1 %v603_v10, %s5363_s22  ;;  %v575_v10 = vld [vmem:[#allocation2 + $0x199] sm:$0xff] }
 0x1ef   : > { %v6342_v27 = vpop.permute.xlu0 %943 }
 0x1f0   : > { %v1070_v29 = vpop.permute.xlu1 %1069 }
 0x1f1   : > { %1211 = vrot.lane.b32.xlu0 %v604_v30, %s5362_s21  ;;  %v1754_v2 = vsel %vm1731_vm5, %v1721_v24, %v1070_v29  ;;  %v1689_v29 = vsel %vm1665_vm4, %v1656_v23, %v6328_v9 }
 0x1f2   : > { %1337 = vrot.lane.b32.xlu1 %v541_v33, %s5364_s23  ;;  %v1722_v45 = vsel %vm1698_vm3, %v1689_v29, %v6342_v27 }
 0x1f3   : > { %v1452_v40 = vpop.permute.xlu0 %1451 }
 0x1f4   : > { %v1578_v5 = vpop.permute.xlu1 %1577  ;;  %v1852_v32 = vsel %vm1830_vm8, %v1819_v18, %v1452_v40 }
 0x1f5   : > { %v1884_v36 = vsel %vm1863_vm9, %v1851_v50, %v1578_v5  ;;  %831 = vrot.lane.b32.xlu0 %v604_v30, %s5363_s22 }
 0x1f6   : > { %957 = vrot.lane.b32.xlu1 %v541_v33, %s5360_s19  ;;  %5254 = vmatprep.mubr.msk.f32.mxu0 %vm1901_vm10, %v1884_v36 }
 0x1f7   : > { %v6361_v12 = vpop.permute.xlu0 %689 }
 0x1f8   : > { %v1072_v14 = vpop.permute.xlu1 %1071  ;;  %v1657_v51 = vsel %vm204_vm0, %v6073_v37, %v6361_v12 }
 0x1f9   : > { %1339 = vrot.lane.b32.xlu0 %v542_v43, %s5364_s23  ;;  %v1755_v50 = vsel %vm1731_vm5, %v1722_v45, %v1072_v14 }
 0x1fa   : > { %1465 = vrot.lane.b32.xlu1 %v573_v7, %s5365_s5 }
 0x1fb   : > { %v1198_v59 = vpop.permute.xlu0 %1197 }
 0x1fc   : > { %v1580_v56 = vpop.permute.xlu1 %1579  ;;  %v1787_v58 = vsel %vm1764_vm6, %v1754_v2, %v1198_v59 }
 0x1fd   : > { %v1885_v3 = vsel %vm1863_vm9, %v1852_v32, %v1580_v56  ;;  %959 = vrot.lane.b32.xlu0 %v542_v43, %s5360_s19 }
 0x1fe   : > { %1085 = vrot.lane.b32.xlu1 %v573_v7, %s5359_s18  ;;  %5255 = vmatmul.mubr.msk.f32.gmra.mxu0 %vm1901_vm10, %v1885_v3 }
 0x1ff   : > { %v6375_v47 = vpop.permute.xlu0 %691 }
 0x200   : > { %v6373_v34 = vpop.permute.xlu1 %817  ;;  %v1658_v37 = vsel %vm204_vm0, %v6101_v41, %v6375_v47 }
 0x201   : > { %1467 = vrot.lane.b32.xlu0 %v574_v11, %s5365_s5  ;;  %v1690_v18 = vsel %vm1665_vm4, %v1657_v51, %v6373_v34 }
 0x202   : > { %1593 = vrot.lane.b32.xlu1 %v605_v35, %s5366_s8 }
 0x203   : > { %v1200_v54 = vpop.permute.xlu0 %1199 }
 0x204   : > { %v1326_v63 = vpop.permute.xlu1 %1325  ;;  %v1788_v5 = vsel %vm1764_vm6, %v1755_v50, %v1200_v54 }
 0x205   : > { %1087 = vrot.lane.b32.xlu0 %v574_v11, %s5359_s18  ;;  %v1820_v39 = vsel %vm1797_vm7, %v1787_v58, %v1326_v63 }
 0x206   : > { %1213 = vrot.lane.b32.xlu1 %v605_v35, %s5362_s21 }
 0x207   : > { %v6381_v55 = vpop.permute.xlu0 %819 }
 0x208   : > { %v946_v8 = vpop.permute.xlu1 %945  ;;  %v1691_v12 = vsel %vm1665_vm4, %v1658_v37, %v6381_v55 }
 0x209   : > { %1595 = vrot.lane.b32.xlu0 %v512_v42, %s5366_s8  ;;  %v1723_v32 = vsel %vm1698_vm3, %v1690_v18, %v946_v8 }
 0x20a   : > { %1215 = vrot.lane.b32.xlu1 %v512_v42, %s5362_s21 }
 0x20b   : > { %v1328_v20 = vpop.permute.xlu0 %1327 }
 0x20c   : > { %v1454_v44 = vpop.permute.xlu1 %1453  ;;  %v1821_v38 = vsel %vm1797_vm7, %v1788_v5, %v1328_v20 }
 0x20d   : > { %1341 = vrot.lane.b32.xlu0 %v543_v61, %s5364_s23  ;;  %v1853_v49 = vsel %vm1830_vm8, %v1820_v39, %v1454_v44 }
 0x20e   : > { %1343 = vrot.lane.b32.xlu1 %v544_v1, %s5364_s23 }
 0x20f   : > { %v948_v30 = vpop.permute.xlu0 %947 }
 0x210   : > { %v1074_v60 = vpop.permute.xlu1 %1073  ;;  %v1724_v34 = vsel %vm1698_vm3, %v1691_v12, %v948_v30 }
 0x211   : > { %1469 = vrot.lane.b32.xlu0 %v575_v10, %s5365_s5  ;;  %v1756_v3 = vsel %vm1731_vm5, %v1723_v32, %v1074_v60 }
 0x212   : > { %1471 = vrot.lane.b32.xlu1 %v576_v16, %s5365_s5 }
 0x213   : > { %v1456_v33 = vpop.permute.xlu0 %1455 }
 0x214   : > { %v1582_v26 = vpop.permute.xlu1 %1581  ;;  %v1854_v21 = vsel %vm1830_vm8, %v1821_v38, %v1456_v33 }
 0x215   : > { %v1886_v0 = vsel %vm1863_vm9, %v1853_v49, %v1582_v26  ;;  %1597 = vrot.lane.b32.xlu0 %v607_v25, %s5366_s8 }
 0x216   : > { %1599 = vrot.lane.b32.xlu1 %v608_v19, %s5366_s8  ;;  %5257 = vmatprep.mubr.msk.f32.mxu0 %vm1901_vm10, %v1886_v0 }
 0x217   : > { %v694_v53 = vpop.permute.xlu0 %693 }
 0x218   : > { %v1076_v31 = vpop.permute.xlu1 %1075  ;;  %v1659_v19 = vsel %vm204_vm0, %v6145_v52, %v694_v53 }
 0x219   : > { %v1757_v44 = vsel %vm1731_vm5, %v1724_v34, %v1076_v31 }
 0x21b   : > { %v1202_v36 = vpop.permute.xlu0 %1201 }
 0x21c   : > { %v1584_v40 = vpop.permute.xlu1 %1583  ;;  %v1789_v35 = vsel %vm1764_vm6, %v1756_v3, %v1202_v36 }
 0x21d   : > { %v1887_v46 = vsel %vm1863_vm9, %v1854_v21, %v1584_v40 }
 0x21e   : > { %5258 = vmatmul.mubr.msk.f32.gmra.mxu0 %vm1901_vm10, %v1887_v46 }
 0x21f   : > { %v696_v62 = vpop.permute.xlu0 %695 }
 0x220   : > { %v822_v9 = vpop.permute.xlu1 %821  ;;  %v1660_v52 = vsel %vm204_vm0, %v6170_v13, %v696_v62 }
 0x221   : > { %v1692_v25 = vsel %vm1665_vm4, %v1659_v19, %v822_v9 }
 0x223   : > { %v1204_v27 = vpop.permute.xlu0 %1203 }
 0x224   : > { %v1330_v7 = vpop.permute.xlu1 %1329  ;;  %v1790_v20 = vsel %vm1764_vm6, %v1757_v44, %v1204_v27 }
 0x225   : > { %v1822_v11 = vsel %vm1797_vm7, %v1789_v35, %v1330_v7 }
 0x227   : > { %v824_v28 = vpop.permute.xlu0 %823 }
 0x228   : > { %v950_v43 = vpop.permute.xlu1 %949  ;;  %v1693_v53 = vsel %vm1665_vm4, %v1660_v52, %v824_v28 }
 0x229   : > { %v1725_v49 = vsel %vm1698_vm3, %v1692_v25, %v950_v43 }
 0x22b   : > { %v1332_v14 = vpop.permute.xlu0 %1331 }
 0x22c   : > { %v1458_v22 = vpop.permute.xlu1 %1457  ;;  %v1823_v48 = vsel %vm1797_vm7, %v1790_v20, %v1332_v14 }
 0x22d   : > { %v1855_v63 = vsel %vm1830_vm8, %v1822_v11, %v1458_v22 }
 0x22f   : > { %v952_v59 = vpop.permute.xlu0 %951 }
 0x230   : > { %v1078_v56 = vpop.permute.xlu1 %1077  ;;  %v1726_v38 = vsel %vm1698_vm3, %v1693_v53, %v952_v59 }
 0x231   : > { %v1758_v0 = vsel %vm1731_vm5, %v1725_v49, %v1078_v56 }
 0x233   : > { %v1460_v42 = vpop.permute.xlu0 %1459 }
 0x234   : > { %v1586_v54 = vpop.permute.xlu1 %1585  ;;  %v1856_v15 = vsel %vm1830_vm8, %v1823_v48, %v1460_v42 }
 0x235   : > { %v1888_v1 = vsel %vm1863_vm9, %v1855_v63, %v1586_v54 }
 0x236   : > { %5260 = vmatprep.mubr.msk.f32.mxu0 %vm1901_vm10, %v1888_v1 }
 0x237   : > { %v698_v61 = vpop.permute.xlu0 %697 }
 0x238   : > { %v1080_v8 = vpop.permute.xlu1 %1079  ;;  %v1661_v59 = vsel %vm204_vm0, %v6210_v57, %v698_v61 }
 0x239   : > { %v1759_v36 = vsel %vm1731_vm5, %v1726_v38, %v1080_v8  ;;  %v8387_v38 = vmov 1.0  }
 0x23a   : > { %2291 = vmatprep.mubr.f32.mxu1 %v8387_v38 }
 0x23b   : > { %v1206_v10 = vpop.permute.xlu0 %1205 }
 0x23c   : > { %v1588_v16 = vpop.permute.xlu1 %1587  ;;  %v1791_v23 = vsel %vm1764_vm6, %v1758_v0, %v1206_v10 }
 0x23d   : > { %v1889_v41 = vsel %vm1863_vm9, %v1856_v15, %v1588_v16 }
 0x23e   : > { %5261 = vmatmul.mubr.msk.f32.gmra.mxu0 %vm1901_vm10, %v1889_v41 }
 0x23f   : > { %v700_v55 = vpop.permute.xlu0 %699 }
 0x240   : > { %v826_v47 = vpop.permute.xlu1 %825  ;;  %v1662_v57 = vsel %vm204_vm0, %v6233_v6, %v700_v55 }
 0x241   : > { %v1694_v3 = vsel %vm1665_vm4, %v1661_v59, %v826_v47 }
 0x243   : > { %v1208_v60 = vpop.permute.xlu0 %1207 }
 0x244   : > { %v1334_v24 = vpop.permute.xlu1 %1333  ;;  %v1792_v46 = vsel %vm1764_vm6, %v1759_v36, %v1208_v60 }
 0x245   : > { %v1824_v29 = vsel %vm1797_vm7, %v1791_v23, %v1334_v24 }
 0x247   : > { %v828_v2 = vpop.permute.xlu0 %827 }
 0x248   : > { %v954_v30 = vpop.permute.xlu1 %953  ;;  %v1695_v61 = vsel %vm1665_vm4, %v1662_v57, %v828_v2 }
 0x249   : > { %v1727_v35 = vsel %vm1698_vm3, %v1694_v3, %v954_v30 }
 0x24b   : > { %v1336_v39 = vpop.permute.xlu0 %1335 }
 0x24c   : > { %v1462_v58 = vpop.permute.xlu1 %1461  ;;  %v1825_v9 = vsel %vm1797_vm7, %v1792_v46, %v1336_v39 }
 0x24d   : > { %v1857_v45 = vsel %vm1830_vm8, %v1824_v29, %v1462_v58 }
 0x24f   : > { %v956_v33 = vpop.permute.xlu0 %955 }
 0x250   : > { %v1082_v26 = vpop.permute.xlu1 %1081  ;;  %v1728_v44 = vsel %vm1698_vm3, %v1695_v61, %v956_v33 }
 0x251   : > { %v1760_v54 = vsel %vm1731_vm5, %v1727_v35, %v1082_v26 }
 0x253   : > { %v1464_v50 = vpop.permute.xlu0 %1463 }
 0x254   : > { %v1590_v31 = vpop.permute.xlu1 %1589  ;;  %v1858_v7 = vsel %vm1830_vm8, %v1825_v9, %v1464_v50 }
 0x255   : > { %v1890_v5 = vsel %vm1863_vm9, %v1857_v45, %v1590_v31 }
 0x256   : > { %5263 = vmatprep.mubr.msk.f32.mxu0 %vm1901_vm10, %v1890_v5 }
 0x257   : > { %v702_v40 = vpop.permute.xlu0 %701 }
 0x258   : > { %v1084_v21 = vpop.permute.xlu1 %1083  ;;  %v1663_v30 = vsel %vm204_vm0, %v6272_v17, %v702_v40 }
 0x259   : > { %v1761_v15 = vsel %vm1731_vm5, %v1728_v44, %v1084_v21  ;;  %v6502_v21 = vpop.f32.mrf.mxu0 }
 0x25b   : > { %v1210_v43 = vpop.permute.xlu0 %1209  ;;  %v6504_v40 = vpop.f32.mrf.mxu0 }
 0x25c   : > { %v1592_v27 = vpop.permute.xlu1 %1591  ;;  %v1793_v42 = vsel %vm1764_vm6, %v1760_v54, %v1210_v43 }
 0x25d   : > { %v1891_v13 = vsel %vm1863_vm9, %v1858_v7, %v1592_v27  ;;  %v6506_v36 = vpop.f32.mrf.mxu0 }
 0x25e   : > { %5264 = vmatmul.mubr.msk.f32.gmra.mxu0 %vm1901_vm10, %v1891_v13 }
 0x25f   : > { %v704_v28 = vpop.permute.xlu0 %703  ;;  %v6508_v46 = vpop.f32.mrf.mxu0 }
 0x260   : > { %v830_v62 = vpop.permute.xlu1 %829  ;;  %v1664_v2 = vsel %vm204_vm0, %v6295_v4, %v704_v28 }
 0x261   : > { %v1696_v58 = vsel %vm1665_vm4, %v1663_v30, %v830_v62  ;;  %v6510_v9 = vpop.f32.mrf.mxu0 }
 0x263   : > { %v1212_v14 = vpop.permute.xlu0 %1211  ;;  %v6512_v7 = vpop.f32.mrf.mxu0 }
 0x264   : > { %v1338_v22 = vpop.permute.xlu1 %1337  ;;  %v1794_v16 = vsel %vm1764_vm6, %v1761_v15, %v1212_v14 }
 0x265   : > { %v1826_v1 = vsel %vm1797_vm7, %v1793_v42, %v1338_v22  ;;  %v6514_v27 = vpop.f32.mrf.mxu0 }
 0x267   : > { %v832_v18 = vpop.permute.xlu0 %831  ;;  %v6516_v43 = vpop.f32.mrf.mxu0 }
 0x268   : > { %v958_v51 = vpop.permute.xlu1 %957  ;;  %v1697_v39 = vsel %vm1665_vm4, %v1664_v2, %v832_v18 }
 0x269   : > { %v1729_v19 = vsel %vm1698_vm3, %v1696_v58, %v958_v51  ;;  %v6518_v13 = vpop.f32.mrf.mxu0 }
 0x26a   : > { %v2306_v58 = vmul.f32 %v6518_v13, %v6518_v13 }
 0x26b   : > { %v1340_v56 = vpop.permute.xlu0 %1339  ;;  %v6520_v62 = vpop.f32.mrf.mxu0 }
 0x26c   : > { %v1466_v32 = vpop.permute.xlu1 %1465  ;;  %v1827_v10 = vsel %vm1797_vm7, %v1794_v16, %v1340_v56 }
 0x26d   : > { %v1859_v37 = vsel %vm1830_vm8, %v1826_v1, %v1466_v32  ;;  %v6522_v28 = vpop.f32.mrf.mxu0 }
 0x26f   : > { %v960_v63 = vpop.permute.xlu0 %959  ;;  %v6524_v22 = vpop.f32.mrf.mxu0 }
 0x270   : > { %v1086_v11 = vpop.permute.xlu1 %1085  ;;  %v1730_v25 = vsel %vm1698_vm3, %v1697_v39, %v960_v63  ;;  %v2307_v30 = vmul.f32 %v6524_v22, %v6524_v22 }
 0x271   : > { %v1762_v33 = vsel %vm1731_vm5, %v1729_v19, %v1086_v11  ;;  %v6526_v14 = vpop.f32.mrf.mxu0  ;;  %v2305_v19 = vmul.f32 %v6520_v62, %v6520_v62 }
 0x273   : > { %v1468_v34 = vpop.permute.xlu0 %1467  ;;  %v6528_v51 = vpop.f32.mrf.mxu0 }
 0x274   : > { %v1594_v12 = vpop.permute.xlu1 %1593  ;;  %v1860_v41 = vsel %vm1830_vm8, %v1827_v10, %v1468_v34 }
 0x275   : > { %v1892_v8 = vsel %vm1863_vm9, %v1859_v37, %v1594_v12  ;;  %v6530_v18 = vpop.f32.mrf.mxu0 }
 0x276   : > { %5266 = vmatprep.mubr.msk.f32.mxu0 %vm1901_vm10, %v1892_v8 }
 0x277   : > { %v1088_v48 = vpop.permute.xlu0 %1087  ;;  %v6532_v32 = vpop.f32.mrf.mxu0 }
 0x278   : > { %v1214_v20 = vpop.permute.xlu1 %1213  ;;  %v1763_v0 = vsel %vm1731_vm5, %v1730_v25, %v1088_v48  ;;  %v2312_v48 = vmul.f32 %v6530_v18, %v6530_v18  ;;  %v2311_v16 = vmul.f32 %v6532_v32, %v6532_v32 }
 0x279   : > { %v1795_v23 = vsel %vm1764_vm6, %v1762_v33, %v1214_v20  ;;  %v2303_v33 = vmul.f32 %v6516_v43, %v6516_v43 }
 0x27b   : > { %v1596_v24 = vpop.permute.xlu0 %1595 }
 0x27c   : > { %v1216_v47 = vpop.permute.xlu1 %1215  ;;  %v1893_v6 = vsel %vm1863_vm9, %v1860_v41, %v1596_v24  ;;  %v2310_v41 = vmul.f32 %v6526_v14, %v6526_v14  ;;  %v2309_v24 = vmul.f32 %v6528_v51, %v6528_v51 }
 0x27d   : > { %5267 = vmatmul.mubr.msk.f32.gmra.mxu0 %vm1901_vm10, %v1893_v6  ;;  %v1796_v17 = vsel %vm1764_vm6, %v1763_v0, %v1216_v47 }
 0x27e   : > { %v6534_v56 = vpop.f32.mrf.mxu0 }
 0x27f   : > { %v1342_v60 = vpop.permute.xlu0 %1341 }
 0x280   : > { %v1344_v55 = vpop.permute.xlu1 %1343  ;;  %v1828_v29 = vsel %vm1797_vm7, %v1795_v23, %v1342_v60  ;;  %v6536_v59 = vpop.f32.mrf.mxu0  ;;  %v2302_v23 = vmul.f32 %v6510_v9, %v6510_v9 }
 0x281   : > { %v1829_v4 = vsel %vm1797_vm7, %v1796_v17, %v1344_v55  ;;  %v2308_v55 = vmul.f32 %v6522_v28, %v6522_v28 }
 0x283   : > { %v1470_v26 = vpop.permute.xlu0 %1469 }
 0x284   : > { %v1472_v49 = vpop.permute.xlu1 %1471  ;;  %v1861_v31 = vsel %vm1830_vm8, %v1828_v29, %v1470_v26 }
 0x285   : > { %v1862_v45 = vsel %vm1830_vm8, %v1829_v4, %v1472_v49  ;;  %v2304_v49 = vmul.f32 %v6514_v27, %v6514_v27  ;;  %v2301_v4 = vmul.f32 %v6512_v7, %v6512_v7 }
 0x287   : > { %v1598_v5 = vpop.permute.xlu0 %1597 }
 0x288   : > { %v1600_v50 = vpop.permute.xlu1 %1599  ;;  %v1894_v53 = vsel %vm1863_vm9, %v1861_v31, %v1598_v5  ;;  %v2314_v5 = vmul.f32 %v6534_v56, %v6534_v56 }
 0x289   : > { %v1895_v52 = vsel %vm1863_vm9, %v1862_v45, %v1600_v50  ;;  %5269 = vmatprep.mubr.msk.f32.mxu0 %vm1901_vm10, %v1894_v53  ;;  %v2300_v45 = vmul.f32 %v6506_v36, %v6506_v36  ;;  %v2299_v50 = vmul.f32 %v6508_v46, %v6508_v46  ;;  %v2313_v53 = vmul.f32 %v6536_v59, %v6536_v59 }
 0x28a   : > { %5270 = vmatmul.mubr.msk.f32.gmra.mxu0 %vm1901_vm10, %v1895_v52  ;;  %v2298_v52 = vmul.f32 %v6502_v21, %v6502_v21 }
 0x29e   : > { %v6538_v3 = vpop.f32.mrf.mxu0 }
 0x29f   : > { %v2316_v29 = vmul.f32 %v6538_v3, %v6538_v3 }
 0x2a0   : > { %v6540_v35 = vpop.f32.mrf.mxu0 }
 0x2a1   : > { %v2315_v31 = vmul.f32 %v6540_v35, %v6540_v35 }
 0x2be   : > { %v6542_v11 = vpop.f32.mrf.mxu0 }
 0x2bf   : > { %v2318_v0 = vmul.f32 %v6542_v11, %v6542_v11 }
 0x2c0   : > { %v6544_v63 = vpop.f32.mrf.mxu0 }
 0x2c1   : > { %v2317_v17 = vmul.f32 %v6544_v63, %v6544_v63 }
 0x2de   : > { %v6546_v54 = vpop.f32.mrf.mxu0 }
 0x2df   : > { %v2320_v25 = vmul.f32 %v6546_v54, %v6546_v54 }
 0x2e0   : > { %v6548_v42 = vpop.f32.mrf.mxu0 }
 0x2e1   : > { %v2319_v26 = vmul.f32 %v6548_v42, %v6548_v42 }
 0x2fe   : > { %v6550_v1 = vpop.f32.mrf.mxu0 }
 0x2ff   : > { %v2322_v2 = vmul.f32 %v6550_v1, %v6550_v1 }
 0x300   : > { %v6552_v37 = vpop.f32.mrf.mxu0 }
 0x301   : > { %v2321_v39 = vmul.f32 %v6552_v37, %v6552_v37 }
 0x31e   : > { %v6554_v12 = vpop.f32.mrf.mxu0 }
 0x31f   : > { %v2324_v6 = vmul.f32 %v6554_v12, %v6554_v12 }
 0x320   : > { %v6556_v34 = vpop.f32.mrf.mxu0 }
 0x321   : > { %v2323_v60 = vmul.f32 %v6556_v34, %v6556_v34 }
 0x33d   : > { %v6558_v8 = vpop.f32.mrf.mxu0 }
 0x33e   : > { %v2326_v10 = vmul.f32 %v6558_v8, %v6558_v8 }
 0x33f   : > { %v6560_v57 = vpop.f32.mrf.mxu0 }
 0x340   : > { %v2325_v47 = vmul.f32 %v6560_v57, %v6560_v57 }
 0x34a   : > { %v6562_v61 = vpop.f32.mrf.mxu0 }
 0x34b   : > { %5037 = vmatprep.subr.mxu1 %v6562_v61  ;;  %v2328_v20 = vmul.f32 %v6562_v61, %v6562_v61 }
 0x34c   : > { %v6565_v44 = vpop.f32.mrf.mxu0  ;;  %5038 = vmatpush3.msra.mxu1 %v6530_v18 }
 0x34d   : > { %5039 = vmatprep.subr.mxu1 %v6565_v44  ;;  %v2327_v15 = vmul.f32 %v6565_v44, %v6565_v44 }
 0x34e   : > { %5040 = vmatpush3.msra.mxu1 %v6532_v32 }
 0x34f   : > { %5041 = vmatprep.subr.mxu1 %v6558_v8 }
 0x350   : > { %5042 = vmatpush3.msra.mxu1 %v6526_v14 }
 0x351   : > { %5043 = vmatprep.subr.mxu1 %v6560_v57 }
 0x352   : > { %5044 = vmatpush3.msra.mxu1 %v6528_v51 }
 0x353   : > { %5045 = vmatprep.subr.mxu1 %v6554_v12 }
 0x354   : > { %5046 = vmatpush3.msra.mxu1 %v6522_v28 }
 0x355   : > { %5047 = vmatprep.subr.mxu1 %v6556_v34 }
 0x356   : > { %5048 = vmatpush3.msra.mxu1 %v6524_v22 }
 0x357   : > { %5049 = vmatprep.subr.mxu1 %v6550_v1 }
 0x358   : > { %5050 = vmatpush3.msra.mxu1 %v6518_v13 }
 0x359   : > { %5051 = vmatprep.subr.mxu1 %v6552_v37 }
 0x35a   : > { %5052 = vmatpush3.msra.mxu1 %v6520_v62 }
 0x35b   : > { %5053 = vmatprep.subr.mxu1 %v6546_v54 }
 0x35c   : > { %5054 = vmatpush3.msra.mxu1 %v6514_v27 }
 0x35d   : > { %5055 = vmatprep.subr.mxu1 %v6548_v42 }
 0x35e   : > { %5056 = vmatpush3.msra.mxu1 %v6516_v43 }
 0x35f   : > { %5057 = vmatprep.subr.mxu1 %v6542_v11 }
 0x360   : > { %5058 = vmatpush3.msra.mxu1 %v6510_v9 }
 0x361   : > { %5059 = vmatprep.subr.mxu1 %v6544_v63 }
 0x362   : > { %5060 = vmatpush3.msra.mxu1 %v6512_v7 }
 0x363   : > { %5061 = vmatprep.subr.mxu1 %v6538_v3 }
 0x364   : > { %5062 = vmatpush3.msra.mxu1 %v6506_v36 }
 0x365   : > { %5063 = vmatprep.subr.mxu1 %v6540_v35 }
 0x366   : > { %5064 = vmatpush3.msra.mxu1 %v6508_v46 }
 0x367   : > { %5065 = vmatprep.subr.mxu1 %v6534_v56 }
 0x368   : > { %5066 = vmatpush3.msra.mxu1 %v6502_v21 }
 0x369   : > { %5067 = vmatprep.subr.mxu1 %v6536_v59 }
 0x36a   : > { %5068 = vmatpush3.msra.mxu1 %v6504_v40 }
 0x36b   : > { %2292 = vmatmul.mubr.f32.vlgmr.msra.gmra.mxu1 %v8387_v38  ;;  %5072 = vmatprep.subr.mxu1 %v2328_v20  ;;  %v2297_v20 = vmul.f32 %v6504_v40, %v6504_v40 }
 0x36c   : > { %5073 = vmatpush3.msra.mxu1 %v2312_v48  ;;  %2393 = vmatprep.mubr.f32.mxu1 %v8387_v38 }
 0x36d   : > { %5074 = vmatprep.subr.mxu1 %v2327_v15 }
 0x36e   : > { %5075 = vmatpush3.msra.mxu1 %v2311_v16 }
 0x36f   : > { %5076 = vmatprep.subr.mxu1 %v2326_v10 }
 0x370   : > { %5077 = vmatpush3.msra.mxu1 %v2310_v41 }
 0x371   : > { %5078 = vmatprep.subr.mxu1 %v2325_v47 }
 0x372   : > { %5079 = vmatpush3.msra.mxu1 %v2309_v24 }
 0x373   : > { %5080 = vmatprep.subr.mxu1 %v2324_v6  ;;  %v2406_v6 = vlaneseq }
 0x374   : > { %5081 = vmatpush3.msra.mxu1 %v2308_v55 }
 0x375   : > { %5082 = vmatprep.subr.mxu1 %v2323_v60 }
 0x376   : > { %5083 = vmatpush3.msra.mxu1 %v2307_v30 }
 0x377   : > { %5084 = vmatprep.subr.mxu1 %v2322_v2  ;;  %v2407_v2 = vshrl.u32 %v2406_v6, 7 }
 0x378   : > { %5085 = vmatpush3.msra.mxu1 %v2306_v58 }
 0x379   : > { %5086 = vmatprep.subr.mxu1 %v2321_v39 }
 0x37a   : > { %5087 = vmatpush3.msra.mxu1 %v2305_v19  ;;  %v6666_v19 = vsub.s32 0, %v2407_v2 }
 0x37b   : > { %5088 = vmatprep.subr.mxu1 %v2320_v25 }
 0x37c   : > { %5089 = vmatpush3.msra.mxu1 %v2304_v49  ;;  %8406 = vst [vmem:[#allocation3_spill] sm:$0xff] %v6666_v19 }
 0x37d   : > { %5090 = vmatprep.subr.mxu1 %v2319_v26 }
 0x37e   : > { %5091 = vmatpush3.msra.mxu1 %v2303_v33 }
 0x37f   : > { %5092 = vmatprep.subr.mxu1 %v2318_v0 }
 0x380   : > { %5093 = vmatpush3.msra.mxu1 %v2302_v23 }
 0x381   : > { %5094 = vmatprep.subr.mxu1 %v2317_v17 }
 0x382   : > { %5095 = vmatpush3.msra.mxu1 %v2301_v4 }
 0x383   : > { %5096 = vmatprep.subr.mxu1 %v2316_v29 }
 0x384   : > { %5097 = vmatpush3.msra.mxu1 %v2300_v45 }
 0x385   : > { %5098 = vmatprep.subr.mxu1 %v2315_v31 }
 0x386   : > { %5099 = vmatpush3.msra.mxu1 %v2299_v50 }
 0x387   : > { %5100 = vmatprep.subr.mxu1 %v2314_v5 }
 0x388   : > { %5101 = vmatpush3.msra.mxu1 %v2298_v52 }
 0x389   : > { %5102 = vmatprep.subr.mxu1 %v2313_v53 }
 0x38a   : > { %5103 = vmatpush3.msra.mxu1 %v2297_v20 }
 0x38b   : > { %2394 = vmatmul.mubr.f32.vlgmr.msra.gmra.mxu1 %v8387_v38 }
 0x38c   : > { %4583 = vmatprep.mubr.f32.mxu1 %v8387_v38 }
 0x42b   : > { %v5069_v48 = vpop.f32.mrf.mxu1 }
 0x42d   : > { %v5070_v15 = vpop.f32.mrf.mxu1 }
 0x42e   : > { %v5071_v16 = vadd.f32 %v5070_v15, %v5069_v48 }
 0x430   : > { %v2399_v41 = vmul.f32 0.00390625, %v5071_v16 }
 0x432   : > { %v2401_v55 = vmul.f32 %v2399_v41, %v2399_v41  ;;  %v6669_v25 = vrot.slane %v2399_v41, %v6666_v19 }
 0x434   : > { %v2410_v49 = vsub.f32 %v6504_v40, %v6669_v25  ;;  %v2411_v26 = vsub.f32 %v6502_v21, %v6669_v25  ;;  %v2412_v33 = vsub.f32 %v6508_v46, %v6669_v25  ;;  %v2413_v0 = vsub.f32 %v6506_v36, %v6669_v25 }
 0x435   : > { %v2414_v23 = vsub.f32 %v6512_v7, %v6669_v25  ;;  %v2415_v17 = vsub.f32 %v6510_v9, %v6669_v25  ;;  %v2416_v4 = vsub.f32 %v6516_v43, %v6669_v25  ;;  %v2417_v40 = vsub.f32 %v6514_v27, %v6669_v25 }
 0x436   : > { %v2418_v21 = vsub.f32 %v6520_v62, %v6669_v25  ;;  %v2419_v46 = vsub.f32 %v6518_v13, %v6669_v25  ;;  %v2420_v36 = vsub.f32 %v6524_v22, %v6669_v25  ;;  %v2421_v7 = vsub.f32 %v6522_v28, %v6669_v25 }
 0x437   : > { %v2422_v9 = vsub.f32 %v6528_v51, %v6669_v25  ;;  %v2423_v43 = vsub.f32 %v6526_v14, %v6669_v25  ;;  %v2424_v27 = vsub.f32 %v6532_v32, %v6669_v25  ;;  %v2425_v62 = vsub.f32 %v6530_v18, %v6669_v25 }
 0x438   : > { %v2426_v13 = vsub.f32 %v6536_v59, %v6669_v25  ;;  %v2427_v22 = vsub.f32 %v6534_v56, %v6669_v25  ;;  %v2428_v28 = vsub.f32 %v6540_v35, %v6669_v25  ;;  %v2429_v51 = vsub.f32 %v6538_v3, %v6669_v25 }
 0x439   : > { %v2430_v14 = vsub.f32 %v6544_v63, %v6669_v25  ;;  %v2431_v32 = vsub.f32 %v6542_v11, %v6669_v25  ;;  %v2432_v18 = vsub.f32 %v6548_v42, %v6669_v25  ;;  %v2433_v59 = vsub.f32 %v6546_v54, %v6669_v25 }
 0x43a   : > { %v2434_v56 = vsub.f32 %v6552_v37, %v6669_v25  ;;  %v2435_v35 = vsub.f32 %v6550_v1, %v6669_v25  ;;  %v2436_v3 = vsub.f32 %v6556_v34, %v6669_v25  ;;  %v2437_v63 = vsub.f32 %v6554_v12, %v6669_v25 }
 0x43b   : > { %v2438_v42 = vsub.f32 %v6560_v57, %v6669_v25  ;;  %v2439_v54 = vsub.f32 %v6558_v8, %v6669_v25  ;;  %v2440_v37 = vsub.f32 %v6565_v44, %v6669_v25  ;;  %v2441_v1 = vsub.f32 %v6562_v61, %v6669_v25 }
 0x44b   : > { %v5104_v10 = vpop.f32.mrf.mxu1 }
 0x44d   : > { %v5105_v47 = vpop.f32.mrf.mxu1 }
 0x44e   : > { %v5106_v24 = vadd.f32 %v5105_v47, %v5104_v10 }
 0x450   : > { %v2400_v60 = vmul.f32 0.00390625, %v5106_v24 }
 0x452   : > { %v2402_v30 = vsub.f32 %v2400_v60, %v2401_v55 }
 0x454   : > { %v2403_v58 = vmax.f32 %v2402_v30, 0.0 }
 0x456   : > { %v2404_v39 = vadd.f32 1e-05, %v2403_v58 }
 0x458   : > { %5347 = vrsqrt.f32 %v2404_v39 }
 0x465   : > { %v5348_v29 = vpop.eup %5347 }
 0x466   : > { %v2445_v11 = vrot.slane %v5348_v29, %v6666_v19  ;;  %v4192_v19 = vld [vmem:[%s8385_s2 + $0x10] sm:$0xff] }
 0x468   : > { %v2446_v45 = vmul.f32 %v2445_v11, %v2410_v49  ;;  %v2447_v31 = vmul.f32 %v2445_v11, %v2411_v26  ;;  %v2448_v34 = vmul.f32 %v2445_v11, %v2412_v33  ;;  %v2449_v50 = vmul.f32 %v2445_v11, %v2413_v0 }
 0x469   : > { %v2450_v5 = vmul.f32 %v2445_v11, %v2414_v23  ;;  %v2451_v12 = vmul.f32 %v2445_v11, %v2415_v17  ;;  %v2452_v52 = vmul.f32 %v2445_v11, %v2416_v4  ;;  %v2453_v53 = vmul.f32 %v2445_v11, %v2417_v40 }
 0x46a   : > { %v2454_v20 = vmul.f32 %v2445_v11, %v2418_v21  ;;  %v2455_v48 = vmul.f32 %v2445_v11, %v2419_v46  ;;  %v2456_v57 = vmul.f32 %v2445_v11, %v2420_v36  ;;  %v2457_v15 = vmul.f32 %v2445_v11, %v2421_v7 }
 0x46b   : > { %v2458_v16 = vmul.f32 %v2445_v11, %v2422_v9  ;;  %v2459_v8 = vmul.f32 %v2445_v11, %v2423_v43  ;;  %v2460_v10 = vmul.f32 %v2445_v11, %v2424_v27  ;;  %v2461_v41 = vmul.f32 %v2445_v11, %v2425_v62 }
 0x46c   : > { %v2462_v44 = vmul.f32 %v2445_v11, %v2426_v13  ;;  %v2463_v47 = vmul.f32 %v2445_v11, %v2427_v22  ;;  %v2464_v24 = vmul.f32 %v2445_v11, %v2428_v28  ;;  %v2465_v61 = vmul.f32 %v2445_v11, %v2429_v51 }
 0x46d   : > { %v6736_v6 = vmul.f32 %v2445_v11, %v2430_v14  ;;  %v6738_v55 = vmul.f32 %v2445_v11, %v2431_v32  ;;  %v6740_v60 = vmul.f32 %v2445_v11, %v2432_v18  ;;  %v6742_v30 = vmul.f32 %v2445_v11, %v2433_v59 }
 0x46e   : > { %v6744_v2 = vmul.f32 %v2445_v11, %v2434_v56  ;;  %v6746_v58 = vmul.f32 %v2445_v11, %v2435_v35  ;;  %v6748_v39 = vmul.f32 %v2445_v11, %v2436_v3  ;;  %v6750_v25 = vmul.f32 %v2445_v11, %v2437_v63 }
 0x46f   : > { %v6752_v49 = vmul.f32 %v2445_v11, %v2438_v42  ;;  %v6754_v26 = vmul.f32 %v2445_v11, %v2439_v54  ;;  %v6756_v33 = vmul.f32 %v2445_v11, %v2440_v37  ;;  %v6758_v0 = vmul.f32 %v2445_v11, %v2441_v1 }
 0x470   : > { %v2478_v23 = vmax.f32 %v2446_v45, 0.0  ;;  %v2479_v17 = vmax.f32 %v2447_v31, 0.0  ;;  %v2480_v4 = vmax.f32 %v2448_v34, 0.0  ;;  %v2481_v40 = vmax.f32 %v2449_v50, 0.0 }
 0x471   : > { %v2482_v21 = vmax.f32 %v2450_v5, 0.0  ;;  %v2483_v46 = vmax.f32 %v2451_v12, 0.0  ;;  %v2484_v36 = vmax.f32 %v2452_v52, 0.0  ;;  %v2485_v7 = vmax.f32 %v2453_v53, 0.0 }
 0x472   : > { %2510 = vst.msk [vmem:[#allocation2 + $0x19] sm:$0xff] %vm204_vm0, %v2478_v23  ;;  %v2486_v9 = vmax.f32 %v2454_v20, 0.0  ;;  %v2487_v43 = vmax.f32 %v2455_v48, 0.0  ;;  %v2488_v27 = vmax.f32 %v2456_v57, 0.0  ;;  %v2489_v62 = vmax.f32 %v2457_v15, 0.0  ;;  %2511 = vst.msk [vmem:[#allocation2 + $0x21] sm:$0xff] %vm204_vm0, %v2479_v17 }
 0x473   : > { %2512 = vst.msk [vmem:[#allocation2 + $0x31] sm:$0xff] %vm204_vm0, %v2480_v4  ;;  %2513 = vst.msk [vmem:[#allocation2 + $0x39] sm:$0xff] %vm204_vm0, %v2481_v40  ;;  %v2490_v13 = vmax.f32 %v2458_v16, 0.0  ;;  %v2491_v22 = vmax.f32 %v2459_v8, 0.0  ;;  %v2492_v28 = vmax.f32 %v2460_v10, 0.0  ;;  %v2493_v51 = vmax.f32 %v2461_v41, 0.0 }
 0x474   : > { %2514 = vst.msk [vmem:[#allocation2 + $0x49] sm:$0xff] %vm204_vm0, %v2482_v21  ;;  %2515 = vst.msk [vmem:[#allocation2 + $0x51] sm:$0xff] %vm204_vm0, %v2483_v46  ;;  %v2494_v14 = vmax.f32 %v2462_v44, 0.0  ;;  %v2495_v29 = vmax.f32 %v2463_v47, 0.0  ;;  %v2496_v32 = vmax.f32 %v2464_v24, 0.0  ;;  %v2497_v18 = vmax.f32 %v2465_v61, 0.0 }
 0x475   : > { %2516 = vst.msk [vmem:[#allocation2 + $0x61] sm:$0xff] %vm204_vm0, %v2484_v36  ;;  %2517 = vst.msk [vmem:[#allocation2 + $0x69] sm:$0xff] %vm204_vm0, %v2485_v7  ;;  %v2498_v59 = vmax.f32 %v6736_v6, 0.0  ;;  %v2499_v56 = vmax.f32 %v6738_v55, 0.0  ;;  %v2500_v35 = vmax.f32 %v6740_v60, 0.0  ;;  %v2501_v3 = vmax.f32 %v6742_v30, 0.0 }
 0x476   : > { %2518 = vst.msk [vmem:[#allocation2 + $0x79] sm:$0xff] %vm204_vm0, %v2486_v9  ;;  %2519 = vst.msk [vmem:[#allocation2 + $0x81] sm:$0xff] %vm204_vm0, %v2487_v43  ;;  %v2502_v63 = vmax.f32 %v6744_v2, 0.0  ;;  %v2503_v11 = vmax.f32 %v6746_v58, 0.0  ;;  %v2504_v42 = vmax.f32 %v6748_v39, 0.0  ;;  %v2505_v54 = vmax.f32 %v6750_v25, 0.0 }
 0x477   : > { %2520 = vst.msk [vmem:[#allocation2 + $0x91] sm:$0xff] %vm204_vm0, %v2488_v27  ;;  %2521 = vst.msk [vmem:[#allocation2 + $0x99] sm:$0xff] %vm204_vm0, %v2489_v62  ;;  %v2506_v37 = vmax.f32 %v6752_v49, 0.0  ;;  %v2507_v1 = vmax.f32 %v6754_v26, 0.0  ;;  %v2508_v45 = vmax.f32 %v6756_v33, 0.0  ;;  %v2509_v31 = vmax.f32 %v6758_v0, 0.0 }
 0x478   : > { %2522 = vst.msk [vmem:[#allocation2 + $0xa9] sm:$0xff] %vm204_vm0, %v2490_v13  ;;  %2523 = vst.msk [vmem:[#allocation2 + $0xb1] sm:$0xff] %vm204_vm0, %v2491_v22 }
 0x479   : > { %2524 = vst.msk [vmem:[#allocation2 + $0xc1] sm:$0xff] %vm204_vm0, %v2492_v28  ;;  %2525 = vst.msk [vmem:[#allocation2 + $0xc9] sm:$0xff] %vm204_vm0, %v2493_v51  ;;  %v2750_v34 = vld [vmem:[#allocation2 + $0x19] sm:$0xff]  ;;  %v2751_v52 = vld [vmem:[#allocation2 + $0x21] sm:$0xff] }
 0x47a   : > { %2526 = vst.msk [vmem:[#allocation2 + $0xd9] sm:$0xff] %vm204_vm0, %v2494_v14  ;;  %2527 = vst.msk [vmem:[#allocation2 + $0xe1] sm:$0xff] %vm204_vm0, %v2495_v29  ;;  %v6800_v50 = vld [vmem:[#allocation2 + $0x20] sm:$0xff]  ;;  %3326 = vrot.lane.b32.xlu0 %v2750_v34, %s5359_s18  ;;  %v2846_v5 = vld [vmem:[#allocation2 + $0x31] sm:$0xff] }
 0x47b   : > { %2528 = vst.msk [vmem:[#allocation2 + $0xf1] sm:$0xff] %vm204_vm0, %v2496_v32  ;;  %2529 = vst.msk [vmem:[#allocation2 + $0xf9] sm:$0xff] %vm204_vm0, %v2497_v18  ;;  %3200 = vrot.lane.b32.xlu1 %v6800_v50, %s5360_s19  ;;  %v6809_v12 = vld [vmem:[#allocation2 + $0x39] sm:$0xff]  ;;  %v2552_v48 = vld [vmem:[#allocation2 + $0x32] sm:$0x1] }
 0x47c   : > { %2530 = vst.msk [vmem:[#allocation2 + $0x109] sm:$0xff] %vm204_vm0, %v2498_v59  ;;  %2531 = vst.msk [vmem:[#allocation2 + $0x111] sm:$0xff] %vm204_vm0, %v2499_v56  ;;  %v2782_v53 = vld [vmem:[#allocation2 + $0x1a] sm:$0xff]  ;;  %v2553_v16 = vld [vmem:[#allocation2 + $0x4a] sm:$0x1] }
 0x47d   : > { %2532 = vst.msk [vmem:[#allocation2 + $0x121] sm:$0xff] %vm204_vm0, %v2500_v35  ;;  %2533 = vst.msk [vmem:[#allocation2 + $0x129] sm:$0xff] %vm204_vm0, %v2501_v3  ;;  %v2551_v20 = vld [vmem:[#allocation2 + $0x1a] sm:$0x1]  ;;  %v2588_v57 = vld [vmem:[#allocation2 + $0x3f] sm:$0x1] }
 0x47e   : > { %2534 = vst.msk [vmem:[#allocation2 + $0x139] sm:$0xff] %vm204_vm0, %v2502_v63  ;;  %2535 = vst.msk [vmem:[#allocation2 + $0x141] sm:$0xff] %vm204_vm0, %v2503_v11  ;;  %3328 = vrot.lane.b32.xlu0 %v2751_v52, %s5359_s18  ;;  %v6820_v15 = vld [vmem:[#allocation2 + $0x38] sm:$0xff]  ;;  %v2589_v8 = vld [vmem:[#allocation2 + $0x57] sm:$0x1] }
 0x47f   : > { %2536 = vst.msk [vmem:[#allocation2 + $0x151] sm:$0xff] %vm204_vm0, %v2504_v42  ;;  %2537 = vst.msk [vmem:[#allocation2 + $0x159] sm:$0xff] %vm204_vm0, %v2505_v54  ;;  %2946 = vrot.lane.b32.xlu1 %v2750_v34, %s5361_s20  ;;  %v2554_v10 = vld [vmem:[#allocation2 + $0x62] sm:$0x1]  ;;  %v2587_v41 = vld [vmem:[#allocation2 + $0x27] sm:$0x1] }
 0x480   : > { %2538 = vst.msk [vmem:[#allocation2 + $0x169] sm:$0xff] %vm204_vm0, %v2506_v37  ;;  %2539 = vst.msk [vmem:[#allocation2 + $0x171] sm:$0xff] %vm204_vm0, %v2507_v1  ;;  %v2590_v44 = vld [vmem:[#allocation2 + $0x6f] sm:$0x1]  ;;  %v2555_v47 = vld [vmem:[#allocation2 + $0x7a] sm:$0x1] }
 0x481   : > { %2540 = vst.msk [vmem:[#allocation2 + $0x181] sm:$0xff] %vm204_vm0, %v2508_v45  ;;  %2541 = vst.msk [vmem:[#allocation2 + $0x189] sm:$0xff] %vm204_vm0, %v2509_v31  ;;  %v2591_v24 = vld [vmem:[#allocation2 + $0x87] sm:$0x1]  ;;  %v2556_v61 = vld [vmem:[#allocation2 + $0x92] sm:$0x1] }
 0x482   : > { %2544 = vst.msk [vmem:[#allocation2 + $0x1] sm:$0xff] %vm204_vm0, %v2846_v5  ;;  %2545 = vst.msk [vmem:[#allocation2 + $0x9] sm:$0xff] %vm204_vm0, %v6809_v12  ;;  %2948 = vrot.lane.b32.xlu0 %v2751_v52, %s5361_s20  ;;  %v2592_v6 = vld [vmem:[#allocation2 + $0x9f] sm:$0x1]  ;;  %v2557_v55 = vld [vmem:[#allocation2 + $0xaa] sm:$0x1] }
 0x483   : > { %3454 = vrot.lane.b32.xlu1 %v2782_v53, %s5362_s21  ;;  %2569 = vst.msk [vmem:[#allocation2 + $0x18] sm:$0x1] %vm266_vm1, %v2551_v20  ;;  %2570 = vst.msk [vmem:[#allocation2 + $0x30] sm:$0x1] %vm266_vm1, %v2552_v48  ;;  %v2593_v30 = vld [vmem:[#allocation2 + $0xb7] sm:$0x1] }
 0x484   : > { %2606 = vst.msk [vmem:[#allocation2 + $0x41] sm:$0x1] %vm266_vm1, %v2588_v57  ;;  %2571 = vst.msk [vmem:[#allocation2 + $0x48] sm:$0x1] %vm266_vm1, %v2553_v16  ;;  %v2558_v2 = vld [vmem:[#allocation2 + $0xc2] sm:$0x1] }
 0x485   : > { %2607 = vst.msk [vmem:[#allocation2 + $0x59] sm:$0x1] %vm266_vm1, %v2589_v8  ;;  %2572 = vst.msk [vmem:[#allocation2 + $0x60] sm:$0x1] %vm266_vm1, %v2554_v10  ;;  %v2594_v58 = vld [vmem:[#allocation2 + $0xcf] sm:$0x1] }
 0x486   : > { %2605 = vst.msk [vmem:[#allocation2 + $0x29] sm:$0x1] %vm266_vm1, %v2587_v41  ;;  %3584 = vrot.lane.b32.xlu0 %v6820_v15, %s5364_s23  ;;  %2608 = vst.msk [vmem:[#allocation2 + $0x71] sm:$0x1] %vm266_vm1, %v2590_v44  ;;  %v2559_v39 = vld [vmem:[#allocation2 + $0xda] sm:$0x1] }
 0x487   : > { %3074 = vrot.lane.b32.xlu1 %v2782_v53, %s5363_s22  ;;  %2573 = vst.msk [vmem:[#allocation2 + $0x78] sm:$0x1] %vm266_vm1, %v2555_v47  ;;  %2609 = vst.msk [vmem:[#allocation2 + $0x89] sm:$0x1] %vm266_vm1, %v2591_v24  ;;  %v2878_v49 = vld [vmem:[#allocation2 + $0x32] sm:$0xff]  ;;  %v2848_v9 = vld [vmem:[#allocation2 + $0x49] sm:$0xff] }
 0x488   : > { %2574 = vst.msk [vmem:[#allocation2 + $0x90] sm:$0x1] %vm266_vm1, %v2556_v61  ;;  %2610 = vst.msk [vmem:[#allocation2 + $0xa1] sm:$0x1] %vm266_vm1, %v2592_v6  ;;  %v2595_v26 = vld [vmem:[#allocation2 + $0xe7] sm:$0x1] }
 0x489   : > { %2575 = vst.msk [vmem:[#allocation2 + $0xa8] sm:$0x1] %vm266_vm1, %v2557_v55  ;;  %v2586_v60 = vld [vmem:[#allocation2 + $0xf] sm:$0x1]  ;;  %2611 = vst.msk [vmem:[#allocation2 + $0xb9] sm:$0x1] %vm266_vm1, %v2593_v30 }
 0x48a   : > { %2604 = vst.msk [vmem:[#allocation2 + $0x11] sm:$0x1] %vm266_vm1, %v2586_v60  ;;  %2576 = vst.msk [vmem:[#allocation2 + $0xc0] sm:$0x1] %vm266_vm1, %v2558_v2  ;;  %3204 = vrot.lane.b32.xlu0 %v6820_v15, %s5360_s19  ;;  %v2550_v25 = vld [vmem:[#allocation2 + $0x2] sm:$0x1] }
 0x48b   : > { %3710 = vrot.lane.b32.xlu1 %v2846_v5, %s5365_s5  ;;  %2612 = vst.msk [vmem:[#allocation2 + $0xd1] sm:$0x1] %vm266_vm1, %v2594_v58  ;;  %2577 = vst.msk [vmem:[#allocation2 + $0xd8] sm:$0x1] %vm266_vm1, %v2559_v39  ;;  %v2560_v33 = vld [vmem:[#allocation2 + $0xf2] sm:$0x1] }
 0x48c   : > { %2568 = vst.msk [vmem:[#allocation2] sm:$0x1] %vm266_vm1, %v2550_v25  ;;  %2613 = vst.msk [vmem:[#allocation2 + $0xe9] sm:$0x1] %vm266_vm1, %v2595_v26  ;;  %v2596_v0 = vld [vmem:[#allocation2 + $0xff] sm:$0x1] }
 0x48d   : > { %2578 = vst.msk [vmem:[#allocation2 + $0xf0] sm:$0x1] %vm266_vm1, %v2560_v33  ;;  %v2561_v23 = vld [vmem:[#allocation2 + $0x10a] sm:$0x1]  ;;  %2614 = vst.msk [vmem:[#allocation2 + $0x101] sm:$0x1] %vm266_vm1, %v2596_v0 }
 0x48e   : > { %3712 = vrot.lane.b32.xlu0 %v6809_v12, %s5365_s5  ;;  %2579 = vst.msk [vmem:[#allocation2 + $0x108] sm:$0x1] %vm266_vm1, %v2561_v23  ;;  %v2597_v17 = vld [vmem:[#allocation2 + $0x117] sm:$0x1]  ;;  %v2562_v4 = vld [vmem:[#allocation2 + $0x122] sm:$0x1] }
 0x48f   : > { %3330 = vrot.lane.b32.xlu1 %v2846_v5, %s5359_s18  ;;  %2615 = vst.msk [vmem:[#allocation2 + $0x119] sm:$0x1] %vm266_vm1, %v2597_v17  ;;  %2580 = vst.msk [vmem:[#allocation2 + $0x120] sm:$0x1] %vm266_vm1, %v2562_v4  ;;  %v2598_v40 = vld [vmem:[#allocation2 + $0x12f] sm:$0x1] }
 0x490   : > { %v2563_v21 = vld [vmem:[#allocation2 + $0x13a] sm:$0x1]  ;;  %2616 = vst.msk [vmem:[#allocation2 + $0x131] sm:$0x1] %vm266_vm1, %v2598_v40  ;;  %v2599_v46 = vld [vmem:[#allocation2 + $0x147] sm:$0x1] }
 0x491   : > { %2581 = vst.msk [vmem:[#allocation2 + $0x138] sm:$0x1] %vm266_vm1, %v2563_v21  ;;  %2617 = vst.msk [vmem:[#allocation2 + $0x149] sm:$0x1] %vm266_vm1, %v2599_v46  ;;  %v2564_v36 = vld [vmem:[#allocation2 + $0x152] sm:$0x1] }
 0x492   : > { %2950 = vrot.lane.b32.xlu0 %v2846_v5, %s5361_s20  ;;  %v6865_v7 = vld [vmem:[#allocation2 + $0x50] sm:$0xff]  ;;  %2582 = vst.msk [vmem:[#allocation2 + $0x150] sm:$0x1] %vm266_vm1, %v2564_v36  ;;  %v2600_v43 = vld [vmem:[#allocation2 + $0x15f] sm:$0x1]  ;;  %v2850_v59 = vld [vmem:[#allocation2 + $0x61] sm:$0xff] }
 0x493   : > { %3838 = vrot.lane.b32.xlu1 %v2878_v49, %s5366_s8  ;;  %v2565_v27 = vld [vmem:[#allocation2 + $0x16a] sm:$0x1]  ;;  %2618 = vst.msk [vmem:[#allocation2 + $0x161] sm:$0x1] %vm266_vm1, %v2600_v43  ;;  %v6875_v13 = vld [vmem:[#allocation2 + $0x171] sm:$0xff]  ;;  %v2882_v35 = vld [vmem:[#allocation2 + $0x62] sm:$0xff] }
 0x494   : > { %v6871_v62 = vld [vmem:[#allocation2 + $0x169] sm:$0xff]  ;;  %2583 = vst.msk [vmem:[#allocation2 + $0x168] sm:$0x1] %vm266_vm1, %v2565_v27  ;;  %8408 = vst [vmem:[#allocation5_spill] sm:$0xff] %v6875_v13  ;;  %v2601_v22 = vld [vmem:[#allocation2 + $0x177] sm:$0x1] }
 0x495   : > { %8407 = vst [vmem:[#allocation4_spill] sm:$0xff] %v6871_v62  ;;  %2548 = vst.msk [vmem:[#allocation2 + $0x199] sm:$0xff] %vm204_vm0, %v6871_v62  ;;  %v2566_v28 = vld [vmem:[#allocation2 + $0x182] sm:$0x1]  ;;  %v2602_v51 = vld [vmem:[#allocation2 + $0x18f] sm:$0x1] }
 0x496   : > { %3458 = vrot.lane.b32.xlu0 %v2878_v49, %s5362_s21  ;;  %2549 = vst.msk [vmem:[#allocation2 + $0x1a1] sm:$0xff] %vm204_vm0, %v6875_v13  ;;  %v2849_v14 = vld [vmem:[#allocation2 + $0x51] sm:$0xff]  ;;  %v6897_v56 = vld [vmem:[#allocation2 + $0x68] sm:$0xff]  ;;  %v2852_v63 = vld [vmem:[#allocation2 + $0x79] sm:$0xff] }
 0x497   : > { %3332 = vrot.lane.b32.xlu1 %v6809_v12, %s5359_s18  ;;  %2619 = vst.msk [vmem:[#allocation2 + $0x179] sm:$0x1] %vm266_vm1, %v2601_v22  ;;  %2584 = vst.msk [vmem:[#allocation2 + $0x180] sm:$0x1] %vm266_vm1, %v2566_v28  ;;  %v2880_v29 = vld [vmem:[#allocation2 + $0x4a] sm:$0xff]  ;;  %v6913_v11 = vld [vmem:[#allocation2 + $0x80] sm:$0xff] }
 0x498   : > { %2620 = vst.msk [vmem:[#allocation2 + $0x191] sm:$0x1] %vm266_vm1, %v2602_v51  ;;  %v2851_v3 = vld [vmem:[#allocation2 + $0x69] sm:$0xff]  ;;  %8409 = vst [vmem:[#allocation6_spill] sm:$0xff] %v6913_v11  ;;  %v2884_v42 = vld [vmem:[#allocation2 + $0x7a] sm:$0xff] }
 0x499   : > { %v2759_v54 = vld [vmem:[#allocation2 + $0x81] sm:$0xff]  ;;  %v2854_v37 = vld [vmem:[#allocation2 + $0x91] sm:$0xff]  ;;  %v2761_v31 = vld [vmem:[#allocation2 + $0x99] sm:$0xff] }
 0x49a   : > { %2952 = vrot.lane.b32.xlu0 %v6809_v12, %s5361_s20  ;;  %v2886_v1 = vld [vmem:[#allocation2 + $0x92] sm:$0xff]  ;;  %v6941_v12 = vld [vmem:[#allocation2 + $0xa9] sm:$0xff]  ;;  %v2879_v6 = vld [vmem:[#allocation2 + $0x3a] sm:$0xff] }
 0x49b   : > { %3078 = vrot.lane.b32.xlu1 %v2878_v49, %s5363_s22  ;;  %v6929_v45 = vld [vmem:[#allocation2 + $0x98] sm:$0xff]  ;;  %v2655_v57 = vld [vmem:[#allocation2 + $0x9] sm:$0xff]  ;;  %v2654_v30 = vld [vmem:[#allocation2 + $0x1] sm:$0xff] }
 0x49c   : > { %v2567_v32 = vld [vmem:[#allocation2 + $0x19a] sm:$0x1]  ;;  %8410 = vst [vmem:[#allocation7_spill] sm:$0xff] %v6929_v45  ;;  %v6963_v10 = vld [vmem:[#allocation2 + $0x30] sm:$0xff]  ;;  %v6989_v2 = vld [vmem:[#allocation2 + $0x48] sm:$0xff] }
 0x49d   : > { %2585 = vst.msk [vmem:[#allocation2 + $0x198] sm:$0x1] %vm266_vm1, %v2567_v32  ;;  %v2603_v18 = vld [vmem:[#allocation2 + $0x1a7] sm:$0x1]  ;;  %v6972_v47 = vld [vmem:[#allocation2 + $0xb0] sm:$0xff]  ;;  %v7005_v33 = vld [vmem:[#allocation2 + $0x18] sm:$0xff] }
 0x49e   : > { %3588 = vrot.lane.b32.xlu0 %v6865_v7, %s5364_s23  ;;  %2621 = vst.msk [vmem:[#allocation2 + $0x1a9] sm:$0x1] %vm266_vm1, %v2603_v18  ;;  %8411 = vst [vmem:[#allocation8_spill] sm:$0xff] %v6972_v47  ;;  %v2686_v25 = vld [vmem:[#allocation2 + $0x2] sm:$0xff]  ;;  %v2881_v0 = vld [vmem:[#allocation2 + $0x52] sm:$0xff] }
 0x49f   : > { %3714 = vrot.lane.b32.xlu1 %v2848_v9, %s5365_s5  ;;  %v7014_v4 = vld [vmem:[#allocation2 + $0x60] sm:$0xff]  ;;  %v2883_v43 = vld [vmem:[#allocation2 + $0x6a] sm:$0xff]  ;;  %v7036_v28 = vld [vmem:[#allocation2 + $0x78] sm:$0xff] }
 0x4a0   : > { %v2783_v40 = vld [vmem:[#allocation2 + $0x22] sm:$0xff]  ;;  %v2763_v62 = vld [vmem:[#allocation2 + $0xb1] sm:$0xff] }
 0x4a1   : > { %v2885_v18 = vld [vmem:[#allocation2 + $0x82] sm:$0xff] }
 0x4a2   : > { %3208 = vrot.lane.b32.xlu0 %v6865_v7, %s5360_s19 }
 0x4a3   : > { %3334 = vrot.lane.b32.xlu1 %v2848_v9, %s5359_s18 }
 0x4a6   : > { %3716 = vrot.lane.b32.xlu0 %v2849_v14, %s5365_s5 }
 0x4a7   : > { %3842 = vrot.lane.b32.xlu1 %v2880_v29, %s5366_s8 }
 0x4aa   : > { %2954 = vrot.lane.b32.xlu0 %v2848_v9, %s5361_s20 }
 0x4ab   : > { %3336 = vrot.lane.b32.xlu1 %v2849_v14, %s5359_s18 }
 0x4ae   : > { %3462 = vrot.lane.b32.xlu0 %v2880_v29, %s5362_s21 }
 0x4af   : > { %3082 = vrot.lane.b32.xlu1 %v2880_v29, %s5363_s22 }
 0x4b2   : > { %2956 = vrot.lane.b32.xlu0 %v2849_v14, %s5361_s20 }
 0x4b3   : > { %3718 = vrot.lane.b32.xlu1 %v2850_v59, %s5365_s5 }
 0x4b6   : > { %3592 = vrot.lane.b32.xlu0 %v6897_v56, %s5364_s23 }
 0x4b7   : > { %3338 = vrot.lane.b32.xlu1 %v2850_v59, %s5359_s18 }
 0x4ba   : > { %3212 = vrot.lane.b32.xlu0 %v6897_v56, %s5360_s19 }
 0x4bb   : > { %3846 = vrot.lane.b32.xlu1 %v2882_v35, %s5366_s8 }
 0x4be   : > { %3720 = vrot.lane.b32.xlu0 %v2851_v3, %s5365_s5 }
 0x4bf   : > { %3340 = vrot.lane.b32.xlu1 %v2851_v3, %s5359_s18 }
 0x4c2   : > { %2958 = vrot.lane.b32.xlu0 %v2850_v59, %s5361_s20 }
 0x4c3   : > { %3086 = vrot.lane.b32.xlu1 %v2882_v35, %s5363_s22 }
 0x4c6   : > { %3466 = vrot.lane.b32.xlu0 %v2882_v35, %s5362_s21 }
 0x4c7   : > { %3722 = vrot.lane.b32.xlu1 %v2852_v63, %s5365_s5 }
 0x4ca   : > { %2960 = vrot.lane.b32.xlu0 %v2851_v3, %s5361_s20  ;;  %v7058_v3 = vld [vmem:[#allocation2 + $0x90] sm:$0xff] }
 0x4cb   : > { %3342 = vrot.lane.b32.xlu1 %v2852_v63, %s5359_s18  ;;  %8416 = vst [vmem:[#allocation13_spill] sm:$0xff] %v7058_v3 }
 0x4ce   : > { %3596 = vrot.lane.b32.xlu0 %v6913_v11, %s5364_s23 }
 0x4cf   : > { %3850 = vrot.lane.b32.xlu1 %v2884_v42, %s5366_s8 }
 0x4d2   : > { %3216 = vrot.lane.b32.xlu0 %v6913_v11, %s5360_s19 }
 0x4d3   : > { %3344 = vrot.lane.b32.xlu1 %v2759_v54, %s5359_s18 }
 0x4d6   : > { %3724 = vrot.lane.b32.xlu0 %v2759_v54, %s5365_s5 }
 0x4d7   : > { %3090 = vrot.lane.b32.xlu1 %v2884_v42, %s5363_s22 }
 0x4da   : > { %2962 = vrot.lane.b32.xlu0 %v2852_v63, %s5361_s20 }
 0x4db   : > { %3726 = vrot.lane.b32.xlu1 %v2854_v37, %s5365_s5 }
 0x4de   : > { %3470 = vrot.lane.b32.xlu0 %v2884_v42, %s5362_s21 }
 0x4df   : > { %3346 = vrot.lane.b32.xlu1 %v2854_v37, %s5359_s18 }
 0x4e2   : > { %2964 = vrot.lane.b32.xlu0 %v2759_v54, %s5361_s20 }
 0x4e3   : > { %3854 = vrot.lane.b32.xlu1 %v2886_v1, %s5366_s8 }
 0x4e6   : > { %3600 = vrot.lane.b32.xlu0 %v6929_v45, %s5364_s23 }
 0x4e7   : > { %3348 = vrot.lane.b32.xlu1 %v2761_v31, %s5359_s18 }
 0x4ea   : > { %3220 = vrot.lane.b32.xlu0 %v6929_v45, %s5360_s19  ;;  %v2687_v45 = vld [vmem:[#allocation2 + $0xa] sm:$0xff] }
 0x4eb   : > { %3094 = vrot.lane.b32.xlu1 %v2886_v1, %s5363_s22 }
 0x4ec   : > { %v6937_v34 = vpop.permute.xlu0 %3326 }
 0x4ed   : > { %v6939_v5 = vpop.permute.xlu1 %3200 }
 0x4ee   : > { %3728 = vrot.lane.b32.xlu0 %v2761_v31, %s5365_s5 }
 0x4ef   : > { %3730 = vrot.lane.b32.xlu1 %v6941_v12, %s5365_s5 }
 0x4f0   : > { %v6946_v52 = vpop.permute.xlu0 %3328 }
 0x4f1   : > { %v6948_v53 = vpop.permute.xlu1 %2946 }
 0x4f2   : > { %2966 = vrot.lane.b32.xlu0 %v2854_v37, %s5361_s20 }
 0x4f3   : > { %3350 = vrot.lane.b32.xlu1 %v6941_v12, %s5359_s18 }
 0x4f4   : > { %v6953_v20 = vpop.permute.xlu0 %2948 }
 0x4f5   : > { %v6955_v48 = vpop.permute.xlu1 %3454 }
 0x4f6   : > { %3474 = vrot.lane.b32.xlu0 %v2886_v1, %s5362_s21  ;;  %v2887_v1 = vld [vmem:[#allocation2 + $0x9a] sm:$0xff] }
 0x4f7   : > { %2944 = vrot.lane.b32.xlu1 %v2655_v57, %s5361_s20 }
 0x4f8   : > { %v6959_v16 = vpop.permute.xlu0 %3584 }
 0x4f9   : > { %v6961_v8 = vpop.permute.xlu1 %3074 }
 0x4fa   : > { %2968 = vrot.lane.b32.xlu0 %v2761_v31, %s5361_s20 }
 0x4fb   : > { %3582 = vrot.lane.b32.xlu1 %v6963_v10, %s5364_s23 }
 0x4fc   : > { %v6968_v41 = vpop.permute.xlu0 %3204 }
 0x4fd   : > { %v6970_v44 = vpop.permute.xlu1 %3710 }
 0x4fe   : > { %3604 = vrot.lane.b32.xlu0 %v6972_v47, %s5364_s23 }
 0x4ff   : > { %3202 = vrot.lane.b32.xlu1 %v6963_v10, %s5360_s19 }
 0x500   : > { %v6978_v24 = vpop.permute.xlu0 %3712 }
 0x501   : > { %v6980_v61 = vpop.permute.xlu1 %3330 }
 0x502   : > { %3224 = vrot.lane.b32.xlu0 %v6972_v47, %s5360_s19  ;;  %v4190_v47 = vld [vmem:[%s8385_s2] sm:$0xff] }
 0x503   : > { %3840 = vrot.lane.b32.xlu1 %v2879_v6, %s5366_s8 }
 0x504   : > { %v6985_v55 = vpop.permute.xlu0 %2950 }
 0x505   : > { %v6987_v60 = vpop.permute.xlu1 %3838 }
 0x506   : > { %2942 = vrot.lane.b32.xlu0 %v2654_v30, %s5361_s20  ;;  %v4194_v30 = vld [vmem:[%s8385_s2 + $0x20] sm:$0xf] }
 0x507   : > { %3586 = vrot.lane.b32.xlu1 %v6989_v2, %s5364_s23  ;;  %5272 = vmatprep.subr.msk.mxu0 %vm1998_vm2, %v4194_v30 }
 0x508   : > { %v6994_v58 = vpop.permute.xlu0 %3458  ;;  %5273 = vmatpush3.msk.msra.mxu0 %vm1998_vm2, %v4194_v30  ;;  %v4191_v30 = vld [vmem:[%s8385_s2 + $0x8] sm:$0xff] }
 0x509   : > { %v6996_v39 = vpop.permute.xlu1 %3332 }
 0x50a   : > { %3070 = vrot.lane.b32.xlu0 %v2686_v25, %s5363_s22  ;;  %v4193_v25 = vld [vmem:[%s8385_s2 + $0x18] sm:$0xff] }
 0x50b   : > { %3206 = vrot.lane.b32.xlu1 %v6989_v2, %s5360_s19  ;;  %5274 = vmatprep.subr.mxu0 %v4193_v25 }
 0x50c   : > { %v7001_v49 = vpop.permute.xlu0 %2952  ;;  %5275 = vmatpush3.msra.mxu0 %v4193_v25 }
 0x50d   : > { %v7003_v26 = vpop.permute.xlu1 %3078  ;;  %5276 = vmatprep.subr.mxu0 %v4192_v19 }
 0x50e   : > { %3198 = vrot.lane.b32.xlu0 %v7005_v33, %s5360_s19  ;;  %5277 = vmatpush3.msra.mxu0 %v4192_v19 }
 0x50f   : > { %3844 = vrot.lane.b32.xlu1 %v2881_v0, %s5366_s8  ;;  %5278 = vmatprep.subr.mxu0 %v4191_v30 }
 0x510   : > { %v7010_v23 = vpop.permute.xlu0 %3588  ;;  %5279 = vmatpush3.msra.mxu0 %v4191_v30 }
 0x511   : > { %v7012_v17 = vpop.permute.xlu1 %3714  ;;  %5280 = vmatprep.subr.mxu0 %v4190_v47 }
 0x512   : > { %3456 = vrot.lane.b32.xlu0 %v2783_v40, %s5362_s21  ;;  %5281 = vmatpush3.msra.mxu0 %v4190_v47  ;;  %v7144_v47 = vld [vmem:[#allocation2 + $0xc0] sm:$0xff] }
 0x513   : > { %3590 = vrot.lane.b32.xlu1 %v7014_v4, %s5364_s23  ;;  %8432 = vst [vmem:[#allocation29_spill] sm:$0xff] %v7144_v47 }
 0x514   : > { %v7019_v21 = vpop.permute.xlu0 %3208 }
 0x515   : > { %v7021_v46 = vpop.permute.xlu1 %3334 }
 0x516   : > { %3076 = vrot.lane.b32.xlu0 %v2783_v40, %s5363_s22 }
 0x517   : > { %3210 = vrot.lane.b32.xlu1 %v7014_v4, %s5360_s19 }
 0x518   : > { %v7026_v36 = vpop.permute.xlu0 %3716 }
 0x519   : > { %8412 = vst [vmem:[#allocation9_spill] sm:$0xff] %v7026_v36  ;;  %v7028_v9 = vpop.permute.xlu1 %3842  ;;  %v2861_v36 = vld [vmem:[#allocation2 + $0xe1] sm:$0xff] }
 0x51a   : > { %8413 = vst [vmem:[#allocation10_spill] sm:$0xff] %v7028_v9  ;;  %3460 = vrot.lane.b32.xlu0 %v2879_v6, %s5362_s21 }
 0x51b   : > { %3848 = vrot.lane.b32.xlu1 %v2883_v43, %s5366_s8 }
 0x51c   : > { %v7032_v27 = vpop.permute.xlu0 %2954 }
 0x51d   : > { %v7034_v22 = vpop.permute.xlu1 %3336 }
 0x51e   : > { %3080 = vrot.lane.b32.xlu0 %v2879_v6, %s5363_s22  ;;  %v7080_v6 = vld [vmem:[#allocation2 + $0xa8] sm:$0xff] }
 0x51f   : > { %3594 = vrot.lane.b32.xlu1 %v7036_v28, %s5364_s23  ;;  %8419 = vst [vmem:[#allocation16_spill] sm:$0xff] %v7080_v6 }
 0x520   : > { %v7041_v51 = vpop.permute.xlu0 %3462 }
 0x521   : > { %v7043_v14 = vpop.permute.xlu1 %3082 }
 0x522   : > { %3464 = vrot.lane.b32.xlu0 %v2881_v0, %s5362_s21 }
 0x523   : > { %3214 = vrot.lane.b32.xlu1 %v7036_v28, %s5360_s19 }
 0x524   : > { %v7048_v29 = vpop.permute.xlu0 %2956 }
 0x525   : > { %v7050_v32 = vpop.permute.xlu1 %3718 }
 0x526   : > { %8414 = vst [vmem:[#allocation11_spill] sm:$0xff] %v7050_v32  ;;  %3084 = vrot.lane.b32.xlu0 %v2881_v0, %s5363_s22  ;;  %v2892_v32 = vld [vmem:[#allocation2 + $0xda] sm:$0xff] }
 0x527   : > { %3852 = vrot.lane.b32.xlu1 %v2885_v18, %s5366_s8 }
 0x528   : > { %v7054_v59 = vpop.permute.xlu0 %3592 }
 0x529   : > { %8415 = vst [vmem:[#allocation12_spill] sm:$0xff] %v7054_v59  ;;  %v7056_v35 = vpop.permute.xlu1 %3338 }
 0x52a   : > { %3468 = vrot.lane.b32.xlu0 %v2883_v43, %s5362_s21 }
 0x52b   : > { %3598 = vrot.lane.b32.xlu1 %v7058_v3, %s5364_s23 }
 0x52c   : > { %v7063_v63 = vpop.permute.xlu0 %3212 }
 0x52d   : > { %v7065_v42 = vpop.permute.xlu1 %3846 }
 0x52e   : > { %8417 = vst [vmem:[#allocation14_spill] sm:$0xff] %v7065_v42  ;;  %3088 = vrot.lane.b32.xlu0 %v2883_v43, %s5363_s22  ;;  %v2888_v43 = vld [vmem:[#allocation2 + $0xaa] sm:$0xff] }
 0x52f   : > { %3218 = vrot.lane.b32.xlu1 %v7058_v3, %s5360_s19 }
 0x530   : > { %v7070_v54 = vpop.permute.xlu0 %3720 }
 0x531   : > { %8418 = vst [vmem:[#allocation15_spill] sm:$0xff] %v7070_v54  ;;  %v7072_v37 = vpop.permute.xlu1 %3340 }
 0x532   : > { %3472 = vrot.lane.b32.xlu0 %v2885_v18, %s5362_s21 }
 0x533   : > { %3856 = vrot.lane.b32.xlu1 %v2887_v1, %s5366_s8 }
 0x534   : > { %v7076_v31 = vpop.permute.xlu0 %2958 }
 0x535   : > { %v7078_v57 = vpop.permute.xlu1 %3086 }
 0x536   : > { %3092 = vrot.lane.b32.xlu0 %v2885_v18, %s5363_s22 }
 0x537   : > { %3602 = vrot.lane.b32.xlu1 %v7080_v6, %s5364_s23 }
 0x538   : > { %v7092_v0 = vpop.permute.xlu0 %3466 }
 0x539   : > { %8420 = vst [vmem:[#allocation17_spill] sm:$0xff] %v7092_v0  ;;  %v7094_v40 = vpop.permute.xlu1 %3722 }
 0x53a   : > { %8421 = vst [vmem:[#allocation18_spill] sm:$0xff] %v7094_v40  ;;  %3476 = vrot.lane.b32.xlu0 %v2887_v1, %s5362_s21 }
 0x53b   : > { %3858 = vrot.lane.b32.xlu1 %v2888_v43, %s5366_s8 }
 0x53c   : > { %v7099_v18 = vpop.permute.xlu0 %2960 }
 0x53d   : > { %v7101_v38 = vpop.permute.xlu1 %3342 }
 0x53e   : > { %8422 = vst [vmem:[#allocation19_spill] sm:$0xff] %v7101_v38  ;;  %3096 = vrot.lane.b32.xlu0 %v2887_v1, %s5363_s22 }
 0x53f   : > { %3222 = vrot.lane.b32.xlu1 %v7080_v6, %s5360_s19 }
 0x540   : > { %v7112_v13 = vpop.permute.xlu0 %3596 }
 0x541   : > { %8423 = vst [vmem:[#allocation20_spill] sm:$0xff] %v7112_v13  ;;  %v7114_v25 = vpop.permute.xlu1 %3850 }
 0x542   : > { %8424 = vst [vmem:[#allocation21_spill] sm:$0xff] %v7114_v25  ;;  %3732 = vrot.lane.b32.xlu0 %v2763_v62, %s5365_s5  ;;  %v2889_v25 = vld [vmem:[#allocation2 + $0xb2] sm:$0xff] }
 0x543   : > { %3352 = vrot.lane.b32.xlu1 %v2763_v62, %s5359_s18 }
 0x544   : > { %v7121_v1 = vpop.permute.xlu0 %3216 }
 0x545   : > { %8425 = vst [vmem:[#allocation22_spill] sm:$0xff] %v7121_v1  ;;  %v7123_v6 = vpop.permute.xlu1 %3344 }
 0x546   : > { %8426 = vst [vmem:[#allocation23_spill] sm:$0xff] %v7123_v6  ;;  %2970 = vrot.lane.b32.xlu0 %v6941_v12, %s5361_s20  ;;  %v2622_v6 = vld [vmem:[#allocation2] sm:$0xff] }
 0x547   : > { %3072 = vrot.lane.b32.xlu1 %v2687_v45, %s5363_s22 }
 0x548   : > { %v7128_v19 = vpop.permute.xlu0 %3724 }
 0x549   : > { %8427 = vst [vmem:[#allocation24_spill] sm:$0xff] %v7128_v19  ;;  %v7130_v3 = vpop.permute.xlu1 %3090 }
 0x54a   : > { %8428 = vst [vmem:[#allocation25_spill] sm:$0xff] %v7130_v3  ;;  %3478 = vrot.lane.b32.xlu0 %v2888_v43, %s5362_s21 }
 0x54b   : > { %3860 = vrot.lane.b32.xlu1 %v2889_v25, %s5366_s8 }
 0x54c   : > { %v7134_v30 = vpop.permute.xlu0 %2962 }
 0x54d   : > { %v7136_v13 = vpop.permute.xlu1 %3726 }
 0x54e   : > { %8429 = vst [vmem:[#allocation26_spill] sm:$0xff] %v7136_v13  ;;  %2972 = vrot.lane.b32.xlu0 %v2763_v62, %s5361_s20  ;;  %v2858_v13 = vld [vmem:[#allocation2 + $0xc1] sm:$0xff] }
 0x54f   : > { %3098 = vrot.lane.b32.xlu1 %v2888_v43, %s5363_s22 }
 0x550   : > { %v7140_v45 = vpop.permute.xlu0 %3470 }
 0x551   : > { %8430 = vst [vmem:[#allocation27_spill] sm:$0xff] %v7140_v45  ;;  %v7142_v12 = vpop.permute.xlu1 %3346 }
 0x552   : > { %8431 = vst [vmem:[#allocation28_spill] sm:$0xff] %v7142_v12  ;;  %3480 = vrot.lane.b32.xlu0 %v2889_v25, %s5362_s21  ;;  %v7160_v12 = vld [vmem:[#allocation2 + $0xc8] sm:$0xff] }
 0x553   : > { %3606 = vrot.lane.b32.xlu1 %v7144_v47, %s5364_s23  ;;  %8437 = vst [vmem:[#allocation34_spill] sm:$0xff] %v7160_v12 }
 0x554   : > { %v7149_v19 = vpop.permute.xlu0 %2964 }
 0x555   : > { %8433 = vst [vmem:[#allocation30_spill] sm:$0xff] %v7149_v19  ;;  %v7151_v54 = vpop.permute.xlu1 %3854 }
 0x556   : > { %8434 = vst [vmem:[#allocation31_spill] sm:$0xff] %v7151_v54  ;;  %3100 = vrot.lane.b32.xlu0 %v2889_v25, %s5363_s22 }
 0x557   : > { %3226 = vrot.lane.b32.xlu1 %v7144_v47, %s5360_s19 }
 0x558   : > { %v7156_v62 = vpop.permute.xlu0 %3600 }
 0x559   : > { %8435 = vst [vmem:[#allocation32_spill] sm:$0xff] %v7156_v62  ;;  %v7158_v43 = vpop.permute.xlu1 %3348  ;;  %v2859_v62 = vld [vmem:[#allocation2 + $0xc9] sm:$0xff] }
 0x55a   : > { %8436 = vst [vmem:[#allocation33_spill] sm:$0xff] %v7158_v43  ;;  %3608 = vrot.lane.b32.xlu0 %v7160_v12, %s5364_s23  ;;  %v2890_v43 = vld [vmem:[#allocation2 + $0xc2] sm:$0xff] }
 0x55b   : > { %3734 = vrot.lane.b32.xlu1 %v2858_v13, %s5365_s5 }
 0x55c   : > { %v7165_v45 = vpop.permute.xlu0 %3220 }
 0x55d   : > { %8438 = vst [vmem:[#allocation35_spill] sm:$0xff] %v7165_v45  ;;  %v7167_v54 = vpop.permute.xlu1 %3094 }
 0x55e   : > { %8439 = vst [vmem:[#allocation36_spill] sm:$0xff] %v7167_v54  ;;  %3228 = vrot.lane.b32.xlu0 %v7160_v12, %s5360_s19 }
 0x55f   : > { %3354 = vrot.lane.b32.xlu1 %v2858_v13, %s5359_s18 }
 0x560   : > { %v7172_v25 = vpop.permute.xlu0 %3728 }
 0x561   : > { %8440 = vst [vmem:[#allocation37_spill] sm:$0xff] %v7172_v25  ;;  %v7174_v47 = vpop.permute.xlu1 %3730  ;;  %v2891_v25 = vld [vmem:[#allocation2 + $0xca] sm:$0xff] }
 0x562   : > { %8441 = vst [vmem:[#allocation38_spill] sm:$0xff] %v7174_v47  ;;  %3736 = vrot.lane.b32.xlu0 %v2859_v62, %s5365_s5 }
 0x563   : > { %3862 = vrot.lane.b32.xlu1 %v2890_v43, %s5366_s8 }
 0x564   : > { %v7178_v42 = vpop.permute.xlu0 %2966 }
 0x565   : > { %8442 = vst [vmem:[#allocation39_spill] sm:$0xff] %v7178_v42  ;;  %v7180_v45 = vpop.permute.xlu1 %3350 }
 0x566   : > { %8443 = vst [vmem:[#allocation40_spill] sm:$0xff] %v7180_v45  ;;  %2974 = vrot.lane.b32.xlu0 %v2858_v13, %s5361_s20  ;;  %v7198_v13 = vld [vmem:[#allocation2 + $0xd8] sm:$0xff] }
 0x567   : > { %3356 = vrot.lane.b32.xlu1 %v2859_v62, %s5359_s18  ;;  %8447 = vst [vmem:[#allocation44_spill] sm:$0xff] %v7198_v13 }
 0x568   : > { %v7184_v54 = vpop.permute.xlu0 %3474 }
 0x569   : > { %8444 = vst [vmem:[#allocation41_spill] sm:$0xff] %v7184_v54  ;;  %v7186_v12 = vpop.permute.xlu1 %2944 }
 0x56a   : > { %3482 = vrot.lane.b32.xlu0 %v2890_v43, %s5362_s21 }
 0x56b   : > { %3864 = vrot.lane.b32.xlu1 %v2891_v25, %s5366_s8 }
 0x56c   : > { %v7190_v47 = vpop.permute.xlu0 %2968 }
 0x56d   : > { %8445 = vst [vmem:[#allocation42_spill] sm:$0xff] %v7190_v47  ;;  %v3583_v40 = vpop.permute.xlu1 %3582  ;;  %v2860_v47 = vld [vmem:[#allocation2 + $0xd9] sm:$0xff] }
 0x56e   : > { %2976 = vrot.lane.b32.xlu0 %v2859_v62, %s5361_s20 }
 0x56f   : > { %3102 = vrot.lane.b32.xlu1 %v2890_v43, %s5363_s22 }
 0x570   : > { %v7194_v45 = vpop.permute.xlu0 %3604 }
 0x571   : > { %8446 = vst [vmem:[#allocation43_spill] sm:$0xff] %v7194_v45  ;;  %v7196_v42 = vpop.permute.xlu1 %3202  ;;  %v7212_v45 = vld [vmem:[#allocation2 + $0xe0] sm:$0xff] }
 0x572   : > { %3484 = vrot.lane.b32.xlu0 %v2891_v25, %s5362_s21  ;;  %8449 = vst [vmem:[#allocation46_spill] sm:$0xff] %v7212_v45 }
 0x573   : > { %3610 = vrot.lane.b32.xlu1 %v7198_v13, %s5364_s23 }
 0x574   : > { %v7203_v54 = vpop.permute.xlu0 %3224 }
 0x575   : > { %8448 = vst [vmem:[#allocation45_spill] sm:$0xff] %v7203_v54  ;;  %v7205_v11 = vpop.permute.xlu1 %3840 }
 0x576   : > { %3104 = vrot.lane.b32.xlu0 %v2891_v25, %s5363_s22 }
 0x577   : > { %3230 = vrot.lane.b32.xlu1 %v7198_v13, %s5360_s19 }
 0x578   : > { %v2943_v62 = vpop.permute.xlu0 %2942 }
 0x579   : > { %v7210_v43 = vpop.permute.xlu1 %3586  ;;  %v3934_v25 = vsel %vm204_vm0, %v2622_v6, %v2943_v62 }
 0x57a   : > { %3612 = vrot.lane.b32.xlu0 %v7212_v45, %s5364_s23 }
 0x57b   : > { %3738 = vrot.lane.b32.xlu1 %v2860_v47, %s5365_s5 }
 0x57c   : > { %v3071_v19 = vpop.permute.xlu0 %3070 }
 0x57d   : > { %v7217_v54 = vpop.permute.xlu1 %3206  ;;  %v3966_v13 = vsel %vm1665_vm4, %v3934_v25, %v3071_v19 }
 0x57e   : > { %3232 = vrot.lane.b32.xlu0 %v7212_v45, %s5360_s19 }
 0x57f   : > { %3358 = vrot.lane.b32.xlu1 %v2860_v47, %s5359_s18 }
 0x580   : > { %v3199_v38 = vpop.permute.xlu0 %3198 }
 0x581   : > { %v7224_v3 = vpop.permute.xlu1 %3844  ;;  %v3998_v59 = vsel %vm1698_vm3, %v3966_v13, %v3199_v38 }
 0x582   : > { %8450 = vst [vmem:[#allocation47_spill] sm:$0xff] %v7224_v3  ;;  %v4030_v9 = vsel %vm1731_vm5, %v3998_v59, %v6937_v34  ;;  %3740 = vrot.lane.b32.xlu0 %v2861_v36, %s5365_s5  ;;  %v2863_v3 = vld [vmem:[#allocation2 + $0xf9] sm:$0xff] }
 0x583   : > { %3866 = vrot.lane.b32.xlu1 %v2892_v32, %s5366_s8  ;;  %v4062_v45 = vsel %vm1764_vm6, %v4030_v9, %v6955_v48  ;;  %v2893_v9 = vld [vmem:[#allocation2 + $0xe2] sm:$0xff] }
 0x584   : > { %v7235_v19 = vpop.permute.xlu0 %3456  ;;  %v4094_v62 = vsel %vm1797_vm7, %v4062_v45, %v3583_v40 }
 0x585   : > { %v7233_v6 = vpop.permute.xlu1 %3590  ;;  %v4126_v38 = vsel %vm1830_vm8, %v4094_v62, %v6970_v44  ;;  %v2862_v62 = vld [vmem:[#allocation2 + $0xf1] sm:$0xff] }
 0x586   : > { %2978 = vrot.lane.b32.xlu0 %v2860_v47, %s5361_s20  ;;  %v4158_v34 = vsel %vm1863_vm9, %v4126_v38, %v6987_v60  ;;  %v7257_v47 = vld [vmem:[#allocation2 + $0xf0] sm:$0xff]  ;;  %v7273_v38 = vld [vmem:[#allocation2 + $0xf8] sm:$0xff] }
 0x587   : > { %3360 = vrot.lane.b32.xlu1 %v2861_v36, %s5359_s18  ;;  %5282 = vmatprep.mubr.msk.f32.mxu0 %vm1901_vm10, %v4158_v34  ;;  %8453 = vst [vmem:[#allocation50_spill] sm:$0xff] %v7257_v47  ;;  %8455 = vst [vmem:[#allocation52_spill] sm:$0xff] %v7273_v38 }
 0x588   : > { %v3077_v48 = vpop.permute.xlu0 %3076 }
 0x589   : > { %v7245_v59 = vpop.permute.xlu1 %3210 }
 0x58a   : > { %3486 = vrot.lane.b32.xlu0 %v2892_v32, %s5362_s21 }
 0x58b   : > { %3868 = vrot.lane.b32.xlu1 %v2893_v9, %s5366_s8 }
 0x58c   : > { %v7251_v44 = vpop.permute.xlu0 %3460 }
 0x58d   : > { %v7249_v40 = vpop.permute.xlu1 %3848 }
 0x58e   : > { %8451 = vst [vmem:[#allocation48_spill] sm:$0xff] %v7249_v40  ;;  %2980 = vrot.lane.b32.xlu0 %v2861_v36, %s5361_s20 }
 0x58f   : > { %3106 = vrot.lane.b32.xlu1 %v2892_v32, %s5363_s22 }
 0x590   : > { %v3081_v60 = vpop.permute.xlu0 %3080 }
 0x591   : > { %v7255_v45 = vpop.permute.xlu1 %3594 }
 0x592   : > { %8452 = vst [vmem:[#allocation49_spill] sm:$0xff] %v7255_v45  ;;  %3488 = vrot.lane.b32.xlu0 %v2893_v9, %s5362_s21 }
 0x593   : > { %3614 = vrot.lane.b32.xlu1 %v7257_v47, %s5364_s23 }
 0x594   : > { %v7264_v25 = vpop.permute.xlu0 %3464 }
 0x595   : > { %v7262_v13 = vpop.permute.xlu1 %3214 }
 0x596   : > { %3108 = vrot.lane.b32.xlu0 %v2893_v9, %s5363_s22 }
 0x597   : > { %3234 = vrot.lane.b32.xlu1 %v7257_v47, %s5360_s19 }
 0x598   : > { %v7271_v32 = vpop.permute.xlu0 %3084 }
 0x599   : > { %v7269_v36 = vpop.permute.xlu1 %3852 }
 0x59a   : > { %8454 = vst [vmem:[#allocation51_spill] sm:$0xff] %v7269_v36  ;;  %3616 = vrot.lane.b32.xlu0 %v7273_v38, %s5364_s23  ;;  %v2894_v36 = vld [vmem:[#allocation2 + $0xf2] sm:$0xff] }
 0x59b   : > { %3742 = vrot.lane.b32.xlu1 %v2862_v62, %s5365_s5 }
 0x59c   : > { %v7280_v40 = vpop.permute.xlu0 %3468 }
 0x59d   : > { %v7278_v34 = vpop.permute.xlu1 %3598  ;;  %8457 = vst [vmem:[#allocation54_spill] sm:$0xff] %v7280_v40 }
 0x59e   : > { %8456 = vst [vmem:[#allocation53_spill] sm:$0xff] %v7278_v34  ;;  %3236 = vrot.lane.b32.xlu0 %v7273_v38, %s5360_s19 }
 0x59f   : > { %3362 = vrot.lane.b32.xlu1 %v2862_v62, %s5359_s18 }
 0x5a0   : > { %v7287_v47 = vpop.permute.xlu0 %3088 }
 0x5a1   : > { %v7285_v9 = vpop.permute.xlu1 %3218 }
 0x5a2   : > { %8458 = vst [vmem:[#allocation55_spill] sm:$0xff] %v7285_v9  ;;  %3744 = vrot.lane.b32.xlu0 %v2863_v3, %s5365_s5  ;;  %v2895_v9 = vld [vmem:[#allocation2 + $0xfa] sm:$0xff] }
 0x5a3   : > { %3870 = vrot.lane.b32.xlu1 %v2894_v36, %s5366_s8 }
 0x5a4   : > { %v7293_v34 = vpop.permute.xlu0 %3472 }
 0x5a5   : > { %v7291_v45 = vpop.permute.xlu1 %3856  ;;  %8460 = vst [vmem:[#allocation57_spill] sm:$0xff] %v7293_v34 }
 0x5a6   : > { %8459 = vst [vmem:[#allocation56_spill] sm:$0xff] %v7291_v45  ;;  %2982 = vrot.lane.b32.xlu0 %v2862_v62, %s5361_s20  ;;  %v3936_v62 = vsel %vm204_vm0, %v7005_v33, %v6948_v53  ;;  %v3937_v45 = vsel %vm204_vm0, %v6800_v50, %v6953_v20  ;;  %v3938_v50 = vsel %vm204_vm0, %v6963_v10, %v6985_v55  ;;  %v2623_v55 = vld [vmem:[#allocation2 + $0x8] sm:$0xff] }
 0x5a7   : > { %3364 = vrot.lane.b32.xlu1 %v2863_v3, %s5359_s18  ;;  %v3939_v53 = vsel %vm204_vm0, %v6820_v15, %v7001_v49  ;;  %v3940_v10 = vsel %vm204_vm0, %v6989_v2, %v7032_v27  ;;  %v3942_v2 = vsel %vm204_vm0, %v7014_v4, %v7076_v31  ;;  %v7379_v31 = vld [vmem:[#allocation2 + $0x109] sm:$0xff] }
 0x5a8   : > { %v7299_v38 = vpop.permute.xlu0 %3092 }
 0x5a9   : > { %v7297_v40 = vpop.permute.xlu1 %3602 }
 0x5aa   : > { %8461 = vst [vmem:[#allocation58_spill] sm:$0xff] %v7297_v40  ;;  %3490 = vrot.lane.b32.xlu0 %v2894_v36, %s5362_s21 }
 0x5ab   : > { %3872 = vrot.lane.b32.xlu1 %v2895_v9, %s5366_s8 }
 0x5ac   : > { %v7305_v0 = vpop.permute.xlu0 %3476 }
 0x5ad   : > { %v7303_v1 = vpop.permute.xlu1 %3858  ;;  %8463 = vst [vmem:[#allocation60_spill] sm:$0xff] %v7305_v0  ;;  %v3969_v0 = vsel %vm1665_vm4, %v3937_v45, %v3077_v48  ;;  %v3971_v48 = vsel %vm1665_vm4, %v3939_v53, %v3081_v60  ;;  %v3943_v45 = vsel %vm204_vm0, %v6897_v56, %v7099_v18  ;;  %v8468_v53 = vld [vmem:[#allocation11_spill] sm:$0xff] }
 0x5ae   : > { %8462 = vst [vmem:[#allocation59_spill] sm:$0xff] %v7303_v1  ;;  %2984 = vrot.lane.b32.xlu0 %v2863_v3, %s5361_s20  ;;  %v3968_v1 = vsel %vm1665_vm4, %v3936_v62, %v6961_v8  ;;  %v4001_v20 = vsel %vm1698_vm3, %v3969_v0, %v6968_v41  ;;  %v3972_v41 = vsel %vm1665_vm4, %v3940_v10, %v7043_v14  ;;  %v8465_v62 = vld [vmem:[#allocation22_spill] sm:$0xff] }
 0x5af   : > { %3110 = vrot.lane.b32.xlu1 %v2894_v36, %s5363_s22  ;;  %v7322_v36 = vld [vmem:[#allocation2 + $0x108] sm:$0xff]  ;;  %v4000_v3 = vsel %vm1698_vm3, %v3968_v1, %v7196_v42  ;;  %v3970_v42 = vsel %vm1665_vm4, %v3938_v50, %v7003_v26  ;;  %v4033_v49 = vsel %vm1731_vm5, %v4001_v20, %v6996_v39  ;;  %v3935_v26 = vsel %vm204_vm0, %v2623_v55, %v7186_v12  ;;  %v8467_v50 = vld [vmem:[#allocation9_spill] sm:$0xff] }
 0x5b0   : > { %v7317_v34 = vpop.permute.xlu0 %3096  ;;  %v4032_v1 = vsel %vm1731_vm5, %v4000_v3, %v6980_v61  ;;  %v4002_v15 = vsel %vm1698_vm3, %v3970_v42, %v7217_v54  ;;  %v3941_v61 = vsel %vm204_vm0, %v6865_v7, %v7048_v29  ;;  %v4003_v14 = vsel %vm1698_vm3, %v3971_v48, %v7019_v21  ;;  %v8469_v20 = vld [vmem:[#allocation49_spill] sm:$0xff]  ;;  %v2896_v10 = vld [vmem:[#allocation2 + $0x10a] sm:$0xff] }
 0x5b1   : > { %v7315_v40 = vpop.permute.xlu1 %3222  ;;  %v4064_v27 = vsel %vm1764_vm6, %v4032_v1, %v6994_v58  ;;  %v4034_v39 = vsel %vm1731_vm5, %v4002_v15, %v7021_v46  ;;  %v3973_v4 = vsel %vm1665_vm4, %v3941_v61, %v7271_v32  ;;  %v7381_v58 = vld [vmem:[#allocation2 + $0x110] sm:$0xff]  ;;  %v4004_v21 = vsel %vm1698_vm3, %v3972_v41, %v7245_v59  ;;  %v8470_v1 = vld [vmem:[#allocation12_spill] sm:$0xff]  ;;  %v8472_v55 = vld [vmem:[#allocation54_spill] sm:$0xff] }
 0x5b2   : > { %3492 = vrot.lane.b32.xlu0 %v2895_v9, %s5362_s21  ;;  %v4096_v7 = vsel %vm1797_vm7, %v4064_v27, %v7210_v43  ;;  %v4065_v12 = vsel %vm1764_vm6, %v4033_v49, %v7251_v44  ;;  %v3974_v46 = vsel %vm1665_vm4, %v3942_v2, %v7078_v57  ;;  %v4035_v59 = vsel %vm1731_vm5, %v4003_v14, %v7034_v22  ;;  %v2865_v15 = vld [vmem:[#allocation2 + $0x111] sm:$0xff]  ;;  %v8473_v2 = vld [vmem:[#allocation25_spill] sm:$0xff] }
 0x5b3   : > { %3618 = vrot.lane.b32.xlu1 %v7322_v36, %s5364_s23  ;;  %v4066_v60 = vsel %vm1764_vm6, %v4034_v39, %v7041_v51  ;;  %v4005_v32 = vsel %vm1698_vm3, %v3973_v4, %v7063_v63  ;;  %v4036_v22 = vsel %vm1731_vm5, %v4004_v21, %v7056_v35  ;;  %v4067_v18 = vsel %vm1764_vm6, %v4035_v59, %v7264_v25  ;;  %v8471_v41 = vld [vmem:[#allocation19_spill] sm:$0xff]  ;;  %v8476_v39 = vld [vmem:[#allocation30_spill] sm:$0xff] }
 0x5b4   : > { %v7339_v33 = vpop.permute.xlu0 %3732  ;;  %v4098_v63 = vsel %vm1797_vm7, %v4066_v60, %v7233_v6  ;;  %v3944_v35 = vsel %vm204_vm0, %v7036_v28, %v7134_v30  ;;  %v4037_v6 = vsel %vm1731_vm5, %v4005_v32, %v7072_v37  ;;  %v8466_v30 = vld [vmem:[#allocation10_spill] sm:$0xff]  ;;  %v4099_v48 = vsel %vm1797_vm7, %v4067_v18, %v8470_v1  ;;  %v8474_v27 = vld [vmem:[#allocation23_spill] sm:$0xff] }
 0x5b5   : > { %v7337_v8 = vpop.permute.xlu1 %3352  ;;  %v4069_v49 = vsel %vm1764_vm6, %v4037_v6, %v8472_v55  ;;  %v8477_v4 = vld [vmem:[#allocation6_spill] sm:$0xff]  ;;  %v8481_v60 = vld [vmem:[#allocation27_spill] sm:$0xff] }
 0x5b6   : > { %3112 = vrot.lane.b32.xlu0 %v2895_v9, %s5363_s22  ;;  %v8478_v21 = vld [vmem:[#allocation18_spill] sm:$0xff]  ;;  %v8493_v1 = vld [vmem:[#allocation39_spill] sm:$0xff] }
 0x5b7   : > { %3238 = vrot.lane.b32.xlu1 %v7322_v36, %s5360_s19 }
 0x5b8   : > { %v7370_v0 = vpop.permute.xlu0 %2970 }
 0x5b9   : > { %v3073_v54 = vpop.permute.xlu1 %3072 }
 0x5ba   : > { %v3967_v29 = vsel %vm1665_vm4, %v3935_v26, %v3073_v54  ;;  %3620 = vrot.lane.b32.xlu0 %v7381_v58, %s5364_s23  ;;  %v3976_v26 = vsel %vm1665_vm4, %v3944_v35, %v8473_v2  ;;  %v8475_v54 = vld [vmem:[#allocation47_spill] sm:$0xff] }
 0x5bb   : > { %v3999_v43 = vsel %vm1698_vm3, %v3967_v29, %v6939_v5  ;;  %3746 = vrot.lane.b32.xlu1 %v7379_v31, %s5365_s5  ;;  %v4128_v5 = vsel %vm1830_vm8, %v4096_v7, %v7012_v17  ;;  %v3975_v17 = vsel %vm1665_vm4, %v3943_v45, %v7287_v47  ;;  %v8464_v47 = vld [vmem:[#allocation17_spill] sm:$0xff]  ;;  %v3945_v29 = vsel %vm204_vm0, %v8477_v4, %v8476_v39  ;;  %v8479_v45 = vld [vmem:[#allocation14_spill] sm:$0xff]  ;;  %v8499_v4 = vld [vmem:[#allocation31_spill] sm:$0xff] }
 0x5bc   : > { %v4031_v44 = vsel %vm1731_vm5, %v3999_v43, %v6946_v52  ;;  %v7412_v56 = vpop.permute.xlu0 %3478  ;;  %v4097_v52 = vsel %vm1797_vm7, %v4065_v12, %v7010_v23  ;;  %v4068_v25 = vsel %vm1764_vm6, %v4036_v22, %v8464_v47  ;;  %v4007_v3 = vsel %vm1698_vm3, %v3975_v17, %v8465_v62 }
 0x5bd   : > { %v4063_v57 = vsel %vm1764_vm6, %v4031_v44, %v7235_v19  ;;  %v7410_v9 = vpop.permute.xlu1 %3860  ;;  %v4129_v37 = vsel %vm1830_vm8, %v4097_v52, %v8467_v50  ;;  %v4100_v42 = vsel %vm1797_vm7, %v4068_v25, %v8469_v20  ;;  %v4039_v14 = vsel %vm1731_vm5, %v4007_v3, %v8474_v27  ;;  %v8480_v44 = vld [vmem:[#allocation15_spill] sm:$0xff]  ;;  %v8490_v50 = vld [vmem:[#allocation24_spill] sm:$0xff] }
 0x5be   : > { %v4095_v51 = vsel %vm1797_vm7, %v4063_v57, %v6959_v16  ;;  %3240 = vrot.lane.b32.xlu0 %v7381_v58, %s5360_s19  ;;  %v4006_v16 = vsel %vm1698_vm3, %v3974_v46, %v7262_v13  ;;  %v4160_v13 = vsel %vm1863_vm9, %v4128_v5, %v8466_v30  ;;  %v4161_v7 = vsel %vm1863_vm9, %v4129_v37, %v8475_v54  ;;  %v8482_v57 = vld [vmem:[#allocation20_spill] sm:$0xff]  ;;  %v8483_v52 = vld [vmem:[#allocation55_spill] sm:$0xff]  ;;  %v8489_v30 = vld [vmem:[#allocation21_spill] sm:$0xff] }
 0x5bf   : > { %3366 = vrot.lane.b32.xlu1 %v7379_v31, %s5359_s18  ;;  %v4127_v23 = vsel %vm1830_vm8, %v4095_v51, %v6978_v24  ;;  %v4038_v61 = vsel %vm1731_vm5, %v4006_v16, %v8471_v41  ;;  %v4132_v12 = vsel %vm1830_vm8, %v4100_v42, %v8478_v21  ;;  %v4131_v5 = vsel %vm1830_vm8, %v4099_v48, %v8480_v44  ;;  %v8486_v16 = vld [vmem:[#allocation48_spill] sm:$0xff]  ;;  %v8491_v37 = vld [vmem:[#allocation26_spill] sm:$0xff]  ;;  %v8494_v48 = vld [vmem:[#allocation13_spill] sm:$0xff] }
 0x5c0   : > { %v4159_v19 = vsel %vm1863_vm9, %v4127_v23, %v7205_v11  ;;  %v7448_v28 = vpop.permute.xlu0 %2972  ;;  %v4130_v11 = vsel %vm1830_vm8, %v4098_v63, %v8468_v53  ;;  %v4070_v32 = vsel %vm1764_vm6, %v4038_v61, %v8481_v60  ;;  %v4101_v22 = vsel %vm1797_vm7, %v4069_v49, %v8482_v57  ;;  %v8484_v63 = vld [vmem:[#allocation53_spill] sm:$0xff]  ;;  %v2897_v42 = vld [vmem:[#allocation2 + $0x112] sm:$0xff] }
 0x5c1   : > { %v7445_v24 = vpop.permute.xlu1 %3098  ;;  %5283 = vmatmul.mubr.msk.f32.vlgmr.msra.gmra.mxu0 %vm1901_vm10, %v4159_v19  ;;  %v4162_v59 = vsel %vm1863_vm9, %v4130_v11, %v8479_v45  ;;  %v4008_v17 = vsel %vm1698_vm3, %v3976_v26, %v8483_v52  ;;  %v3977_v51 = vsel %vm1665_vm4, %v3945_v29, %v7299_v38  ;;  %v4102_v18 = vsel %vm1797_vm7, %v4070_v32, %v8484_v63  ;;  %v8485_v23 = vld [vmem:[#allocation57_spill] sm:$0xff]  ;;  %v8487_v19 = vld [vmem:[#allocation28_spill] sm:$0xff]  ;;  %v8488_v38 = vld [vmem:[#allocation35_spill] sm:$0xff] }
 0x5c2   : > { %5285 = vmatprep.mubr.msk.f32.mxu0 %vm1901_vm10, %v4160_v13  ;;  %3748 = vrot.lane.b32.xlu0 %v2865_v15, %s5365_s5  ;;  %v4071_v35 = vsel %vm1764_vm6, %v4039_v14, %v8485_v23  ;;  %v4163_v6 = vsel %vm1863_vm9, %v4131_v5, %v8486_v16  ;;  %v4040_v47 = vsel %vm1731_vm5, %v4008_v17, %v8487_v19  ;;  %v8492_v11 = vld [vmem:[#allocation32_spill] sm:$0xff]  ;;  %v8495_v61 = vld [vmem:[#allocation41_spill] sm:$0xff]  ;;  %v8497_v26 = vld [vmem:[#allocation51_spill] sm:$0xff] }
 0x5c3   : > { %3874 = vrot.lane.b32.xlu1 %v2896_v10, %s5366_s8  ;;  %v4009_v25 = vsel %vm1698_vm3, %v3977_v51, %v8488_v38  ;;  %v4164_v13 = vsel %vm1863_vm9, %v4132_v12, %v8489_v30  ;;  %v4134_v53 = vsel %vm1830_vm8, %v4102_v18, %v8491_v37  ;;  %v4103_v20 = vsel %vm1797_vm7, %v4071_v35, %v8492_v11  ;;  %v8496_v49 = vld [vmem:[#allocation33_spill] sm:$0xff]  ;;  %v8498_v14 = vld [vmem:[#allocation58_spill] sm:$0xff]  ;;  %v8501_v45 = vld [vmem:[#allocation36_spill] sm:$0xff] }
 0x5c4   : > { %v7478_v46 = vpop.permute.xlu0 %3480  ;;  %v3946_v41 = vsel %vm204_vm0, %v8494_v48, %v8493_v1  ;;  %v4072_v55 = vsel %vm1764_vm6, %v4040_v47, %v8495_v61  ;;  %v4041_v2 = vsel %vm1731_vm5, %v4009_v25, %v8496_v49  ;;  %v4166_v29 = vsel %vm1863_vm9, %v4134_v53, %v8499_v4  ;;  %v8500_v21 = vld [vmem:[#allocation37_spill] sm:$0xff]  ;;  %v8502_v44 = vld [vmem:[#allocation60_spill] sm:$0xff]  ;;  %v8503_v32 = vld [vmem:[#allocation38_spill] sm:$0xff] }
 0x5c5   : > { %v3607_v43 = vpop.permute.xlu1 %3606  ;;  %5286 = vmatmul.mubr.msk.f32.gmra.mxu0 %vm1901_vm10, %v4161_v7  ;;  %v4104_v54 = vsel %vm1797_vm7, %v4072_v55, %v8498_v14  ;;  %v4135_v12 = vsel %vm1830_vm8, %v4103_v20, %v8500_v21  ;;  %v4073_v5 = vsel %vm1764_vm6, %v4041_v2, %v8502_v44  ;;  %v8505_v17 = vld [vmem:[#allocation59_spill] sm:$0xff]  ;;  %v8507_v23 = vld [vmem:[#allocation40_spill] sm:$0xff]  ;;  %v7564_v35 = vld [vmem:[#allocation2 + $0x120] sm:$0xff] }
 0x5c6   : > { %5288 = vmatprep.mubr.msk.f32.mxu0 %vm1901_vm10, %v4162_v59  ;;  %2986 = vrot.lane.b32.xlu0 %v7379_v31, %s5361_s20  ;;  %v4133_v31 = vsel %vm1830_vm8, %v4101_v22, %v8490_v50  ;;  %v3978_v59 = vsel %vm1665_vm4, %v3946_v41, %v8501_v45  ;;  %v4136_v57 = vsel %vm1830_vm8, %v4104_v54, %v8503_v32  ;;  %v8504_v22 = vld [vmem:[#allocation56_spill] sm:$0xff]  ;;  %v8508_v38 = vld [vmem:[#allocation42_spill] sm:$0xff]  ;;  %v8509_v25 = vld [vmem:[#allocation7_spill] sm:$0xff] }
 0x5c7   : > { %3368 = vrot.lane.b32.xlu1 %v2865_v15, %s5359_s18  ;;  %v4165_v27 = vsel %vm1863_vm9, %v4133_v31, %v8497_v26  ;;  %v4010_v60 = vsel %vm1698_vm3, %v3978_v59, %v7315_v40  ;;  %v4167_v52 = vsel %vm1863_vm9, %v4135_v12, %v8504_v22  ;;  %v4168_v51 = vsel %vm1863_vm9, %v4136_v57, %v8505_v17  ;;  %v8506_v40 = vld [vmem:[#allocation43_spill] sm:$0xff]  ;;  %v2866_v20 = vld [vmem:[#allocation2 + $0x121] sm:$0xff] }
 0x5c8   : > { %v7509_v3 = vpop.permute.xlu0 %3100  ;;  %v3947_v30 = vsel %vm204_vm0, %v8509_v25, %v8508_v38  ;;  %v2898_v49 = vld [vmem:[#allocation2 + $0x122] sm:$0xff] }
 0x5c9   : > { %v7507_v62 = vpop.permute.xlu1 %3226  ;;  %5289 = vmatmul.mubr.msk.f32.gmra.mxu0 %vm1901_vm10, %v4163_v6  ;;  %v2867_v2 = vld [vmem:[#allocation2 + $0x129] sm:$0xff] }
 0x5ca   : > { %5291 = vmatprep.mubr.msk.f32.mxu0 %vm1901_vm10, %v4164_v13  ;;  %3494 = vrot.lane.b32.xlu0 %v2896_v10, %s5362_s21 }
 0x5cb   : > { %3876 = vrot.lane.b32.xlu1 %v2897_v42, %s5366_s8 }
 0x5cc   : > { %v3609_v39 = vpop.permute.xlu0 %3608 }
 0x5cd   : > { %v3735_v7 = vpop.permute.xlu1 %3734  ;;  %5292 = vmatmul.mubr.msk.f32.gmra.mxu0 %vm1901_vm10, %v4165_v27 }
 0x5ce   : > { %5294 = vmatprep.mubr.msk.f32.mxu0 %vm1901_vm10, %v4166_v29  ;;  %2988 = vrot.lane.b32.xlu0 %v2865_v15, %s5361_s20  ;;  %v4042_v15 = vsel %vm1731_vm5, %v4010_v60, %v8507_v23  ;;  %v8511_v29 = vld [vmem:[#allocation16_spill] sm:$0xff] }
 0x5cf   : > { %3114 = vrot.lane.b32.xlu1 %v2896_v10, %s5363_s22  ;;  %v4105_v10 = vsel %vm1797_vm7, %v4073_v5, %v8506_v40  ;;  %v4074_v6 = vsel %vm1764_vm6, %v4042_v15, %v7412_v56  ;;  %v3979_v56 = vsel %vm1665_vm4, %v3947_v30, %v7317_v34  ;;  %v7594_v34 = vld [vmem:[#allocation2 + $0x128] sm:$0xff]  ;;  %v3948_v21 = vsel %vm204_vm0, %v8511_v29, %v7370_v0  ;;  %v7635_v60 = vld [vmem:[#allocation2 + $0x138] sm:$0xff] }
 0x5d0   : > { %v7556_v18 = vpop.permute.xlu0 %3228  ;;  %v4137_v16 = vsel %vm1830_vm8, %v4105_v10, %v7339_v33  ;;  %v4106_v47 = vsel %vm1797_vm7, %v4074_v6, %v3607_v43  ;;  %v3980_v12 = vsel %vm1665_vm4, %v3948_v21, %v7445_v24  ;;  %v2868_v15 = vld [vmem:[#allocation2 + $0x139] sm:$0xff] }
 0x5d1   : > { %v7554_v63 = vpop.permute.xlu1 %3354  ;;  %5295 = vmatmul.mubr.msk.f32.gmra.mxu0 %vm1901_vm10, %v4167_v52  ;;  %v4169_v19 = vsel %vm1863_vm9, %v4137_v16, %v7410_v9  ;;  %v4138_v13 = vsel %vm1830_vm8, %v4106_v47, %v3735_v7  ;;  %v8510_v9 = vld [vmem:[#allocation45_spill] sm:$0xff]  ;;  %v2899_v7 = vld [vmem:[#allocation2 + $0x12a] sm:$0xff]  ;;  %v4012_v45 = vsel %vm1698_vm3, %v3980_v12, %v7507_v62  ;;  %v8512_v52 = vld [vmem:[#allocation8_spill] sm:$0xff] }
 0x5d2   : > { %5297 = vmatprep.mubr.msk.f32.mxu0 %vm1901_vm10, %v4168_v51  ;;  %3496 = vrot.lane.b32.xlu0 %v2897_v42, %s5362_s21  ;;  %v4011_v43 = vsel %vm1698_vm3, %v3979_v56, %v8510_v9  ;;  %v4044_v5 = vsel %vm1731_vm5, %v4012_v45, %v7554_v63  ;;  %v3949_v17 = vsel %vm204_vm0, %v8512_v52, %v7448_v28  ;;  %v7658_v28 = vld [vmem:[#allocation2 + $0x140] sm:$0xff]  ;;  %v2870_v45 = vld [vmem:[#allocation2 + $0x151] sm:$0xff] }
 0x5d3   : > { %3622 = vrot.lane.b32.xlu1 %v7564_v35, %s5364_s23  ;;  %v4043_v11 = vsel %vm1731_vm5, %v4011_v43, %v7337_v8  ;;  %v3981_v51 = vsel %vm1665_vm4, %v3949_v17, %v7509_v3  ;;  %v2900_v30 = vld [vmem:[#allocation2 + $0x13a] sm:$0xff]  ;;  %v2901_v9 = vld [vmem:[#allocation2 + $0x142] sm:$0xff] }
 0x5d4   : > { %v3737_v50 = vpop.permute.xlu0 %3736  ;;  %v4075_v1 = vsel %vm1764_vm6, %v4043_v11, %v7478_v46  ;;  %v4013_v63 = vsel %vm1698_vm3, %v3981_v51, %v7556_v18  ;;  %v8513_v11 = vld [vmem:[#allocation29_spill] sm:$0xff] }
 0x5d5   : > { %v3863_v33 = vpop.permute.xlu1 %3862  ;;  %5298 = vmatmul.mubr.msk.f32.gmra.mxu0 %vm1901_vm10, %v4169_v19 }
 0x5d6   : > { %v4170_v31 = vsel %vm1863_vm9, %v4138_v13, %v3863_v33  ;;  %3116 = vrot.lane.b32.xlu0 %v2897_v42, %s5363_s22  ;;  %v4107_v42 = vsel %vm1797_vm7, %v4075_v1, %v3609_v39  ;;  %v2869_v13 = vld [vmem:[#allocation2 + $0x141] sm:$0xff] }
 0x5d7   : > { %3242 = vrot.lane.b32.xlu1 %v7564_v35, %s5360_s19  ;;  %5300 = vmatprep.mubr.msk.f32.mxu0 %vm1901_vm10, %v4170_v31  ;;  %v4139_v48 = vsel %vm1830_vm8, %v4107_v42, %v3737_v50 }
 0x5d8   : > { %v7590_v53 = vpop.permute.xlu0 %2974 }
 0x5d9   : > { %v3357_v37 = vpop.permute.xlu1 %3356 }
 0x5da   : > { %3624 = vrot.lane.b32.xlu0 %v7594_v34, %s5364_s23  ;;  %v4045_v23 = vsel %vm1731_vm5, %v4013_v63, %v3357_v37 }
 0x5db   : > { %3750 = vrot.lane.b32.xlu1 %v2866_v20, %s5365_s5 }
 0x5dc   : > { %v3483_v61 = vpop.permute.xlu0 %3482 }
 0x5dd   : > { %v3865_v41 = vpop.permute.xlu1 %3864  ;;  %v4076_v0 = vsel %vm1764_vm6, %v4044_v5, %v3483_v61 }
 0x5de   : > { %v4171_v55 = vsel %vm1863_vm9, %v4139_v48, %v3865_v41  ;;  %3244 = vrot.lane.b32.xlu0 %v7594_v34, %s5360_s19 }
 0x5df   : > { %3370 = vrot.lane.b32.xlu1 %v2866_v20, %s5359_s18  ;;  %5301 = vmatmul.mubr.msk.f32.gmra.mxu0 %vm1901_vm10, %v4171_v55  ;;  %v7697_v55 = vld [vmem:[#allocation2 + $0x150] sm:$0xff] }
 0x5e0   : > { %v7610_v46 = vpop.permute.xlu0 %2976 }
 0x5e1   : > { %v7608_v8 = vpop.permute.xlu1 %3102 }
 0x5e2   : > { %3752 = vrot.lane.b32.xlu0 %v2867_v2, %s5365_s5 }
 0x5e3   : > { %3878 = vrot.lane.b32.xlu1 %v2898_v49, %s5366_s8 }
 0x5e4   : > { %v3485_v27 = vpop.permute.xlu0 %3484 }
 0x5e5   : > { %v3611_v26 = vpop.permute.xlu1 %3610  ;;  %v4077_v16 = vsel %vm1764_vm6, %v4045_v23, %v3485_v27 }
 0x5e6   : > { %2990 = vrot.lane.b32.xlu0 %v2866_v20, %s5361_s20  ;;  %v4108_v24 = vsel %vm1797_vm7, %v4076_v0, %v3611_v26  ;;  %v3950_v20 = vsel %vm204_vm0, %v8513_v11, %v7590_v53 }
 0x5e7   : > { %3372 = vrot.lane.b32.xlu1 %v2867_v2, %s5359_s18  ;;  %v3982_v1 = vsel %vm1665_vm4, %v3950_v20, %v7608_v8 }
 0x5e8   : > { %v7618_v54 = vpop.permute.xlu0 %3104 }
 0x5e9   : > { %v7616_v14 = vpop.permute.xlu1 %3230 }
 0x5ea   : > { %3498 = vrot.lane.b32.xlu0 %v2898_v49, %s5362_s21  ;;  %v4014_v42 = vsel %vm1698_vm3, %v3982_v1, %v7616_v14  ;;  %v8514_v14 = vld [vmem:[#allocation34_spill] sm:$0xff] }
 0x5eb   : > { %3880 = vrot.lane.b32.xlu1 %v2899_v7, %s5366_s8 }
 0x5ec   : > { %v3613_v4 = vpop.permute.xlu0 %3612 }
 0x5ed   : > { %v3739_v39 = vpop.permute.xlu1 %3738  ;;  %v4109_v3 = vsel %vm1797_vm7, %v4077_v16, %v3613_v4  ;;  %v8515_v16 = vld [vmem:[#allocation44_spill] sm:$0xff] }
 0x5ee   : > { %2992 = vrot.lane.b32.xlu0 %v2867_v2, %s5361_s20  ;;  %v4140_v32 = vsel %vm1830_vm8, %v4108_v24, %v3739_v39 }
 0x5ef   : > { %3118 = vrot.lane.b32.xlu1 %v2898_v49, %s5363_s22 }
 0x5f0   : > { %v7631_v44 = vpop.permute.xlu0 %3232 }
 0x5f1   : > { %v3359_v59 = vpop.permute.xlu1 %3358 }
 0x5f2   : > { %3500 = vrot.lane.b32.xlu0 %v2899_v7, %s5362_s21  ;;  %v4046_v61 = vsel %vm1731_vm5, %v4014_v42, %v3359_v59 }
 0x5f3   : > { %3626 = vrot.lane.b32.xlu1 %v7635_v60, %s5364_s23 }
 0x5f4   : > { %v3741_v57 = vpop.permute.xlu0 %3740 }
 0x5f5   : > { %v3867_v62 = vpop.permute.xlu1 %3866  ;;  %v4141_v6 = vsel %vm1830_vm8, %v4109_v3, %v3741_v57  ;;  %v2902_v57 = vld [vmem:[#allocation2 + $0x152] sm:$0xff] }
 0x5f6   : > { %v4172_v22 = vsel %vm1863_vm9, %v4140_v32, %v3867_v62  ;;  %3120 = vrot.lane.b32.xlu0 %v2899_v7, %s5363_s22  ;;  %v3951_v7 = vsel %vm204_vm0, %v8514_v14, %v7610_v46  ;;  %v7720_v46 = vld [vmem:[#allocation2 + $0x158] sm:$0xff]  ;;  %v2904_v14 = vld [vmem:[#allocation2 + $0x16a] sm:$0xff] }
 0x5f7   : > { %3246 = vrot.lane.b32.xlu1 %v7635_v60, %s5360_s19  ;;  %5303 = vmatprep.mubr.msk.f32.mxu0 %vm1901_vm10, %v4172_v22  ;;  %v3983_v39 = vsel %vm1665_vm4, %v3951_v7, %v7618_v54  ;;  %v2871_v22 = vld [vmem:[#allocation2 + $0x159] sm:$0xff] }
 0x5f8   : > { %v7655_v10 = vpop.permute.xlu0 %2978  ;;  %v4015_v4 = vsel %vm1698_vm3, %v3983_v39, %v7631_v44  ;;  %v8518_v7 = vld [vmem:[#allocation5_spill] sm:$0xff] }
 0x5f9   : > { %v3361_v40 = vpop.permute.xlu1 %3360  ;;  %v3952_v3 = vsel %vm204_vm0, %v8515_v16, %v7655_v10  ;;  %v8520_v16 = vld [vmem:[#allocation52_spill] sm:$0xff] }
 0x5fa   : > { %3628 = vrot.lane.b32.xlu0 %v7658_v28, %s5364_s23  ;;  %v4047_v12 = vsel %vm1731_vm5, %v4015_v4, %v3361_v40  ;;  %v2903_v40 = vld [vmem:[#allocation2 + $0x15a] sm:$0xff] }
 0x5fb   : > { %3754 = vrot.lane.b32.xlu1 %v2868_v15, %s5365_s5 }
 0x5fc   : > { %v3487_v19 = vpop.permute.xlu0 %3486 }
 0x5fd   : > { %v3869_v18 = vpop.permute.xlu1 %3868  ;;  %v4078_v49 = vsel %vm1764_vm6, %v4046_v61, %v3487_v19  ;;  %v7782_v61 = vld [vmem:[#allocation2 + $0x170] sm:$0xff] }
 0x5fe   : > { %v4173_v47 = vsel %vm1863_vm9, %v4141_v6, %v3869_v18  ;;  %3248 = vrot.lane.b32.xlu0 %v7658_v28, %s5360_s19 }
 0x5ff   : > { %3374 = vrot.lane.b32.xlu1 %v2868_v15, %s5359_s18  ;;  %5304 = vmatmul.mubr.msk.f32.gmra.mxu0 %vm1901_vm10, %v4173_v47 }
 0x600   : > { %v7673_v25 = vpop.permute.xlu0 %2980 }
 0x601   : > { %v7671_v38 = vpop.permute.xlu1 %3106 }
 0x602   : > { %3756 = vrot.lane.b32.xlu0 %v2869_v13, %s5365_s5  ;;  %v3984_v6 = vsel %vm1665_vm4, %v3952_v3, %v7671_v38 }
 0x603   : > { %3882 = vrot.lane.b32.xlu1 %v2900_v30, %s5366_s8 }
 0x604   : > { %v3489_v50 = vpop.permute.xlu0 %3488 }
 0x605   : > { %v3615_v33 = vpop.permute.xlu1 %3614  ;;  %v4079_v59 = vsel %vm1764_vm6, %v4047_v12, %v3489_v50 }
 0x606   : > { %2994 = vrot.lane.b32.xlu0 %v2868_v15, %s5361_s20  ;;  %v4110_v53 = vsel %vm1797_vm7, %v4078_v49, %v3615_v33  ;;  %v8517_v49 = vld [vmem:[#allocation4_spill] sm:$0xff] }
 0x607   : > { %3376 = vrot.lane.b32.xlu1 %v2869_v13, %s5359_s18 }
 0x608   : > { %v7681_v31 = vpop.permute.xlu0 %3108 }
 0x609   : > { %v7679_v56 = vpop.permute.xlu1 %3234 }
 0x60a   : > { %3502 = vrot.lane.b32.xlu0 %v2900_v30, %s5362_s21  ;;  %v4016_v18 = vsel %vm1698_vm3, %v3984_v6, %v7679_v56 }
 0x60b   : > { %3884 = vrot.lane.b32.xlu1 %v2901_v9, %s5366_s8 }
 0x60c   : > { %v3617_v37 = vpop.permute.xlu0 %3616 }
 0x60d   : > { %v3743_v43 = vpop.permute.xlu1 %3742  ;;  %v4111_v54 = vsel %vm1797_vm7, %v4079_v59, %v3617_v37 }
 0x60e   : > { %2996 = vrot.lane.b32.xlu0 %v2869_v13, %s5361_s20  ;;  %v4142_v8 = vsel %vm1830_vm8, %v4110_v53, %v3743_v43  ;;  %v7759_v13 = vld [vmem:[#allocation2 + $0x168] sm:$0xff] }
 0x60f   : > { %3122 = vrot.lane.b32.xlu1 %v2900_v30, %s5363_s22  ;;  %v8516_v43 = vld [vmem:[#allocation46_spill] sm:$0xff] }
 0x610   : > { %v7694_v41 = vpop.permute.xlu0 %3236  ;;  %v3953_v37 = vsel %vm204_vm0, %v8516_v43, %v7673_v25 }
 0x611   : > { %v3363_v48 = vpop.permute.xlu1 %3362  ;;  %v3985_v11 = vsel %vm1665_vm4, %v3953_v37, %v7681_v31 }
 0x612   : > { %3504 = vrot.lane.b32.xlu0 %v2901_v9, %s5362_s21  ;;  %v4048_v30 = vsel %vm1731_vm5, %v4016_v18, %v3363_v48  ;;  %v4017_v20 = vsel %vm1698_vm3, %v3985_v11, %v7694_v41  ;;  %v2906_v11 = vld [vmem:[#allocation2 + $0x182] sm:$0xff] }
 0x613   : > { %3630 = vrot.lane.b32.xlu1 %v7697_v55, %s5364_s23 }
 0x614   : > { %v3745_v26 = vpop.permute.xlu0 %3744 }
 0x615   : > { %v3871_v2 = vpop.permute.xlu1 %3870  ;;  %v4143_v5 = vsel %vm1830_vm8, %v4111_v54, %v3745_v26 }
 0x616   : > { %v4174_v27 = vsel %vm1863_vm9, %v4142_v8, %v3871_v2  ;;  %3124 = vrot.lane.b32.xlu0 %v2901_v9, %s5363_s22 }
 0x617   : > { %3250 = vrot.lane.b32.xlu1 %v7697_v55, %s5360_s19  ;;  %5306 = vmatprep.mubr.msk.f32.mxu0 %vm1901_vm10, %v4174_v27 }
 0x618   : > { %v7717_v21 = vpop.permute.xlu0 %2982 }
 0x619   : > { %v3365_v29 = vpop.permute.xlu1 %3364 }
 0x61a   : > { %3632 = vrot.lane.b32.xlu0 %v7720_v46, %s5364_s23  ;;  %v4049_v48 = vsel %vm1731_vm5, %v4017_v20, %v3365_v29  ;;  %v2875_v20 = vld [vmem:[#allocation2 + $0x189] sm:$0xff] }
 0x61b   : > { %3758 = vrot.lane.b32.xlu1 %v2870_v45, %s5365_s5 }
 0x61c   : > { %v3491_v0 = vpop.permute.xlu0 %3490 }
 0x61d   : > { %v3873_v44 = vpop.permute.xlu1 %3872  ;;  %v4080_v33 = vsel %vm1764_vm6, %v4048_v30, %v3491_v0 }
 0x61e   : > { %v4175_v24 = vsel %vm1863_vm9, %v4143_v5, %v3873_v44  ;;  %3252 = vrot.lane.b32.xlu0 %v7720_v46, %s5360_s19  ;;  %v8519_v5 = vld [vmem:[#allocation50_spill] sm:$0xff] }
 0x61f   : > { %3378 = vrot.lane.b32.xlu1 %v2870_v45, %s5359_s18  ;;  %5307 = vmatmul.mubr.msk.f32.gmra.mxu0 %vm1901_vm10, %v4175_v24  ;;  %v3954_v44 = vsel %vm204_vm0, %v8519_v5, %v7717_v21  ;;  %v2876_v5 = vld [vmem:[#allocation2 + $0x199] sm:$0xff] }
 0x620   : > { %v7735_v62 = vpop.permute.xlu0 %2984 }
 0x621   : > { %v7733_v32 = vpop.permute.xlu1 %3110  ;;  %v3955_v3 = vsel %vm204_vm0, %v8520_v16, %v7735_v62  ;;  %v2843_v62 = vld [vmem:[#allocation2 + $0x188] sm:$0xff] }
 0x622   : > { %3760 = vrot.lane.b32.xlu0 %v2871_v22, %s5365_s5  ;;  %v3986_v0 = vsel %vm1665_vm4, %v3954_v44, %v7733_v32 }
 0x623   : > { %3886 = vrot.lane.b32.xlu1 %v2902_v57, %s5366_s8 }
 0x624   : > { %v3493_v17 = vpop.permute.xlu0 %3492 }
 0x625   : > { %v3619_v52 = vpop.permute.xlu1 %3618  ;;  %v4081_v25 = vsel %vm1764_vm6, %v4049_v48, %v3493_v17  ;;  %v2842_v17 = vld [vmem:[#allocation2 + $0x180] sm:$0xff] }
 0x626   : > { %2998 = vrot.lane.b32.xlu0 %v2870_v45, %s5361_s20  ;;  %v4112_v10 = vsel %vm1797_vm7, %v4080_v33, %v3619_v52  ;;  %v2905_v45 = vld [vmem:[#allocation2 + $0x172] sm:$0xff] }
 0x627   : > { %3380 = vrot.lane.b32.xlu1 %v2871_v22, %s5359_s18 }
 0x628   : > { %v7743_v63 = vpop.permute.xlu0 %3112 }
 0x629   : > { %v7741_v51 = vpop.permute.xlu1 %3238  ;;  %v3987_v6 = vsel %vm1665_vm4, %v3955_v3, %v7743_v63 }
 0x62a   : > { %3506 = vrot.lane.b32.xlu0 %v2902_v57, %s5362_s21  ;;  %v4018_v24 = vsel %vm1698_vm3, %v3986_v0, %v7741_v51 }
 0x62b   : > { %3888 = vrot.lane.b32.xlu1 %v2903_v40, %s5366_s8 }
 0x62c   : > { %v3621_v15 = vpop.permute.xlu0 %3620 }
 0x62d   : > { %v3747_v23 = vpop.permute.xlu1 %3746  ;;  %v4113_v31 = vsel %vm1797_vm7, %v4081_v25, %v3621_v15 }
 0x62e   : > { %3000 = vrot.lane.b32.xlu0 %v2871_v22, %s5361_s20  ;;  %v4144_v38 = vsel %vm1830_vm8, %v4112_v10, %v3747_v23  ;;  %v2874_v10 = vld [vmem:[#allocation2 + $0x181] sm:$0xff] }
 0x62f   : > { %3126 = vrot.lane.b32.xlu1 %v2902_v57, %s5363_s22 }
 0x630   : > { %v7756_v47 = vpop.permute.xlu0 %3240 }
 0x631   : > { %v3367_v19 = vpop.permute.xlu1 %3366  ;;  %v4019_v18 = vsel %vm1698_vm3, %v3987_v6, %v7756_v47 }
 0x632   : > { %3508 = vrot.lane.b32.xlu0 %v2903_v40, %s5362_s21  ;;  %v4050_v52 = vsel %vm1731_vm5, %v4018_v24, %v3367_v19  ;;  %v2909_v24 = vld [vmem:[#allocation2 + $0x1a2] sm:$0xff] }
 0x633   : > { %3634 = vrot.lane.b32.xlu1 %v7759_v13, %s5364_s23 }
 0x634   : > { %v3749_v56 = vpop.permute.xlu0 %3748 }
 0x635   : > { %v3875_v50 = vpop.permute.xlu1 %3874  ;;  %v4145_v53 = vsel %vm1830_vm8, %v4113_v31, %v3749_v56  ;;  %v2813_v31 = vld [vmem:[#allocation2 + $0x18a] sm:$0xff] }
 0x636   : > { %v4176_v9 = vsel %vm1863_vm9, %v4144_v38, %v3875_v50  ;;  %3128 = vrot.lane.b32.xlu0 %v2903_v40, %s5363_s22 }
 0x637   : > { %3254 = vrot.lane.b32.xlu1 %v7759_v13, %s5360_s19  ;;  %5309 = vmatprep.mubr.msk.f32.mxu0 %vm1901_vm10, %v4176_v9 }
 0x638   : > { %v7779_v42 = vpop.permute.xlu0 %2986 }
 0x639   : > { %v3369_v1 = vpop.permute.xlu1 %3368 }
 0x63a   : > { %3636 = vrot.lane.b32.xlu0 %v7782_v61, %s5364_s23  ;;  %v4051_v33 = vsel %vm1731_vm5, %v4019_v18, %v3369_v1 }
 0x63b   : > { %3762 = vrot.lane.b32.xlu1 %v8517_v49, %s5365_s5 }
 0x63c   : > { %v3495_v8 = vpop.permute.xlu0 %3494 }
 0x63d   : > { %v3877_v41 = vpop.permute.xlu1 %3876  ;;  %v4082_v40 = vsel %vm1764_vm6, %v4050_v52, %v3495_v8  ;;  %v2845_v8 = vld [vmem:[#allocation2 + $0x1a0] sm:$0xff] }
 0x63e   : > { %v4177_v2 = vsel %vm1863_vm9, %v4145_v53, %v3877_v41  ;;  %3256 = vrot.lane.b32.xlu0 %v7782_v61, %s5360_s19  ;;  %v2908_v52 = vld [vmem:[#allocation2 + $0x19a] sm:$0xff] }
 0x63f   : > { %3382 = vrot.lane.b32.xlu1 %v8517_v49, %s5359_s18  ;;  %5310 = vmatmul.mubr.msk.f32.gmra.mxu0 %vm1901_vm10, %v4177_v2  ;;  %v2844_v2 = vld [vmem:[#allocation2 + $0x198] sm:$0xff] }
 0x640   : > { %v7799_v27 = vpop.permute.xlu0 %2988 }
 0x641   : > { %v7797_v26 = vpop.permute.xlu1 %3114 }
 0x642   : > { %3764 = vrot.lane.b32.xlu0 %v8518_v7, %s5365_s5 }
 0x643   : > { %3890 = vrot.lane.b32.xlu1 %v2904_v14, %s5366_s8 }
 0x644   : > { %v3497_v4 = vpop.permute.xlu0 %3496 }
 0x645   : > { %v3623_v39 = vpop.permute.xlu1 %3622  ;;  %v4083_v38 = vsel %vm1764_vm6, %v4051_v33, %v3497_v4 }
 0x646   : > { %3002 = vrot.lane.b32.xlu0 %v8517_v49, %s5361_s20  ;;  %v4114_v21 = vsel %vm1797_vm7, %v4082_v40, %v3623_v39 }
 0x647   : > { %3384 = vrot.lane.b32.xlu1 %v8518_v7, %s5359_s18 }
 0x648   : > { %v7810_v12 = vpop.permute.xlu0 %3116 }
 0x649   : > { %v7808_v29 = vpop.permute.xlu1 %3242 }
 0x64a   : > { %3510 = vrot.lane.b32.xlu0 %v2904_v14, %s5362_s21 }
 0x64b   : > { %3892 = vrot.lane.b32.xlu1 %v2905_v45, %s5366_s8 }
 0x64c   : > { %v3625_v54 = vpop.permute.xlu0 %3624 }
 0x64d   : > { %v3751_v59 = vpop.permute.xlu1 %3750  ;;  %v4115_v63 = vsel %vm1797_vm7, %v4083_v38, %v3625_v54  ;;  %v2877_v54 = vld [vmem:[#allocation2 + $0x1a1] sm:$0xff] }
 0x64e   : > { %3004 = vrot.lane.b32.xlu0 %v8518_v7, %s5361_s20  ;;  %v4146_v23 = vsel %vm1830_vm8, %v4114_v21, %v3751_v59  ;;  %s8268_s20 = scalar_lea.vmem %s8386_s3, %s4998_s14 }
 0x64f   : > { %3130 = vrot.lane.b32.xlu1 %v2904_v14, %s5363_s22  ;;  %v3956_v14 = vsel %vm204_vm0, %v7322_v36, %v7779_v42 }
 0x650   : > { %v7824_v22 = vpop.permute.xlu0 %3244  ;;  %v3988_v7 = vsel %vm1665_vm4, %v3956_v14, %v7797_v26 }
 0x651   : > { %v3371_v57 = vpop.permute.xlu1 %3370  ;;  %v4020_v39 = vsel %vm1698_vm3, %v3988_v7, %v7808_v29 }
 0x652   : > { %3512 = vrot.lane.b32.xlu0 %v2905_v45, %s5362_s21  ;;  %v4052_v59 = vsel %vm1731_vm5, %v4020_v39, %v3371_v57  ;;  %v3957_v57 = vsel %vm204_vm0, %v7381_v58, %v7799_v27 }
 0x653   : > { %3638 = vrot.lane.b32.xlu1 %v2842_v17, %s5364_s23 }
 0x654   : > { %v3753_v15 = vpop.permute.xlu0 %3752 }
 0x655   : > { %v3879_v32 = vpop.permute.xlu1 %3878  ;;  %v4147_v50 = vsel %vm1830_vm8, %v4115_v63, %v3753_v15 }
 0x656   : > { %v4178_v51 = vsel %vm1863_vm9, %v4146_v23, %v3879_v32  ;;  %3132 = vrot.lane.b32.xlu0 %v2905_v45, %s5363_s22 }
 0x657   : > { %3258 = vrot.lane.b32.xlu1 %v2842_v17, %s5360_s19  ;;  %5312 = vmatprep.mubr.msk.f32.mxu0 %vm1901_vm10, %v4178_v51  ;;  %v3989_v17 = vsel %vm1665_vm4, %v3957_v57, %v7810_v12 }
 0x658   : > { %v7845_v30 = vpop.permute.xlu0 %2990  ;;  %v4021_v40 = vsel %vm1698_vm3, %v3989_v17, %v7824_v22 }
 0x659   : > { %v7843_v19 = vpop.permute.xlu1 %3372  ;;  %v3958_v38 = vsel %vm204_vm0, %v7564_v35, %v7845_v30 }
 0x65a   : > { %3640 = vrot.lane.b32.xlu0 %v2843_v62, %s5364_s23  ;;  %v4053_v32 = vsel %vm1731_vm5, %v4021_v40, %v7843_v19 }
 0x65b   : > { %3766 = vrot.lane.b32.xlu1 %v2874_v10, %s5365_s5 }
 0x65c   : > { %v3499_v47 = vpop.permute.xlu0 %3498 }
 0x65d   : > { %v3881_v56 = vpop.permute.xlu1 %3880  ;;  %v4084_v44 = vsel %vm1764_vm6, %v4052_v59, %v3499_v47 }
 0x65e   : > { %v4179_v9 = vsel %vm1863_vm9, %v4147_v50, %v3881_v56  ;;  %3260 = vrot.lane.b32.xlu0 %v2843_v62, %s5360_s19 }
 0x65f   : > { %3386 = vrot.lane.b32.xlu1 %v2874_v10, %s5359_s18  ;;  %5313 = vmatmul.mubr.msk.f32.gmra.mxu0 %vm1901_vm10, %v4179_v9 }
 0x660   : > { %v7859_v37 = vpop.permute.xlu0 %2992 }
 0x661   : > { %v7857_v43 = vpop.permute.xlu1 %3118  ;;  %v3959_v35 = vsel %vm204_vm0, %v7594_v34, %v7859_v37 }
 0x662   : > { %3768 = vrot.lane.b32.xlu0 %v2875_v20, %s5365_s5  ;;  %v3990_v63 = vsel %vm1665_vm4, %v3958_v38, %v7857_v43 }
 0x663   : > { %3894 = vrot.lane.b32.xlu1 %v2906_v11, %s5366_s8 }
 0x664   : > { %v3501_v48 = vpop.permute.xlu0 %3500 }
 0x665   : > { %v3627_v1 = vpop.permute.xlu1 %3626  ;;  %v4085_v15 = vsel %vm1764_vm6, %v4053_v32, %v3501_v48 }
 0x666   : > { %3388 = vrot.lane.b32.xlu0 %v2875_v20, %s5359_s18  ;;  %v4116_v36 = vsel %vm1797_vm7, %v4084_v44, %v3627_v1 }
 0x667   : > { %3514 = vrot.lane.b32.xlu1 %v2906_v11, %s5362_s21 }
 0x668   : > { %v7865_v49 = vpop.permute.xlu0 %3120 }
 0x669   : > { %v3247_v25 = vpop.permute.xlu1 %3246  ;;  %v3991_v30 = vsel %vm1665_vm4, %v3959_v35, %v7865_v49 }
 0x66a   : > { %3896 = vrot.lane.b32.xlu0 %v2813_v31, %s5366_s8  ;;  %v4022_v50 = vsel %vm1698_vm3, %v3990_v63, %v3247_v25 }
 0x66b   : > { %3516 = vrot.lane.b32.xlu1 %v2813_v31, %s5362_s21 }
 0x66c   : > { %v3629_v41 = vpop.permute.xlu0 %3628 }
 0x66d   : > { %v3755_v53 = vpop.permute.xlu1 %3754  ;;  %v4117_v58 = vsel %vm1797_vm7, %v4085_v15, %v3629_v41 }
 0x66e   : > { %3642 = vrot.lane.b32.xlu0 %v2844_v2, %s5364_s23  ;;  %v4148_v42 = vsel %vm1830_vm8, %v4116_v36, %v3755_v53 }
 0x66f   : > { %3644 = vrot.lane.b32.xlu1 %v2845_v8, %s5364_s23 }
 0x670   : > { %v3249_v45 = vpop.permute.xlu0 %3248 }
 0x671   : > { %v3375_v4 = vpop.permute.xlu1 %3374  ;;  %v4023_v43 = vsel %vm1698_vm3, %v3991_v30, %v3249_v45 }
 0x672   : > { %3770 = vrot.lane.b32.xlu0 %v2876_v5, %s5365_s5  ;;  %v4054_v47 = vsel %vm1731_vm5, %v4022_v50, %v3375_v4 }
 0x673   : > { %3772 = vrot.lane.b32.xlu1 %v2877_v54, %s5365_s5 }
 0x674   : > { %v3757_v0 = vpop.permute.xlu0 %3756 }
 0x675   : > { %v3883_v26 = vpop.permute.xlu1 %3882  ;;  %v4149_v27 = vsel %vm1830_vm8, %v4117_v58, %v3757_v0 }
 0x676   : > { %v4180_v29 = vsel %vm1863_vm9, %v4148_v42, %v3883_v26  ;;  %3898 = vrot.lane.b32.xlu0 %v2908_v52, %s5366_s8 }
 0x677   : > { %3900 = vrot.lane.b32.xlu1 %v2909_v24, %s5366_s8  ;;  %5315 = vmatprep.mubr.msk.f32.mxu0 %vm1901_vm10, %v4180_v29 }
 0x678   : > { %v2995_v23 = vpop.permute.xlu0 %2994 }
 0x679   : > { %v3377_v21 = vpop.permute.xlu1 %3376  ;;  %v3960_v42 = vsel %vm204_vm0, %v7635_v60, %v2995_v23 }
 0x67a   : > { %v4055_v41 = vsel %vm1731_vm5, %v4023_v43, %v3377_v21 }
 0x67c   : > { %v3503_v16 = vpop.permute.xlu0 %3502 }
 0x67d   : > { %v3885_v51 = vpop.permute.xlu1 %3884  ;;  %v4086_v11 = vsel %vm1764_vm6, %v4054_v47, %v3503_v16 }
 0x67e   : > { %v4181_v12 = vsel %vm1863_vm9, %v4149_v27, %v3885_v51 }
 0x67f   : > { %5316 = vmatmul.mubr.msk.f32.gmra.mxu0 %vm1901_vm10, %v4181_v12 }
 0x680   : > { %v2997_v6 = vpop.permute.xlu0 %2996 }
 0x681   : > { %v3123_v3 = vpop.permute.xlu1 %3122  ;;  %v3961_v60 = vsel %vm204_vm0, %v7658_v28, %v2997_v6 }
 0x682   : > { %v3992_v26 = vsel %vm1665_vm4, %v3960_v42, %v3123_v3 }
 0x684   : > { %v3505_v18 = vpop.permute.xlu0 %3504 }
 0x685   : > { %v3631_v22 = vpop.permute.xlu1 %3630  ;;  %v4087_v2 = vsel %vm1764_vm6, %v4055_v41, %v3505_v18 }
 0x686   : > { %v4118_v20 = vsel %vm1797_vm7, %v4086_v11, %v3631_v22 }
 0x688   : > { %v3125_v10 = vpop.permute.xlu0 %3124 }
 0x689   : > { %v3251_v33 = vpop.permute.xlu1 %3250  ;;  %v3993_v23 = vsel %vm1665_vm4, %v3961_v60, %v3125_v10 }
 0x68a   : > { %v4024_v0 = vsel %vm1698_vm3, %v3992_v26, %v3251_v33 }
 0x68c   : > { %v3633_v19 = vpop.permute.xlu0 %3632 }
 0x68d   : > { %v3759_v62 = vpop.permute.xlu1 %3758  ;;  %v4119_v14 = vsel %vm1797_vm7, %v4087_v2, %v3633_v19 }
 0x68e   : > { %v4150_v1 = vsel %vm1830_vm8, %v4118_v20, %v3759_v62 }
 0x690   : > { %v3253_v9 = vpop.permute.xlu0 %3252 }
 0x691   : > { %v3379_v56 = vpop.permute.xlu1 %3378  ;;  %v4025_v58 = vsel %vm1698_vm3, %v3993_v23, %v3253_v9 }
 0x692   : > { %v4056_v24 = vsel %vm1731_vm5, %v4024_v0, %v3379_v56 }
 0x694   : > { %v3761_v53 = vpop.permute.xlu0 %3760 }
 0x695   : > { %v3887_v48 = vpop.permute.xlu1 %3886  ;;  %v4151_v7 = vsel %vm1830_vm8, %v4119_v14, %v3761_v53 }
 0x696   : > { %v4182_v31 = vsel %vm1863_vm9, %v4150_v1, %v3887_v48 }
 0x697   : > { %5318 = vmatprep.mubr.msk.f32.mxu0 %vm1901_vm10, %v4182_v31 }
 0x698   : > { %v2999_v8 = vpop.permute.xlu0 %2998 }
 0x699   : > { %v3381_v25 = vpop.permute.xlu1 %3380  ;;  %v3962_v47 = vsel %vm204_vm0, %v7697_v55, %v2999_v8 }
 0x69a   : > { %v4057_v51 = vsel %vm1731_vm5, %v4025_v58, %v3381_v25  ;;  %v7986_v58 = vpop.f32.mrf.mxu0 }
 0x69c   : > { %v3507_v37 = vpop.permute.xlu0 %3506 }
 0x69d   : > { %v3889_v39 = vpop.permute.xlu1 %3888  ;;  %v4088_v57 = vsel %vm1764_vm6, %v4056_v24, %v3507_v37 }
 0x69e   : > { %v4183_v34 = vsel %vm1863_vm9, %v4151_v7, %v3889_v39 }
 0x69f   : > { %5319 = vmatmul.mubr.msk.f32.gmra.mxu0 %vm1901_vm10, %v4183_v34 }
 0x6a0   : > { %v3001_v49 = vpop.permute.xlu0 %3000 }
 0x6a1   : > { %v3127_v4 = vpop.permute.xlu1 %3126  ;;  %v3963_v55 = vsel %vm204_vm0, %v7720_v46, %v3001_v49 }
 0x6a2   : > { %v3994_v9 = vsel %vm1665_vm4, %v3962_v47, %v3127_v4 }
 0x6a4   : > { %v3509_v45 = vpop.permute.xlu0 %3508 }
 0x6a5   : > { %v3635_v59 = vpop.permute.xlu1 %3634  ;;  %v4089_v12 = vsel %vm1764_vm6, %v4057_v51, %v3509_v45 }
 0x6a6   : > { %v4120_v17 = vsel %vm1797_vm7, %v4088_v57, %v3635_v59 }
 0x6a8   : > { %v3129_v5 = vpop.permute.xlu0 %3128 }
 0x6a9   : > { %v3255_v54 = vpop.permute.xlu1 %3254  ;;  %v3995_v41 = vsel %vm1665_vm4, %v3963_v55, %v3129_v5 }
 0x6aa   : > { %v4026_v11 = vsel %vm1698_vm3, %v3994_v9, %v3255_v54 }
 0x6ac   : > { %v3637_v36 = vpop.permute.xlu0 %3636 }
 0x6ad   : > { %v3763_v44 = vpop.permute.xlu1 %3762  ;;  %v4121_v3 = vsel %vm1797_vm7, %v4089_v12, %v3637_v36 }
 0x6ae   : > { %v4152_v40 = vsel %vm1830_vm8, %v4120_v17, %v3763_v44 }
 0x6b0   : > { %v3257_v52 = vpop.permute.xlu0 %3256 }
 0x6b1   : > { %v3383_v29 = vpop.permute.xlu1 %3382  ;;  %v4027_v2 = vsel %vm1698_vm3, %v3995_v41, %v3257_v52 }
 0x6b2   : > { %v4058_v1 = vsel %vm1731_vm5, %v4026_v11, %v3383_v29 }
 0x6b4   : > { %v3765_v15 = vpop.permute.xlu0 %3764 }
 0x6b5   : > { %v3891_v21 = vpop.permute.xlu1 %3890  ;;  %v4153_v22 = vsel %vm1830_vm8, %v4121_v3, %v3765_v15 }
 0x6b6   : > { %v4184_v32 = vsel %vm1863_vm9, %v4152_v40, %v3891_v21 }
 0x6b7   : > { %5321 = vmatprep.mubr.msk.f32.mxu0 %vm1901_vm10, %v4184_v32 }
 0x6b8   : > { %v3003_v16 = vpop.permute.xlu0 %3002 }
 0x6b9   : > { %v3385_v27 = vpop.permute.xlu1 %3384  ;;  %v3964_v5 = vsel %vm204_vm0, %v7759_v13, %v3003_v16 }
 0x6ba   : > { %v4059_v7 = vsel %vm1731_vm5, %v4027_v2, %v3385_v27  ;;  %v7988_v27 = vpop.f32.mrf.mxu0 }
 0x6bc   : > { %v3511_v28 = vpop.permute.xlu0 %3510  ;;  %v7990_v51 = vpop.f32.mrf.mxu0 }
 0x6bd   : > { %v3893_v18 = vpop.permute.xlu1 %3892  ;;  %v4090_v31 = vsel %vm1764_vm6, %v4058_v1, %v3511_v28 }
 0x6be   : > { %v4185_v33 = vsel %vm1863_vm9, %v4153_v22, %v3893_v18  ;;  %v7992_v16 = vpop.f32.mrf.mxu0 }
 0x6bf   : > { %5322 = vmatmul.mubr.msk.f32.gmra.mxu0 %vm1901_vm10, %v4185_v33 }
 0x6c0   : > { %v3005_v10 = vpop.permute.xlu0 %3004  ;;  %v7994_v12 = vpop.f32.mrf.mxu0 }
 0x6c1   : > { %v3131_v6 = vpop.permute.xlu1 %3130  ;;  %v3965_v54 = vsel %vm204_vm0, %v7782_v61, %v3005_v10 }
 0x6c2   : > { %v3996_v36 = vsel %vm1665_vm4, %v3964_v5, %v3131_v6  ;;  %v7996_v3 = vpop.f32.mrf.mxu0 }
 0x6c4   : > { %v3513_v19 = vpop.permute.xlu0 %3512  ;;  %v7998_v22 = vpop.f32.mrf.mxu0 }
 0x6c5   : > { %v3639_v62 = vpop.permute.xlu1 %3638  ;;  %v4091_v39 = vsel %vm1764_vm6, %v4059_v7, %v3513_v19  ;;  %v8521_v7 = vmov 1.0  }
 0x6c6   : > { %v4122_v53 = vsel %vm1797_vm7, %v4090_v31, %v3639_v62  ;;  %v8000_v18 = vpop.f32.mrf.mxu0 }
 0x6c8   : > { %v3133_v63 = vpop.permute.xlu0 %3132  ;;  %v8002_v33 = vpop.f32.mrf.mxu0 }
 0x6c9   : > { %v3259_v38 = vpop.permute.xlu1 %3258  ;;  %v3997_v44 = vsel %vm1665_vm4, %v3965_v54, %v3133_v63 }
 0x6ca   : > { %v4028_v0 = vsel %vm1698_vm3, %v3996_v36, %v3259_v38  ;;  %v8004_v28 = vpop.f32.mrf.mxu0 }
 0x6cc   : > { %v3641_v56 = vpop.permute.xlu0 %3640  ;;  %v8006_v6 = vpop.f32.mrf.mxu0 }
 0x6cd   : > { %v3767_v50 = vpop.permute.xlu1 %3766  ;;  %v4123_v34 = vsel %vm1797_vm7, %v4091_v39, %v3641_v56 }
 0x6ce   : > { %v4154_v35 = vsel %vm1830_vm8, %v4122_v53, %v3767_v50  ;;  %v8008_v10 = vpop.f32.mrf.mxu0 }
 0x6cf   : > { %v4599_v54 = vmul.f32 %v8008_v10, %v8008_v10 }
 0x6d0   : > { %v3261_v48 = vpop.permute.xlu0 %3260  ;;  %v8010_v62 = vpop.f32.mrf.mxu0 }
 0x6d1   : > { %v3387_v20 = vpop.permute.xlu1 %3386  ;;  %v4029_v42 = vsel %vm1698_vm3, %v3997_v44, %v3261_v48  ;;  %v4598_v44 = vmul.f32 %v8002_v33, %v8002_v33 }
 0x6d2   : > { %v4060_v52 = vsel %vm1731_vm5, %v4028_v0, %v3387_v20  ;;  %v8012_v19 = vpop.f32.mrf.mxu0  ;;  %v4596_v0 = vmul.f32 %v7998_v22, %v7998_v22 }
 0x6d4   : > { %v3769_v25 = vpop.permute.xlu0 %3768  ;;  %v8014_v38 = vpop.f32.mrf.mxu0 }
 0x6d5   : > { %v3895_v30 = vpop.permute.xlu1 %3894  ;;  %v4155_v4 = vsel %vm1830_vm8, %v4123_v34, %v3769_v25  ;;  %v4604_v2 = vmul.f32 %v8014_v38, %v8014_v38 }
 0x6d6   : > { %v4186_v43 = vsel %vm1863_vm9, %v4154_v35, %v3895_v30  ;;  %v8016_v63 = vpop.f32.mrf.mxu0 }
 0x6d7   : > { %5324 = vmatprep.mubr.msk.f32.mxu0 %vm1901_vm10, %v4186_v43  ;;  %v4603_v39 = vmul.f32 %v8016_v63, %v8016_v63 }
 0x6d8   : > { %v3389_v14 = vpop.permute.xlu0 %3388 }
 0x6d9   : > { %v3515_v8 = vpop.permute.xlu1 %3514  ;;  %v4061_v29 = vsel %vm1731_vm5, %v4029_v42, %v3389_v14  ;;  %v4597_v42 = vmul.f32 %v8004_v28, %v8004_v28 }
 0x6da   : > { %v4092_v61 = vsel %vm1764_vm6, %v4060_v52, %v3515_v8 }
 0x6dc   : > { %v3897_v59 = vpop.permute.xlu0 %3896 }
 0x6dd   : > { %v3517_v37 = vpop.permute.xlu1 %3516  ;;  %v4187_v45 = vsel %vm1863_vm9, %v4155_v4, %v3897_v59  ;;  %v4601_v59 = vmul.f32 %v8012_v19, %v8012_v19 }
 0x6de   : > { %5325 = vmatmul.mubr.msk.f32.gmra.mxu0 %vm1901_vm10, %v4187_v45  ;;  %v4093_v57 = vsel %vm1764_vm6, %v4061_v29, %v3517_v37  ;;  %v4602_v37 = vmul.f32 %v8010_v62, %v8010_v62 }
 0x6df   : > { %v8018_v50 = vpop.f32.mrf.mxu0 }
 0x6e0   : > { %v3643_v49 = vpop.permute.xlu0 %3642 }
 0x6e1   : > { %v3645_v46 = vpop.permute.xlu1 %3644  ;;  %v4124_v17 = vsel %vm1797_vm7, %v4092_v61, %v3643_v49  ;;  %v8020_v56 = vpop.f32.mrf.mxu0 }
 0x6e2   : > { %v4125_v13 = vsel %vm1797_vm7, %v4093_v57, %v3645_v46  ;;  %v4600_v46 = vmul.f32 %v8006_v6, %v8006_v6  ;;  %v4594_v57 = vmul.f32 %v7994_v12, %v7994_v12 }
 0x6e4   : > { %v3771_v24 = vpop.permute.xlu0 %3770 }
 0x6e5   : > { %v3773_v26 = vpop.permute.xlu1 %3772  ;;  %v4156_v32 = vsel %vm1830_vm8, %v4124_v17, %v3771_v24  ;;  %v4595_v24 = vmul.f32 %v8000_v18, %v8000_v18 }
 0x6e6   : > { %v4157_v40 = vsel %vm1830_vm8, %v4125_v13, %v3773_v26  ;;  %v4593_v13 = vmul.f32 %v7996_v3, %v7996_v3 }
 0x6e8   : > { %v3899_v60 = vpop.permute.xlu0 %3898 }
 0x6e9   : > { %v3901_v21 = vpop.permute.xlu1 %3900  ;;  %v4188_v23 = vsel %vm1863_vm9, %v4156_v32, %v3899_v60  ;;  %v4591_v32 = vmul.f32 %v7992_v16, %v7992_v16  ;;  %v4590_v60 = vmul.f32 %v7986_v58, %v7986_v58 }
 0x6ea   : > { %v4189_v15 = vsel %vm1863_vm9, %v4157_v40, %v3901_v21  ;;  %5327 = vmatprep.mubr.msk.f32.mxu0 %vm1901_vm10, %v4188_v23  ;;  %v4592_v40 = vmul.f32 %v7990_v51, %v7990_v51  ;;  %v4605_v23 = vmul.f32 %v8020_v56, %v8020_v56 }
 0x6eb   : > { %5328 = vmatmul.mubr.msk.f32.gmra.mxu0 %vm1901_vm10, %v4189_v15  ;;  %v4606_v15 = vmul.f32 %v8018_v50, %v8018_v50 }
 0x6ff   : > { %v8022_v47 = vpop.f32.mrf.mxu0 }
 0x700   : > { %v4608_v17 = vmul.f32 %v8022_v47, %v8022_v47 }
 0x701   : > { %v8024_v9 = vpop.f32.mrf.mxu0 }
 0x702   : > { %v4607_v21 = vmul.f32 %v8024_v9, %v8024_v9 }
 0x71f   : > { %v8026_v11 = vpop.f32.mrf.mxu0 }
 0x720   : > { %v4610_v52 = vmul.f32 %v8026_v11, %v8026_v11 }
 0x721   : > { %v8028_v20 = vpop.f32.mrf.mxu0 }
 0x722   : > { %v4609_v61 = vmul.f32 %v8028_v20, %v8028_v20 }
 0x73f   : > { %v8030_v1 = vpop.f32.mrf.mxu0 }
 0x740   : > { %v4612_v26 = vmul.f32 %v8030_v1, %v8030_v1 }
 0x741   : > { %v8032_v48 = vpop.f32.mrf.mxu0 }
 0x742   : > { %v4611_v29 = vmul.f32 %v8032_v48, %v8032_v48 }
 0x75f   : > { %v8034_v31 = vpop.f32.mrf.mxu0 }
 0x760   : > { %v4614_v5 = vmul.f32 %v8034_v31, %v8034_v31 }
 0x761   : > { %v8036_v53 = vpop.f32.mrf.mxu0 }
 0x762   : > { %v4613_v36 = vmul.f32 %v8036_v53, %v8036_v53 }
 0x77f   : > { %v8038_v35 = vpop.f32.mrf.mxu0 }
 0x780   : > { %v4616_v45 = vmul.f32 %v8038_v35, %v8038_v35 }
 0x781   : > { %v8040_v30 = vpop.f32.mrf.mxu0 }
 0x782   : > { %v4615_v49 = vmul.f32 %v8040_v30, %v8040_v30 }
 0x79e   : > { %v8042_v43 = vpop.f32.mrf.mxu0 }
 0x79f   : > { %v4618_v34 = vmul.f32 %v8042_v43, %v8042_v43 }
 0x7a0   : > { %v8044_v25 = vpop.f32.mrf.mxu0 }
 0x7a1   : > { %v4617_v4 = vmul.f32 %v8044_v25, %v8044_v25 }
 0x7ab   : > { %v8046_v55 = vpop.f32.mrf.mxu0 }
 0x7ac   : > { %5144 = vmatprep.subr.mxu1 %v8046_v55  ;;  %v4620_v8 = vmul.f32 %v8046_v55, %v8046_v55 }
 0x7ad   : > { %v8049_v41 = vpop.f32.mrf.mxu0  ;;  %5145 = vmatpush3.msra.mxu1 %v8014_v38 }
 0x7ae   : > { %5146 = vmatprep.subr.mxu1 %v8049_v41  ;;  %v4619_v14 = vmul.f32 %v8049_v41, %v8049_v41 }
 0x7af   : > { %5147 = vmatpush3.msra.mxu1 %v8016_v63 }
 0x7b0   : > { %5148 = vmatprep.subr.mxu1 %v8042_v43 }
 0x7b1   : > { %5149 = vmatpush3.msra.mxu1 %v8010_v62 }
 0x7b2   : > { %5150 = vmatprep.subr.mxu1 %v8044_v25 }
 0x7b3   : > { %5151 = vmatpush3.msra.mxu1 %v8012_v19 }
 0x7b4   : > { %5152 = vmatprep.subr.mxu1 %v8038_v35 }
 0x7b5   : > { %5153 = vmatpush3.msra.mxu1 %v8006_v6 }
 0x7b6   : > { %5154 = vmatprep.subr.mxu1 %v8040_v30 }
 0x7b7   : > { %5155 = vmatpush3.msra.mxu1 %v8008_v10 }
 0x7b8   : > { %5156 = vmatprep.subr.mxu1 %v8034_v31 }
 0x7b9   : > { %5157 = vmatpush3.msra.mxu1 %v8002_v33 }
 0x7ba   : > { %5158 = vmatprep.subr.mxu1 %v8036_v53 }
 0x7bb   : > { %5159 = vmatpush3.msra.mxu1 %v8004_v28 }
 0x7bc   : > { %5160 = vmatprep.subr.mxu1 %v8030_v1 }
 0x7bd   : > { %5161 = vmatpush3.msra.mxu1 %v7998_v22 }
 0x7be   : > { %5162 = vmatprep.subr.mxu1 %v8032_v48 }
 0x7bf   : > { %5163 = vmatpush3.msra.mxu1 %v8000_v18 }
 0x7c0   : > { %5164 = vmatprep.subr.mxu1 %v8026_v11 }
 0x7c1   : > { %5165 = vmatpush3.msra.mxu1 %v7994_v12 }
 0x7c2   : > { %5166 = vmatprep.subr.mxu1 %v8028_v20 }
 0x7c3   : > { %5167 = vmatpush3.msra.mxu1 %v7996_v3 }
 0x7c4   : > { %5168 = vmatprep.subr.mxu1 %v8022_v47 }
 0x7c5   : > { %5169 = vmatpush3.msra.mxu1 %v7990_v51 }
 0x7c6   : > { %5170 = vmatprep.subr.mxu1 %v8024_v9 }
 0x7c7   : > { %5171 = vmatpush3.msra.mxu1 %v7992_v16 }
 0x7c8   : > { %5172 = vmatprep.subr.mxu1 %v8018_v50 }
 0x7c9   : > { %5173 = vmatpush3.msra.mxu1 %v7986_v58 }
 0x7ca   : > { %5174 = vmatprep.subr.mxu1 %v8020_v56 }
 0x7cb   : > { %5175 = vmatpush3.msra.mxu1 %v7988_v27 }
 0x7cc   : > { %4584 = vmatmul.mubr.f32.vlgmr.msra.gmra.mxu1 %v8521_v7  ;;  %5179 = vmatprep.subr.mxu1 %v4620_v8  ;;  %v4589_v8 = vmul.f32 %v7988_v27, %v7988_v27 }
 0x7cd   : > { %5180 = vmatpush3.msra.mxu1 %v4604_v2  ;;  %4685 = vmatprep.mubr.f32.mxu1 %v8521_v7 }
 0x7ce   : > { %5181 = vmatprep.subr.mxu1 %v4619_v14 }
 0x7cf   : > { %5182 = vmatpush3.msra.mxu1 %v4603_v39 }
 0x7d0   : > { %5183 = vmatprep.subr.mxu1 %v4618_v34 }
 0x7d1   : > { %5184 = vmatpush3.msra.mxu1 %v4602_v37 }
 0x7d2   : > { %5185 = vmatprep.subr.mxu1 %v4617_v4 }
 0x7d3   : > { %5186 = vmatpush3.msra.mxu1 %v4601_v59 }
 0x7d4   : > { %5187 = vmatprep.subr.mxu1 %v4616_v45 }
 0x7d5   : > { %5188 = vmatpush3.msra.mxu1 %v4600_v46 }
 0x7d6   : > { %5189 = vmatprep.subr.mxu1 %v4615_v49 }
 0x7d7   : > { %5190 = vmatpush3.msra.mxu1 %v4599_v54 }
 0x7d8   : > { %5191 = vmatprep.subr.mxu1 %v4614_v5 }
 0x7d9   : > { %5192 = vmatpush3.msra.mxu1 %v4598_v44  ;;  %v8522_v44 = vld [vmem:[#allocation3_spill] sm:$0xff] }
 0x7da   : > { %5193 = vmatprep.subr.mxu1 %v4613_v36 }
 0x7db   : > { %5194 = vmatpush3.msra.mxu1 %v4597_v42 }
 0x7dc   : > { %5195 = vmatprep.subr.mxu1 %v4612_v26 }
 0x7dd   : > { %5196 = vmatpush3.msra.mxu1 %v4596_v0 }
 0x7de   : > { %5197 = vmatprep.subr.mxu1 %v4611_v29 }
 0x7df   : > { %5198 = vmatpush3.msra.mxu1 %v4595_v24 }
 0x7e0   : > { %5199 = vmatprep.subr.mxu1 %v4610_v52 }
 0x7e1   : > { %5200 = vmatpush3.msra.mxu1 %v4594_v57 }
 0x7e2   : > { %5201 = vmatprep.subr.mxu1 %v4609_v61 }
 0x7e3   : > { %5202 = vmatpush3.msra.mxu1 %v4593_v13 }
 0x7e4   : > { %5203 = vmatprep.subr.mxu1 %v4608_v17 }
 0x7e5   : > { %5204 = vmatpush3.msra.mxu1 %v4592_v40 }
 0x7e6   : > { %5205 = vmatprep.subr.mxu1 %v4607_v21 }
 0x7e7   : > { %5206 = vmatpush3.msra.mxu1 %v4591_v32 }
 0x7e8   : > { %5207 = vmatprep.subr.mxu1 %v4606_v15 }
 0x7e9   : > { %5208 = vmatpush3.msra.mxu1 %v4590_v60 }
 0x7ea   : > { %5209 = vmatprep.subr.mxu1 %v4605_v23 }
 0x7eb   : > { %5210 = vmatpush3.msra.mxu1 %v4589_v8 }
 0x7ec   : > { %4686 = vmatmul.mubr.f32.vlgmr.msra.gmra.mxu1 %v8521_v7 }
 0x88c   : > { %v5176_v2 = vpop.f32.mrf.mxu1 }
 0x88e   : > { %v5177_v14 = vpop.f32.mrf.mxu1 }
 0x88f   : > { %v5178_v39 = vadd.f32 %v5177_v14, %v5176_v2  ;;  %v4770_v2 = vld [vmem:[%s5404_s17] sm:$0xff]  ;;  %v4771_v14 = vld [vmem:[%s5404_s17 + $0x8] sm:$0xff] }
 0x891   : > { %v4691_v37 = vmul.f32 0.00390625, %v5178_v39  ;;  %v4772_v39 = vld [vmem:[%s5404_s17 + $0x10] sm:$0xff] }
 0x893   : > { %v4693_v45 = vmul.f32 %v4691_v37, %v4691_v37  ;;  %v8150_v36 = vrot.slane %v4691_v37, %v8522_v44 }
 0x895   : > { %v4702_v42 = vsub.f32 %v7988_v27, %v8150_v36  ;;  %v4703_v7 = vsub.f32 %v7986_v58, %v8150_v36  ;;  %v4704_v26 = vsub.f32 %v7992_v16, %v8150_v36  ;;  %v4705_v0 = vsub.f32 %v7990_v51, %v8150_v36 }
 0x896   : > { %v4706_v29 = vsub.f32 %v7996_v3, %v8150_v36  ;;  %v4707_v24 = vsub.f32 %v7994_v12, %v8150_v36  ;;  %v4708_v52 = vsub.f32 %v8000_v18, %v8150_v36  ;;  %v4709_v27 = vsub.f32 %v7998_v22, %v8150_v36 }
 0x897   : > { %v4710_v58 = vsub.f32 %v8004_v28, %v8150_v36  ;;  %v4711_v16 = vsub.f32 %v8002_v33, %v8150_v36  ;;  %v4712_v51 = vsub.f32 %v8008_v10, %v8150_v36  ;;  %v4713_v3 = vsub.f32 %v8006_v6, %v8150_v36 }
 0x898   : > { %v4714_v12 = vsub.f32 %v8012_v19, %v8150_v36  ;;  %v4715_v18 = vsub.f32 %v8010_v62, %v8150_v36  ;;  %v4716_v22 = vsub.f32 %v8016_v63, %v8150_v36  ;;  %v4717_v28 = vsub.f32 %v8014_v38, %v8150_v36 }
 0x899   : > { %v4718_v33 = vsub.f32 %v8020_v56, %v8150_v36  ;;  %v4719_v10 = vsub.f32 %v8018_v50, %v8150_v36  ;;  %v4720_v6 = vsub.f32 %v8024_v9, %v8150_v36  ;;  %v4721_v19 = vsub.f32 %v8022_v47, %v8150_v36 }
 0x89a   : > { %v4722_v62 = vsub.f32 %v8028_v20, %v8150_v36  ;;  %v4723_v63 = vsub.f32 %v8026_v11, %v8150_v36  ;;  %v4724_v38 = vsub.f32 %v8032_v48, %v8150_v36  ;;  %v4725_v56 = vsub.f32 %v8030_v1, %v8150_v36 }
 0x89b   : > { %v4726_v50 = vsub.f32 %v8036_v53, %v8150_v36  ;;  %v4727_v9 = vsub.f32 %v8034_v31, %v8150_v36  ;;  %v4728_v47 = vsub.f32 %v8040_v30, %v8150_v36  ;;  %v4729_v20 = vsub.f32 %v8038_v35, %v8150_v36 }
 0x89c   : > { %v4730_v48 = vsub.f32 %v8044_v25, %v8150_v36  ;;  %v4731_v1 = vsub.f32 %v8042_v43, %v8150_v36  ;;  %v4732_v53 = vsub.f32 %v8049_v41, %v8150_v36  ;;  %v4733_v31 = vsub.f32 %v8046_v55, %v8150_v36 }
 0x8ac   : > { %v5211_v34 = vpop.f32.mrf.mxu1 }
 0x8ae   : > { %v5212_v4 = vpop.f32.mrf.mxu1 }
 0x8af   : > { %v5213_v59 = vadd.f32 %v5212_v4, %v5211_v34  ;;  %v4773_v34 = vld [vmem:[%s5404_s17 + $0x18] sm:$0xff] }
 0x8b1   : > { %v4692_v46 = vmul.f32 0.00390625, %v5213_v59 }
 0x8b3   : > { %v4694_v49 = vsub.f32 %v4692_v46, %v4693_v45  ;;  %v4774_v46 = vld [vmem:[%s5404_s17 + $0x20] sm:$0xff] }
 0x8b5   : > { %v4695_v54 = vmax.f32 %v4694_v49, 0.0  ;;  %v4775_v49 = vld [vmem:[%s5404_s17 + $0x28] sm:$0xff] }
 0x8b7   : > { %v4696_v5 = vadd.f32 1e-05, %v4695_v54  ;;  %v4776_v54 = vld [vmem:[%s5404_s17 + $0x30] sm:$0xff] }
 0x8b9   : > { %5349 = vrsqrt.f32 %v4696_v5  ;;  %v4777_v5 = vld [vmem:[%s5404_s17 + $0x38] sm:$0xff] }
 0x8c6   : > { %v5350_v57 = vpop.eup %5349 }
 0x8c7   : > { %v4737_v11 = vrot.slane %v5350_v57, %v8522_v44  ;;  %v4789_v57 = vld [vmem:[%s5404_s17 + $0x98] sm:$0xff] }
 0x8c9   : > { %v4738_v61 = vmul.f32 %v4737_v11, %v4702_v42  ;;  %v4739_v30 = vmul.f32 %v4737_v11, %v4703_v7  ;;  %v4740_v13 = vmul.f32 %v4737_v11, %v4704_v26  ;;  %v4741_v35 = vmul.f32 %v4737_v11, %v4705_v0  ;;  %v4778_v26 = vld [vmem:[%s5404_s17 + $0x40] sm:$0xff]  ;;  %v4779_v0 = vld [vmem:[%s5404_s17 + $0x48] sm:$0xff] }
 0x8ca   : > { %v4742_v17 = vmul.f32 %v4737_v11, %v4706_v29  ;;  %v4743_v40 = vmul.f32 %v4737_v11, %v4707_v24  ;;  %v4744_v25 = vmul.f32 %v4737_v11, %v4708_v52  ;;  %v4745_v21 = vmul.f32 %v4737_v11, %v4709_v27  ;;  %v4780_v29 = vld [vmem:[%s5404_s17 + $0x50] sm:$0xff] }
 0x8cb   : > { %v4746_v32 = vmul.f32 %v4737_v11, %v4710_v58  ;;  %v4747_v43 = vmul.f32 %v4737_v11, %v4711_v16  ;;  %v4748_v41 = vmul.f32 %v4737_v11, %v4712_v51  ;;  %v4749_v15 = vmul.f32 %v4737_v11, %v4713_v3  ;;  %v4781_v16 = vld [vmem:[%s5404_s17 + $0x58] sm:$0xff]  ;;  %v4782_v51 = vld [vmem:[%s5404_s17 + $0x60] sm:$0xff]  ;;  %v4783_v3 = vld [vmem:[%s5404_s17 + $0x68] sm:$0xff] }
 0x8cc   : > { %v8217_v55 = vmul.f32 %v4737_v11, %v4714_v12  ;;  %v8219_v60 = vmul.f32 %v4737_v11, %v4715_v18  ;;  %v8221_v23 = vmul.f32 %v4737_v11, %v4716_v22  ;;  %v8223_v8 = vmul.f32 %v4737_v11, %v4717_v28 }
 0x8cd   : > { %v8229_v37 = vmul.f32 %v4737_v11, %v4718_v33  ;;  %v8231_v4 = vmul.f32 %v4737_v11, %v4719_v10  ;;  %v8233_v59 = vmul.f32 %v4737_v11, %v4720_v6  ;;  %v8235_v45 = vmul.f32 %v4737_v11, %v4721_v19  ;;  %v4784_v33 = vld [vmem:[%s5404_s17 + $0x70] sm:$0xff]  ;;  %v4785_v10 = vld [vmem:[%s5404_s17 + $0x78] sm:$0xff]  ;;  %v4786_v6 = vld [vmem:[%s5404_s17 + $0x80] sm:$0xff] }
 0x8ce   : > { %v8241_v44 = vmul.f32 %v4737_v11, %v4722_v62  ;;  %v8243_v36 = vmul.f32 %v4737_v11, %v4723_v63  ;;  %v8245_v42 = vmul.f32 %v4737_v11, %v4724_v38  ;;  %v8247_v7 = vmul.f32 %v4737_v11, %v4725_v56  ;;  %v4787_v19 = vld [vmem:[%s5404_s17 + $0x88] sm:$0xff]  ;;  %v4788_v62 = vld [vmem:[%s5404_s17 + $0x90] sm:$0xff] }
 0x8cf   : > { %v8252_v24 = vmul.f32 %v4737_v11, %v4726_v50  ;;  %v8254_v52 = vmul.f32 %v4737_v11, %v4727_v9  ;;  %v8256_v27 = vmul.f32 %v4737_v11, %v4728_v47  ;;  %v8258_v58 = vmul.f32 %v4737_v11, %v4729_v20  ;;  %v4790_v9 = vld [vmem:[%s5404_s17 + $0xa0] sm:$0xff]  ;;  %v4791_v47 = vld [vmem:[%s5404_s17 + $0xa8] sm:$0xff]  ;;  %v4792_v20 = vld [vmem:[%s5404_s17 + $0xb0] sm:$0xff] }
 0x8d0   : > { %v8270_v12 = vmul.f32 %v4737_v11, %v4730_v48  ;;  %v8272_v18 = vmul.f32 %v4737_v11, %v4731_v1  ;;  %v8274_v22 = vmul.f32 %v4737_v11, %v4732_v53  ;;  %v8276_v28 = vmul.f32 %v4737_v11, %v4733_v31  ;;  %v4793_v31 = vld [vmem:[%s5404_s17 + $0xb8] sm:$0xff] }
 0x8d1   : > { %v4802_v63 = vadd.f32 %v4770_v2, %v4738_v61  ;;  %v4803_v38 = vadd.f32 %v4771_v14, %v4739_v30  ;;  %v4804_v56 = vadd.f32 %v4772_v39, %v4740_v13  ;;  %v4805_v50 = vadd.f32 %v4773_v34, %v4741_v35  ;;  %v4795_v61 = vld [vmem:[%s5404_s17 + $0xc8] sm:$0xff] }
 0x8d2   : > { %8523 = vst [vmem:[#allocation17_spill] sm:$0xff] %v8276_v28  ;;  %v4806_v11 = vadd.f32 %v4774_v46, %v4742_v17  ;;  %v4807_v48 = vadd.f32 %v4775_v49, %v4743_v40  ;;  %v4808_v1 = vadd.f32 %v4776_v54, %v4744_v25  ;;  %v4809_v53 = vadd.f32 %v4777_v5, %v4745_v21  ;;  %v4794_v28 = vld [vmem:[%s5404_s17 + $0xc0] sm:$0xff]  ;;  %v4796_v17 = vld [vmem:[%s5404_s17 + $0xd0] sm:$0xff]  ;;  %v4797_v40 = vld [vmem:[%s5404_s17 + $0xd8] sm:$0xff] }
 0x8d3   : > { %v4810_v30 = vadd.f32 %v4778_v26, %v4746_v32  ;;  %v4811_v13 = vadd.f32 %v4779_v0, %v4747_v43  ;;  %v4812_v35 = vadd.f32 %v4780_v29, %v4748_v41  ;;  %v4813_v2 = vadd.f32 %v4781_v16, %v4749_v15  ;;  %4834 = vst.msk [vmem:[%s8268_s20] sm:$0xff] %vm204_vm0, %v4802_v63  ;;  %v4798_v25 = vld [vmem:[%s5404_s17 + $0xe0] sm:$0xff]  ;;  %v4799_v15 = vld [vmem:[%s5404_s17 + $0xe8] sm:$0xff] }
 0x8d4   : > { %4835 = vst.msk [vmem:[%s8268_s20 + $0x8] sm:$0xff] %vm204_vm0, %v4803_v38  ;;  %4836 = vst.msk [vmem:[%s8268_s20 + $0x10] sm:$0xff] %vm204_vm0, %v4804_v56  ;;  %v4814_v21 = vadd.f32 %v4782_v51, %v8217_v55  ;;  %v4815_v32 = vadd.f32 %v4783_v3, %v8219_v60  ;;  %v4816_v43 = vadd.f32 %v4784_v33, %v8221_v23  ;;  %v4800_v55 = vld [vmem:[%s5404_s17 + $0xf0] sm:$0xff]  ;;  %v4801_v60 = vld [vmem:[%s5404_s17 + $0xf8] sm:$0xff] }
 0x8d5   : > { %4837 = vst.msk [vmem:[%s8268_s20 + $0x18] sm:$0xff] %vm204_vm0, %v4805_v50  ;;  %v4817_v41 = vadd.f32 %v4785_v10, %v8223_v8  ;;  %4838 = vst.msk [vmem:[%s8268_s20 + $0x20] sm:$0xff] %vm204_vm0, %v4806_v11  ;;  %v4818_v23 = vadd.f32 %v4786_v6, %v8229_v37  ;;  %v4819_v14 = vadd.f32 %v4787_v19, %v8231_v4 }
 0x8d6   : > { %4839 = vst.msk [vmem:[%s8268_s20 + $0x28] sm:$0xff] %vm204_vm0, %v4807_v48  ;;  %4840 = vst.msk [vmem:[%s8268_s20 + $0x30] sm:$0xff] %vm204_vm0, %v4808_v1  ;;  %v4820_v8 = vadd.f32 %v4788_v62, %v8233_v59  ;;  %v4821_v39 = vadd.f32 %v4789_v57, %v8235_v45  ;;  %v4822_v34 = vadd.f32 %v4790_v9, %v8241_v44 }
 0x8d7   : > { %4841 = vst.msk [vmem:[%s8268_s20 + $0x38] sm:$0xff] %vm204_vm0, %v4809_v53  ;;  %4842 = vst.msk [vmem:[%s8268_s20 + $0x40] sm:$0xff] %vm204_vm0, %v4810_v30  ;;  %v4823_v37 = vadd.f32 %v4791_v47, %v8243_v36  ;;  %v4824_v4 = vadd.f32 %v4792_v20, %v8245_v42  ;;  %v4825_v59 = vadd.f32 %v4793_v31, %v8247_v7 }
 0x8d8   : > { %4843 = vst.msk [vmem:[%s8268_s20 + $0x48] sm:$0xff] %vm204_vm0, %v4811_v13  ;;  %4844 = vst.msk [vmem:[%s8268_s20 + $0x50] sm:$0xff] %vm204_vm0, %v4812_v35  ;;  %v4826_v45 = vadd.f32 %v4794_v28, %v8252_v24  ;;  %v4827_v46 = vadd.f32 %v4795_v61, %v8254_v52  ;;  %v4828_v49 = vadd.f32 %v4796_v17, %v8256_v27 }
 0x8d9   : > { %4845 = vst.msk [vmem:[%s8268_s20 + $0x58] sm:$0xff] %vm204_vm0, %v4813_v2  ;;  %4846 = vst.msk [vmem:[%s8268_s20 + $0x60] sm:$0xff] %vm204_vm0, %v4814_v21  ;;  %v4829_v54 = vadd.f32 %v4797_v40, %v8258_v58  ;;  %v4830_v5 = vadd.f32 %v4798_v25, %v8270_v12  ;;  %v4831_v44 = vadd.f32 %v4799_v15, %v8272_v18  ;;  %v8524_v42 = vld [vmem:[#allocation17_spill] sm:$0xff] }
 0x8da   : > { %4847 = vst.msk [vmem:[%s8268_s20 + $0x68] sm:$0xff] %vm204_vm0, %v4815_v32  ;;  %4848 = vst.msk [vmem:[%s8268_s20 + $0x70] sm:$0xff] %vm204_vm0, %v4816_v43  ;;  %v4832_v36 = vadd.f32 %v4800_v55, %v8274_v22  ;;  %v4833_v7 = vadd.f32 %v4801_v60, %v8524_v42 }
 0x8db   : > { %4849 = vst.msk [vmem:[%s8268_s20 + $0x78] sm:$0xff] %vm204_vm0, %v4817_v41  ;;  %4850 = vst.msk [vmem:[%s8268_s20 + $0x80] sm:$0xff] %vm204_vm0, %v4818_v23 }
 0x8dc   : > { %4851 = vst.msk [vmem:[%s8268_s20 + $0x88] sm:$0xff] %vm204_vm0, %v4819_v14  ;;  %4852 = vst.msk [vmem:[%s8268_s20 + $0x90] sm:$0xff] %vm204_vm0, %v4820_v8 }
 0x8dd   : > { %4853 = vst.msk [vmem:[%s8268_s20 + $0x98] sm:$0xff] %vm204_vm0, %v4821_v39  ;;  %4854 = vst.msk [vmem:[%s8268_s20 + $0xa0] sm:$0xff] %vm204_vm0, %v4822_v34 }
 0x8de   : > { %4855 = vst.msk [vmem:[%s8268_s20 + $0xa8] sm:$0xff] %vm204_vm0, %v4823_v37  ;;  %4856 = vst.msk [vmem:[%s8268_s20 + $0xb0] sm:$0xff] %vm204_vm0, %v4824_v4 }
 0x8df   : > { %4857 = vst.msk [vmem:[%s8268_s20 + $0xb8] sm:$0xff] %vm204_vm0, %v4825_v59  ;;  %4858 = vst.msk [vmem:[%s8268_s20 + $0xc0] sm:$0xff] %vm204_vm0, %v4826_v45 }
 0x8e0   : > { %4859 = vst.msk [vmem:[%s8268_s20 + $0xc8] sm:$0xff] %vm204_vm0, %v4827_v46  ;;  %4860 = vst.msk [vmem:[%s8268_s20 + $0xd0] sm:$0xff] %vm204_vm0, %v4828_v49 }
 0x8e1   : > { %4861 = vst.msk [vmem:[%s8268_s20 + $0xd8] sm:$0xff] %vm204_vm0, %v4829_v54  ;;  %4862 = vst.msk [vmem:[%s8268_s20 + $0xe0] sm:$0xff] %vm204_vm0, %v4830_v5 }
 0x8e2   : > { %4863 = vst.msk [vmem:[%s8268_s20 + $0xe8] sm:$0xff] %vm204_vm0, %v4831_v44  ;;  %4864 = vst.msk [vmem:[%s8268_s20 + $0xf0] sm:$0xff] %vm204_vm0, %v4832_v36 }
 0x8e3   : > { %4865 = vst.msk [vmem:[%s8268_s20 + $0xf8] sm:$0xff] %vm204_vm0, %v4833_v7 }
 0x8e4 PF: > { %s13_s12 = sadd.s32 1, %s5357_s12  }
 0x8e5   : > { %p10_p4 = scmp.ge.s32.totalorder %s13_s12, 4  }
 0x8e7   :  { %12 = sbr.rel (!%p10_p4) target bundleno = 1 (0x1), region = 66 }

</bundles_post_ra>
